<compile_context>
chip_gen: v5e
topology: v5e:2x2
jax: 0.10.0
libtpu: 0.0.40
codegen_flags: <defaults>
</compile_context>

<pallas_src>
import jax
import jax.numpy as jnp
from jax import lax
from jax.experimental import pallas as pl
from jax.experimental.pallas import tpu as pltpu

N_EMBED = 384
NUM_HEADS = 6
HEAD_SIZE = N_EMBED // NUM_HEADS  # 64
LN_EPS = 1e-5
NEG_BIG = -1e30  # large finite negative (avoids NaN if a row were ever fully masked)


def _layernorm_f32(x, gamma, beta):
    mu = jnp.mean(x, axis=-1, keepdims=True)
    var = jnp.mean((x - mu) ** 2, axis=-1, keepdims=True)
    return (x - mu) * lax.rsqrt(var + LN_EPS) * gamma + beta


def block_kernel(x_ref,
                 ln1g_ref, ln1b_ref,
                 wqkv_ref, bqkv_ref,
                 wp_ref, bp_ref,
                 ln2g_ref, ln2b_ref,
                 w1_ref, b1_ref, w2_ref, b2_ref,
                 o_ref):
    Bb, T, C = x_ref.shape
    R = Bb * T

    # Fold (batch-block, seq) into one row axis so every large matmul sees
    # M = Bb*T rows instead of M = T.
    x = x_ref[...].astype(jnp.float32).reshape(R, C)

    # ---- LayerNorm 1 (f32 elementwise; v5e has no bf16 VPU/EUP) ----
    h16 = _layernorm_f32(x, ln1g_ref[0], ln1b_ref[0]).astype(jnp.bfloat16)

    # ---- Fused q|k|v projection: one (R,C) @ (C,3C) pass, lane-dense N=1152.
    # The attention scale C**-0.5 is already folded into the q block of
    # wqkv/bqkv (done on the host at init time).
    qkv = jnp.dot(h16, wqkv_ref[...], preferred_element_type=jnp.float32) + bqkv_ref[0]
    qkv16 = qkv.astype(jnp.bfloat16).reshape(Bb, T, 3 * C)
    q3 = qkv16[:, :, :C]          # lane offset 0
    k3 = qkv16[:, :, C:2 * C]     # lane offset 384
    v3 = qkv16[:, :, 2 * C:]      # lane offset 768

    # Additive causal mask, built once: 0 where allowed, -1e30 where masked.
    row = lax.broadcasted_iota(jnp.int32, (T, T), 0)
    col = lax.broadcasted_iota(jnp.int32, (T, T), 1)
    mask = jnp.where(col <= row, jnp.float32(0.0), jnp.float32(NEG_BIG))[None]  # (1,T,T)

    # ---- Per-head attention: bf16 operands, f32 accumulation, one softmax
    # chain per head.  Head outputs are concatenated so the output projection
    # is a single K=384 matmul.
    outs = []
    for hh in range(NUM_HEADS):
        sl = slice(hh * HEAD_SIZE, (hh + 1) * HEAD_SIZE)
        qh, kh, vh = q3[:, :, sl], k3[:, :, sl], v3[:, :, sl]
        s = jnp.einsum("bqd,bkd->bqk", qh, kh,
                       preferred_element_type=jnp.float32)          # (Bb, T, T) f32
        s = s + mask
        s = s - jnp.max(s, axis=-1, keepdims=True)
        p = jnp.exp(s)
        p = p * pl.reciprocal(jnp.sum(p, axis=-1, keepdims=True))    # exact division
        # TODO(synk): attention-weight dropout (p=0.2) skipped (eval mode).
        ho = jnp.einsum("bqk,bkd->bqd", p.astype(jnp.bfloat16), vh,
                        preferred_element_type=jnp.float32)          # (Bb, T, Dh)
        outs.append(ho.astype(jnp.bfloat16))
    ho_cat = jnp.concatenate(outs, axis=-1).reshape(R, C)            # (R, C) bf16

    # ---- Output projection: one (R,384) @ (384,384) matmul (K fully filled).
    attn = jnp.dot(ho_cat, wp_ref[...], preferred_element_type=jnp.float32) + bp_ref[0]
    # TODO(synk): projection dropout skipped (eval mode).
    x1 = x + attn

    # ---- LayerNorm 2 + FeedForward ----
    h2 = _layernorm_f32(x1, ln2g_ref[0], ln2b_ref[0]).astype(jnp.bfloat16)
    f = jnp.dot(h2, w1_ref[...], preferred_element_type=jnp.float32) + b1_ref[0]
    f = jnp.maximum(f, 0.0).astype(jnp.bfloat16)
    f = jnp.dot(f, w2_ref[...], preferred_element_type=jnp.float32) + b2_ref[0]
    # TODO(synk): FFW output dropout skipped (eval mode).

    o_ref[...] = (x1 + f).reshape(Bb, T, C).astype(o_ref.dtype)


def _tpu_kind():
    try:
        return jax.devices()[0].device_kind.lower()
    except Exception:
        return ""


def _pick_block_batch(B, T, target_rows=512, force_multi_step=False):
    """Largest divisor of B whose folded row count Bb*T is near target_rows.

    target_rows=512 amortizes the ~0.35us per-grid-step pipeline overhead and
    raises weight reuse per step.  On v7x (`force_multi_step`) we always keep
    >= 2 grid steps when B >= 2 so both TensorCores get work.
    """
    bb = max(1, min(B, max(1, target_rows // max(T, 1))))
    while B % bb:
        bb -= 1
    if B // bb == 1 and B > 1:
        half = B // 2
        while B % half:
            half -= 1
        # Split only if each half still fills an MXU pass -- except on v7x,
        # where an idle second TensorCore costs more than an under-filled M.
        if force_multi_step or half * T >= 128:
            bb = half
    return bb


@jax.jit
def block_forward(x, params):
    B, T, C = x.shape
    assert C == N_EMBED

    kind = _tpu_kind()
    is_v7 = ("v7" in kind) or ("tpu7" in kind)
    bb = _pick_block_batch(B, T, target_rows=512, force_multi_step=is_v7)

    # Generation-aware VMEM limit: v7x has 64 MiB physical VMEM per core,
    # v5e/v6e have 128 MiB.  Unknown chips keep the conservative default.
    if is_v7:
        vmem_limit = 48 * 1024 * 1024
    elif ("v5" in kind) or ("v6" in kind):
        vmem_limit = 96 * 1024 * 1024
    else:
        vmem_limit = None

    full = lambda shape: pl.BlockSpec(shape, lambda b: (0,) * len(shape))

    param_list = [
        params["ln1_g"], params["ln1_b"],
        params["wqkv"], params["bqkv"],
        params["wp"], params["bp"],
        params["ln2_g"], params["ln2_b"],
        params["w1"], params["b1"], params["w2"], params["b2"],
    ]
    in_specs = [pl.BlockSpec((bb, T, C), lambda b: (b, 0, 0))]
    in_specs += [full(p.shape) for p in param_list]

    return pl.pallas_call(
        block_kernel,
        out_shape=jax.ShapeDtypeStruct((B, T, C), x.dtype),
        grid_spec=pltpu.PrefetchScalarGridSpec(
            num_scalar_prefetch=0,
            grid=(B // bb,),
            in_specs=in_specs,
            out_specs=pl.BlockSpec((bb, T, C), lambda b: (b, 0, 0)),
        ),
        compiler_params=pltpu.CompilerParams(
            dimension_semantics=("parallel",),
            vmem_limit_bytes=vmem_limit,
        ),
    )(x, *param_list)


def init_params(key):
    ks = jax.random.split(key, 6)
    scale = 0.02
    C, H4 = N_EMBED, 4 * N_EMBED
    w = lambda k, shp: scale * jax.random.normal(k, shp, jnp.float32)
    attn_scale = C ** -0.5
    # Per-head q/k/v Linear(n_embed, head_size) weights concatenated column-wise
    # (head h = columns h*HEAD_SIZE:(h+1)*HEAD_SIZE), then q|k|v fused into one
    # (C, 3C) bf16 weight.  The attention scale C**-0.5 is folded into the q
    # block (weight AND bias), so neither kernel nor reference multiplies by it.
    wq = w(ks[0], (C, C)) * attn_scale
    wk = w(ks[1], (C, C))
    wv = w(ks[2], (C, C))
    wqkv = jnp.concatenate([wq, wk, wv], axis=1).astype(jnp.bfloat16)
    bqkv = jnp.zeros((1, 3 * C), jnp.float32)  # q third is pre-scaled too (zero here)
    return {
        "ln1_g": jnp.ones((1, C), jnp.float32),
        "ln1_b": jnp.zeros((1, C), jnp.float32),
        "wqkv": wqkv, "bqkv": bqkv,
        "wp": w(ks[3], (C, C)).astype(jnp.bfloat16),
        "bp": jnp.zeros((1, C), jnp.float32),
        "ln2_g": jnp.ones((1, C), jnp.float32),
        "ln2_b": jnp.zeros((1, C), jnp.float32),
        "w1": w(ks[4], (C, H4)).astype(jnp.bfloat16),
        "b1": jnp.zeros((1, H4), jnp.float32),
        "w2": w(ks[5], (H4, C)).astype(jnp.bfloat16),
        "b2": jnp.zeros((1, C), jnp.float32),
    }


def reference_forward(x, p):
    """Plain-JAX reference of the PyTorch Block forward (eval mode).

    Linear layers use the same bf16-operand / f32-accumulate precision as the
    kernel (the stored weights are bf16); the attention score/softmax/PV math
    is kept in f32 so the kernel's bf16 attention operands are checked against
    a higher-precision reference.
    """
    def ln(z, g, b):
        mu = jnp.mean(z, axis=-1, keepdims=True)
        var = jnp.mean((z - mu) ** 2, axis=-1, keepdims=True)
        return (z - mu) * lax.rsqrt(var + LN_EPS) * g[0] + b[0]

    def mm(a, w):
        return jnp.dot(a.astype(jnp.bfloat16), w, preferred_element_type=jnp.float32)

    B, T, C = x.shape
    h = ln(x, p["ln1_g"], p["ln1_b"])
    qkv = mm(h, p["wqkv"]) + p["bqkv"][0]
    # The C**-0.5 attention scale is pre-folded into the q block of wqkv/bqkv.
    q, k, v = qkv[..., :C], qkv[..., C:2 * C], qkv[..., 2 * C:]
    mask = jnp.tril(jnp.ones((T, T), bool))
    outs = []
    for hh in range(NUM_HEADS):
        sl = slice(hh * HEAD_SIZE, (hh + 1) * HEAD_SIZE)
        s = jnp.einsum("btd,bsd->bts", q[..., sl], k[..., sl])
        s = jnp.where(mask, s, -jnp.inf)
        w = jax.nn.softmax(s, axis=-1)
        outs.append(jnp.einsum("bts,bsd->btd", w, v[..., sl]))
    attn = mm(jnp.concatenate(outs, axis=-1), p["wp"]) + p["bp"][0]
    x1 = x + attn
    h2 = ln(x1, p["ln2_g"], p["ln2_b"])
    f = mm(jnp.maximum(mm(h2, p["w1"]) + p["b1"][0], 0.0), p["w2"]) + p["b2"][0]
    return x1 + f


if __name__ == "__main__":
    key = jax.random.PRNGKey(0)
    k_x, k_p = jax.random.split(key)

    B, T = 2, 8
    x = jax.random.normal(k_x, (B, T, N_EMBED), jnp.float32)
    params = init_params(k_p)

    out = jax.block_until_ready(block_forward(x, params))
    ref = reference_forward(x, params)

    assert out.shape == (B, T, N_EMBED)
    err = float(jnp.max(jnp.abs(out - ref)))
    # 3e-3 tolerance: the kernel runs the attention score / PV matmuls with
    # bf16 operands (f32 accumulation) while the reference keeps them in f32.
    assert jnp.allclose(out, ref, atol=3e-3, rtol=3e-3), \
        f"mismatch vs reference: max abs err {err:.3e}"

    print("KERNEL_OK")
</pallas_src>

<mosaic_0001>
module attributes {stable_mosaic.version = 11 : i64} {
  func.func @block_kernel(%arg0: i32, %arg1: memref<2x8x384xf32, #tpu.memory_space<vmem>>, %arg2: memref<1x384xf32, #tpu.memory_space<vmem>>, %arg3: memref<1x384xf32, #tpu.memory_space<vmem>>, %arg4: memref<384x1152xbf16, #tpu.memory_space<vmem>>, %arg5: memref<1x1152xf32, #tpu.memory_space<vmem>>, %arg6: memref<384x384xbf16, #tpu.memory_space<vmem>>, %arg7: memref<1x384xf32, #tpu.memory_space<vmem>>, %arg8: memref<1x384xf32, #tpu.memory_space<vmem>>, %arg9: memref<1x384xf32, #tpu.memory_space<vmem>>, %arg10: memref<384x1536xbf16, #tpu.memory_space<vmem>>, %arg11: memref<1x1536xf32, #tpu.memory_space<vmem>>, %arg12: memref<1536x384xbf16, #tpu.memory_space<vmem>>, %arg13: memref<1x384xf32, #tpu.memory_space<vmem>>, %arg14: memref<2x8x384xf32, #tpu.memory_space<vmem>>) attributes {dimension_semantics = [#tpu.dimension_semantics<parallel>], iteration_bounds = array<i64: 1>, scalar_prefetch = 0 : i64, scratch_operands = 0 : i64, tpu.core_type = #tpu.core_type<tc>, window_params = [{transform_indices = @transform_0, window_bounds = array<i64: 2, 8, 384>}, {pipeline_mode = #tpu.pipeline_mode<synchronous>, transform_indices = @transform_1, window_bounds = array<i64: 1, 384>}, {pipeline_mode = #tpu.pipeline_mode<synchronous>, transform_indices = @transform_2, window_bounds = array<i64: 1, 384>}, {pipeline_mode = #tpu.pipeline_mode<synchronous>, transform_indices = @transform_3, window_bounds = array<i64: 384, 1152>}, {pipeline_mode = #tpu.pipeline_mode<synchronous>, transform_indices = @transform_4, window_bounds = array<i64: 1, 1152>}, {pipeline_mode = #tpu.pipeline_mode<synchronous>, transform_indices = @transform_5, window_bounds = array<i64: 384, 384>}, {pipeline_mode = #tpu.pipeline_mode<synchronous>, transform_indices = @transform_6, window_bounds = array<i64: 1, 384>}, {pipeline_mode = #tpu.pipeline_mode<synchronous>, transform_indices = @transform_7, window_bounds = array<i64: 1, 384>}, {pipeline_mode = #tpu.pipeline_mode<synchronous>, transform_indices = @transform_8, window_bounds = array<i64: 1, 384>}, {pipeline_mode = #tpu.pipeline_mode<synchronous>, transform_indices = @transform_9, window_bounds = array<i64: 384, 1536>}, {pipeline_mode = #tpu.pipeline_mode<synchronous>, transform_indices = @transform_10, window_bounds = array<i64: 1, 1536>}, {pipeline_mode = #tpu.pipeline_mode<synchronous>, transform_indices = @transform_11, window_bounds = array<i64: 1536, 384>}, {pipeline_mode = #tpu.pipeline_mode<synchronous>, transform_indices = @transform_12, window_bounds = array<i64: 1, 384>}, {transform_indices = @transform_13, window_bounds = array<i64: 2, 8, 384>}]} {
    %c0 = arith.constant 0 : index
    %c0_0 = arith.constant 0 : index
    %c0_1 = arith.constant 0 : index
    %0 = vector.load %arg1[%c0, %c0_0, %c0_1] : memref<2x8x384xf32, #tpu.memory_space<vmem>>, vector<2x8x384xf32>
    %1 = vector.shape_cast %0 : vector<2x8x384xf32> to vector<16x384xf32>
    %c0_2 = arith.constant 0 : index
    %c0_3 = arith.constant 0 : index
    %2 = vector.load %arg2[%c0_2, %c0_3] : memref<1x384xf32, #tpu.memory_space<vmem>>, vector<1x384xf32>
    %3 = vector.shape_cast %2 : vector<1x384xf32> to vector<384xf32>
    %c0_4 = arith.constant 0 : index
    %c0_5 = arith.constant 0 : index
    %4 = vector.load %arg3[%c0_4, %c0_5] : memref<1x384xf32, #tpu.memory_space<vmem>>, vector<1x384xf32>
    %5 = vector.shape_cast %4 : vector<1x384xf32> to vector<384xf32>
    %cst = arith.constant dense<0.000000e+00> : vector<16xf32>
    %6 = vector.multi_reduction <add>, %1, %cst [1] : vector<16x384xf32> to vector<16xf32>
    %7 = vector.shape_cast %6 : vector<16xf32> to vector<16x1xf32>
    %cst_6 = arith.constant 3.840000e+02 : f32
    %8 = vector.broadcast %cst_6 : f32 to vector<16x1xf32>
    %9 = arith.divf %7, %8 : vector<16x1xf32>
    %10 = vector.broadcast %9 : vector<16x1xf32> to vector<16x384xf32>
    %11 = arith.subf %1, %10 : vector<16x384xf32>
    %12 = arith.mulf %11, %11 : vector<16x384xf32>
    %cst_7 = arith.constant dense<0.000000e+00> : vector<16xf32>
    %13 = vector.multi_reduction <add>, %12, %cst_7 [1] : vector<16x384xf32> to vector<16xf32>
    %14 = vector.shape_cast %13 : vector<16xf32> to vector<16x1xf32>
    %cst_8 = arith.constant 3.840000e+02 : f32
    %15 = vector.broadcast %cst_8 : f32 to vector<16x1xf32>
    %16 = arith.divf %14, %15 : vector<16x1xf32>
    %17 = vector.broadcast %9 : vector<16x1xf32> to vector<16x384xf32>
    %18 = arith.subf %1, %17 : vector<16x384xf32>
    %cst_9 = arith.constant 9.99999974E-6 : f32
    %19 = vector.broadcast %cst_9 : f32 to vector<16x1xf32>
    %20 = arith.addf %16, %19 : vector<16x1xf32>
    %21 = math.rsqrt %20 : vector<16x1xf32>
    %22 = vector.broadcast %21 : vector<16x1xf32> to vector<16x384xf32>
    %23 = arith.mulf %18, %22 : vector<16x384xf32>
    %24 = vector.shape_cast %3 : vector<384xf32> to vector<1x384xf32>
    %25 = vector.broadcast %24 : vector<1x384xf32> to vector<16x384xf32>
    %26 = arith.mulf %23, %25 : vector<16x384xf32>
    %27 = vector.shape_cast %5 : vector<384xf32> to vector<1x384xf32>
    %28 = vector.broadcast %27 : vector<1x384xf32> to vector<16x384xf32>
    %29 = arith.addf %26, %28 : vector<16x384xf32>
    %30 = arith.truncf %29 : vector<16x384xf32> to vector<16x384xbf16>
    %c0_10 = arith.constant 0 : index
    %c0_11 = arith.constant 0 : index
    %31 = vector.load %arg4[%c0_10, %c0_11] : memref<384x1152xbf16, #tpu.memory_space<vmem>>, vector<384x1152xbf16>
    %cst_12 = arith.constant dense<0.000000e+00> : vector<16x1152xf32>
    %32 = tpu.matmul %30, %31, %cst_12 {dimension_numbers = #tpu.dot_dimension_numbers<[1], [0], [0], [1], [0, 0, 1, 1], [], []>} : vector<16x384xbf16>, vector<384x1152xbf16>, vector<16x1152xf32> -> vector<16x1152xf32>
    %c0_13 = arith.constant 0 : index
    %c0_14 = arith.constant 0 : index
    %33 = vector.load %arg5[%c0_13, %c0_14] : memref<1x1152xf32, #tpu.memory_space<vmem>>, vector<1x1152xf32>
    %34 = vector.shape_cast %33 : vector<1x1152xf32> to vector<1152xf32>
    %35 = vector.shape_cast %34 : vector<1152xf32> to vector<1x1152xf32>
    %36 = vector.broadcast %35 : vector<1x1152xf32> to vector<16x1152xf32>
    %37 = arith.addf %32, %36 : vector<16x1152xf32>
    %38 = arith.truncf %37 : vector<16x1152xf32> to vector<16x1152xbf16>
    %39 = vector.shape_cast %38 : vector<16x1152xbf16> to vector<2x8x1152xbf16>
    %40 = vector.extract_strided_slice %39 {offsets = [0, 0, 0], sizes = [2, 8, 384], strides = [1, 1, 1]} : vector<2x8x1152xbf16> to vector<2x8x384xbf16>
    %41 = vector.extract_strided_slice %39 {offsets = [0, 0, 384], sizes = [2, 8, 384], strides = [1, 1, 1]} : vector<2x8x1152xbf16> to vector<2x8x384xbf16>
    %42 = vector.extract_strided_slice %39 {offsets = [0, 0, 768], sizes = [2, 8, 384], strides = [1, 1, 1]} : vector<2x8x1152xbf16> to vector<2x8x384xbf16>
    %43 = tpu.iota {dimensions = array<i32: 0>} : vector<8x8xi32>
    %44 = tpu.iota {dimensions = array<i32: 1>} : vector<8x8xi32>
    %45 = arith.cmpi sle, %44, %43 : vector<8x8xi32>
    %cst_15 = arith.constant 0.000000e+00 : f32
    %cst_16 = arith.constant -1.000000e+30 : f32
    %46 = vector.broadcast %cst_15 : f32 to vector<8x8xf32>
    %47 = vector.broadcast %cst_16 : f32 to vector<8x8xf32>
    %48 = arith.select %45, %46, %47 : vector<8x8xi1>, vector<8x8xf32>
    %49 = vector.shape_cast %48 : vector<8x8xf32> to vector<1x8x8xf32>
    %50 = vector.extract_strided_slice %40 {offsets = [0, 0, 0], sizes = [2, 8, 64], strides = [1, 1, 1]} : vector<2x8x384xbf16> to vector<2x8x64xbf16>
    %51 = vector.extract_strided_slice %41 {offsets = [0, 0, 0], sizes = [2, 8, 64], strides = [1, 1, 1]} : vector<2x8x384xbf16> to vector<2x8x64xbf16>
    %52 = vector.extract_strided_slice %42 {offsets = [0, 0, 0], sizes = [2, 8, 64], strides = [1, 1, 1]} : vector<2x8x384xbf16> to vector<2x8x64xbf16>
    "tpu.trace_start"() <{level = 10 : i32, message = "bqd,bkd->bqk"}> : () -> ()
    %cst_17 = arith.constant dense<0.000000e+00> : vector<2x8x8xf32>
    %53 = tpu.matmul %50, %51, %cst_17 {dimension_numbers = #tpu.dot_dimension_numbers<[2], [2], [1], [1], [0, 0, 0, 1, 1, 1], [0], [0]>} : vector<2x8x64xbf16>, vector<2x8x64xbf16>, vector<2x8x8xf32> -> vector<2x8x8xf32>
    "tpu.trace_stop"() : () -> ()
    %54 = vector.broadcast %49 : vector<1x8x8xf32> to vector<2x8x8xf32>
    %55 = arith.addf %53, %54 : vector<2x8x8xf32>
    %cst_18 = arith.constant dense<0xFF800000> : vector<2x8xf32>
    %56 = vector.multi_reduction <maximumf>, %55, %cst_18 [2] : vector<2x8x8xf32> to vector<2x8xf32>
    %57 = vector.shape_cast %56 : vector<2x8xf32> to vector<2x8x1xf32>
    %58 = vector.broadcast %57 : vector<2x8x1xf32> to vector<2x8x8xf32>
    %59 = arith.subf %55, %58 : vector<2x8x8xf32>
    %60 = math.exp %59 : vector<2x8x8xf32>
    %cst_19 = arith.constant dense<0.000000e+00> : vector<2x8xf32>
    %61 = vector.multi_reduction <add>, %60, %cst_19 [2] : vector<2x8x8xf32> to vector<2x8xf32>
    %62 = vector.shape_cast %61 : vector<2x8xf32> to vector<2x8x1xf32>
    %63 = tpu.reciprocal %62 : vector<2x8x1xf32> -> vector<2x8x1xf32>
    %64 = vector.broadcast %63 : vector<2x8x1xf32> to vector<2x8x8xf32>
    %65 = arith.mulf %60, %64 : vector<2x8x8xf32>
    %66 = arith.truncf %65 : vector<2x8x8xf32> to vector<2x8x8xbf16>
    "tpu.trace_start"() <{level = 10 : i32, message = "bqk,bkd->bqd"}> : () -> ()
    %cst_20 = arith.constant dense<0.000000e+00> : vector<2x8x64xf32>
    %67 = tpu.matmul %66, %52, %cst_20 {dimension_numbers = #tpu.dot_dimension_numbers<[2], [1], [1], [2], [0, 0, 0, 1, 1, 2], [0], [0]>} : vector<2x8x8xbf16>, vector<2x8x64xbf16>, vector<2x8x64xf32> -> vector<2x8x64xf32>
    "tpu.trace_stop"() : () -> ()
    %68 = arith.truncf %67 : vector<2x8x64xf32> to vector<2x8x64xbf16>
    %69 = vector.extract_strided_slice %40 {offsets = [0, 0, 64], sizes = [2, 8, 64], strides = [1, 1, 1]} : vector<2x8x384xbf16> to vector<2x8x64xbf16>
    %70 = vector.extract_strided_slice %41 {offsets = [0, 0, 64], sizes = [2, 8, 64], strides = [1, 1, 1]} : vector<2x8x384xbf16> to vector<2x8x64xbf16>
    %71 = vector.extract_strided_slice %42 {offsets = [0, 0, 64], sizes = [2, 8, 64], strides = [1, 1, 1]} : vector<2x8x384xbf16> to vector<2x8x64xbf16>
    "tpu.trace_start"() <{level = 10 : i32, message = "bqd,bkd->bqk"}> : () -> ()
    %cst_21 = arith.constant dense<0.000000e+00> : vector<2x8x8xf32>
    %72 = tpu.matmul %69, %70, %cst_21 {dimension_numbers = #tpu.dot_dimension_numbers<[2], [2], [1], [1], [0, 0, 0, 1, 1, 1], [0], [0]>} : vector<2x8x64xbf16>, vector<2x8x64xbf16>, vector<2x8x8xf32> -> vector<2x8x8xf32>
    "tpu.trace_stop"() : () -> ()
    %73 = vector.broadcast %49 : vector<1x8x8xf32> to vector<2x8x8xf32>
    %74 = arith.addf %72, %73 : vector<2x8x8xf32>
    %cst_22 = arith.constant dense<0xFF800000> : vector<2x8xf32>
    %75 = vector.multi_reduction <maximumf>, %74, %cst_22 [2] : vector<2x8x8xf32> to vector<2x8xf32>
    %76 = vector.shape_cast %75 : vector<2x8xf32> to vector<2x8x1xf32>
    %77 = vector.broadcast %76 : vector<2x8x1xf32> to vector<2x8x8xf32>
    %78 = arith.subf %74, %77 : vector<2x8x8xf32>
    %79 = math.exp %78 : vector<2x8x8xf32>
    %cst_23 = arith.constant dense<0.000000e+00> : vector<2x8xf32>
    %80 = vector.multi_reduction <add>, %79, %cst_23 [2] : vector<2x8x8xf32> to vector<2x8xf32>
    %81 = vector.shape_cast %80 : vector<2x8xf32> to vector<2x8x1xf32>
    %82 = tpu.reciprocal %81 : vector<2x8x1xf32> -> vector<2x8x1xf32>
    %83 = vector.broadcast %82 : vector<2x8x1xf32> to vector<2x8x8xf32>
    %84 = arith.mulf %79, %83 : vector<2x8x8xf32>
    %85 = arith.truncf %84 : vector<2x8x8xf32> to vector<2x8x8xbf16>
    "tpu.trace_start"() <{level = 10 : i32, message = "bqk,bkd->bqd"}> : () -> ()
    %cst_24 = arith.constant dense<0.000000e+00> : vector<2x8x64xf32>
    %86 = tpu.matmul %85, %71, %cst_24 {dimension_numbers = #tpu.dot_dimension_numbers<[2], [1], [1], [2], [0, 0, 0, 1, 1, 2], [0], [0]>} : vector<2x8x8xbf16>, vector<2x8x64xbf16>, vector<2x8x64xf32> -> vector<2x8x64xf32>
    "tpu.trace_stop"() : () -> ()
    %87 = arith.truncf %86 : vector<2x8x64xf32> to vector<2x8x64xbf16>
    %88 = vector.extract_strided_slice %40 {offsets = [0, 0, 128], sizes = [2, 8, 64], strides = [1, 1, 1]} : vector<2x8x384xbf16> to vector<2x8x64xbf16>
    %89 = vector.extract_strided_slice %41 {offsets = [0, 0, 128], sizes = [2, 8, 64], strides = [1, 1, 1]} : vector<2x8x384xbf16> to vector<2x8x64xbf16>
    %90 = vector.extract_strided_slice %42 {offsets = [0, 0, 128], sizes = [2, 8, 64], strides = [1, 1, 1]} : vector<2x8x384xbf16> to vector<2x8x64xbf16>
    "tpu.trace_start"() <{level = 10 : i32, message = "bqd,bkd->bqk"}> : () -> ()
    %cst_25 = arith.constant dense<0.000000e+00> : vector<2x8x8xf32>
    %91 = tpu.matmul %88, %89, %cst_25 {dimension_numbers = #tpu.dot_dimension_numbers<[2], [2], [1], [1], [0, 0, 0, 1, 1, 1], [0], [0]>} : vector<2x8x64xbf16>, vector<2x8x64xbf16>, vector<2x8x8xf32> -> vector<2x8x8xf32>
    "tpu.trace_stop"() : () -> ()
    %92 = vector.broadcast %49 : vector<1x8x8xf32> to vector<2x8x8xf32>
    %93 = arith.addf %91, %92 : vector<2x8x8xf32>
    %cst_26 = arith.constant dense<0xFF800000> : vector<2x8xf32>
    %94 = vector.multi_reduction <maximumf>, %93, %cst_26 [2] : vector<2x8x8xf32> to vector<2x8xf32>
    %95 = vector.shape_cast %94 : vector<2x8xf32> to vector<2x8x1xf32>
    %96 = vector.broadcast %95 : vector<2x8x1xf32> to vector<2x8x8xf32>
    %97 = arith.subf %93, %96 : vector<2x8x8xf32>
    %98 = math.exp %97 : vector<2x8x8xf32>
    %cst_27 = arith.constant dense<0.000000e+00> : vector<2x8xf32>
    %99 = vector.multi_reduction <add>, %98, %cst_27 [2] : vector<2x8x8xf32> to vector<2x8xf32>
    %100 = vector.shape_cast %99 : vector<2x8xf32> to vector<2x8x1xf32>
    %101 = tpu.reciprocal %100 : vector<2x8x1xf32> -> vector<2x8x1xf32>
    %102 = vector.broadcast %101 : vector<2x8x1xf32> to vector<2x8x8xf32>
    %103 = arith.mulf %98, %102 : vector<2x8x8xf32>
    %104 = arith.truncf %103 : vector<2x8x8xf32> to vector<2x8x8xbf16>
    "tpu.trace_start"() <{level = 10 : i32, message = "bqk,bkd->bqd"}> : () -> ()
    %cst_28 = arith.constant dense<0.000000e+00> : vector<2x8x64xf32>
    %105 = tpu.matmul %104, %90, %cst_28 {dimension_numbers = #tpu.dot_dimension_numbers<[2], [1], [1], [2], [0, 0, 0, 1, 1, 2], [0], [0]>} : vector<2x8x8xbf16>, vector<2x8x64xbf16>, vector<2x8x64xf32> -> vector<2x8x64xf32>
    "tpu.trace_stop"() : () -> ()
    %106 = arith.truncf %105 : vector<2x8x64xf32> to vector<2x8x64xbf16>
    %107 = vector.extract_strided_slice %40 {offsets = [0, 0, 192], sizes = [2, 8, 64], strides = [1, 1, 1]} : vector<2x8x384xbf16> to vector<2x8x64xbf16>
    %108 = vector.extract_strided_slice %41 {offsets = [0, 0, 192], sizes = [2, 8, 64], strides = [1, 1, 1]} : vector<2x8x384xbf16> to vector<2x8x64xbf16>
    %109 = vector.extract_strided_slice %42 {offsets = [0, 0, 192], sizes = [2, 8, 64], strides = [1, 1, 1]} : vector<2x8x384xbf16> to vector<2x8x64xbf16>
    "tpu.trace_start"() <{level = 10 : i32, message = "bqd,bkd->bqk"}> : () -> ()
    %cst_29 = arith.constant dense<0.000000e+00> : vector<2x8x8xf32>
    %110 = tpu.matmul %107, %108, %cst_29 {dimension_numbers = #tpu.dot_dimension_numbers<[2], [2], [1], [1], [0, 0, 0, 1, 1, 1], [0], [0]>} : vector<2x8x64xbf16>, vector<2x8x64xbf16>, vector<2x8x8xf32> -> vector<2x8x8xf32>
    "tpu.trace_stop"() : () -> ()
    %111 = vector.broadcast %49 : vector<1x8x8xf32> to vector<2x8x8xf32>
    %112 = arith.addf %110, %111 : vector<2x8x8xf32>
    %cst_30 = arith.constant dense<0xFF800000> : vector<2x8xf32>
    %113 = vector.multi_reduction <maximumf>, %112, %cst_30 [2] : vector<2x8x8xf32> to vector<2x8xf32>
    %114 = vector.shape_cast %113 : vector<2x8xf32> to vector<2x8x1xf32>
    %115 = vector.broadcast %114 : vector<2x8x1xf32> to vector<2x8x8xf32>
    %116 = arith.subf %112, %115 : vector<2x8x8xf32>
    %117 = math.exp %116 : vector<2x8x8xf32>
    %cst_31 = arith.constant dense<0.000000e+00> : vector<2x8xf32>
    %118 = vector.multi_reduction <add>, %117, %cst_31 [2] : vector<2x8x8xf32> to vector<2x8xf32>
    %119 = vector.shape_cast %118 : vector<2x8xf32> to vector<2x8x1xf32>
    %120 = tpu.reciprocal %119 : vector<2x8x1xf32> -> vector<2x8x1xf32>
    %121 = vector.broadcast %120 : vector<2x8x1xf32> to vector<2x8x8xf32>
    %122 = arith.mulf %117, %121 : vector<2x8x8xf32>
    %123 = arith.truncf %122 : vector<2x8x8xf32> to vector<2x8x8xbf16>
    "tpu.trace_start"() <{level = 10 : i32, message = "bqk,bkd->bqd"}> : () -> ()
    %cst_32 = arith.constant dense<0.000000e+00> : vector<2x8x64xf32>
    %124 = tpu.matmul %123, %109, %cst_32 {dimension_numbers = #tpu.dot_dimension_numbers<[2], [1], [1], [2], [0, 0, 0, 1, 1, 2], [0], [0]>} : vector<2x8x8xbf16>, vector<2x8x64xbf16>, vector<2x8x64xf32> -> vector<2x8x64xf32>
    "tpu.trace_stop"() : () -> ()
    %125 = arith.truncf %124 : vector<2x8x64xf32> to vector<2x8x64xbf16>
    %126 = vector.extract_strided_slice %40 {offsets = [0, 0, 256], sizes = [2, 8, 64], strides = [1, 1, 1]} : vector<2x8x384xbf16> to vector<2x8x64xbf16>
    %127 = vector.extract_strided_slice %41 {offsets = [0, 0, 256], sizes = [2, 8, 64], strides = [1, 1, 1]} : vector<2x8x384xbf16> to vector<2x8x64xbf16>
    %128 = vector.extract_strided_slice %42 {offsets = [0, 0, 256], sizes = [2, 8, 64], strides = [1, 1, 1]} : vector<2x8x384xbf16> to vector<2x8x64xbf16>
    "tpu.trace_start"() <{level = 10 : i32, message = "bqd,bkd->bqk"}> : () -> ()
    %cst_33 = arith.constant dense<0.000000e+00> : vector<2x8x8xf32>
    %129 = tpu.matmul %126, %127, %cst_33 {dimension_numbers = #tpu.dot_dimension_numbers<[2], [2], [1], [1], [0, 0, 0, 1, 1, 1], [0], [0]>} : vector<2x8x64xbf16>, vector<2x8x64xbf16>, vector<2x8x8xf32> -> vector<2x8x8xf32>
    "tpu.trace_stop"() : () -> ()
    %130 = vector.broadcast %49 : vector<1x8x8xf32> to vector<2x8x8xf32>
    %131 = arith.addf %129, %130 : vector<2x8x8xf32>
    %cst_34 = arith.constant dense<0xFF800000> : vector<2x8xf32>
    %132 = vector.multi_reduction <maximumf>, %131, %cst_34 [2] : vector<2x8x8xf32> to vector<2x8xf32>
    %133 = vector.shape_cast %132 : vector<2x8xf32> to vector<2x8x1xf32>
    %134 = vector.broadcast %133 : vector<2x8x1xf32> to vector<2x8x8xf32>
    %135 = arith.subf %131, %134 : vector<2x8x8xf32>
    %136 = math.exp %135 : vector<2x8x8xf32>
    %cst_35 = arith.constant dense<0.000000e+00> : vector<2x8xf32>
    %137 = vector.multi_reduction <add>, %136, %cst_35 [2] : vector<2x8x8xf32> to vector<2x8xf32>
    %138 = vector.shape_cast %137 : vector<2x8xf32> to vector<2x8x1xf32>
    %139 = tpu.reciprocal %138 : vector<2x8x1xf32> -> vector<2x8x1xf32>
    %140 = vector.broadcast %139 : vector<2x8x1xf32> to vector<2x8x8xf32>
    %141 = arith.mulf %136, %140 : vector<2x8x8xf32>
    %142 = arith.truncf %141 : vector<2x8x8xf32> to vector<2x8x8xbf16>
    "tpu.trace_start"() <{level = 10 : i32, message = "bqk,bkd->bqd"}> : () -> ()
    %cst_36 = arith.constant dense<0.000000e+00> : vector<2x8x64xf32>
    %143 = tpu.matmul %142, %128, %cst_36 {dimension_numbers = #tpu.dot_dimension_numbers<[2], [1], [1], [2], [0, 0, 0, 1, 1, 2], [0], [0]>} : vector<2x8x8xbf16>, vector<2x8x64xbf16>, vector<2x8x64xf32> -> vector<2x8x64xf32>
    "tpu.trace_stop"() : () -> ()
    %144 = arith.truncf %143 : vector<2x8x64xf32> to vector<2x8x64xbf16>
    %145 = vector.extract_strided_slice %40 {offsets = [0, 0, 320], sizes = [2, 8, 64], strides = [1, 1, 1]} : vector<2x8x384xbf16> to vector<2x8x64xbf16>
    %146 = vector.extract_strided_slice %41 {offsets = [0, 0, 320], sizes = [2, 8, 64], strides = [1, 1, 1]} : vector<2x8x384xbf16> to vector<2x8x64xbf16>
    %147 = vector.extract_strided_slice %42 {offsets = [0, 0, 320], sizes = [2, 8, 64], strides = [1, 1, 1]} : vector<2x8x384xbf16> to vector<2x8x64xbf16>
    "tpu.trace_start"() <{level = 10 : i32, message = "bqd,bkd->bqk"}> : () -> ()
    %cst_37 = arith.constant dense<0.000000e+00> : vector<2x8x8xf32>
    %148 = tpu.matmul %145, %146, %cst_37 {dimension_numbers = #tpu.dot_dimension_numbers<[2], [2], [1], [1], [0, 0, 0, 1, 1, 1], [0], [0]>} : vector<2x8x64xbf16>, vector<2x8x64xbf16>, vector<2x8x8xf32> -> vector<2x8x8xf32>
    "tpu.trace_stop"() : () -> ()
    %149 = vector.broadcast %49 : vector<1x8x8xf32> to vector<2x8x8xf32>
    %150 = arith.addf %148, %149 : vector<2x8x8xf32>
    %cst_38 = arith.constant dense<0xFF800000> : vector<2x8xf32>
    %151 = vector.multi_reduction <maximumf>, %150, %cst_38 [2] : vector<2x8x8xf32> to vector<2x8xf32>
    %152 = vector.shape_cast %151 : vector<2x8xf32> to vector<2x8x1xf32>
    %153 = vector.broadcast %152 : vector<2x8x1xf32> to vector<2x8x8xf32>
    %154 = arith.subf %150, %153 : vector<2x8x8xf32>
    %155 = math.exp %154 : vector<2x8x8xf32>
    %cst_39 = arith.constant dense<0.000000e+00> : vector<2x8xf32>
    %156 = vector.multi_reduction <add>, %155, %cst_39 [2] : vector<2x8x8xf32> to vector<2x8xf32>
    %157 = vector.shape_cast %156 : vector<2x8xf32> to vector<2x8x1xf32>
    %158 = tpu.reciprocal %157 : vector<2x8x1xf32> -> vector<2x8x1xf32>
    %159 = vector.broadcast %158 : vector<2x8x1xf32> to vector<2x8x8xf32>
    %160 = arith.mulf %155, %159 : vector<2x8x8xf32>
    %161 = arith.truncf %160 : vector<2x8x8xf32> to vector<2x8x8xbf16>
    "tpu.trace_start"() <{level = 10 : i32, message = "bqk,bkd->bqd"}> : () -> ()
    %cst_40 = arith.constant dense<0.000000e+00> : vector<2x8x64xf32>
    %162 = tpu.matmul %161, %147, %cst_40 {dimension_numbers = #tpu.dot_dimension_numbers<[2], [1], [1], [2], [0, 0, 0, 1, 1, 2], [0], [0]>} : vector<2x8x8xbf16>, vector<2x8x64xbf16>, vector<2x8x64xf32> -> vector<2x8x64xf32>
    "tpu.trace_stop"() : () -> ()
    %163 = arith.truncf %162 : vector<2x8x64xf32> to vector<2x8x64xbf16>
    %164 = tpu.concatenate %68, %87, %106, %125, %144, %163 in 2 : vector<2x8x64xbf16>, vector<2x8x64xbf16>, vector<2x8x64xbf16>, vector<2x8x64xbf16>, vector<2x8x64xbf16>, vector<2x8x64xbf16> -> vector<2x8x384xbf16>
    %165 = vector.shape_cast %164 : vector<2x8x384xbf16> to vector<16x384xbf16>
    %c0_41 = arith.constant 0 : index
    %c0_42 = arith.constant 0 : index
    %166 = vector.load %arg6[%c0_41, %c0_42] : memref<384x384xbf16, #tpu.memory_space<vmem>>, vector<384x384xbf16>
    %cst_43 = arith.constant dense<0.000000e+00> : vector<16x384xf32>
    %167 = tpu.matmul %165, %166, %cst_43 {dimension_numbers = #tpu.dot_dimension_numbers<[1], [0], [0], [1], [0, 0, 1, 1], [], []>} : vector<16x384xbf16>, vector<384x384xbf16>, vector<16x384xf32> -> vector<16x384xf32>
    %c0_44 = arith.constant 0 : index
    %c0_45 = arith.constant 0 : index
    %168 = vector.load %arg7[%c0_44, %c0_45] : memref<1x384xf32, #tpu.memory_space<vmem>>, vector<1x384xf32>
    %169 = vector.shape_cast %168 : vector<1x384xf32> to vector<384xf32>
    %170 = vector.shape_cast %169 : vector<384xf32> to vector<1x384xf32>
    %171 = vector.broadcast %170 : vector<1x384xf32> to vector<16x384xf32>
    %172 = arith.addf %167, %171 : vector<16x384xf32>
    %173 = arith.addf %1, %172 : vector<16x384xf32>
    %c0_46 = arith.constant 0 : index
    %c0_47 = arith.constant 0 : index
    %174 = vector.load %arg8[%c0_46, %c0_47] : memref<1x384xf32, #tpu.memory_space<vmem>>, vector<1x384xf32>
    %175 = vector.shape_cast %174 : vector<1x384xf32> to vector<384xf32>
    %c0_48 = arith.constant 0 : index
    %c0_49 = arith.constant 0 : index
    %176 = vector.load %arg9[%c0_48, %c0_49] : memref<1x384xf32, #tpu.memory_space<vmem>>, vector<1x384xf32>
    %177 = vector.shape_cast %176 : vector<1x384xf32> to vector<384xf32>
    %cst_50 = arith.constant dense<0.000000e+00> : vector<16xf32>
    %178 = vector.multi_reduction <add>, %173, %cst_50 [1] : vector<16x384xf32> to vector<16xf32>
    %179 = vector.shape_cast %178 : vector<16xf32> to vector<16x1xf32>
    %cst_51 = arith.constant 3.840000e+02 : f32
    %180 = vector.broadcast %cst_51 : f32 to vector<16x1xf32>
    %181 = arith.divf %179, %180 : vector<16x1xf32>
    %182 = vector.broadcast %181 : vector<16x1xf32> to vector<16x384xf32>
    %183 = arith.subf %173, %182 : vector<16x384xf32>
    %184 = arith.mulf %183, %183 : vector<16x384xf32>
    %cst_52 = arith.constant dense<0.000000e+00> : vector<16xf32>
    %185 = vector.multi_reduction <add>, %184, %cst_52 [1] : vector<16x384xf32> to vector<16xf32>
    %186 = vector.shape_cast %185 : vector<16xf32> to vector<16x1xf32>
    %cst_53 = arith.constant 3.840000e+02 : f32
    %187 = vector.broadcast %cst_53 : f32 to vector<16x1xf32>
    %188 = arith.divf %186, %187 : vector<16x1xf32>
    %189 = vector.broadcast %181 : vector<16x1xf32> to vector<16x384xf32>
    %190 = arith.subf %173, %189 : vector<16x384xf32>
    %cst_54 = arith.constant 9.99999974E-6 : f32
    %191 = vector.broadcast %cst_54 : f32 to vector<16x1xf32>
    %192 = arith.addf %188, %191 : vector<16x1xf32>
    %193 = math.rsqrt %192 : vector<16x1xf32>
    %194 = vector.broadcast %193 : vector<16x1xf32> to vector<16x384xf32>
    %195 = arith.mulf %190, %194 : vector<16x384xf32>
    %196 = vector.shape_cast %175 : vector<384xf32> to vector<1x384xf32>
    %197 = vector.broadcast %196 : vector<1x384xf32> to vector<16x384xf32>
    %198 = arith.mulf %195, %197 : vector<16x384xf32>
    %199 = vector.shape_cast %177 : vector<384xf32> to vector<1x384xf32>
    %200 = vector.broadcast %199 : vector<1x384xf32> to vector<16x384xf32>
    %201 = arith.addf %198, %200 : vector<16x384xf32>
    %202 = arith.truncf %201 : vector<16x384xf32> to vector<16x384xbf16>
    %c0_55 = arith.constant 0 : index
    %c0_56 = arith.constant 0 : index
    %203 = vector.load %arg10[%c0_55, %c0_56] : memref<384x1536xbf16, #tpu.memory_space<vmem>>, vector<384x1536xbf16>
    %cst_57 = arith.constant dense<0.000000e+00> : vector<16x1536xf32>
    %204 = tpu.matmul %202, %203, %cst_57 {dimension_numbers = #tpu.dot_dimension_numbers<[1], [0], [0], [1], [0, 0, 1, 1], [], []>} : vector<16x384xbf16>, vector<384x1536xbf16>, vector<16x1536xf32> -> vector<16x1536xf32>
    %c0_58 = arith.constant 0 : index
    %c0_59 = arith.constant 0 : index
    %205 = vector.load %arg11[%c0_58, %c0_59] : memref<1x1536xf32, #tpu.memory_space<vmem>>, vector<1x1536xf32>
    %206 = vector.shape_cast %205 : vector<1x1536xf32> to vector<1536xf32>
    %207 = vector.shape_cast %206 : vector<1536xf32> to vector<1x1536xf32>
    %208 = vector.broadcast %207 : vector<1x1536xf32> to vector<16x1536xf32>
    %209 = arith.addf %204, %208 : vector<16x1536xf32>
    %cst_60 = arith.constant 0.000000e+00 : f32
    %210 = vector.broadcast %cst_60 : f32 to vector<16x1536xf32>
    %211 = arith.maximumf %209, %210 : vector<16x1536xf32>
    %212 = arith.truncf %211 : vector<16x1536xf32> to vector<16x1536xbf16>
    %c0_61 = arith.constant 0 : index
    %c0_62 = arith.constant 0 : index
    %213 = vector.load %arg12[%c0_61, %c0_62] : memref<1536x384xbf16, #tpu.memory_space<vmem>>, vector<1536x384xbf16>
    %cst_63 = arith.constant dense<0.000000e+00> : vector<16x384xf32>
    %214 = tpu.matmul %212, %213, %cst_63 {dimension_numbers = #tpu.dot_dimension_numbers<[1], [0], [0], [1], [0, 0, 1, 1], [], []>} : vector<16x1536xbf16>, vector<1536x384xbf16>, vector<16x384xf32> -> vector<16x384xf32>
    %c0_64 = arith.constant 0 : index
    %c0_65 = arith.constant 0 : index
    %215 = vector.load %arg13[%c0_64, %c0_65] : memref<1x384xf32, #tpu.memory_space<vmem>>, vector<1x384xf32>
    %216 = vector.shape_cast %215 : vector<1x384xf32> to vector<384xf32>
    %217 = vector.shape_cast %216 : vector<384xf32> to vector<1x384xf32>
    %218 = vector.broadcast %217 : vector<1x384xf32> to vector<16x384xf32>
    %219 = arith.addf %214, %218 : vector<16x384xf32>
    %220 = arith.addf %173, %219 : vector<16x384xf32>
    %221 = vector.shape_cast %220 : vector<16x384xf32> to vector<2x8x384xf32>
    %c0_66 = arith.constant 0 : index
    %c0_67 = arith.constant 0 : index
    %c0_68 = arith.constant 0 : index
    %222 = vector.load %arg14[%c0_66, %c0_67, %c0_68] : memref<2x8x384xf32, #tpu.memory_space<vmem>>, vector<2x8x384xf32>
    tpu.vector_store %arg14[%c0_66, %c0_67, %c0_68], %221 {strides = array<i32>} : memref<2x8x384xf32, #tpu.memory_space<vmem>>, vector<2x8x384xf32>,
    return
  }
  func.func @transform_0(%arg0: i32) -> (i32, i32, i32) {
    %c0_i32 = arith.constant 0 : i32
    %c0_i32_0 = arith.constant 0 : i32
    %c0_i32_1 = arith.constant 0 : i32
    return %arg0, %c0_i32, %c0_i32_0 : i32, i32, i32
  }
  func.func @transform_1(%arg0: i32) -> (i32, i32) {
    %c0_i32 = arith.constant 0 : i32
    %c0_i32_0 = arith.constant 0 : i32
    %c0_i32_1 = arith.constant 0 : i32
    return %c0_i32, %c0_i32_0 : i32, i32
  }
  func.func @transform_2(%arg0: i32) -> (i32, i32) {
    %c0_i32 = arith.constant 0 : i32
    %c0_i32_0 = arith.constant 0 : i32
    %c0_i32_1 = arith.constant 0 : i32
    return %c0_i32, %c0_i32_0 : i32, i32
  }
  func.func @transform_3(%arg0: i32) -> (i32, i32) {
    %c0_i32 = arith.constant 0 : i32
    %c0_i32_0 = arith.constant 0 : i32
    %c0_i32_1 = arith.constant 0 : i32
    return %c0_i32, %c0_i32_0 : i32, i32
  }
  func.func @transform_4(%arg0: i32) -> (i32, i32) {
    %c0_i32 = arith.constant 0 : i32
    %c0_i32_0 = arith.constant 0 : i32
    %c0_i32_1 = arith.constant 0 : i32
    return %c0_i32, %c0_i32_0 : i32, i32
  }
  func.func @transform_5(%arg0: i32) -> (i32, i32) {
    %c0_i32 = arith.constant 0 : i32
    %c0_i32_0 = arith.constant 0 : i32
    %c0_i32_1 = arith.constant 0 : i32
    return %c0_i32, %c0_i32_0 : i32, i32
  }
  func.func @transform_6(%arg0: i32) -> (i32, i32) {
    %c0_i32 = arith.constant 0 : i32
    %c0_i32_0 = arith.constant 0 : i32
    %c0_i32_1 = arith.constant 0 : i32
    return %c0_i32, %c0_i32_0 : i32, i32
  }
  func.func @transform_7(%arg0: i32) -> (i32, i32) {
    %c0_i32 = arith.constant 0 : i32
    %c0_i32_0 = arith.constant 0 : i32
    %c0_i32_1 = arith.constant 0 : i32
    return %c0_i32, %c0_i32_0 : i32, i32
  }
  func.func @transform_8(%arg0: i32) -> (i32, i32) {
    %c0_i32 = arith.constant 0 : i32
    %c0_i32_0 = arith.constant 0 : i32
    %c0_i32_1 = arith.constant 0 : i32
    return %c0_i32, %c0_i32_0 : i32, i32
  }
  func.func @transform_9(%arg0: i32) -> (i32, i32) {
    %c0_i32 = arith.constant 0 : i32
    %c0_i32_0 = arith.constant 0 : i32
    %c0_i32_1 = arith.constant 0 : i32
    return %c0_i32, %c0_i32_0 : i32, i32
  }
  func.func @transform_10(%arg0: i32) -> (i32, i32) {
    %c0_i32 = arith.constant 0 : i32
    %c0_i32_0 = arith.constant 0 : i32
    %c0_i32_1 = arith.constant 0 : i32
    return %c0_i32, %c0_i32_0 : i32, i32
  }
  func.func @transform_11(%arg0: i32) -> (i32, i32) {
    %c0_i32 = arith.constant 0 : i32
    %c0_i32_0 = arith.constant 0 : i32
    %c0_i32_1 = arith.constant 0 : i32
    return %c0_i32, %c0_i32_0 : i32, i32
  }
  func.func @transform_12(%arg0: i32) -> (i32, i32) {
    %c0_i32 = arith.constant 0 : i32
    %c0_i32_0 = arith.constant 0 : i32
    %c0_i32_1 = arith.constant 0 : i32
    return %c0_i32, %c0_i32_0 : i32, i32
  }
  func.func @transform_13(%arg0: i32) -> (i32, i32, i32) {
    %c0_i32 = arith.constant 0 : i32
    %c0_i32_0 = arith.constant 0 : i32
    %c0_i32_1 = arith.constant 0 : i32
    return %arg0, %c0_i32, %c0_i32_0 : i32, i32, i32
  }
}

</mosaic_0001>

<bundles_post_ra>
// kernel: block_forward.1
= control target key start
LH: loop header
LB: loop body
LE: loop exit
PB: predicated region body
PF: predicated region fallthrough
CT: control target
= control target key end

     0   :  { %18 = vsyncpa [#allocation3], 0  ;;  %s14203_s0 = inlined_call_operand.hbm [shape: f32[2,8,384], index: 0, kind: input, shape index: {}]   ;;  %s14204_s1 = inlined_call_operand.hbm [shape: f32[1,384], index: 1, kind: input, shape index: {}]   ;;  %s14205_s2 = inlined_call_operand.hbm [shape: f32[1,384], index: 2, kind: input, shape index: {}]   ;;  %s14206_s3 = inlined_call_operand.hbm [shape: bf16[384,1152], index: 3, kind: input, shape index: {}]   ;;  %s14207_s4 = inlined_call_operand.hbm [shape: f32[1,1152], index: 4, kind: input, shape index: {}]   ;;  %s14208_s5 = inlined_call_operand.hbm [shape: bf16[384,384], index: 5, kind: input, shape index: {}]   ;;  %s14209_s6 = inlined_call_operand.hbm [shape: f32[1,384], index: 6, kind: input, shape index: {}]   ;;  %s14210_s7 = inlined_call_operand.hbm [shape: f32[1,384], index: 7, kind: input, shape index: {}]   ;;  %s14211_s8 = inlined_call_operand.hbm [shape: f32[1,384], index: 8, kind: input, shape index: {}]   ;;  %s14212_s9 = inlined_call_operand.hbm [shape: bf16[384,1536], index: 9, kind: input, shape index: {}]   ;;  %s14213_s10 = inlined_call_operand.hbm [shape: f32[1,1536], index: 10, kind: input, shape index: {}]   ;;  %s14214_s11 = inlined_call_operand.hbm [shape: bf16[1536,384], index: 11, kind: input, shape index: {}]   ;;  %s14215_s12 = inlined_call_operand.hbm [shape: f32[1,384], index: 12, kind: input, shape index: {}]   ;;  %s14216_s13 = inlined_call_operand.hbm [shape: f32[2,8,384], index: 13, kind: output, shape index: {}]  }
   0x1   :  { %19 = vsyncpa [#allocation6], 0 }
   0x2   :  { %20 = vsyncpa [#allocation9], 0 }
   0x3   :  { %21 = vsyncpa [#allocation12], 0 }
   0x4   :  { %22 = vsyncpa [#allocation15], 0 }
   0x5   :  { %23 = vsyncpa [#allocation18], 0 }
   0x6   :  { %24 = vsyncpa [#allocation21], 0  ;;  %s44_s27 = sshll.u32 %s14204_s1, 4  ;;  %s45_s27 = int_to_ptr.hbm [resolvable:$true] %s44_s27 }
   0x7   :  { %25 = vsyncpa [#allocation4], 0  ;;  %s13277_s28 = smov [#allocation5]   ;;  %s65_s15 = sshll.u32 %s14206_s3, 4  ;;  %s66_s15 = int_to_ptr.hbm [resolvable:$true] %s65_s15 }
   0x8   :  { %s46_s29 = sshll.u32 %s13277_s28, 4  ;;  %s13278_s16 = smov [#allocation8]   ;;  %s47_s29 = int_to_ptr.vmem [resolvable:$true] %s46_s29 }
   0x9   :  { %49 = dma.hbm_to_vmem [thread:$0]  %s45_s27, 48, %s47_s29, [#allocation6]  }
   0xa   :  { %s67_s17 = sshll.u32 %s13278_s16, 4  ;;  %s13279_s18 = smov 576   ;;  %s68_s17 = int_to_ptr.vmem [resolvable:$true] %s67_s17 }
   0xb   :  { %s13280_s19 = smov 36   ;;  %s89_s1 = sshll.u32 %s14208_s5, 4  ;;  %s90_s1 = int_to_ptr.hbm [resolvable:$true] %s89_s1 }
   0xc   :  { %73 = dma.hbm_to_vmem [thread:$0]  %s66_s15, 27648, %s68_s17, [#allocation9], %s13279_s18, %s13279_s18, %s13280_s19  }
   0xd   :  { %s13281_s22 = smov [#allocation11]   ;;  %s114_s3 = sshll.u32 %s14210_s7, 4  ;;  %s115_s3 = int_to_ptr.hbm [resolvable:$true] %s114_s3 }
   0xe   :  { %s91_s23 = sshll.u32 %s13281_s22, 4  ;;  %s13282_s26 = smov 192   ;;  %s92_s23 = int_to_ptr.vmem [resolvable:$true] %s91_s23 }
   0xf   :  { %s13283_s27 = smov 12   ;;  %s13284_s28 = smov [#allocation14]  }
  0x10   :  { %97 = dma.hbm_to_vmem [thread:$0]  %s90_s1, 9216, %s92_s23, [#allocation12], %s13282_s26, %s13282_s26, %s13283_s27  }
  0x11   :  { %s116_s29 = sshll.u32 %s13284_s28, 4  ;;  %s135_s15 = sshll.u32 %s14212_s9, 4  ;;  %s117_s29 = int_to_ptr.vmem [resolvable:$true] %s116_s29  ;;  %s136_s15 = int_to_ptr.hbm [resolvable:$true] %s135_s15 }
  0x12   :  { %119 = dma.hbm_to_vmem [thread:$0]  %s115_s3, 48, %s117_s29, [#allocation15]  }
  0x13   :  { %s13285_s5 = smov [#allocation17]   ;;  %s159_s7 = sshll.u32 %s14214_s11, 4  ;;  %s160_s7 = int_to_ptr.hbm [resolvable:$true] %s159_s7 }
  0x14   :  { %s137_s16 = sshll.u32 %s13285_s5, 4  ;;  %s13286_s19 = smov 768   ;;  %s138_s16 = int_to_ptr.vmem [resolvable:$true] %s137_s16 }
  0x15   :  { %s13287_s20 = smov 48   ;;  %s13288_s21 = smov [#allocation20]  }
  0x16   :  { %143 = dma.hbm_to_vmem [thread:$0]  %s136_s15, 36864, %s138_s16, [#allocation18], %s13286_s19, %s13286_s19, %s13287_s20  }
  0x17   :  { %s161_s1 = sshll.u32 %s13288_s21, 4  ;;  %s30_s9 = sshll.u32 %s14203_s0, 4  ;;  %s162_s1 = int_to_ptr.vmem [resolvable:$true] %s161_s1  ;;  %s31_s9 = int_to_ptr.hbm [resolvable:$true] %s30_s9 }
  0x18   :  { %167 = dma.hbm_to_vmem [thread:$0]  %s160_s7, 36864, %s162_s1, [#allocation21], %s13282_s26, %s13282_s26, %s13283_s27  }
  0x19   :  { %s13289_s24 = smov [#allocation2]   ;;  %s55_s11 = sshll.u32 %s14205_s2, 4  ;;  %s56_s11 = int_to_ptr.hbm [resolvable:$true] %s55_s11 }
  0x1a   :  { %s32_s25 = sshll.u32 %s13289_s24, 4  ;;  %s13290_s29 = smov 384   ;;  %s33_s25 = int_to_ptr.vmem [resolvable:$true] %s32_s25 }
  0x1b   :  { %s13291_s30 = smov 24   ;;  %s13292_s14 = smov [#allocation7]  }
  0x1c   :  { %38 = dma.hbm_to_vmem [thread:$0]  %s31_s9, 768, %s33_s25, [#allocation3], %s13290_s29, %s13290_s29, %s13291_s30  }
  0x1d   :  { %s57_s15 = sshll.u32 %s13292_s14, 4  ;;  %s79_s26 = sshll.u32 %s14207_s4, 4  ;;  %s58_s15 = int_to_ptr.vmem [resolvable:$true] %s57_s15  ;;  %s80_s26 = int_to_ptr.hbm [resolvable:$true] %s79_s26 }
  0x1e   :  { %60 = dma.hbm_to_vmem [thread:$0]  %s56_s11, 48, %s58_s15, [#allocation6]  }
  0x1f   :  { %s103_s2 = sshll.u32 %s14209_s6, 4  ;;  %s13293_s17 = smov [#allocation10]   ;;  %s104_s2 = int_to_ptr.hbm [resolvable:$true] %s103_s2 }
  0x20   :  { %s81_s18 = sshll.u32 %s13293_s17, 4  ;;  %s13294_s7 = smov [#allocation13]   ;;  %s82_s18 = int_to_ptr.vmem [resolvable:$true] %s81_s18 }
  0x21   :  { %84 = dma.hbm_to_vmem [thread:$0]  %s80_s26, 144, %s82_s18, [#allocation9]  }
  0x22   :  { %s105_s19 = sshll.u32 %s13294_s7, 4  ;;  %s125_s1 = sshll.u32 %s14211_s8, 4  ;;  %s106_s19 = int_to_ptr.vmem [resolvable:$true] %s105_s19  ;;  %s126_s1 = int_to_ptr.hbm [resolvable:$true] %s125_s1 }
  0x23   :  { %108 = dma.hbm_to_vmem [thread:$0]  %s104_s2, 48, %s106_s19, [#allocation12]  }
  0x24   :  { %s149_s23 = sshll.u32 %s14213_s10, 4  ;;  %s13295_s9 = smov [#allocation16]   ;;  %s150_s23 = int_to_ptr.hbm [resolvable:$true] %s149_s23 }
  0x25   :  { %s127_s6 = sshll.u32 %s13295_s9, 4  ;;  %s13296_s24 = smov [#allocation19]   ;;  %s128_s6 = int_to_ptr.vmem [resolvable:$true] %s127_s6 }
  0x26   :  { %130 = dma.hbm_to_vmem [thread:$0]  %s126_s1, 48, %s128_s6, [#allocation15]  }
  0x27   :  { %s151_s25 = sshll.u32 %s13296_s24, 4  ;;  %s173_s11 = sshll.u32 %s14215_s12, 4  ;;  %s152_s25 = int_to_ptr.vmem [resolvable:$true] %s151_s25  ;;  %s174_s11 = int_to_ptr.hbm [resolvable:$true] %s173_s11 }
  0x28   :  { %154 = dma.hbm_to_vmem [thread:$0]  %s150_s23, 192, %s152_s25, [#allocation18]  }
  0x29   :  { %s13297_s8 = smov [#allocation22]  }
  0x2a   :  { %s175_s14 = sshll.u32 %s13297_s8, 4  ;;  %s176_s14 = int_to_ptr.vmem [resolvable:$true] %s175_s14 }
  0x2b   :  { %178 = dma.hbm_to_vmem [thread:$0]  %s174_s11, 48, %s176_s14, [#allocation21]  }
  0x2c   :  { %13261 = dma.done.wait [#allocation3], 768  }
  0x2d   :  { %13262 = vsyncadd [#allocation3], 4294966528 }
  0x2e   :  { %13263 = dma.done.wait [#allocation6], 96  }
  0x2f   :  { %13264 = vsyncadd [#allocation6], 4294967200 }
  0x30   :  { %13265 = dma.done.wait [#allocation9], 27792  }
  0x31   :  { %13266 = vsyncadd [#allocation9], 4294939504 }
  0x32   :  { %13267 = dma.done.wait [#allocation12], 9264  }
  0x33   :  { %13268 = vsyncadd [#allocation12], 4294958032 }
  0x34   :  { %13269 = dma.done.wait [#allocation15], 96  }
  0x35   :  { %13270 = vsyncadd [#allocation15], 4294967200 }
  0x36   :  { %13271 = dma.done.wait [#allocation18], 37056  }
  0x37   :  { %13272 = vsyncadd [#allocation18], 4294930240 }
  0x38   :  { %13273 = dma.done.wait [#allocation21], 36912  }
  0x39   :  { %13274 = vsyncadd [#allocation21], 4294930384  ;;  %v13414_v0 = vld [vmem:[#allocation2] sm:$0xff]  ;;  %v13416_v1 = vld [vmem:[#allocation2 + $0x8] sm:$0xff]  ;;  %v13298_v10 = vmov 384.0   ;;  %s13299_s10 = smov 64  }
  0x3a   :  { %v13418_v2 = vld [vmem:[#allocation2 + $0x10] sm:$0xff]  ;;  %v240_v3 = vadd.f32 %v13416_v1, %v13414_v0  ;;  %v13422_v4 = vld [vmem:[#allocation2 + $0x18] sm:$0xff]  ;;  %v13424_v5 = vld [vmem:[#allocation2 + $0x20] sm:$0xff]  ;;  %12861 = vrcp.f32 %v13298_v10  ;;  %vm2098_vm7 = vcmask 523264   ;;  %vm2193_vm8 = vcmask 1043456   ;;  %s13301_s12 = smov [#allocation23]  }
  0x3b   :  { %v244_v7 = vadd.f32 %v13424_v5, %v13422_v4  ;;  %v13429_v8 = vld [vmem:[#allocation2 + $0x28] sm:$0xff]  ;;  %v8745_v14 = vld [vmem:[#allocation8 + $0x1f8] sm:$0xf]  ;;  %v12038_v15 = vld [vmem:[#allocation8 + $0x218] sm:$0xf0]  ;;  %vm2139_vm10 = vcmask 64512  }
  0x3c   :  { %v241_v6 = vadd.f32 %v240_v3, %v13418_v2  ;;  %v9033_v16 = vld [vmem:[#allocation8 + $0x438] sm:$0xf]  ;;  %v8746_v17 = vor.u32 %v12038_v15, %v8745_v14  ;;  %v12110_v18 = vld [vmem:[#allocation8 + $0x458] sm:$0xf0]  ;;  %v8747_v24 = vld [vmem:[#allocation8 + $0x21c] sm:$0xf0] }
  0x3d   :  { %v245_v9 = vadd.f32 %v244_v7, %v13429_v8  ;;  %v9321_v19 = vld [vmem:[#allocation8 + $0x678] sm:$0xf]  ;;  %v12182_v20 = vld [vmem:[#allocation8 + $0x698] sm:$0xf0]  ;;  %v9034_v21 = vor.u32 %v12110_v18, %v9033_v16  ;;  %v8709_v25 = vld [vmem:[#allocation8 + $0x1b0] sm:$0xf] }
  0x3e   :  { %242 = vadd.xlane.f32.xlu0 %v241_v6  ;;  %v9322_v22 = vor.u32 %v12182_v20, %v9321_v19  ;;  %v12034_v23 = vld [vmem:[#allocation8 + $0x1fc] sm:$0xf]  ;;  %1702 = vmatpush.bf16.msra.mxu0 %v8746_v17  ;;  %v12029_v28 = vld [vmem:[#allocation8 + $0x1d0] sm:$0xf0]  ;;  %v8997_v29 = vld [vmem:[#allocation8 + $0x3f0] sm:$0xf] }
  0x3f   :  { %v8750_v27 = vor.u32 %v12034_v23, %v8747_v24  ;;  %v12101_v30 = vld [vmem:[#allocation8 + $0x410] sm:$0xf0]  ;;  %1716 = vmatpush.bf16.msra.mxu1 %v9034_v21  ;;  %v8710_v31 = vor.u32 %v12029_v28, %v8709_v25  ;;  %v9285_v33 = vld [vmem:[#allocation8 + $0x630] sm:$0xf]  ;;  %v8711_v37 = vld [vmem:[#allocation8 + $0x1d4] sm:$0xf0] }
  0x40   :  { %v12862_v11 = vpop.eup %12861  ;;  %1730 = vmatpush.bf16.msra.mxu2 %v9322_v22  ;;  %v8998_v32 = vor.u32 %v12101_v30, %v8997_v29  ;;  %v12173_v34 = vld [vmem:[#allocation8 + $0x650] sm:$0xf0]  ;;  %v8673_v38 = vld [vmem:[#allocation8 + $0x168] sm:$0xf]  ;;  %v12020_v39 = vld [vmem:[#allocation8 + $0x188] sm:$0xf0] }
  0x41   :  { %v249_v12 = vmul.f32 384.0, %v12862_v11  ;;  %v12025_v35 = vld [vmem:[#allocation8 + $0x1b4] sm:$0xf]  ;;  %1744 = vmatpush.bf16.msra.mxu3 %v8750_v27  ;;  %v9286_v36 = vor.u32 %v12173_v34, %v9285_v33  ;;  %v8961_v41 = vld [vmem:[#allocation8 + $0x3a8] sm:$0xf]  ;;  %v8674_v45 = vor.u32 %v12020_v39, %v8673_v38  ;;  %vm253_vm0 = vweird.f32 %v12862_v11  ;;  %s8470_s15 = sshll.u32 %s13301_s12, 4  ;;  %s8471_s15 = int_to_ptr.vmem [resolvable:$true] %s8470_s15 }
  0x42   :  { %v8714_v40 = vor.u32 %v12025_v35, %v8711_v37  ;;  %v12092_v42 = vld [vmem:[#allocation8 + $0x3c8] sm:$0xf0]  ;;  %v9249_v43 = vld [vmem:[#allocation8 + $0x5e8] sm:$0xf]  ;;  %1703 = vmatpush.bf16.msra.mxu0 %v8710_v31  ;;  %v8675_v48 = vld [vmem:[#allocation8 + $0x18c] sm:$0xf0] }
  0x43   :  { %v250_v13 = vsub.f32 1.0, %v249_v12  ;;  %v12164_v46 = vld [vmem:[#allocation8 + $0x608] sm:$0xf0]  ;;  %1717 = vmatpush.bf16.msra.mxu1 %v8998_v32  ;;  %v8962_v49 = vor.u32 %v12092_v42, %v8961_v41  ;;  %v8637_v51 = vld [vmem:[#allocation8 + $0x120] sm:$0xf]  ;;  %s8472_s26 = sshll.u32 %s14216_s13, 4  ;;  %s8473_s26 = int_to_ptr.hbm [resolvable:$true] %s8472_s26 }
  0x44   :  { %v12016_v47 = vld [vmem:[#allocation8 + $0x16c] sm:$0xf]  ;;  %1731 = vmatpush.bf16.msra.mxu2 %v9286_v36  ;;  %v9250_v50 = vor.u32 %v12164_v46, %v9249_v43  ;;  %v12011_v52 = vld [vmem:[#allocation8 + $0x140] sm:$0xf0]  ;;  %v8925_v53 = vld [vmem:[#allocation8 + $0x360] sm:$0xf] }
  0x45   :  { %v251_v26 = vmul.f32 %v12862_v11, %v250_v13  ;;  %1745 = vmatpush.bf16.msra.mxu3 %v8714_v40  ;;  %v8678_v54 = vor.u32 %v12016_v47, %v8675_v48  ;;  %v12083_v55 = vld [vmem:[#allocation8 + $0x380] sm:$0xf0]  ;;  %v9213_v56 = vld [vmem:[#allocation8 + $0x5a0] sm:$0xf]  ;;  %v8639_v59 = vld [vmem:[#allocation8 + $0x144] sm:$0xf0]  ;;  %v8638_v61 = vor.u32 %v12011_v52, %v8637_v51 }
  0x46   :  { %246 = vadd.xlane.f32.xlu0 %v245_v9  ;;  %v12155_v57 = vld [vmem:[#allocation8 + $0x5c0] sm:$0xf0]  ;;  %1704 = vmatpush.bf16.msra.mxu0 %v8674_v45  ;;  %v8601_v62 = vld [vmem:[#allocation8 + $0xd8] sm:$0xf]  ;;  %v12002_v63 = vld [vmem:[#allocation8 + $0xf8] sm:$0xf0]  ;;  %v8926_v6 = vor.u32 %v12083_v55, %v8925_v53 }
  0x47   :  { %v252_v44 = vadd.f32 %v12862_v11, %v251_v26  ;;  %v12007_v58 = vld [vmem:[#allocation8 + $0x124] sm:$0xf]  ;;  %v8889_v3 = vld [vmem:[#allocation8 + $0x318] sm:$0xf]  ;;  %1718 = vmatpush.bf16.msra.mxu1 %v8962_v49  ;;  %v9214_v7 = vor.u32 %v12155_v57, %v9213_v56  ;;  %v12074_v9 = vld [vmem:[#allocation8 + $0x338] sm:$0xf0]  ;;  %v8602_v17 = vor.u32 %v12002_v63, %v8601_v62 }
  0x48   :  { %1732 = vmatpush.bf16.msra.mxu2 %v9250_v50  ;;  %v9177_v10 = vld [vmem:[#allocation8 + $0x558] sm:$0xf]  ;;  %v12146_v12 = vld [vmem:[#allocation8 + $0x578] sm:$0xf0]  ;;  %v8642_v14 = vor.u32 %v12007_v58, %v8639_v59  ;;  %v8890_v18 = vor.u32 %v12074_v9, %v8889_v3  ;;  %v11993_v36 = vld [vmem:[#allocation8 + $0xb0] sm:$0xf0] }
  0x49   :  { %v13432_v60 = vsel %vm253_vm0, %v12862_v11, %v252_v44  ;;  %1746 = vmatpush.bf16.msra.mxu3 %v8678_v54  ;;  %v11998_v16 = vld [vmem:[#allocation8 + $0xdc] sm:$0xf]  ;;  %v8603_v11 = vld [vmem:[#allocation8 + $0xfc] sm:$0xf0]  ;;  %v9178_v19 = vor.u32 %v12146_v12, %v9177_v10  ;;  %v12065_v38 = vld [vmem:[#allocation8 + $0x2f0] sm:$0xf0] }
  0x4a   :  { %1705 = vmatpush.bf16.msra.mxu0 %v8638_v61  ;;  %v8606_v23 = vor.u32 %v11998_v16, %v8603_v11  ;;  %v12137_v39 = vld [vmem:[#allocation8 + $0x530] sm:$0xf0]  ;;  %v8567_v43 = vld [vmem:[#allocation8 + $0xb4] sm:$0xf0]  ;;  %v8529_v45 = vld [vmem:[#allocation8 + $0x48] sm:$0xf] }
  0x4b   :  { %1719 = vmatpush.bf16.msra.mxu1 %v8926_v6  ;;  %v11989_v42 = vld [vmem:[#allocation8 + $0x94] sm:$0xf]  ;;  %v11984_v46 = vld [vmem:[#allocation8 + $0x68] sm:$0xf0]  ;;  %v8817_v47 = vld [vmem:[#allocation8 + $0x288] sm:$0xf] }
  0x4c   :  { %1733 = vmatpush.bf16.msra.mxu2 %v9214_v7  ;;  %v8570_v44 = vor.u32 %v11989_v42, %v8567_v43  ;;  %v8530_v48 = vor.u32 %v11984_v46, %v8529_v45  ;;  %v12056_v49 = vld [vmem:[#allocation8 + $0x2a8] sm:$0xf0]  ;;  %v9105_v50 = vld [vmem:[#allocation8 + $0x4c8] sm:$0xf]  ;;  %v8531_v55 = vld [vmem:[#allocation8 + $0x6c] sm:$0xf0] }
  0x4d   :  { %1747 = vmatpush.bf16.msra.mxu3 %v8642_v14  ;;  %v12128_v51 = vld [vmem:[#allocation8 + $0x4e8] sm:$0xf0]  ;;  %v8818_v52 = vor.u32 %v12056_v49, %v8817_v47  ;;  %v8493_v57 = vld [vmem:[#allocation8] sm:$0xf]  ;;  %v11975_v58 = vld [vmem:[#allocation8 + $0x20] sm:$0xf0] }
  0x4e   :  { %1706 = vmatpush.bf16.msra.mxu0 %v8602_v17  ;;  %v9106_v53 = vor.u32 %v12128_v51, %v9105_v50  ;;  %v11980_v54 = vld [vmem:[#allocation8 + $0x4c] sm:$0xf]  ;;  %v8781_v59 = vld [vmem:[#allocation8 + $0x240] sm:$0xf]  ;;  %v8494_v61 = vor.u32 %v11975_v58, %v8493_v57  ;;  %v12047_v62 = vld [vmem:[#allocation8 + $0x260] sm:$0xf0] }
  0x4f   :  { %1720 = vmatpush.bf16.msra.mxu1 %v8890_v18  ;;  %v8534_v56 = vor.u32 %v11980_v54, %v8531_v55  ;;  %v9069_v63 = vld [vmem:[#allocation8 + $0x480] sm:$0xf]  ;;  %v12119_v3 = vld [vmem:[#allocation8 + $0x4a0] sm:$0xf0]  ;;  %v8782_v6 = vor.u32 %v12047_v62, %v8781_v59  ;;  %v8495_v10 = vld [vmem:[#allocation8 + $0x24] sm:$0xf0] }
  0x50   :  { %1734 = vmatpush.bf16.msra.mxu2 %v9178_v19  ;;  %v9070_v7 = vor.u32 %v12119_v3, %v9069_v63  ;;  %v11971_v9 = vld [vmem:[#allocation8 + $0x4] sm:$0xf]  ;;  %v12106_v12 = vld [vmem:[#allocation8 + $0x43c] sm:$0xf]  ;;  %v9035_v14 = vld [vmem:[#allocation8 + $0x45c] sm:$0xf0] }
  0x51   :  { %1748 = vmatpush.bf16.msra.mxu3 %v8606_v23  ;;  %v9323_v16 = vld [vmem:[#allocation8 + $0x69c] sm:$0xf0]  ;;  %v9038_v11 = vor.u32 %v12106_v12, %v9035_v14  ;;  %v12039_v19 = vld [vmem:[#allocation8 + $0x220] sm:$0xf0]  ;;  %v12021_v42 = vld [vmem:[#allocation8 + $0x190] sm:$0xf0] }
  0x52   :  { %v8753_v18 = vld [vmem:[#allocation8 + $0x200] sm:$0xf]  ;;  %v8969_v45 = vld [vmem:[#allocation8 + $0x3b0] sm:$0xf]  ;;  %v12093_v46 = vld [vmem:[#allocation8 + $0x3d0] sm:$0xf0] }
  0x53   :  { %v9041_v23 = vld [vmem:[#allocation8 + $0x440] sm:$0xf]  ;;  %v8970_v47 = vor.u32 %v12093_v46, %v8969_v45  ;;  %v8927_v49 = vld [vmem:[#allocation8 + $0x384] sm:$0xf0]  ;;  %v12151_v50 = vld [vmem:[#allocation8 + $0x5a4] sm:$0xf] }
  0x54   :  { %v12012_v54 = vld [vmem:[#allocation8 + $0x148] sm:$0xf0]  ;;  %v8933_v57 = vld [vmem:[#allocation8 + $0x368] sm:$0xf]  ;;  %v8891_v62 = vld [vmem:[#allocation8 + $0x33c] sm:$0xf0] }
  0x55   :  { %1749 = vmatpush.bf16.msra.mxu3 %v8570_v44  ;;  %v12084_v58 = vld [vmem:[#allocation8 + $0x388] sm:$0xf0]  ;;  %v12142_v63 = vld [vmem:[#allocation8 + $0x55c] sm:$0xf]  ;;  %v12075_v14 = vld [vmem:[#allocation8 + $0x340] sm:$0xf0] }
  0x56   :  { %v8934_v59 = vor.u32 %v12084_v58, %v8933_v57  ;;  %v12115_v45 = vld [vmem:[#allocation8 + $0x484] sm:$0xf]  ;;  %v9071_v46 = vld [vmem:[#allocation8 + $0x4a4] sm:$0xf0] }
  0x59   :  { %1750 = vmatpush.bf16.msra.mxu3 %v8534_v56 }
  0xb1   :  { %v243_v13 = vpop.xlane.xlu0 %242 }
  0xb2   :  { %v255_v15 = vmul.f32 %v13432_v60, %v243_v13  ;;  %v8498_v13 = vor.u32 %v11971_v9, %v8495_v10  ;;  %v12003_v9 = vld [vmem:[#allocation8 + $0x100] sm:$0xf0] }
  0xb4   :  { %v13436_v20 = vsub.f32 %v13414_v0, %v255_v15  ;;  %v13439_v21 = vsub.f32 %v13416_v1, %v255_v15  ;;  %v13442_v22 = vsub.f32 %v13418_v2, %v255_v15  ;;  %v12178_v15 = vld [vmem:[#allocation8 + $0x67c] sm:$0xf]  ;;  %1751 = vmatpush.bf16.msra.mxu3 %v8498_v13  ;;  %v8897_v13 = vld [vmem:[#allocation8 + $0x320] sm:$0xf] }
  0xb5   :  { %v9326_v17 = vor.u32 %v12178_v15, %v9323_v16  ;;  %v8898_v15 = vor.u32 %v12075_v14, %v8897_v13  ;;  %v12061_v16 = vld [vmem:[#allocation8 + $0x2d4] sm:$0xf] }
  0xb6   :  { %v263_v24 = vmul.f32 %v13436_v20, %v13436_v20  ;;  %v264_v25 = vmul.f32 %v13439_v21, %v13439_v21  ;;  %v265_v0 = vmul.f32 %v13442_v22, %v13442_v22 }
  0xb8   :  { %v269_v26 = vadd.f32 %v264_v25, %v263_v24  ;;  %v8754_v24 = vor.u32 %v12039_v19, %v8753_v18  ;;  %v12111_v25 = vld [vmem:[#allocation8 + $0x460] sm:$0xf0]  ;;  %v9143_v19 = vld [vmem:[#allocation8 + $0x534] sm:$0xf0] }
  0xb9   :  { %v247_v1 = vpop.xlane.xlu0 %246 }
  0xba   :  { %v256_v2 = vmul.f32 %v13432_v60, %v247_v1  ;;  %v270_v27 = vadd.f32 %v269_v26, %v265_v0  ;;  %v12097_v0 = vld [vmem:[#allocation8 + $0x3f4] sm:$0xf]  ;;  %v8999_v26 = vld [vmem:[#allocation8 + $0x414] sm:$0xf0]  ;;  %v9042_v1 = vor.u32 %v12111_v25, %v9041_v23 }
  0xbb   :  { %v8573_v23 = vld [vmem:[#allocation8 + $0x98] sm:$0xf] }
  0xbc   :  { %v13452_v28 = vsub.f32 %v13422_v4, %v256_v2  ;;  %v13455_v29 = vsub.f32 %v13424_v5, %v256_v2  ;;  %v13458_v30 = vsub.f32 %v13429_v8, %v256_v2  ;;  %271 = vadd.xlane.f32.xlu1 %v270_v27  ;;  %v8565_v4 = vld [vmem:[#allocation8 + $0x90] sm:$0xf]  ;;  %v9002_v2 = vor.u32 %v12097_v0, %v8999_v26  ;;  %v12169_v27 = vld [vmem:[#allocation8 + $0x634] sm:$0xf]  ;;  %v8861_v26 = vld [vmem:[#allocation8 + $0x2d8] sm:$0xf] }
  0xbd   :  { %v8853_v5 = vld [vmem:[#allocation8 + $0x2d0] sm:$0xf]  ;;  %v8566_v37 = vor.u32 %v11993_v36, %v8565_v4  ;;  %v12102_v4 = vld [vmem:[#allocation8 + $0x418] sm:$0xf0]  ;;  %1800 = vmatpush.bf16.msrb.mxu3 %v9042_v1 }
  0xbe   :  { %v266_v31 = vmul.f32 %v13452_v28, %v13452_v28  ;;  %v267_v32 = vmul.f32 %v13455_v29, %v13455_v29  ;;  %v268_v33 = vmul.f32 %v13458_v30, %v13458_v30  ;;  %v9141_v8 = vld [vmem:[#allocation8 + $0x510] sm:$0xf]  ;;  %v8854_v40 = vor.u32 %v12065_v38, %v8853_v5  ;;  %v12066_v1 = vld [vmem:[#allocation8 + $0x2f8] sm:$0xf0] }
  0xbf   :  { %v9142_v41 = vor.u32 %v12137_v39, %v9141_v8  ;;  %1707 = vmatpush.bf16.msra.mxu0 %v8566_v37  ;;  %v12088_v37 = vld [vmem:[#allocation8 + $0x3ac] sm:$0xf]  ;;  %v8963_v38 = vld [vmem:[#allocation8 + $0x3cc] sm:$0xf0] }
  0xc0   :  { %v273_v34 = vadd.f32 %v267_v32, %v266_v31  ;;  %1721 = vmatpush.bf16.msra.mxu1 %v8854_v40  ;;  %v9287_v31 = vld [vmem:[#allocation8 + $0x654] sm:$0xf0]  ;;  %v12160_v8 = vld [vmem:[#allocation8 + $0x5ec] sm:$0xf]  ;;  %v8966_v39 = vor.u32 %v12088_v37, %v8963_v38  ;;  %v9251_v40 = vld [vmem:[#allocation8 + $0x60c] sm:$0xf0] }
  0xc1   :  { %1735 = vmatpush.bf16.msra.mxu2 %v9142_v41  ;;  %v8717_v32 = vld [vmem:[#allocation8 + $0x1b8] sm:$0xf]  ;;  %v8681_v41 = vld [vmem:[#allocation8 + $0x170] sm:$0xf]  ;;  %v9254_v43 = vor.u32 %v12160_v8, %v9251_v40 }
  0xc2   :  { %v274_v35 = vadd.f32 %v273_v34, %v268_v33  ;;  %v9290_v33 = vor.u32 %v12169_v27, %v9287_v31  ;;  %v12030_v34 = vld [vmem:[#allocation8 + $0x1d8] sm:$0xf0]  ;;  %v8682_v44 = vor.u32 %v12021_v42, %v8681_v41  ;;  %v12052_v27 = vld [vmem:[#allocation8 + $0x28c] sm:$0xf]  ;;  %v8819_v31 = vld [vmem:[#allocation8 + $0x2ac] sm:$0xf0] }
  0xc3   :  { %1708 = vmatpush.bf16.msra.mxu0 %v8530_v48  ;;  %v8718_v36 = vor.u32 %v12030_v34, %v8717_v32  ;;  %v12079_v48 = vld [vmem:[#allocation8 + $0x364] sm:$0xf]  ;;  %v12124_v32 = vld [vmem:[#allocation8 + $0x4cc] sm:$0xf]  ;;  %v8822_v34 = vor.u32 %v12052_v27, %v8819_v31  ;;  %v8825_v8 = vld [vmem:[#allocation8 + $0x290] sm:$0xf] }
  0xc4   :  { %275 = vadd.xlane.f32.xlu1 %v274_v35  ;;  %1722 = vmatpush.bf16.msra.mxu1 %v8818_v52  ;;  %v9005_v35 = vld [vmem:[#allocation8 + $0x3f8] sm:$0xf]  ;;  %v8930_v51 = vor.u32 %v12079_v48, %v8927_v49  ;;  %v9215_v52 = vld [vmem:[#allocation8 + $0x5c4] sm:$0xf0]  ;;  %v12043_v42 = vld [vmem:[#allocation8 + $0x244] sm:$0xf]  ;;  %v9074_v48 = vor.u32 %v12115_v45, %v9071_v46 }
  0xc5   :  { %1736 = vmatpush.bf16.msra.mxu2 %v9106_v53  ;;  %v9006_v5 = vor.u32 %v12102_v4, %v9005_v35  ;;  %v8645_v53 = vld [vmem:[#allocation8 + $0x128] sm:$0xf]  ;;  %v9218_v55 = vor.u32 %v12151_v50, %v9215_v52  ;;  %v9107_v35 = vld [vmem:[#allocation8 + $0x4ec] sm:$0xf0]  ;;  %v11976_v49 = vld [vmem:[#allocation8 + $0x28] sm:$0xf0] }
  0xc6   :  { %v8646_v56 = vor.u32 %v12012_v54, %v8645_v53  ;;  %v8537_v4 = vld [vmem:[#allocation8 + $0x50] sm:$0xf]  ;;  %v9110_v37 = vor.u32 %v12124_v32, %v9107_v35  ;;  %v8789_v50 = vld [vmem:[#allocation8 + $0x248] sm:$0xf]  ;;  %v12183_v35 = vld [vmem:[#allocation8 + $0x6a0] sm:$0xf0] }
  0xc7   :  { %1709 = vmatpush.bf16.msra.mxu0 %v8494_v61  ;;  %1801 = vmatpush.bf16.msrb.mxu3 %v9006_v5  ;;  %v12070_v61 = vld [vmem:[#allocation8 + $0x31c] sm:$0xf] }
  0xc8   :  { %1723 = vmatpush.bf16.msra.mxu1 %v8782_v6  ;;  %v8894_v3 = vor.u32 %v12070_v61, %v8891_v62  ;;  %v9179_v6 = vld [vmem:[#allocation8 + $0x57c] sm:$0xf0] }
  0xc9   :  { %1737 = vmatpush.bf16.msra.mxu2 %v9070_v7  ;;  %v8609_v7 = vld [vmem:[#allocation8 + $0xe0] sm:$0xf]  ;;  %v9182_v10 = vor.u32 %v12142_v63, %v9179_v6 }
  0xca   :  { %v8610_v12 = vor.u32 %v12003_v9, %v8609_v7  ;;  %v238_v7 = vld [vmem:[#allocation5] sm:$0x7] }
  0xcb   :  { %1758 = vmatpush.bf16.msrb.mxu0 %v9038_v11  ;;  %1802 = vmatpush.bf16.msrb.mxu3 %v8970_v47  ;;  %v8855_v11 = vld [vmem:[#allocation8 + $0x2f4] sm:$0xf0]  ;;  %v8501_v47 = vld [vmem:[#allocation8 + $0x8] sm:$0xf]  ;;  %v308_v13 = vperm.slane %v238_v7, 0  ;;  %v309_v14 = vperm.slane %v238_v7, 1 }
  0xcc   :  { %1772 = vmatpush.bf16.msrb.mxu1 %v9326_v17  ;;  %v12133_v17 = vld [vmem:[#allocation8 + $0x514] sm:$0xf]  ;;  %v8858_v18 = vor.u32 %v12061_v16, %v8855_v11  ;;  %v8502_v52 = vor.u32 %v11976_v49, %v8501_v47  ;;  %v9293_v47 = vld [vmem:[#allocation8 + $0x638] sm:$0xf] }
  0xcd   :  { %1786 = vmatpush.bf16.msrb.mxu2 %v8754_v24  ;;  %v11994_v24 = vld [vmem:[#allocation8 + $0xb8] sm:$0xf0]  ;;  %v9146_v25 = vor.u32 %v12133_v17, %v9143_v19 }
  0xce   :  { %v8574_v0 = vor.u32 %v11994_v24, %v8573_v23 }
  0xcf   :  { %1759 = vmatpush.bf16.msrb.mxu0 %v9002_v2  ;;  %1803 = vmatpush.bf16.msrb.mxu3 %v8934_v59  ;;  %v8862_v2 = vor.u32 %v12066_v1, %v8861_v26 }
  0xd0   :  { %1773 = vmatpush.bf16.msrb.mxu1 %v9290_v33 }
  0xd1   :  { %1787 = vmatpush.bf16.msrb.mxu2 %v8718_v36  ;;  %v11985_v36 = vld [vmem:[#allocation8 + $0x70] sm:$0xf0] }
  0xd2   :  { %v8538_v38 = vor.u32 %v11985_v36, %v8537_v4 }
  0xd3   :  { %1760 = vmatpush.bf16.msrb.mxu0 %v8966_v39  ;;  %1804 = vmatpush.bf16.msrb.mxu3 %v8898_v15  ;;  %v12057_v39 = vld [vmem:[#allocation8 + $0x2b0] sm:$0xf0]  ;;  %v239_v15 = vld [vmem:[#allocation7] sm:$0x7] }
  0xd4   :  { %1774 = vmatpush.bf16.msrb.mxu1 %v9254_v43  ;;  %v8826_v40 = vor.u32 %v12057_v39, %v8825_v8  ;;  %v8783_v43 = vld [vmem:[#allocation8 + $0x264] sm:$0xf0]  ;;  %v321_v24 = vperm.slane %v239_v15, 0 }
  0xd5   :  { %1788 = vmatpush.bf16.msrb.mxu2 %v8682_v44  ;;  %v8786_v44 = vor.u32 %v12043_v42, %v8783_v43  ;;  %v9043_v42 = vld [vmem:[#allocation8 + $0x464] sm:$0xf0] }
  0xd6   :  { %v9331_v43 = vld [vmem:[#allocation8 + $0x6a4] sm:$0xf0] }
  0xd7   :  { %1761 = vmatpush.bf16.msrb.mxu0 %v8930_v51  ;;  %1805 = vmatpush.bf16.msrb.mxu3 %v8862_v2  ;;  %v12048_v51 = vld [vmem:[#allocation8 + $0x268] sm:$0xf0] }
  0xd8   :  { %1775 = vmatpush.bf16.msrb.mxu1 %v9218_v55  ;;  %v8790_v53 = vor.u32 %v12048_v51, %v8789_v50  ;;  %v12026_v51 = vld [vmem:[#allocation8 + $0x1bc] sm:$0xf] }
  0xd9   :  { %1789 = vmatpush.bf16.msrb.mxu2 %v8646_v56 }
  0xdb   :  { %1762 = vmatpush.bf16.msrb.mxu0 %v8894_v3  ;;  %1806 = vmatpush.bf16.msrb.mxu3 %v8826_v40 }
  0xdc   :  { %1776 = vmatpush.bf16.msrb.mxu1 %v9182_v10 }
  0xdd   :  { %1790 = vmatpush.bf16.msrb.mxu2 %v8610_v12 }
  0xdf   :  { %1763 = vmatpush.bf16.msrb.mxu0 %v8858_v18  ;;  %1807 = vmatpush.bf16.msrb.mxu3 %v8790_v53  ;;  %v310_v18 = vperm.slane %v238_v7, 2  ;;  %v12098_v53 = vld [vmem:[#allocation8 + $0x3fc] sm:$0xf]  ;;  %v12089_v7 = vld [vmem:[#allocation8 + $0x3b4] sm:$0xf] }
  0xe0   :  { %1777 = vmatpush.bf16.msrb.mxu1 %v9146_v25  ;;  %v322_v25 = vperm.slane %v239_v15, 1 }
  0xe1   :  { %1791 = vmatpush.bf16.msrb.mxu2 %v8574_v0  ;;  %v323_v0 = vperm.slane %v239_v15, 2  ;;  %v9221_v15 = vld [vmem:[#allocation8 + $0x5a8] sm:$0xf] }
  0xe3   :  { %1764 = vmatpush.bf16.msrb.mxu0 %v8822_v34 }
  0xe4   :  { %1778 = vmatpush.bf16.msrb.mxu1 %v9110_v37  ;;  %v8755_v37 = vld [vmem:[#allocation8 + $0x224] sm:$0xf0] }
  0xe5   :  { %1792 = vmatpush.bf16.msrb.mxu2 %v8538_v38  ;;  %v12107_v38 = vld [vmem:[#allocation8 + $0x444] sm:$0xf] }
  0xe6   :  { %v9046_v49 = vor.u32 %v12107_v38, %v9043_v42  ;;  %v8863_v42 = vld [vmem:[#allocation8 + $0x2fc] sm:$0xf0] }
  0xe7   :  { %1765 = vmatpush.bf16.msrb.mxu0 %v8786_v44 }
  0xe8   :  { %1779 = vmatpush.bf16.msrb.mxu1 %v9074_v48  ;;  %v12174_v48 = vld [vmem:[#allocation8 + $0x658] sm:$0xf0] }
  0xe9   :  { %1793 = vmatpush.bf16.msrb.mxu2 %v8502_v52  ;;  %v8719_v52 = vld [vmem:[#allocation8 + $0x1dc] sm:$0xf0] }
 0x12f   :  { %v272_v33 = vpop.xlane.xlu1 %271 }
 0x130   :  { %v277_v5 = vmul.f32 %v272_v33, %v13432_v60 }
 0x132   :  { %v279_v41 = vadd.f32 1e-05, %v277_v5  ;;  %v12035_v5 = vld [vmem:[#allocation8 + $0x204] sm:$0xf] }
 0x133   :  { %v8758_v46 = vor.u32 %v12035_v5, %v8755_v37  ;;  %v9149_v5 = vld [vmem:[#allocation8 + $0x518] sm:$0xf]  ;;  %v12138_v37 = vld [vmem:[#allocation8 + $0x538] sm:$0xf0] }
 0x134   :  { %12863 = vrsqrt.f32 %v279_v41  ;;  %vm287_vm2 = vweird.f32 %v279_v41 }
 0x137   :  { %v276_v54 = vpop.xlane.xlu1 %275 }
 0x138   :  { %v278_v55 = vmul.f32 %v276_v54, %v13432_v60  ;;  %v9007_v54 = vld [vmem:[#allocation8 + $0x41c] sm:$0xf0] }
 0x13a   :  { %v12864_v56 = vpop.eup %12863  ;;  %v280_v57 = vadd.f32 1e-05, %v278_v55  ;;  %v12170_v55 = vld [vmem:[#allocation8 + $0x63c] sm:$0xf] }
 0x13b   :  { %v282_v58 = vmul.f32 %v12864_v56, %v279_v41  ;;  %vm288_vm1 = vweird.f32 %v12864_v56 }
 0x13c   :  { %12865 = vrsqrt.f32 %v280_v57  ;;  %vm289_vm3 = vmor %vm287_vm2, %vm288_vm1  ;;  %vm297_vm5 = vweird.f32 %v280_v57 }
 0x13d   :  { %v283_v59 = vmul.f32 %v12864_v56, %v282_v58  ;;  %v8722_v58 = vor.u32 %v12026_v51, %v8719_v52  ;;  %v11981_v51 = vld [vmem:[#allocation8 + $0x54] sm:$0xf]  ;;  %v8539_v52 = vld [vmem:[#allocation8 + $0x74] sm:$0xf0] }
 0x13f   :  { %v284_v61 = vmul.f32 0.5, %v283_v59  ;;  %v9257_v59 = vld [vmem:[#allocation8 + $0x5f0] sm:$0xf] }
 0x141   :  { %v285_v62 = vsub.f32 1.5, %v284_v61  ;;  %v12165_v61 = vld [vmem:[#allocation8 + $0x610] sm:$0xf0] }
 0x142   :  { %v12866_v63 = vpop.eup %12865 }
 0x143   :  { %v286_v3 = vmul.f32 %v12864_v56, %v285_v62  ;;  %v292_v6 = vmul.f32 %v12866_v63, %v280_v57  ;;  %vm298_vm4 = vweird.f32 %v12866_v63  ;;  %v9294_v57 = vor.u32 %v12174_v48, %v9293_v47  ;;  %v9113_v47 = vld [vmem:[#allocation8 + $0x4d0] sm:$0xf]  ;;  %v12129_v48 = vld [vmem:[#allocation8 + $0x4f0] sm:$0xf0] }
 0x144   :  { %vm299_vm6 = vmor %vm297_vm5, %vm298_vm4  ;;  %v9010_v62 = vor.u32 %v12098_v53, %v9007_v54  ;;  %v12053_v53 = vld [vmem:[#allocation8 + $0x294] sm:$0xf]  ;;  %v8827_v54 = vld [vmem:[#allocation8 + $0x2b4] sm:$0xf0] }
 0x145   :  { %v293_v9 = vmul.f32 %v12866_v63, %v292_v6  ;;  %v290_v10 = vsel %vm289_vm3, %v12864_v56, %v286_v3  ;;  %v9295_v56 = vld [vmem:[#allocation8 + $0x65c] sm:$0xf0]  ;;  %v12017_v3 = vld [vmem:[#allocation8 + $0x174] sm:$0xf]  ;;  %v8683_v6 = vld [vmem:[#allocation8 + $0x194] sm:$0xf0] }
 0x146   :  { %v301_v16 = vmul.f32 %v290_v10, %v13436_v20  ;;  %v302_v11 = vmul.f32 %v290_v10, %v13439_v21  ;;  %v303_v19 = vmul.f32 %v290_v10, %v13442_v22  ;;  %v9329_v22 = vld [vmem:[#allocation8 + $0x680] sm:$0xf]  ;;  %v12161_v10 = vld [vmem:[#allocation8 + $0x5f4] sm:$0xf] }
 0x147   :  { %v294_v12 = vmul.f32 0.5, %v293_v9  ;;  %v8971_v9 = vld [vmem:[#allocation8 + $0x3d4] sm:$0xf0] }
 0x148   :  { %v314_v26 = vmul.f32 %v308_v13, %v301_v16  ;;  %v315_v1 = vmul.f32 %v309_v14, %v302_v11  ;;  %v316_v27 = vmul.f32 %v310_v18, %v303_v19  ;;  %v12156_v16 = vld [vmem:[#allocation8 + $0x5c8] sm:$0xf0]  ;;  %v8974_v11 = vor.u32 %v12089_v7, %v8971_v9  ;;  %v8647_v19 = vld [vmem:[#allocation8 + $0x14c] sm:$0xf0] }
 0x149   :  { %v295_v17 = vsub.f32 1.5, %v294_v12  ;;  %v9259_v12 = vld [vmem:[#allocation8 + $0x614] sm:$0xf0]  ;;  %v12044_v7 = vld [vmem:[#allocation8 + $0x24c] sm:$0xf] }
 0x14a   :  { %v327_v4 = vadd.f32 %v321_v24, %v314_v26  ;;  %v328_v36 = vadd.f32 %v322_v25, %v315_v1  ;;  %v329_v8 = vadd.f32 %v323_v0, %v316_v27  ;;  %v9222_v26 = vor.u32 %v12156_v16, %v9221_v15  ;;  %v12147_v27 = vld [vmem:[#allocation8 + $0x580] sm:$0xf0]  ;;  %v8791_v9 = vld [vmem:[#allocation8 + $0x26c] sm:$0xf0]  ;;  %v9049_v15 = vld [vmem:[#allocation8 + $0x448] sm:$0xf] }
 0x14b   :  { %v296_v23 = vmul.f32 %v12866_v63, %v295_v17  ;;  %v9262_v17 = vor.u32 %v12161_v10, %v9259_v12  ;;  %v12116_v10 = vld [vmem:[#allocation8 + $0x48c] sm:$0xf]  ;;  %v9079_v12 = vld [vmem:[#allocation8 + $0x4ac] sm:$0xf0] }
 0x14c   :  { %v12112_v16 = vld [vmem:[#allocation8 + $0x468] sm:$0xf0] }
 0x14d   :  { %v300_v2 = vsel %vm299_vm6, %v12866_v63, %v296_v23  ;;  %v9298_v63 = vor.u32 %v12170_v55, %v9295_v56  ;;  %v12080_v23 = vld [vmem:[#allocation8 + $0x36c] sm:$0xf]  ;;  %v12125_v55 = vld [vmem:[#allocation8 + $0x4d4] sm:$0xf]  ;;  %v9115_v56 = vld [vmem:[#allocation8 + $0x4f4] sm:$0xf0] }
 0x14e   :  { %v304_v31 = vmul.f32 %v300_v2, %v13452_v28  ;;  %v305_v20 = vmul.f32 %v300_v2, %v13455_v29  ;;  %v306_v21 = vmul.f32 %v300_v2, %v13458_v30  ;;  %v12179_v28 = vld [vmem:[#allocation8 + $0x684] sm:$0xf]  ;;  %v9330_v29 = vor.u32 %v12183_v35, %v9329_v22  ;;  %v9185_v2 = vld [vmem:[#allocation8 + $0x560] sm:$0xf]  ;;  %v9187_v35 = vld [vmem:[#allocation8 + $0x584] sm:$0xf0] }
 0x14f   :  { %v9334_v50 = vor.u32 %v12179_v28, %v9331_v43  ;;  %v12143_v22 = vld [vmem:[#allocation8 + $0x564] sm:$0xf]  ;;  %v12134_v28 = vld [vmem:[#allocation8 + $0x51c] sm:$0xf]  ;;  %v9151_v43 = vld [vmem:[#allocation8 + $0x53c] sm:$0xf0] }
 0x150   :  { %v317_v32 = vmul.f32 %v308_v13, %v304_v31  ;;  %v318_v33 = vmul.f32 %v309_v14, %v305_v20  ;;  %v319_v34 = vmul.f32 %v310_v18, %v306_v21  ;;  %v9258_v13 = vor.u32 %v12165_v61, %v9257_v59  ;;  %v12008_v18 = vld [vmem:[#allocation8 + $0x12c] sm:$0xf]  ;;  %v11999_v21 = vld [vmem:[#allocation8 + $0xe4] sm:$0xf] }
 0x151   :  { %v8686_v14 = vor.u32 %v12017_v3, %v8683_v6  ;;  %v8650_v1 = vor.u32 %v12008_v18, %v8647_v19  ;;  %v8542_v59 = vor.u32 %v11981_v51, %v8539_v52  ;;  %v12120_v61 = vld [vmem:[#allocation8 + $0x4a8] sm:$0xf0]  ;;  %v8830_v3 = vor.u32 %v12053_v53, %v8827_v54  ;;  %v8941_v51 = vld [vmem:[#allocation8 + $0x370] sm:$0xf]  ;;  %v12085_v52 = vld [vmem:[#allocation8 + $0x390] sm:$0xf0] }
 0x152   :  { %v330_v39 = vadd.f32 %v321_v24, %v317_v32  ;;  %v331_v40 = vadd.f32 %v322_v25, %v318_v33  ;;  %v332_v41 = vadd.f32 %v323_v0, %v319_v34  ;;  %v8935_v24 = vld [vmem:[#allocation8 + $0x38c] sm:$0xf0]  ;;  %v12152_v25 = vld [vmem:[#allocation8 + $0x5ac] sm:$0xf]  ;;  %v8611_v32 = vld [vmem:[#allocation8 + $0x104] sm:$0xf0]  ;;  %v9118_v6 = vor.u32 %v12125_v55, %v9115_v56 }
 0x153   :  { %v9223_v0 = vld [vmem:[#allocation8 + $0x5cc] sm:$0xf0]  ;;  %v8938_v31 = vor.u32 %v12080_v23, %v8935_v24  ;;  %v12071_v33 = vld [vmem:[#allocation8 + $0x324] sm:$0xf]  ;;  %v8899_v34 = vld [vmem:[#allocation8 + $0x344] sm:$0xf0] }
 0x154   :  { %v13474_v44 = vpack.c.bf16 %v330_v39, %v327_v4  ;;  %v13476_v30 = vpack.c.bf16 %v331_v40, %v328_v36  ;;  %v13478_v45 = vpack.c.bf16 %v332_v41, %v329_v8  ;;  %v9226_v20 = vor.u32 %v12152_v25, %v9223_v0  ;;  %v11990_v39 = vld [vmem:[#allocation8 + $0x9c] sm:$0xf]  ;;  %v8575_v40 = vld [vmem:[#allocation8 + $0xbc] sm:$0xf0]  ;;  %v12184_v19 = vld [vmem:[#allocation8 + $0x6a8] sm:$0xf0] }
 0x155   :  { %v9186_v4 = vor.u32 %v12147_v27, %v9185_v2  ;;  %v8614_v36 = vor.u32 %v11999_v21, %v8611_v32  ;;  %v8902_v38 = vor.u32 %v12071_v33, %v8899_v34  ;;  %v9190_v8 = vor.u32 %v12143_v22, %v9187_v35  ;;  %v12062_v41 = vld [vmem:[#allocation8 + $0x2dc] sm:$0xf]  ;;  %v12036_v23 = vld [vmem:[#allocation8 + $0x20c] sm:$0xf]  ;;  %v8763_v24 = vld [vmem:[#allocation8 + $0x22c] sm:$0xf0] }
 0x156   :  { %1710 = vmatmul.bf16.vlgmr.msra.gmra.mxu0 %v13474_v44  ;;  %1724 = vmatmul.bf16.vlgmr.msra.gmra.mxu1 %v13476_v30  ;;  %v8794_v25 = vor.u32 %v12044_v7, %v8791_v9  ;;  %v9082_v0 = vor.u32 %v12116_v10, %v9079_v12  ;;  %v8725_v2 = vld [vmem:[#allocation8 + $0x1c0] sm:$0xf]  ;;  %v12031_v27 = vld [vmem:[#allocation8 + $0x1e0] sm:$0xf0]  ;;  %v8727_v35 = vld [vmem:[#allocation8 + $0x1e4] sm:$0xf0] }
 0x157   :  { %1738 = vmatmul.bf16.vlgmr.msra.gmra.mxu2 %v13478_v45  ;;  %1752 = vmatmul.bf16.vlgmr.msra.gmra.mxu3 %v13474_v44  ;;  %v9013_v21 = vld [vmem:[#allocation8 + $0x400] sm:$0xf]  ;;  %v12103_v32 = vld [vmem:[#allocation8 + $0x420] sm:$0xf0]  ;;  %v9229_v53 = vld [vmem:[#allocation8 + $0x5b0] sm:$0xf] }
 0x158   :  { %1814 = vmatpush.bf16.msra.mxu0 %v9330_v29  ;;  %1828 = vmatpush.bf16.msra.mxu1 %v8758_v46  ;;  %v9150_v29 = vor.u32 %v12138_v37, %v9149_v5  ;;  %v8578_v46 = vor.u32 %v11990_v39, %v8575_v40  ;;  %v9301_v33 = vld [vmem:[#allocation8 + $0x640] sm:$0xf]  ;;  %v12175_v34 = vld [vmem:[#allocation8 + $0x660] sm:$0xf0]  ;;  %v8689_v5 = vld [vmem:[#allocation8 + $0x178] sm:$0xf] }
 0x159   :  { %1842 = vmatpush.bf16.msra.mxu2 %v9046_v49  ;;  %1856 = vmatpush.bf16.msra.mxu3 %v9334_v50  ;;  %v8866_v49 = vor.u32 %v12062_v41, %v8863_v42  ;;  %v9154_v50 = vor.u32 %v12134_v28, %v9151_v43  ;;  %v12027_v22 = vld [vmem:[#allocation8 + $0x1c4] sm:$0xf]  ;;  %v12022_v37 = vld [vmem:[#allocation8 + $0x198] sm:$0xf0]  ;;  %v8977_v39 = vld [vmem:[#allocation8 + $0x3b8] sm:$0xf] }
 0x15a   :  { %v12094_v40 = vld [vmem:[#allocation8 + $0x3d8] sm:$0xf0]  ;;  %v9265_v41 = vld [vmem:[#allocation8 + $0x5f8] sm:$0xf]  ;;  %v8691_v43 = vld [vmem:[#allocation8 + $0x19c] sm:$0xf0] }
 0x15b   :  { %v12166_v42 = vld [vmem:[#allocation8 + $0x618] sm:$0xf0]  ;;  %v12157_v54 = vld [vmem:[#allocation8 + $0x5d0] sm:$0xf0]  ;;  %v8655_v56 = vld [vmem:[#allocation8 + $0x154] sm:$0xf0] }
 0x15c   :  { %1815 = vmatpush.bf16.msra.mxu0 %v9294_v57  ;;  %1829 = vmatpush.bf16.msra.mxu1 %v8722_v58  ;;  %v9077_v57 = vld [vmem:[#allocation8 + $0x488] sm:$0xf]  ;;  %v9114_v58 = vor.u32 %v12129_v48, %v9113_v47  ;;  %v12018_v28 = vld [vmem:[#allocation8 + $0x17c] sm:$0xf]  ;;  %v8653_v47 = vld [vmem:[#allocation8 + $0x130] sm:$0xf] }
 0x15d   :  { %1843 = vmatpush.bf16.msra.mxu2 %v9010_v62  ;;  %1857 = vmatpush.bf16.msra.mxu3 %v9298_v63  ;;  %v11972_v62 = vld [vmem:[#allocation8 + $0xc] sm:$0xf]  ;;  %v8503_v63 = vld [vmem:[#allocation8 + $0x2c] sm:$0xf0]  ;;  %v12013_v48 = vld [vmem:[#allocation8 + $0x150] sm:$0xf0] }
 0x15e   :  { %v8506_v18 = vor.u32 %v11972_v62, %v8503_v63  ;;  %v12009_v55 = vld [vmem:[#allocation8 + $0x134] sm:$0xf]  ;;  %v9230_v62 = vor.u32 %v12157_v54, %v9229_v53  ;;  %v9193_v7 = vld [vmem:[#allocation8 + $0x568] sm:$0xf]  ;;  %v12148_v9 = vld [vmem:[#allocation8 + $0x588] sm:$0xf0] }
 0x15f   :  { %v8658_v63 = vor.u32 %v12009_v55, %v8655_v56  ;;  %v12000_v10 = vld [vmem:[#allocation8 + $0xec] sm:$0xf]  ;;  %v8619_v12 = vld [vmem:[#allocation8 + $0x10c] sm:$0xf0]  ;;  %v12113_v54 = vld [vmem:[#allocation8 + $0x470] sm:$0xf0] }
 0x160   :  { %1816 = vmatpush.bf16.msra.mxu0 %v9258_v13  ;;  %1830 = vmatpush.bf16.msra.mxu1 %v8686_v14  ;;  %v8761_v13 = vld [vmem:[#allocation8 + $0x208] sm:$0xf]  ;;  %v12040_v14 = vld [vmem:[#allocation8 + $0x228] sm:$0xf0]  ;;  %v9057_v53 = vld [vmem:[#allocation8 + $0x450] sm:$0xf] }
 0x161   :  { %1844 = vmatpush.bf16.msra.mxu2 %v8974_v11  ;;  %1858 = vmatpush.bf16.msra.mxu3 %v9262_v17  ;;  %v9337_v11 = vld [vmem:[#allocation8 + $0x688] sm:$0xf]  ;;  %v9078_v17 = vor.u32 %v12120_v61, %v9077_v57  ;;  %v8654_v57 = vor.u32 %v12013_v48, %v8653_v47  ;;  %v12004_v61 = vld [vmem:[#allocation8 + $0x108] sm:$0xf0]  ;;  %v9339_v48 = vld [vmem:[#allocation8 + $0x6ac] sm:$0xf0] }
 0x162   :  { %v12180_v47 = vld [vmem:[#allocation8 + $0x68c] sm:$0xf] }
 0x164   :  { %1817 = vmatpush.bf16.msra.mxu0 %v9222_v26  ;;  %1831 = vmatpush.bf16.msra.mxu1 %v8650_v1  ;;  %v8762_v26 = vor.u32 %v12040_v14, %v8761_v13  ;;  %v9050_v1 = vor.u32 %v12112_v16, %v9049_v15  ;;  %v8581_v15 = vld [vmem:[#allocation8 + $0xa0] sm:$0xf]  ;;  %v11995_v16 = vld [vmem:[#allocation8 + $0xc0] sm:$0xf0] }
 0x165   :  { %1845 = vmatpush.bf16.msra.mxu2 %v8938_v31  ;;  %1859 = vmatpush.bf16.msra.mxu3 %v9226_v20  ;;  %v9338_v31 = vor.u32 %v12184_v19, %v9337_v11  ;;  %v8766_v20 = vor.u32 %v12036_v23, %v8763_v24  ;;  %v9194_v11 = vor.u32 %v12148_v9, %v9193_v7  ;;  %v12067_v19 = vld [vmem:[#allocation8 + $0x300] sm:$0xf0]  ;;  %v9157_v23 = vld [vmem:[#allocation8 + $0x520] sm:$0xf]  ;;  %v8733_v7 = vld [vmem:[#allocation8 + $0x1c8] sm:$0xf] }
 0x166   :  { %1766 = vmatmul.bf16.vlgmr.msrb.gmra.mxu0 %v13476_v30  ;;  %1780 = vmatmul.bf16.vlgmr.msrb.gmra.mxu1 %v13478_v45  ;;  %v12139_v24 = vld [vmem:[#allocation8 + $0x540] sm:$0xf0]  ;;  %v12032_v9 = vld [vmem:[#allocation8 + $0x1e8] sm:$0xf0] }
 0x167   :  { %1794 = vmatmul.bf16.vlgmr.msrb.gmra.mxu2 %v13474_v44  ;;  %1808 = vmatmul.bf16.vlgmr.msrb.gmra.mxu3 %v13476_v30 }
 0x168   :  { %1818 = vmatpush.bf16.msra.mxu0 %v9186_v4  ;;  %1832 = vmatpush.bf16.msra.mxu1 %v8614_v36  ;;  %v8726_v4 = vor.u32 %v12031_v27, %v8725_v2  ;;  %v9014_v36 = vor.u32 %v12103_v32, %v9013_v21  ;;  %v8545_v2 = vld [vmem:[#allocation8 + $0x58] sm:$0xf]  ;;  %v11986_v27 = vld [vmem:[#allocation8 + $0x78] sm:$0xf0] }
 0x169   :  { %1846 = vmatpush.bf16.msra.mxu2 %v8902_v38  ;;  %1860 = vmatpush.bf16.msra.mxu3 %v9190_v8  ;;  %v9302_v38 = vor.u32 %v12175_v34, %v9301_v33  ;;  %v8730_v8 = vor.u32 %v12027_v22, %v8727_v35  ;;  %v8833_v21 = vld [vmem:[#allocation8 + $0x298] sm:$0xf]  ;;  %v12058_v32 = vld [vmem:[#allocation8 + $0x2b8] sm:$0xf0]  ;;  %v8547_v35 = vld [vmem:[#allocation8 + $0x7c] sm:$0xf0] }
 0x16a   :  { %v9121_v33 = vld [vmem:[#allocation8 + $0x4d8] sm:$0xf]  ;;  %v12130_v34 = vld [vmem:[#allocation8 + $0x4f8] sm:$0xf0] }
 0x16b   :  { %v11982_v22 = vld [vmem:[#allocation8 + $0x5c] sm:$0xf] }
 0x16c   :  { %1819 = vmatpush.bf16.msra.mxu0 %v9150_v29  ;;  %1833 = vmatpush.bf16.msra.mxu1 %v8578_v46  ;;  %v8690_v29 = vor.u32 %v12022_v37, %v8689_v5  ;;  %v8978_v46 = vor.u32 %v12094_v40, %v8977_v39  ;;  %v8834_v5 = vor.u32 %v12058_v32, %v8833_v21  ;;  %v11977_v37 = vld [vmem:[#allocation8 + $0x30] sm:$0xf0]  ;;  %v9231_v32 = vld [vmem:[#allocation8 + $0x5d4] sm:$0xf0] }
 0x16d   :  { %1847 = vmatpush.bf16.msra.mxu2 %v8866_v49  ;;  %1861 = vmatpush.bf16.msra.mxu3 %v9154_v50  ;;  %v9266_v49 = vor.u32 %v12166_v42, %v9265_v41  ;;  %v8694_v50 = vor.u32 %v12018_v28, %v8691_v43  ;;  %v9122_v39 = vor.u32 %v12130_v34, %v9121_v33  ;;  %v9085_v41 = vld [vmem:[#allocation8 + $0x490] sm:$0xf]  ;;  %v12121_v42 = vld [vmem:[#allocation8 + $0x4b0] sm:$0xf0]  ;;  %v8511_v43 = vld [vmem:[#allocation8 + $0x34] sm:$0xf0] }
 0x16e   :  { %v8550_v40 = vor.u32 %v11982_v22, %v8547_v35  ;;  %v11973_v28 = vld [vmem:[#allocation8 + $0x14] sm:$0xf]  ;;  %v9086_v55 = vor.u32 %v12121_v42, %v9085_v41  ;;  %v8661_v33 = vld [vmem:[#allocation8 + $0x138] sm:$0xf]  ;;  %v12014_v34 = vld [vmem:[#allocation8 + $0x158] sm:$0xf0] }
 0x16f   :  { %v8514_v56 = vor.u32 %v11973_v28, %v8511_v43  ;;  %v12153_v21 = vld [vmem:[#allocation8 + $0x5b4] sm:$0xf]  ;;  %v8949_v22 = vld [vmem:[#allocation8 + $0x378] sm:$0xf]  ;;  %v12086_v35 = vld [vmem:[#allocation8 + $0x398] sm:$0xf0] }
 0x170   :  { %1820 = vmatpush.bf16.msra.mxu0 %v9114_v58  ;;  %1834 = vmatpush.bf16.msra.mxu1 %v8542_v59  ;;  %v8942_v58 = vor.u32 %v12085_v52, %v8941_v51  ;;  %v8617_v59 = vld [vmem:[#allocation8 + $0xe8] sm:$0xf]  ;;  %v12041_v52 = vld [vmem:[#allocation8 + $0x230] sm:$0xf0]  ;;  %v8625_v41 = vld [vmem:[#allocation8 + $0xf0] sm:$0xf] }
 0x171   :  { %1848 = vmatpush.bf16.msra.mxu2 %v8830_v3  ;;  %1862 = vmatpush.bf16.msra.mxu3 %v9118_v6  ;;  %v8905_v3 = vld [vmem:[#allocation8 + $0x328] sm:$0xf]  ;;  %v12076_v6 = vld [vmem:[#allocation8 + $0x348] sm:$0xf0]  ;;  %v8618_v13 = vor.u32 %v12004_v61, %v8617_v59  ;;  %v12099_v59 = vld [vmem:[#allocation8 + $0x404] sm:$0xf] }
 0x172   :  { %v8906_v14 = vor.u32 %v12076_v6, %v8905_v3  ;;  %v9015_v61 = vld [vmem:[#allocation8 + $0x424] sm:$0xf0]  ;;  %v12171_v3 = vld [vmem:[#allocation8 + $0x644] sm:$0xf]  ;;  %v12005_v42 = vld [vmem:[#allocation8 + $0x110] sm:$0xf0] }
 0x173   :  { %v9303_v6 = vld [vmem:[#allocation8 + $0x664] sm:$0xf0]  ;;  %v8913_v28 = vld [vmem:[#allocation8 + $0x330] sm:$0xf]  ;;  %v12077_v43 = vld [vmem:[#allocation8 + $0x350] sm:$0xf0] }
 0x174   :  { %1821 = vmatpush.bf16.msra.mxu0 %v9078_v17  ;;  %1835 = vmatpush.bf16.msra.mxu1 %v8506_v18  ;;  %v8622_v17 = vor.u32 %v12000_v10, %v8619_v12  ;;  %v8869_v18 = vld [vmem:[#allocation8 + $0x2e0] sm:$0xf]  ;;  %v9021_v10 = vld [vmem:[#allocation8 + $0x408] sm:$0xf]  ;;  %v12104_v12 = vld [vmem:[#allocation8 + $0x428] sm:$0xf0] }
 0x175   :  { %1849 = vmatpush.bf16.msra.mxu2 %v8794_v25  ;;  %1863 = vmatpush.bf16.msra.mxu3 %v9082_v0  ;;  %v11991_v25 = vld [vmem:[#allocation8 + $0xa4] sm:$0xf]  ;;  %v8583_v0 = vld [vmem:[#allocation8 + $0xc4] sm:$0xf0] }
 0x177   :  { %1822 = vmatmul.bf16.vlgmr.msra.gmra.mxu0 %v13478_v45  ;;  %1836 = vmatmul.bf16.vlgmr.msra.gmra.mxu1 %v13474_v44 }
 0x178   :  { %1870 = vmatpush.bf16.msrb.mxu0 %v8762_v26  ;;  %1884 = vmatpush.bf16.msrb.mxu1 %v9050_v1  ;;  %v8582_v26 = vor.u32 %v11995_v16, %v8581_v15  ;;  %v8870_v1 = vor.u32 %v12067_v19, %v8869_v18  ;;  %v12090_v15 = vld [vmem:[#allocation8 + $0x3bc] sm:$0xf]  ;;  %v8979_v16 = vld [vmem:[#allocation8 + $0x3dc] sm:$0xf0] }
 0x179   :  { %1898 = vmatpush.bf16.msrb.mxu2 %v9338_v31  ;;  %1912 = vmatpush.bf16.msrb.mxu3 %v8766_v20  ;;  %v9158_v31 = vor.u32 %v12139_v24, %v9157_v23  ;;  %v8586_v20 = vor.u32 %v11991_v25, %v8583_v0  ;;  %v12162_v18 = vld [vmem:[#allocation8 + $0x5fc] sm:$0xf]  ;;  %v9267_v19 = vld [vmem:[#allocation8 + $0x61c] sm:$0xf0]  ;;  %v12023_v24 = vld [vmem:[#allocation8 + $0x1a0] sm:$0xf0] }
 0x17a   :  { %1850 = vmatmul.bf16.vlgmr.msra.gmra.mxu2 %v13476_v30  ;;  %1864 = vmatmul.bf16.vlgmr.msra.gmra.mxu3 %v13478_v45  ;;  %v8697_v23 = vld [vmem:[#allocation8 + $0x180] sm:$0xf]  ;;  %v12095_v0 = vld [vmem:[#allocation8 + $0x3e0] sm:$0xf0] }
 0x17b   :  { %v8985_v25 = vld [vmem:[#allocation8 + $0x3c0] sm:$0xf] }
 0x17c   :  { %1871 = vmatpush.bf16.msrb.mxu0 %v8726_v4  ;;  %1885 = vmatpush.bf16.msrb.mxu1 %v9014_v36  ;;  %v8509_v4 = vld [vmem:[#allocation8 + $0x10] sm:$0xf]  ;;  %v8546_v36 = vor.u32 %v11986_v27, %v8545_v2  ;;  %v12081_v2 = vld [vmem:[#allocation8 + $0x374] sm:$0xf]  ;;  %v8943_v27 = vld [vmem:[#allocation8 + $0x394] sm:$0xf0] }
 0x17d   :  { %1899 = vmatpush.bf16.msrb.mxu2 %v9302_v38  ;;  %1913 = vmatpush.bf16.msrb.mxu3 %v8730_v8  ;;  %v8797_v38 = vld [vmem:[#allocation8 + $0x250] sm:$0xf]  ;;  %v12049_v8 = vld [vmem:[#allocation8 + $0x270] sm:$0xf0] }
 0x17e   :  { %v8798_v51 = vor.u32 %v12049_v8, %v8797_v38  ;;  %v8662_v38 = vor.u32 %v12014_v34, %v8661_v33  ;;  %v8950_v8 = vor.u32 %v12086_v35, %v8949_v22  ;;  %v12181_v33 = vld [vmem:[#allocation8 + $0x694] sm:$0xf]  ;;  %v9347_v34 = vld [vmem:[#allocation8 + $0x6b4] sm:$0xf0] }
 0x180   :  { %1872 = vmatpush.bf16.msrb.mxu0 %v8690_v29  ;;  %1886 = vmatpush.bf16.msrb.mxu1 %v8978_v46  ;;  %v12108_v29 = vld [vmem:[#allocation8 + $0x44c] sm:$0xf]  ;;  %v9051_v46 = vld [vmem:[#allocation8 + $0x46c] sm:$0xf0] }
 0x181   :  { %1900 = vmatpush.bf16.msrb.mxu2 %v9266_v49  ;;  %1914 = vmatpush.bf16.msrb.mxu3 %v8694_v50  ;;  %v8769_v49 = vld [vmem:[#allocation8 + $0x210] sm:$0xf]  ;;  %v8510_v50 = vor.u32 %v11977_v37, %v8509_v4  ;;  %v8946_v4 = vor.u32 %v12081_v2, %v8943_v27  ;;  %v12037_v2 = vld [vmem:[#allocation8 + $0x214] sm:$0xf]  ;;  %v8771_v27 = vld [vmem:[#allocation8 + $0x234] sm:$0xf0] }
 0x182   :  { %v8907_v37 = vld [vmem:[#allocation8 + $0x34c] sm:$0xf0] }
 0x184   :  { %1873 = vmatpush.bf16.msrb.mxu0 %v8654_v57  ;;  %1887 = vmatpush.bf16.msrb.mxu1 %v8942_v58  ;;  %v9054_v57 = vor.u32 %v12108_v29, %v9051_v46  ;;  %v9342_v58 = vor.u32 %v12180_v47, %v9339_v48  ;;  %v12063_v47 = vld [vmem:[#allocation8 + $0x2e4] sm:$0xf]  ;;  %v8871_v48 = vld [vmem:[#allocation8 + $0x304] sm:$0xf0] }
 0x185   :  { %1901 = vmatpush.bf16.msrb.mxu2 %v9230_v62  ;;  %1915 = vmatpush.bf16.msrb.mxu3 %v8658_v63  ;;  %v8770_v62 = vor.u32 %v12041_v52, %v8769_v49  ;;  %v9058_v63 = vor.u32 %v12113_v54, %v9057_v53  ;;  %v8626_v49 = vor.u32 %v12005_v42, %v8625_v41  ;;  %v9159_v52 = vld [vmem:[#allocation8 + $0x544] sm:$0xf0]  ;;  %v11996_v54 = vld [vmem:[#allocation8 + $0xc8] sm:$0xf0]  ;;  %v9023_v42 = vld [vmem:[#allocation8 + $0x42c] sm:$0xf0] }
 0x186   :  { %v8589_v53 = vld [vmem:[#allocation8 + $0xa8] sm:$0xf]  ;;  %v12100_v41 = vld [vmem:[#allocation8 + $0x40c] sm:$0xf] }
 0x188   :  { %1874 = vmatpush.bf16.msrb.mxu0 %v8618_v13  ;;  %1888 = vmatpush.bf16.msrb.mxu1 %v8906_v14  ;;  %v9018_v13 = vor.u32 %v12099_v59, %v9015_v61  ;;  %v9306_v14 = vor.u32 %v12171_v3, %v9303_v6  ;;  %v12054_v59 = vld [vmem:[#allocation8 + $0x29c] sm:$0xf]  ;;  %v8835_v61 = vld [vmem:[#allocation8 + $0x2bc] sm:$0xf0] }
 0x189   :  { %1902 = vmatpush.bf16.msrb.mxu2 %v9194_v11  ;;  %1916 = vmatpush.bf16.msrb.mxu3 %v8622_v17  ;;  %v8734_v11 = vor.u32 %v12032_v9, %v8733_v7  ;;  %v9022_v17 = vor.u32 %v12104_v12, %v9021_v10  ;;  %v12126_v3 = vld [vmem:[#allocation8 + $0x4dc] sm:$0xf]  ;;  %v9123_v6 = vld [vmem:[#allocation8 + $0x4fc] sm:$0xf0]  ;;  %v11987_v9 = vld [vmem:[#allocation8 + $0x80] sm:$0xf0] }
 0x18a   :  { %v8553_v7 = vld [vmem:[#allocation8 + $0x60] sm:$0xf]  ;;  %v12059_v12 = vld [vmem:[#allocation8 + $0x2c0] sm:$0xf0] }
 0x18b   :  { %v8841_v10 = vld [vmem:[#allocation8 + $0x2a0] sm:$0xf] }
 0x18c   :  { %1875 = vmatpush.bf16.msrb.mxu0 %v8582_v26  ;;  %1889 = vmatpush.bf16.msrb.mxu1 %v8870_v1  ;;  %v8982_v26 = vor.u32 %v12090_v15, %v8979_v16  ;;  %v9270_v1 = vor.u32 %v12162_v18, %v9267_v19  ;;  %v9126_v15 = vor.u32 %v12126_v3, %v9123_v6  ;;  %v8799_v16 = vld [vmem:[#allocation8 + $0x274] sm:$0xf0]  ;;  %v12010_v3 = vld [vmem:[#allocation8 + $0x13c] sm:$0xf]  ;;  %v8663_v6 = vld [vmem:[#allocation8 + $0x15c] sm:$0xf0] }
 0x18d   :  { %1903 = vmatpush.bf16.msrb.mxu2 %v9158_v31  ;;  %1917 = vmatpush.bf16.msrb.mxu3 %v8586_v20  ;;  %v8698_v31 = vor.u32 %v12023_v24, %v8697_v23  ;;  %v8986_v20 = vor.u32 %v12095_v0, %v8985_v25  ;;  %v8554_v18 = vor.u32 %v11987_v9, %v8553_v7  ;;  %v8517_v23 = vld [vmem:[#allocation8 + $0x18] sm:$0xf]  ;;  %v11978_v24 = vld [vmem:[#allocation8 + $0x38] sm:$0xf0]  ;;  %v8951_v9 = vld [vmem:[#allocation8 + $0x39c] sm:$0xf0] }
 0x18e   :  { %v8842_v19 = vor.u32 %v12059_v12, %v8841_v10  ;;  %v8805_v25 = vld [vmem:[#allocation8 + $0x258] sm:$0xf]  ;;  %v12050_v0 = vld [vmem:[#allocation8 + $0x278] sm:$0xf0]  ;;  %v8518_v22 = vor.u32 %v11978_v24, %v8517_v23  ;;  %v9239_v12 = vld [vmem:[#allocation8 + $0x5dc] sm:$0xf0] }
 0x18f   :  { %v8806_v35 = vor.u32 %v12050_v0, %v8805_v25  ;;  %v12082_v7 = vld [vmem:[#allocation8 + $0x37c] sm:$0xf]  ;;  %v12073_v23 = vld [vmem:[#allocation8 + $0x334] sm:$0xf]  ;;  %v8915_v24 = vld [vmem:[#allocation8 + $0x354] sm:$0xf0] }
 0x190   :  { %1876 = vmatpush.bf16.msrb.mxu0 %v8546_v36  ;;  %1890 = vmatpush.bf16.msrb.mxu1 %v8834_v5  ;;  %v9234_v36 = vor.u32 %v12153_v21, %v9231_v32  ;;  %v12072_v5 = vld [vmem:[#allocation8 + $0x32c] sm:$0xf]  ;;  %v9059_v32 = vld [vmem:[#allocation8 + $0x474] sm:$0xf0]  ;;  %v12154_v10 = vld [vmem:[#allocation8 + $0x5bc] sm:$0xf] }
 0x191   :  { %1904 = vmatpush.bf16.msrb.mxu2 %v9122_v39  ;;  %1918 = vmatpush.bf16.msrb.mxu3 %v8550_v40  ;;  %v12144_v39 = vld [vmem:[#allocation8 + $0x56c] sm:$0xf]  ;;  %v9195_v40 = vld [vmem:[#allocation8 + $0x58c] sm:$0xf0]  ;;  %v8910_v29 = vor.u32 %v12072_v5, %v8907_v37  ;;  %v9309_v5 = vld [vmem:[#allocation8 + $0x648] sm:$0xf] }
 0x192   :  { %v9198_v46 = vor.u32 %v12144_v39, %v9195_v40  ;;  %v12176_v37 = vld [vmem:[#allocation8 + $0x668] sm:$0xf0]  ;;  %v8735_v40 = vld [vmem:[#allocation8 + $0x1ec] sm:$0xf0]  ;;  %v12145_v25 = vld [vmem:[#allocation8 + $0x574] sm:$0xf] }
 0x193   :  { %v12028_v39 = vld [vmem:[#allocation8 + $0x1cc] sm:$0xf]  ;;  %v9203_v0 = vld [vmem:[#allocation8 + $0x594] sm:$0xf0] }
 0x194   :  { %1877 = vmatpush.bf16.msrb.mxu0 %v8510_v50  ;;  %1891 = vmatpush.bf16.msrb.mxu1 %v8798_v51  ;;  %v8914_v50 = vor.u32 %v12077_v43, %v8913_v28  ;;  %v12135_v51 = vld [vmem:[#allocation8 + $0x524] sm:$0xf]  ;;  %v12172_v28 = vld [vmem:[#allocation8 + $0x64c] sm:$0xf]  ;;  %v9311_v43 = vld [vmem:[#allocation8 + $0x66c] sm:$0xf0] }
 0x195   :  { %1905 = vmatpush.bf16.msrb.mxu2 %v9086_v55  ;;  %1919 = vmatpush.bf16.msrb.mxu3 %v8514_v56  ;;  %v8877_v55 = vld [vmem:[#allocation8 + $0x2e8] sm:$0xf]  ;;  %v12068_v56 = vld [vmem:[#allocation8 + $0x308] sm:$0xf0] }
 0x197   :  { %1878 = vmatmul.bf16.vlgmr.msrb.gmra.mxu0 %v13474_v44  ;;  %1892 = vmatmul.bf16.vlgmr.msrb.gmra.mxu1 %v13476_v30 }
 0x198   :  { %1926 = vmatpush.bf16.msra.mxu0 %v9054_v57  ;;  %1940 = vmatpush.bf16.msra.mxu1 %v9342_v58  ;;  %v8874_v57 = vor.u32 %v12063_v47, %v8871_v48  ;;  %v9162_v58 = vor.u32 %v12135_v51, %v9159_v52  ;;  %v9273_v47 = vld [vmem:[#allocation8 + $0x600] sm:$0xf]  ;;  %v12167_v48 = vld [vmem:[#allocation8 + $0x620] sm:$0xf0]  ;;  %v8699_v52 = vld [vmem:[#allocation8 + $0x1a4] sm:$0xf0] }
 0x199   :  { %1954 = vmatpush.bf16.msra.mxu2 %v8770_v62  ;;  %1968 = vmatpush.bf16.msra.mxu3 %v9058_v63  ;;  %v8590_v62 = vor.u32 %v11996_v54, %v8589_v53  ;;  %v8878_v63 = vor.u32 %v12068_v56, %v8877_v55  ;;  %v12019_v51 = vld [vmem:[#allocation8 + $0x184] sm:$0xf]  ;;  %v8987_v54 = vld [vmem:[#allocation8 + $0x3e4] sm:$0xf0] }
 0x19a   :  { %1906 = vmatmul.bf16.vlgmr.msrb.gmra.mxu2 %v13478_v45  ;;  %1920 = vmatmul.bf16.vlgmr.msrb.gmra.mxu3 %v13474_v44  ;;  %v12091_v53 = vld [vmem:[#allocation8 + $0x3c4] sm:$0xf]  ;;  %v9275_v56 = vld [vmem:[#allocation8 + $0x624] sm:$0xf0] }
 0x19b   :  { %v12163_v55 = vld [vmem:[#allocation8 + $0x604] sm:$0xf] }
 0x19c   :  { %1927 = vmatpush.bf16.msra.mxu0 %v9018_v13  ;;  %1941 = vmatpush.bf16.msra.mxu1 %v9306_v14  ;;  %v12045_v13 = vld [vmem:[#allocation8 + $0x254] sm:$0xf]  ;;  %v8838_v14 = vor.u32 %v12054_v59, %v8835_v61  ;;  %v9237_v59 = vld [vmem:[#allocation8 + $0x5b8] sm:$0xf]  ;;  %v12158_v61 = vld [vmem:[#allocation8 + $0x5d8] sm:$0xf0] }
 0x19d   :  { %1955 = vmatpush.bf16.msra.mxu2 %v8734_v11  ;;  %1969 = vmatpush.bf16.msra.mxu3 %v9022_v17  ;;  %v12117_v11 = vld [vmem:[#allocation8 + $0x494] sm:$0xf]  ;;  %v9087_v17 = vld [vmem:[#allocation8 + $0x4b4] sm:$0xf0] }
 0x19e   :  { %v9090_v21 = vor.u32 %v12117_v11, %v9087_v17  ;;  %v8954_v11 = vor.u32 %v12082_v7, %v8951_v9  ;;  %v9242_v17 = vor.u32 %v12154_v10, %v9239_v12 }
 0x1a0   :  { %1928 = vmatpush.bf16.msra.mxu0 %v8982_v26  ;;  %1942 = vmatpush.bf16.msra.mxu1 %v9270_v1  ;;  %v9345_v26 = vld [vmem:[#allocation8 + $0x690] sm:$0xf]  ;;  %v12185_v1 = vld [vmem:[#allocation8 + $0x6b0] sm:$0xf0] }
 0x1a1   :  { %1956 = vmatpush.bf16.msra.mxu2 %v8698_v31  ;;  %1970 = vmatpush.bf16.msra.mxu3 %v8986_v20  ;;  %v12109_v31 = vld [vmem:[#allocation8 + $0x454] sm:$0xf]  ;;  %v8802_v20 = vor.u32 %v12045_v13, %v8799_v16  ;;  %v9238_v13 = vor.u32 %v12158_v61, %v9237_v59  ;;  %v9065_v59 = vld [vmem:[#allocation8 + $0x458] sm:$0xf]  ;;  %v12114_v61 = vld [vmem:[#allocation8 + $0x478] sm:$0xf0] }
 0x1a2   :  { %v12149_v16 = vld [vmem:[#allocation8 + $0x590] sm:$0xf0]  ;;  %v9066_v12 = vor.u32 %v12114_v61, %v9065_v59  ;;  %v8561_v61 = vld [vmem:[#allocation8 + $0x68] sm:$0xf] }
 0x1a4   :  { %1929 = vmatpush.bf16.msra.mxu0 %v8946_v4  ;;  %1943 = vmatpush.bf16.msra.mxu1 %v9234_v36  ;;  %v9346_v4 = vor.u32 %v12185_v1, %v9345_v26  ;;  %v8774_v36 = vor.u32 %v12037_v2, %v8771_v27  ;;  %v9165_v2 = vld [vmem:[#allocation8 + $0x528] sm:$0xf]  ;;  %v12140_v27 = vld [vmem:[#allocation8 + $0x548] sm:$0xf0] }
 0x1a5   :  { %1957 = vmatpush.bf16.msra.mxu2 %v8662_v38  ;;  %1971 = vmatpush.bf16.msra.mxu3 %v8950_v8  ;;  %v9062_v38 = vor.u32 %v12109_v31, %v9059_v32  ;;  %v9350_v8 = vor.u32 %v12181_v33, %v9347_v34  ;;  %v8918_v31 = vor.u32 %v12073_v23, %v8915_v24  ;;  %v8591_v32 = vld [vmem:[#allocation8 + $0xcc] sm:$0xf0]  ;;  %v12064_v33 = vld [vmem:[#allocation8 + $0x2ec] sm:$0xf]  ;;  %v8705_v24 = vld [vmem:[#allocation8 + $0x188] sm:$0xf] }
 0x1a6   :  { %v8879_v34 = vld [vmem:[#allocation8 + $0x30c] sm:$0xf0] }
 0x1a8   :  { %1930 = vmatpush.bf16.msra.mxu0 %v8910_v29  ;;  %1944 = vmatpush.bf16.msra.mxu1 %v9198_v46  ;;  %v9310_v29 = vor.u32 %v12176_v37, %v9309_v5  ;;  %v8738_v46 = vor.u32 %v12028_v39, %v8735_v40  ;;  %v9129_v5 = vld [vmem:[#allocation8 + $0x4e0] sm:$0xf]  ;;  %v12131_v37 = vld [vmem:[#allocation8 + $0x500] sm:$0xf0]  ;;  %v8555_v40 = vld [vmem:[#allocation8 + $0x84] sm:$0xf0] }
 0x1a9   :  { %1958 = vmatpush.bf16.msra.mxu2 %v8626_v49  ;;  %1972 = vmatpush.bf16.msra.mxu3 %v8914_v50  ;;  %v9026_v49 = vor.u32 %v12100_v41, %v9023_v42  ;;  %v9314_v50 = vor.u32 %v12172_v28, %v9311_v43  ;;  %v11983_v39 = vld [vmem:[#allocation8 + $0x64] sm:$0xf]  ;;  %v8843_v42 = vld [vmem:[#allocation8 + $0x2c4] sm:$0xf0] }
 0x1aa   :  { %v12055_v41 = vld [vmem:[#allocation8 + $0x2a4] sm:$0xf]  ;;  %v9131_v43 = vld [vmem:[#allocation8 + $0x504] sm:$0xf0] }
 0x1ab   :  { %v12127_v28 = vld [vmem:[#allocation8 + $0x4e4] sm:$0xf] }
 0x1ac   :  { %1931 = vmatpush.bf16.msra.mxu0 %v8874_v57  ;;  %1945 = vmatpush.bf16.msra.mxu1 %v9162_v58  ;;  %v9274_v57 = vor.u32 %v12167_v48, %v9273_v47  ;;  %v8702_v58 = vor.u32 %v12019_v51, %v8699_v52  ;;  %v9093_v47 = vld [vmem:[#allocation8 + $0x498] sm:$0xf]  ;;  %v12122_v48 = vld [vmem:[#allocation8 + $0x4b8] sm:$0xf0]  ;;  %v9134_v51 = vor.u32 %v12127_v28, %v9131_v43  ;;  %v8519_v52 = vld [vmem:[#allocation8 + $0x3c] sm:$0xf0] }
 0x1ad   :  { %1959 = vmatpush.bf16.msra.mxu2 %v8590_v62  ;;  %1973 = vmatpush.bf16.msra.mxu3 %v8878_v63  ;;  %v8990_v62 = vor.u32 %v12091_v53, %v8987_v54  ;;  %v9278_v63 = vor.u32 %v12163_v55, %v9275_v56  ;;  %v12046_v53 = vld [vmem:[#allocation8 + $0x25c] sm:$0xf]  ;;  %v8807_v54 = vld [vmem:[#allocation8 + $0x27c] sm:$0xf0] }
 0x1ae   :  { %v12118_v55 = vld [vmem:[#allocation8 + $0x49c] sm:$0xf]  ;;  %v9095_v56 = vld [vmem:[#allocation8 + $0x4bc] sm:$0xf0]  ;;  %v8810_v7 = vor.u32 %v12046_v53, %v8807_v54  ;;  %v11997_v53 = vld [vmem:[#allocation8 + $0xd0] sm:$0xf0] }
 0x1af   :  { %v9098_v9 = vor.u32 %v12118_v55, %v9095_v56  ;;  %v8885_v54 = vld [vmem:[#allocation8 + $0x2f0] sm:$0xf]  ;;  %v12069_v55 = vld [vmem:[#allocation8 + $0x310] sm:$0xf0] }
 0x1b0   :  { %1932 = vmatpush.bf16.msra.mxu0 %v8838_v14  ;;  %1946 = vmatpush.bf16.msra.mxu1 %v9126_v15  ;;  %v8666_v14 = vor.u32 %v12010_v3, %v8663_v6  ;;  %v9201_v15 = vld [vmem:[#allocation8 + $0x570] sm:$0xf]  ;;  %v9353_v3 = vld [vmem:[#allocation8 + $0x698] sm:$0xf]  ;;  %v12186_v6 = vld [vmem:[#allocation8 + $0x6b8] sm:$0xf0]  ;;  %v8886_v59 = vor.u32 %v12069_v55, %v8885_v54 }
 0x1b1   :  { %1960 = vmatpush.bf16.msra.mxu2 %v8554_v18  ;;  %1974 = vmatpush.bf16.msra.mxu3 %v8842_v19  ;;  %v12001_v18 = vld [vmem:[#allocation8 + $0xf4] sm:$0xf]  ;;  %v8627_v19 = vld [vmem:[#allocation8 + $0x114] sm:$0xf0]  ;;  %v9202_v26 = vor.u32 %v12149_v16, %v9201_v15  ;;  %v9029_v16 = vld [vmem:[#allocation8 + $0x410] sm:$0xf] }
 0x1b2   :  { %v8630_v1 = vor.u32 %v12001_v18, %v8627_v19  ;;  %v12033_v15 = vld [vmem:[#allocation8 + $0x1f0] sm:$0xf0]  ;;  %v9173_v56 = vld [vmem:[#allocation8 + $0x530] sm:$0xf] }
 0x1b3   :  { %v12177_v18 = vld [vmem:[#allocation8 + $0x670] sm:$0xf0] }
 0x1b4   :  { %1933 = vmatpush.bf16.msra.mxu0 %v8802_v20  ;;  %1947 = vmatpush.bf16.msra.mxu1 %v9090_v21  ;;  %v9206_v20 = vor.u32 %v12145_v25, %v9203_v0  ;;  %v11992_v21 = vld [vmem:[#allocation8 + $0xac] sm:$0xf] }
 0x1b5   :  { %1961 = vmatpush.bf16.msra.mxu2 %v8518_v22  ;;  %1975 = vmatpush.bf16.msra.mxu3 %v8806_v35  ;;  %v12136_v22 = vld [vmem:[#allocation8 + $0x52c] sm:$0xf]  ;;  %v9167_v35 = vld [vmem:[#allocation8 + $0x54c] sm:$0xf0] }
 0x1b6   :  { %v12024_v0 = vld [vmem:[#allocation8 + $0x1a8] sm:$0xf0] }
 0x1b7   :  { %1934 = vmatmul.bf16.vlgmr.msra.gmra.mxu0 %v13476_v30  ;;  %1948 = vmatmul.bf16.vlgmr.msra.gmra.mxu1 %v13478_v45 }
 0x1b8   :  { %1982 = vmatpush.bf16.msrb.mxu0 %v9346_v4  ;;  %1996 = vmatpush.bf16.msrb.mxu1 %v8774_v36  ;;  %v9166_v4 = vor.u32 %v12140_v27, %v9165_v2  ;;  %v8594_v36 = vor.u32 %v11992_v21, %v8591_v32  ;;  %v9281_v2 = vld [vmem:[#allocation8 + $0x608] sm:$0xf]  ;;  %v12168_v27 = vld [vmem:[#allocation8 + $0x628] sm:$0xf0]  ;;  %v8706_v21 = vor.u32 %v12024_v0, %v8705_v24  ;;  %v12051_v24 = vld [vmem:[#allocation8 + $0x280] sm:$0xf0] }
 0x1b9   :  { %2010 = vmatpush.bf16.msrb.mxu2 %v9062_v38  ;;  %2024 = vmatpush.bf16.msrb.mxu3 %v9350_v8  ;;  %v8882_v38 = vor.u32 %v12064_v33, %v8879_v34  ;;  %v9170_v8 = vor.u32 %v12136_v22, %v9167_v35  ;;  %v8669_v33 = vld [vmem:[#allocation8 + $0x140] sm:$0xf]  ;;  %v9282_v34 = vor.u32 %v12168_v27, %v9281_v2  ;;  %v12015_v22 = vld [vmem:[#allocation8 + $0x160] sm:$0xf0] }
 0x1ba   :  { %1962 = vmatmul.bf16.vlgmr.msra.gmra.mxu2 %v13474_v44  ;;  %1976 = vmatmul.bf16.vlgmr.msra.gmra.mxu3 %v13476_v30  ;;  %v8957_v35 = vld [vmem:[#allocation8 + $0x380] sm:$0xf] }
 0x1bb   :  { %v9101_v0 = vld [vmem:[#allocation8 + $0x4a0] sm:$0xf] }
 0x1bc   :  { %1983 = vmatpush.bf16.msrb.mxu0 %v9310_v29  ;;  %1997 = vmatpush.bf16.msrb.mxu1 %v8738_v46  ;;  %v9130_v29 = vor.u32 %v12131_v37, %v9129_v5  ;;  %v8558_v46 = vor.u32 %v11983_v39, %v8555_v40  ;;  %v12159_v5 = vld [vmem:[#allocation8 + $0x5e0] sm:$0xf0]  ;;  %v8670_v37 = vor.u32 %v12015_v22, %v8669_v33  ;;  %v12006_v40 = vld [vmem:[#allocation8 + $0x118] sm:$0xf0] }
 0x1bd   :  { %2011 = vmatpush.bf16.msrb.mxu2 %v9026_v49  ;;  %2025 = vmatpush.bf16.msrb.mxu3 %v9314_v50  ;;  %v11974_v49 = vld [vmem:[#allocation8 + $0x1c] sm:$0xf]  ;;  %v8846_v50 = vor.u32 %v12055_v41, %v8843_v42  ;;  %v8921_v41 = vld [vmem:[#allocation8 + $0x338] sm:$0xf] }
 0x1be   :  { %v12078_v42 = vld [vmem:[#allocation8 + $0x358] sm:$0xf0] }
 0x1c0   :  { %1984 = vmatpush.bf16.msrb.mxu0 %v9274_v57  ;;  %1998 = vmatpush.bf16.msrb.mxu1 %v8702_v58  ;;  %v8777_v57 = vld [vmem:[#allocation8 + $0x218] sm:$0xf]  ;;  %v12042_v58 = vld [vmem:[#allocation8 + $0x238] sm:$0xf0] }
 0x1c1   :  { %2012 = vmatpush.bf16.msrb.mxu2 %v8990_v62  ;;  %2026 = vmatpush.bf16.msrb.mxu3 %v9278_v63  ;;  %v9094_v62 = vor.u32 %v12122_v48, %v9093_v47  ;;  %v8522_v63 = vor.u32 %v11974_v49, %v8519_v52  ;;  %v8778_v10 = vor.u32 %v12042_v58, %v8777_v57  ;;  %v12141_v57 = vld [vmem:[#allocation8 + $0x550] sm:$0xf0] }
 0x1c4   :  { %1985 = vmatpush.bf16.msrb.mxu0 %v9238_v13  ;;  %1999 = vmatpush.bf16.msrb.mxu1 %v8666_v14  ;;  %v8741_v13 = vld [vmem:[#allocation8 + $0x1d0] sm:$0xf]  ;;  %v9354_v14 = vor.u32 %v12186_v6, %v9353_v3  ;;  %v8849_v3 = vld [vmem:[#allocation8 + $0x2a8] sm:$0xf]  ;;  %v12060_v6 = vld [vmem:[#allocation8 + $0x2c8] sm:$0xf0] }
 0x1c5   :  { %2013 = vmatpush.bf16.msrb.mxu2 %v8954_v11  ;;  %2027 = vmatpush.bf16.msrb.mxu3 %v9242_v17  ;;  %v12105_v11 = vld [vmem:[#allocation8 + $0x430] sm:$0xf0]  ;;  %v9317_v17 = vld [vmem:[#allocation8 + $0x650] sm:$0xf]  ;;  %v8742_v19 = vor.u32 %v12033_v15, %v8741_v13  ;;  %v13512_v13 = vld [vmem:[#allocation10] sm:$0xff] }
 0x1c6   :  { %v9030_v23 = vor.u32 %v12105_v11, %v9029_v16  ;;  %v9318_v25 = vor.u32 %v12177_v18, %v9317_v17  ;;  %v8850_v11 = vor.u32 %v12060_v6, %v8849_v3  ;;  %v8525_v17 = vld [vmem:[#allocation8 + $0x20] sm:$0xf] }
 0x1c8   :  { %1986 = vmatpush.bf16.msrb.mxu0 %v9202_v26  ;;  %2000 = vmatpush.bf16.msrb.mxu1 %v8630_v1  ;;  %v8993_v26 = vld [vmem:[#allocation8 + $0x3c8] sm:$0xf]  ;;  %v12096_v1 = vld [vmem:[#allocation8 + $0x3e8] sm:$0xf0] }
 0x1c9   :  { %2014 = vmatpush.bf16.msrb.mxu2 %v8918_v31  ;;  %2028 = vmatpush.bf16.msrb.mxu3 %v9206_v20  ;;  %v8994_v32 = vor.u32 %v12096_v1, %v8993_v26  ;;  %v12123_v26 = vld [vmem:[#allocation8 + $0x4c0] sm:$0xf0]  ;;  %v581_v1 = vperm.slane %v13512_v13, 1 }
 0x1cc   :  { %1987 = vmatpush.bf16.msrb.mxu0 %v9166_v4  ;;  %2001 = vmatpush.bf16.msrb.mxu1 %v8594_v36  ;;  %v12087_v4 = vld [vmem:[#allocation8 + $0x3a0] sm:$0xf0]  ;;  %v9245_v36 = vld [vmem:[#allocation8 + $0x5c0] sm:$0xf] }
 0x1cd   :  { %2015 = vmatpush.bf16.msrb.mxu2 %v8882_v38  ;;  %2029 = vmatpush.bf16.msrb.mxu3 %v9170_v8  ;;  %v8958_v38 = vor.u32 %v12087_v4, %v8957_v35  ;;  %v8633_v8 = vld [vmem:[#allocation8 + $0xf8] sm:$0xf]  ;;  %v9246_v39 = vor.u32 %v12159_v5, %v9245_v36 }
 0x1ce   :  { %v8634_v49 = vor.u32 %v12006_v40, %v8633_v8 }
 0x1d0   :  { %1988 = vmatpush.bf16.msrb.mxu0 %v9130_v29  ;;  %2002 = vmatpush.bf16.msrb.mxu1 %v8558_v46  ;;  %v9209_v29 = vld [vmem:[#allocation8 + $0x578] sm:$0xf]  ;;  %v12150_v46 = vld [vmem:[#allocation8 + $0x598] sm:$0xf0] }
 0x1d1   :  { %2016 = vmatpush.bf16.msrb.mxu2 %v8846_v50  ;;  %2030 = vmatpush.bf16.msrb.mxu3 %v9134_v51  ;;  %v8922_v50 = vor.u32 %v12078_v42, %v8921_v41  ;;  %v8597_v51 = vld [vmem:[#allocation8 + $0xb0] sm:$0xf]  ;;  %v9210_v52 = vor.u32 %v12150_v46, %v9209_v29  ;;  %v582_v29 = vperm.slane %v13512_v13, 2 }
 0x1d2   :  { %v8598_v58 = vor.u32 %v11997_v53, %v8597_v51 }
 0x1d3   :  { %v13504_v31 = vpop.f32.mrf.mxu0  ;;  %v13506_v20 = vpop.f32.mrf.mxu1 }
 0x1d4   :  { %1989 = vmatpush.bf16.msrb.mxu0 %v9094_v62  ;;  %2003 = vmatpush.bf16.msrb.mxu1 %v8522_v63  ;;  %v9174_v62 = vor.u32 %v12141_v57, %v9173_v56  ;;  %v11988_v63 = vld [vmem:[#allocation8 + $0x88] sm:$0xf0] }
 0x1d5   :  { %2017 = vmatpush.bf16.msrb.mxu2 %v8810_v7  ;;  %2031 = vmatpush.bf16.msrb.mxu3 %v9098_v9  ;;  %v8562_v16 = vor.u32 %v11988_v63, %v8561_v61 }
 0x1d7   :  { %1990 = vmatmul.bf16.vlgmr.msrb.gmra.mxu0 %v13478_v45  ;;  %2004 = vmatmul.bf16.vlgmr.msrb.gmra.mxu1 %v13474_v44 }
 0x1d8   :  { %2038 = vmatpush.bf16.msra.mxu0 %v8778_v10  ;;  %2052 = vmatpush.bf16.msra.mxu1 %v9066_v12  ;;  %v9137_v10 = vld [vmem:[#allocation8 + $0x4e8] sm:$0xf]  ;;  %v12132_v12 = vld [vmem:[#allocation8 + $0x508] sm:$0xf0] }
 0x1d9   :  { %2066 = vmatpush.bf16.msra.mxu2 %v9354_v14  ;;  %2032 = vmatmul.bf16.vlgmr.msrb.gmra.mxu3 %v13478_v45  ;;  %v9138_v18 = vor.u32 %v12132_v12, %v9137_v10 }
 0x1da   :  { %2018 = vmatmul.bf16.vlgmr.msrb.gmra.mxu2 %v13476_v30  ;;  %v13508_v28 = vpop.f32.mrf.mxu2  ;;  %v13510_v43 = vpop.f32.mrf.mxu3 }
 0x1db   :  { %v1713_v47 = vpop.f32.mrf.mxu0  ;;  %v1727_v48 = vpop.f32.mrf.mxu1 }
 0x1dc   :  { %2039 = vmatpush.bf16.msra.mxu0 %v8742_v19  ;;  %2053 = vmatpush.bf16.msra.mxu1 %v9030_v23  ;;  %v11979_v19 = vld [vmem:[#allocation8 + $0x40] sm:$0xf0]  ;;  %v8813_v23 = vld [vmem:[#allocation8 + $0x260] sm:$0xf] }
 0x1dd   :  { %2067 = vmatpush.bf16.msra.mxu2 %v9318_v25  ;;  %v580_v25 = vperm.slane %v13512_v13, 0  ;;  %v8526_v27 = vor.u32 %v11979_v19, %v8525_v17 }
 0x1df   :  { %v1714_v2 = vadd.f32 %v1713_v47, %v580_v25  ;;  %v1754_v47 = vadd.f32 %v13510_v43, %v581_v1 }
 0x1e0   :  { %2040 = vmatpush.bf16.msra.mxu0 %v8706_v21  ;;  %2054 = vmatpush.bf16.msra.mxu1 %v8994_v32  ;;  %v8814_v21 = vor.u32 %v12051_v24, %v8813_v23  ;;  %v9102_v32 = vor.u32 %v12123_v26, %v9101_v0 }
 0x1e1   :  { %2068 = vmatpush.bf16.msra.mxu2 %v9282_v34  ;;  %v1728_v4 = vadd.f32 %v1727_v48, %v1714_v2 }
 0x1e2   :  { %v1741_v7 = vpop.f32.mrf.mxu2  ;;  %v1755_v9 = vpop.f32.mrf.mxu3 }
 0x1e3   :  { %v1767_v14 = vpop.f32.mrf.mxu0  ;;  %v1781_v15 = vpop.f32.mrf.mxu1  ;;  %v1756_v33 = vadd.f32 %v1755_v9, %v581_v1  ;;  %v584_v1 = vperm.slane %v13512_v13, 4 }
 0x1e4   :  { %2041 = vmatpush.bf16.msra.mxu0 %v8670_v37  ;;  %2055 = vmatpush.bf16.msra.mxu1 %v8958_v38  ;;  %v1742_v37 = vadd.f32 %v1741_v7, %v1728_v4 }
 0x1e5   :  { %2069 = vmatpush.bf16.msra.mxu2 %v9246_v39 }
 0x1e8   :  { %2042 = vmatpush.bf16.msra.mxu0 %v8634_v49  ;;  %2056 = vmatpush.bf16.msra.mxu1 %v8922_v50 }
 0x1e9   :  { %2070 = vmatpush.bf16.msra.mxu2 %v9210_v52 }
 0x1ea   :  { %v1795_v34 = vpop.f32.mrf.mxu2  ;;  %v1809_v22 = vpop.f32.mrf.mxu3 }
 0x1eb   :  { %v1769_v35 = vpop.f32.mrf.mxu0  ;;  %v1783_v5 = vpop.f32.mrf.mxu1  ;;  %v1796_v48 = vadd.f32 %v1795_v34, %v582_v29 }
 0x1ec   :  { %2043 = vmatpush.bf16.msra.mxu0 %v8598_v58  ;;  %2057 = vmatpush.bf16.msra.mxu1 %v8886_v59  ;;  %v1770_v36 = vadd.f32 %v1769_v35, %v1756_v33 }
 0x1ed   :  { %2071 = vmatpush.bf16.msra.mxu2 %v9174_v62  ;;  %v1810_v55 = vadd.f32 %v1809_v22, %v1796_v48 }
 0x1ee   :  { %v1784_v38 = vadd.f32 %v1783_v5, %v1770_v36 }
 0x1f0   :  { %2044 = vmatpush.bf16.msra.mxu0 %v8562_v16  ;;  %2058 = vmatpush.bf16.msra.mxu1 %v8850_v11  ;;  %v13519_v8 = vpack.c.bf16 %v1784_v38, %v1742_v37 }
 0x1f1   :  { %2072 = vmatpush.bf16.msra.mxu2 %v9138_v18 }
 0x1f2   :  { %v1797_v39 = vpop.f32.mrf.mxu2  ;;  %v1811_v40 = vpop.f32.mrf.mxu3  ;;  %v2262_v41 = vunpack.c.l.b16 %v13519_v8 }
 0x1f3   :  { %v1798_v62 = vadd.f32 %v1797_v39, %v582_v29 }
 0x1f4   :  { %2045 = vmatpush.bf16.msra.mxu0 %v8526_v27  ;;  %2059 = vmatpush.bf16.msra.mxu1 %v8814_v21  ;;  %v2263_v42 = vpack.c.b16 %v2262_v41, %v2262_v41  ;;  %v1837_v46 = vpop.f32.mrf.mxu1  ;;  %v1823_v49 = vpop.f32.mrf.mxu0  ;;  %v585_v27 = vperm.slane %v13512_v13, 5 }
 0x1f5   :  { %2073 = vmatpush.bf16.msra.mxu2 %v9102_v32  ;;  %v1824_v58 = vadd.f32 %v1823_v49, %v1810_v55  ;;  %v1812_v7 = vadd.f32 %v1811_v40, %v1798_v62 }
 0x1f6   :  { %2264 = vrot.lane.b32.xlu1 %v2263_v42, %s13299_s10 }
 0x1f7   :  { %2046 = vmatmul.bf16.vlgmr.msra.gmra.mxu0 %v13474_v44  ;;  %2060 = vmatmul.bf16.vlgmr.msra.gmra.mxu1 %v13476_v30  ;;  %v583_v44 = vperm.slane %v13512_v13, 3  ;;  %v1712_v30 = vadd.f32 %v13504_v31, %v580_v25 }
 0x1f8   :  { %2074 = vmatmul.bf16.vlgmr.msra.gmra.mxu2 %v13478_v45  ;;  %v1768_v45 = vadd.f32 %v1767_v14, %v1754_v47 }
 0x1f9   :  { %v1838_v50 = vadd.f32 %v1837_v46, %v583_v44  ;;  %v1726_v53 = vadd.f32 %v13506_v20, %v1712_v30 }
 0x1fa   :  { %v1782_v54 = vadd.f32 %v1781_v15, %v1768_v45 }
 0x1fb   :  { %v1740_v57 = vadd.f32 %v13508_v28, %v1726_v53 }
 0x1fc   :  { %v1839_v43 = vpop.f32.mrf.mxu1  ;;  %v1825_v3 = vpop.f32.mrf.mxu0 }
 0x1fd   :  { %v1851_v51 = vpop.f32.mrf.mxu2  ;;  %v1865_v52 = vpop.f32.mrf.mxu3  ;;  %v13529_v61 = vpack.c.bf16 %v1782_v54, %v1740_v57  ;;  %v1840_v63 = vadd.f32 %v1839_v43, %v583_v44  ;;  %v1826_v14 = vadd.f32 %v1825_v3, %v1812_v7  ;;  %v586_v57 = vperm.slane %v13512_v13, 6 }
 0x1fe   :  { %v1852_v56 = vadd.f32 %v1851_v51, %v1838_v50  ;;  %v587_v43 = vperm.slane %v13512_v13, 7 }
 0x1ff   :  { %v2235_v10 = vunpack.c.l.b16 %v13529_v61  ;;  %v2385_v50 = vrot.slane %v13529_v61, 4 }
 0x200   :  { %v1866_v59 = vadd.f32 %v1865_v52, %v1852_v56 }
 0x201   :  { %v2236_v11 = vpack.c.b16 %v2235_v10, %v2235_v10 }
 0x202   :  { %v13531_v31 = vpack.c.bf16 %v1866_v59, %v1824_v58 }
 0x204   :  { %2231 = vrot.lane.b32.xlu2 %v13531_v31, %s13299_s10  ;;  %v2097_v20 = vrot.slane %v13531_v31, 4  ;;  %v2800_v19 = vunpack.c.l.b16 %v13531_v31 }
 0x205   :  { %v1853_v6 = vpop.f32.mrf.mxu2  ;;  %v1867_v12 = vpop.f32.mrf.mxu3 }
 0x206   :  { %v1854_v9 = vadd.f32 %v1853_v6, %v1840_v63  ;;  %v2103_v28 = vsel %vm2098_vm7, %v2097_v20, 0  ;;  %v2801_v23 = vpack.c.b16 %v2800_v19, %v2800_v19 }
 0x207   :  { %2112 = vmatpush.bf16.xpose.msra.mxu3 %v2103_v28 }
 0x208   :  { %v1868_v15 = vadd.f32 %v1867_v12, %v1854_v9 }
 0x20a   :  { %v13538_v16 = vpack.c.bf16 %v1868_v15, %v1826_v14 }
 0x20c   :  { %2258 = vrot.lane.b32.xlu0 %v13538_v16, %s13299_s10  ;;  %2237 = vrot.lane.b32.xlu2 %v2236_v11, %s13299_s10  ;;  %v2119_v17 = vrot.slane %v13538_v16, 4  ;;  %v2826_v28 = vunpack.c.l.b16 %v13538_v16 }
 0x20e   :  { %9355 = vmatmul.msk.bf16.vlgmr.msra.gmra.mxu3 %vm2098_vm7, %v13529_v61  ;;  %v2124_v18 = vsel %vm2098_vm7, %v2119_v17, 0  ;;  %v2827_v13 = vpack.c.b16 %v2826_v28, %v2826_v28 }
 0x20f   :  { %2133 = vmatpush.bf16.xpose.msrb.mxu3 %v2124_v18 }
 0x214   :  { %2544 = vrot.lane.b32.xlu0 %v13519_v8, %s13299_s10  ;;  %v1879_v24 = vpop.f32.mrf.mxu0  ;;  %v1893_v25 = vpop.f32.mrf.mxu1 }
 0x215   :  { %v1880_v21 = vadd.f32 %v1879_v24, %v584_v1 }
 0x217   :  { %v1894_v35 = vadd.f32 %v1893_v25, %v1880_v21 }
 0x21c   :  { %2802 = vrot.lane.b32.xlu0 %v2801_v23, %s13299_s10  ;;  %v1881_v0 = vpop.f32.mrf.mxu0  ;;  %v1895_v26 = vpop.f32.mrf.mxu1 }
 0x21d   :  { %v1921_v2 = vpop.f32.mrf.mxu3  ;;  %v1907_v32 = vpop.f32.mrf.mxu2  ;;  %v1882_v38 = vadd.f32 %v1881_v0, %v584_v1 }
 0x21e   :  { %9356 = vmatmul.msk.bf16.vlgmr.msrb.gmra.mxu3 %vm2098_vm7, %v13519_v8  ;;  %v1922_v33 = vadd.f32 %v1921_v2, %v585_v27  ;;  %v1908_v36 = vadd.f32 %v1907_v32, %v1894_v35 }
 0x21f   :  { %v1896_v47 = vadd.f32 %v1895_v26, %v1882_v38 }
 0x225   :  { %v1923_v37 = vpop.f32.mrf.mxu3  ;;  %v1909_v29 = vpop.f32.mrf.mxu2 }
 0x226   :  { %v1924_v40 = vadd.f32 %v1923_v37, %v585_v27  ;;  %v1910_v48 = vadd.f32 %v1909_v29, %v1896_v47 }
 0x234   :  { %v1935_v34 = vpop.f32.mrf.mxu0  ;;  %v1949_v22 = vpop.f32.mrf.mxu1 }
 0x235   :  { %v1936_v4 = vadd.f32 %v1935_v34, %v1922_v33 }
 0x237   :  { %v1950_v5 = vadd.f32 %v1949_v22, %v1936_v4 }
 0x239   :  { %v13555_v39 = vpack.c.bf16 %v1950_v5, %v1908_v36  ;;  %v2090_v36 = vlaneseq }
 0x23b   :  { %v2390_v41 = vsel %vm2098_vm7, %v13555_v39, 0  ;;  %v2521_v42 = vunpack.c.l.b16 %v13555_v39  ;;  %v2091_v37 = vshrl.u32 %v2090_v36, 7  ;;  %v2093_v38 = vand.u32 127, %v2090_v36 }
 0x23c   :  { %v1937_v46 = vpop.f32.mrf.mxu0  ;;  %2399 = vmatpush.bf16.xpose.msrb.mxu2 %v2390_v41  ;;  %v1951_v45 = vpop.f32.mrf.mxu1  ;;  %v2667_v47 = vrot.slane %v13555_v39, 4 }
 0x23d   :  { %v1938_v44 = vadd.f32 %v1937_v46, %v1924_v40  ;;  %v2522_v30 = vpack.c.b16 %v2521_v42, %v2521_v42  ;;  %v1963_v54 = vpop.f32.mrf.mxu2  ;;  %v1977_v55 = vpop.f32.mrf.mxu3  ;;  %vm2094_vm9 = vcmp.le.s32.totalorder %v2093_v38, %v2091_v37  ;;  %v13300_v40 = vmov -1e+30  }
 0x23e   :  { %v1964_v62 = vadd.f32 %v1963_v54, %v586_v57  ;;  %v13591_v41 = vsel %vm2094_vm9, 0.0, %v13300_v40 }
 0x23f   :  { %v1952_v49 = vadd.f32 %v1951_v45, %v1938_v44  ;;  %2523 = vrot.lane.b32.xlu2 %v2522_v30, %s13299_s10  ;;  %v2405_v44 = vrot.slane %v13519_v8, 4 }
 0x240   :  { %v1978_v6 = vadd.f32 %v1977_v55, %v1964_v62 }
 0x241   :  { %v13562_v51 = vpack.c.bf16 %v1952_v49, %v1910_v48  ;;  %v2672_v48 = vsel %vm2098_vm7, %v2667_v47, 0 }
 0x243   :  { %2823 = vrot.lane.b32.xlu1 %v13562_v51, %s13299_s10  ;;  %9363 = vmatmul.msk.bf16.vlgmr.msrb.gmra.mxu2 %vm2098_vm7, %v2385_v50  ;;  %v2548_v52 = vunpack.c.l.b16 %v13562_v51  ;;  %v2410_v4 = vsel %vm2098_vm7, %v13562_v51, 0  ;;  %v2687_v50 = vrot.slane %v13562_v51, 4 }
 0x245   :  { %v2549_v53 = vpack.c.b16 %v2548_v52, %v2548_v52  ;;  %v1965_v56 = vpop.f32.mrf.mxu2  ;;  %v1979_v58 = vpop.f32.mrf.mxu3 }
 0x246   :  { %v1966_v14 = vadd.f32 %v1965_v56, %v586_v57 }
 0x247   :  { %2550 = vrot.lane.b32.xlu2 %v2549_v53, %s13299_s10 }
 0x248   :  { %v1980_v24 = vadd.f32 %v1979_v58, %v1966_v14 }
 0x24f   :  { %2517 = vrot.lane.b32.xlu2 %v13529_v61, %s13299_s10 }
 0x254   :  { %v2005_v59 = vpop.f32.mrf.mxu1  ;;  %v1991_v63 = vpop.f32.mrf.mxu0 }
 0x255   :  { %v2006_v20 = vadd.f32 %v2005_v59, %v587_v43  ;;  %v1992_v61 = vadd.f32 %v1991_v63, %v1978_v6 }
 0x257   :  { %2797 = vrot.lane.b32.xlu2 %v13555_v39, %s13299_s10  ;;  %v2692_v39 = vsel %vm2098_vm7, %v2687_v50, 0 }
 0x25c   :  { %v2033_v9 = vpop.f32.mrf.mxu3  ;;  %v2007_v12 = vpop.f32.mrf.mxu1 }
 0x25d   :  { %v2019_v3 = vpop.f32.mrf.mxu2  ;;  %v1993_v11 = vpop.f32.mrf.mxu0  ;;  %v2008_v17 = vadd.f32 %v2007_v12, %v587_v43 }
 0x25e   :  { %v2020_v7 = vadd.f32 %v2019_v3, %v2006_v20  ;;  %v2232_v23 = vpop.permute.xlu2 %2231  ;;  %v1994_v1 = vadd.f32 %v1993_v11, %v1980_v24 }
 0x25f   :  { %2828 = vrot.lane.b32.xlu2 %v2827_v13, %s13299_s10  ;;  %v2233_v0 = vrot.slane %v2232_v23, 4 }
 0x260   :  { %v2034_v10 = vadd.f32 %v2033_v9, %v2020_v7 }
 0x261   :  { %v2243_v27 = vsel %vm2098_vm7, %v2233_v0, 0 }
 0x262   :  { %v13576_v15 = vpack.c.bf16 %v2034_v10, %v1992_v61  ;;  %2252 = vmatpush.bf16.xpose.msra.mxu3 %v2243_v27 }
 0x264   :  { %v2195_v18 = vsel %vm2193_vm8, %v13576_v15, 0  ;;  %v2035_v26 = vpop.f32.mrf.mxu3 }
 0x265   :  { %v2021_v19 = vpop.f32.mrf.mxu2  ;;  %2204 = vmatpush.bf16.msrb.mxu0 %v2195_v18 }
 0x266   :  { %v2022_v25 = vadd.f32 %v2021_v19, %v2008_v17  ;;  %v2238_v33 = vpop.permute.xlu2 %2237 }
 0x268   :  { %v2036_v2 = vadd.f32 %v2035_v26, %v2022_v25  ;;  %v2265_v5 = vpop.permute.xlu1 %2264 }
 0x269   :  { %9359 = vmatmul.msk.bf16.vlgmr.msra.gmra.mxu3 %vm2098_vm7, %v2238_v33 }
 0x26a   :  { %v13582_v21 = vpack.c.bf16 %v2036_v2, %v1994_v1 }
 0x26c   :  { %v2214_v32 = vsel %vm2193_vm8, %v13582_v21, 0 }
 0x26d   :  { %2223 = vmatpush.bf16.msrb.mxu1 %v2214_v32 }
 0x27b   :  { %v13607_v63 = vpop.f32.mrf.mxu2 }
 0x27e   :  { %v2259_v34 = vpop.permute.xlu0 %2258 }
 0x27f   :  { %v2260_v22 = vrot.slane %v2259_v34, 4 }
 0x281   :  { %v2270_v35 = vsel %vm2098_vm7, %v2260_v22, 0 }
 0x282   :  { %2279 = vmatpush.bf16.xpose.msrb.mxu3 %v2270_v35 }
 0x283   :  { %v13615_v9 = vpop.f32.mrf.mxu2 }
 0x286   :  { %v2545_v55 = vpop.permute.xlu0 %2544 }
 0x287   :  { %v2546_v57 = vrot.slane %v2545_v55, 4 }
 0x289   :  { %9360 = vmatmul.msk.bf16.vlgmr.msrb.gmra.mxu3 %vm2098_vm7, %v2265_v5 }
 0x28a   :  { %2419 = vmatpush.bf16.xpose.msra.mxu3 %v2410_v4 }
 0x28e   :  { %v2803_v14 = vpop.permute.xlu0 %2802 }
 0x291   :  { %v2114_v42 = vpop.f32.mrf.mxu3 }
 0x292   :  { %v2115_v29 = vadd.f32 %v2114_v42, %v13591_v41 }
 0x294   :  { %v2140_v46 = vsel %vm2139_vm10, %v2115_v29, -inf }
 0x295   :  { %2141 = vmax.xlane.f32.xlu1 %v2140_v46 }
 0x299   :  { %v2524_v30 = vpop.permute.xlu2 %2523  ;;  %v2116_v49 = vpop.f32.mrf.mxu3  ;;  %9364 = vmatmul.msk.bf16.vlgmr.msra.gmra.mxu3 %vm2098_vm7, %v2405_v44 }
 0x29a   :  { %v2529_v45 = vsel %vm2098_vm7, %v2524_v30, 0 }
 0x29b   :  { %2538 = vmatpush.bf16.xpose.msra.mxu2 %v2529_v45 }
 0x2a1   :  { %v2551_v52 = vpop.permute.xlu2 %2550  ;;  %v2135_v54 = vpop.f32.mrf.mxu3 }
 0x2a2   :  { %v2556_v53 = vsel %vm2098_vm7, %v2551_v52, 0  ;;  %v2136_v8 = vadd.f32 %v2135_v54, %v13591_v41 }
 0x2a3   :  { %2681 = vmatpush.bf16.xpose.msrb.mxu2 %v2672_v48  ;;  %2565 = vmatpush.bf16.xpose.msrb.mxu3 %v2556_v53 }
 0x2a4   :  { %v2143_v56 = vsel %vm2139_vm10, %v2136_v8, -inf }
 0x2a5   :  { %2144 = vmax.xlane.f32.xlu0 %v2143_v56 }
 0x2a9   :  { %v2518_v58 = vpop.permute.xlu2 %2517  ;;  %v2137_v43 = vpop.f32.mrf.mxu3 }
 0x2aa   :  { %v2519_v59 = vrot.slane %v2518_v58, 4  ;;  %9368 = vmatmul.msk.bf16.vlgmr.msrb.gmra.mxu3 %vm2098_vm7, %v2546_v57 }
 0x2ab   :  { %2701 = vmatpush.bf16.xpose.msra.mxu3 %v2692_v39 }
 0x2ac   :  { %9367 = vmatmul.msk.bf16.vlgmr.msra.gmra.mxu2 %vm2098_vm7, %v2519_v59 }
 0x2b1   :  { %v2798_v51 = vpop.permute.xlu2 %2797 }
 0x2b2   :  { %v2799_v62 = vrot.slane %v2798_v51, 4 }
 0x2b4   :  { %v2808_v20 = vsel %vm2098_vm7, %v2799_v62, 0 }
 0x2b5   :  { %v2824_v3 = vpop.permute.xlu1 %2823  ;;  %2817 = vmatpush.bf16.xpose.msra.mxu2 %v2808_v20 }
 0x2b6   :  { %v2825_v6 = vrot.slane %v2824_v3, 4 }
 0x2b8   :  { %v2834_v7 = vsel %vm2098_vm7, %v2825_v6, 0 }
 0x2b9   :  { %2843 = vmatpush.bf16.xpose.msrb.mxu3 %v2834_v7  ;;  %v2829_v12 = vpop.permute.xlu2 %2828 }
 0x2ba   :  { %9372 = vmatmul.msk.bf16.vlgmr.msra.gmra.mxu3 %vm2098_vm7, %v13538_v16 }
 0x2bc   :  { %9371 = vmatmul.msk.bf16.vlgmr.msrb.gmra.mxu2 %vm2098_vm7, %v13531_v31 }
 0x2c6   :  { %v2401_v28 = vpop.f32.mrf.mxu2 }
 0x2c7   :  { %v2402_v61 = vadd.f32 %v2401_v28, %v13591_v41 }
 0x2c9   :  { %v2425_v10 = vsel %vm2139_vm10, %v2402_v61, -inf }
 0x2ca   :  { %2426 = vmax.xlane.f32.xlu0 %v2425_v10  ;;  %9376 = vmatmul.msk.bf16.vlgmr.msrb.gmra.mxu3 %vm2098_vm7, %v2829_v12  ;;  %v2360_v10 = vunpack.c.l.b16 %v13582_v21 }
 0x2cc   :  { %9375 = vmatmul.msk.bf16.vlgmr.msra.gmra.mxu2 %vm2098_vm7, %v2803_v14  ;;  %v2361_v12 = vpack.c.b16 %v2360_v10, %v2360_v10 }
 0x2ce   :  { %v2403_v13 = vpop.f32.mrf.mxu2 }
 0x2ec   :  { %v2254_v11 = vpop.f32.mrf.mxu3 }
 0x2ed   :  { %v13622_v16 = vadd.f32 %v2254_v11, %v13591_v41  ;;  %v2336_v11 = vunpack.c.l.b16 %v13576_v15 }
 0x2ef   :  { %v2285_v31 = vsel %vm2139_vm10, %v13622_v16, -inf }
 0x2f0   :  { %2286 = vmax.xlane.f32.xlu2 %v2285_v31 }
 0x2f4   :  { %v2256_v17 = vpop.f32.mrf.mxu3 }
 0x2f5   :  { %v2337_v17 = vpack.c.b16 %v2336_v11, %v2336_v11 }
 0x308   :  { %v2142_v18 = vpop.xlane.xlu1 %2141 }
 0x309   :  { %v2146_v19 = vsub.f32 %v2115_v29, %v2142_v18 }
 0x30b   :  { %v2148_v23 = vmul.f32 1.442695, %v2146_v19 }
 0x30c   :  { %v2281_v24 = vpop.f32.mrf.mxu3 }
 0x30d   :  { %12867 = vpow2.f32 %v2148_v23  ;;  %v13627_v25 = vadd.f32 %v2281_v24, %v13591_v41 }
 0x30f   :  { %v2288_v0 = vsel %vm2139_vm10, %v13627_v25, -inf }
 0x310   :  { %2289 = vmax.xlane.f32.xlu1 %v2288_v0 }
 0x313   :  { %v13631_v26 = vpop.eup %12867 }
 0x314   :  { %v2283_v1 = vpop.f32.mrf.mxu3  ;;  %v2152_v2 = vsel %vm2139_vm10, %v13631_v26, 0.0 }
 0x315   :  { %2153 = vadd.xlane.f32.xlu2 %v2152_v2 }
 0x318   :  { %v2145_v34 = vpop.xlane.xlu0 %2144 }
 0x319   :  { %v2147_v35 = vsub.f32 %v2136_v8, %v2145_v34 }
 0x31b   :  { %v2150_v4 = vmul.f32 1.442695, %v2147_v35 }
 0x31c   :  { %v2421_v27 = vpop.f32.mrf.mxu3 }
 0x31d   :  { %v13636_v32 = vadd.f32 %v2421_v27, %v13591_v41  ;;  %12869 = vpow2.f32 %v2150_v4 }
 0x31f   :  { %v2428_v33 = vsel %vm2139_vm10, %v13636_v32, -inf }
 0x320   :  { %2429 = vmax.xlane.f32.xlu2 %v2428_v33 }
 0x323   :  { %v13645_v42 = vpop.eup %12869 }
 0x324   :  { %v2423_v22 = vpop.f32.mrf.mxu3  ;;  %v2155_v46 = vsel %vm2139_vm10, %v13645_v42, 0.0 }
 0x32d   :  { %v2567_v36 = vpop.f32.mrf.mxu3 }
 0x32e   :  { %v13669_v43 = vadd.f32 %v2567_v36, %v13591_v41 }
 0x32f   :  { %v2540_v5 = vpop.f32.mrf.mxu2 }
 0x330   :  { %v13641_v37 = vadd.f32 %v2540_v5, %v13591_v41  ;;  %v2574_v3 = vsel %vm2139_vm10, %v13669_v43, -inf }
 0x332   :  { %v2571_v38 = vsel %vm2139_vm10, %v13641_v37, -inf }
 0x333   :  { %2572 = vmax.xlane.f32.xlu1 %v2571_v38 }
 0x335   :  { %v2569_v40 = vpop.f32.mrf.mxu3 }
 0x337   :  { %v2542_v29 = vpop.f32.mrf.mxu2 }
 0x33b   :  { %2156 = vadd.xlane.f32.xlu1 %v2155_v46 }
 0x33d   :  { %v2427_v47 = vpop.xlane.xlu0 %2426  ;;  %v2703_v30 = vpop.f32.mrf.mxu3 }
 0x33e   :  { %v2431_v44 = vsub.f32 %v2402_v61, %v2427_v47  ;;  %v13672_v51 = vadd.f32 %v2703_v30, %v13591_v41 }
 0x33f   :  { %v2683_v45 = vpop.f32.mrf.mxu2 }
 0x340   :  { %v2433_v48 = vmul.f32 1.442695, %v2431_v44  ;;  %v13654_v39 = vadd.f32 %v2683_v45, %v13591_v41  ;;  %v2710_v6 = vsel %vm2139_vm10, %v13672_v51, -inf }
 0x342   :  { %12871 = vpow2.f32 %v2433_v48  ;;  %v2707_v57 = vsel %vm2139_vm10, %v13654_v39, -inf }
 0x345   :  { %v2705_v49 = vpop.f32.mrf.mxu3 }
 0x347   :  { %v2685_v50 = vpop.f32.mrf.mxu2 }
 0x348   :  { %v13649_v52 = vpop.eup %12871 }
 0x349   :  { %v2437_v53 = vsel %vm2139_vm10, %v13649_v52, 0.0 }
 0x34a   :  { %2438 = vadd.xlane.f32.xlu0 %v2437_v53 }
 0x34d   :  { %v2845_v54 = vpop.f32.mrf.mxu3 }
 0x34e   :  { %v13657_v55 = vadd.f32 %v2845_v54, %v13591_v41 }
 0x34f   :  { %v2819_v8 = vpop.f32.mrf.mxu2 }
 0x350   :  { %v13660_v56 = vadd.f32 %v2819_v8, %v13591_v41  ;;  %v2852_v58 = vsel %vm2139_vm10, %v13657_v55, -inf }
 0x351   :  { %2853 = vmax.xlane.f32.xlu1 %v2852_v58 }
 0x352   :  { %2708 = vmax.xlane.f32.xlu0 %v2707_v57  ;;  %v2849_v59 = vsel %vm2139_vm10, %v13660_v56, -inf }
 0x353   :  { %2850 = vmax.xlane.f32.xlu2 %v2849_v59 }
 0x355   :  { %v2847_v62 = vpop.f32.mrf.mxu3 }
 0x357   :  { %v2821_v20 = vpop.f32.mrf.mxu2 }
 0x35a   :  { %2575 = vmax.xlane.f32.xlu0 %v2574_v3 }
 0x35b   :  { %2711 = vmax.xlane.f32.xlu2 %v2710_v6 }
 0x363   :  { %v2287_v7 = vpop.xlane.xlu2 %2286 }
 0x364   :  { %v2291_v28 = vsub.f32 %v13622_v16, %v2287_v7 }
 0x366   :  { %v2293_v61 = vmul.f32 1.442695, %v2291_v28 }
 0x368   :  { %12873 = vpow2.f32 %v2293_v61 }
 0x36e   :  { %2362 = vrot.lane.b32.xlu0 %v2361_v12, %s13299_s10  ;;  %v13681_v41 = vpop.eup %12873 }
 0x36f   :  { %v2297_v14 = vsel %vm2139_vm10, %v13681_v41, 0.0 }
 0x370   :  { %2298 = vadd.xlane.f32.xlu1 %v2297_v14 }
 0x383   :  { %v2290_v13 = vpop.xlane.xlu1 %2289 }
 0x384   :  { %v2292_v31 = vsub.f32 %v13627_v25, %v2290_v13 }
 0x386   :  { %v2295_v16 = vmul.f32 1.442695, %v2292_v31 }
 0x388   :  { %v2154_v18 = vpop.xlane.xlu2 %2153 }
 0x389   :  { %12875 = vrcp.f32 %v2154_v18  ;;  %2338 = vrot.lane.b32.xlu1 %v2337_v17, %s13299_s10  ;;  %v2169_v1 = vand.u32 2147483648, %v2154_v18  ;;  %v2167_v27 = vand.u32 2147483647, %v2154_v18  ;;  %vm2163_vm12 = vweird.f32 %v2154_v18 }
 0x38a   :  { %12877 = vpow2.f32 %v2295_v16 }
 0x38b   :  { %v2170_v34 = vor.u32 1.1754944e-38, %v2169_v1  ;;  %vm2168_vm14 = vcmp.eq.f32.partialorder %v2167_v27, 8.507059e+37 }
 0x38f   :  { %v12876_v19 = vpop.eup %12875 }
 0x390   :  { %v2159_v23 = vmul.f32 %v12876_v19, %v2154_v18  ;;  %v13688_v24 = vpop.eup %12877  ;;  %vm2164_vm11 = vweird.f32 %v12876_v19 }
 0x391   :  { %v2300_v33 = vsel %vm2139_vm10, %v13688_v24, 0.0  ;;  %vm2165_vm13 = vmor %vm2163_vm12, %vm2164_vm11 }
 0x392   :  { %v2160_v0 = vsub.f32 1.0, %v2159_v23  ;;  %v12860_v23 = vld [vmem:[#allocation10 + $0x8] ss:$0 sm:$0xff] }
 0x393   :  { %v2430_v5 = vpop.xlane.xlu2 %2429 }
 0x394   :  { %v2161_v2 = vmul.f32 %v12876_v19, %v2160_v0  ;;  %v2432_v29 = vsub.f32 %v13636_v32, %v2430_v5 }
 0x396   :  { %v2162_v25 = vadd.f32 %v12876_v19, %v2161_v2  ;;  %v2435_v47 = vmul.f32 1.442695, %v2432_v29 }
 0x398   :  { %2301 = vadd.xlane.f32.xlu0 %v2300_v33  ;;  %v2166_v22 = vsel %vm2165_vm13, %v12876_v19, %v2162_v25  ;;  %v2047_v19 = vpop.f32.mrf.mxu0 }
 0x399   :  { %v2171_v35 = vsel %vm2168_vm14, %v2170_v34, %v2166_v22  ;;  %v2048_v33 = vadd.f32 %v12860_v23, %v2047_v19  ;;  %v2495_v34 = vrot.slane %v13582_v21, 4 }
 0x39a   :  { %v2186_v4 = vmul.f32 %v13631_v26, %v2171_v35 }
 0x39c   :  { %v2188_v36 = vpack.c.bf16 %v2186_v4, %v2186_v4 }
 0x39e   :  { %9357 = vmatmul.msk.bf16.vlgmr.msrb.gmra.mxu0 %vm2139_vm10, %v2188_v36 }
 0x3a0   :  { %v2049_v25 = vpop.f32.mrf.mxu0 }
 0x3a1   :  { %v2050_v35 = vadd.f32 %v12860_v23, %v2049_v25 }
 0x3a6   :  { %v2573_v38 = vpop.xlane.xlu1 %2572 }
 0x3a7   :  { %v2577_v40 = vsub.f32 %v13641_v37, %v2573_v38 }
 0x3a9   :  { %v2579_v46 = vmul.f32 1.442695, %v2577_v40  ;;  %v2500_v40 = vsel %vm2193_vm8, %v2495_v34, 0 }
 0x3ab   :  { %12879 = vpow2.f32 %v2579_v46 }
 0x3ac   :  { %2643 = vrot.lane.b32.xlu0 %v13582_v21, %s13299_s10 }
 0x3ae   :  { %v2157_v44 = vpop.xlane.xlu1 %2156 }
 0x3af   :  { %12881 = vrcp.f32 %v2157_v44  ;;  %v2183_v49 = vand.u32 2147483648, %v2157_v44  ;;  %v2181_v53 = vand.u32 2147483647, %v2157_v44  ;;  %vm2177_vm0 = vweird.f32 %v2157_v44 }
 0x3b0   :  { %12883 = vpow2.f32 %v2435_v47 }
 0x3b1   :  { %v13698_v30 = vpop.eup %12879  ;;  %v2184_v57 = vor.u32 1.1754944e-38, %v2183_v49  ;;  %vm2182_vm2 = vcmp.eq.f32.partialorder %v2181_v53, 8.507059e+37 }
 0x3b2   :  { %v2583_v26 = vsel %vm2139_vm10, %v13698_v30, 0.0 }
 0x3b3   :  { %2584 = vadd.xlane.f32.xlu2 %v2583_v26 }
 0x3b5   :  { %v12882_v45 = vpop.eup %12881 }
 0x3b6   :  { %v2173_v48 = vmul.f32 %v12882_v45, %v2157_v44  ;;  %v13702_v37 = vpop.eup %12883  ;;  %vm2178_vm15 = vweird.f32 %v12882_v45 }
 0x3b7   :  { %v2440_v54 = vsel %vm2139_vm10, %v13702_v37, 0.0  ;;  %vm2179_vm1 = vmor %vm2177_vm0, %vm2178_vm15 }
 0x3b8   :  { %v2174_v32 = vsub.f32 1.0, %v2173_v48 }
 0x3ba   :  { %v2175_v50 = vmul.f32 %v12882_v45, %v2174_v32 }
 0x3bb   :  { %2441 = vadd.xlane.f32.xlu2 %v2440_v54 }
 0x3bc   :  { %v2176_v8 = vadd.f32 %v12882_v45, %v2175_v50 }
 0x3bd   :  { %v13706_v58 = vpop.xlane.xlu0 %2438 }
 0x3be   :  { %v2180_v59 = vsel %vm2179_vm1, %v12882_v45, %v2176_v8  ;;  %vm2448_vm11 = vweird.f32 %v13706_v58 }
 0x3bf   :  { %v2185_v62 = vsel %vm2182_vm2, %v2184_v57, %v2180_v59 }
 0x3c0   :  { %v2187_v20 = vmul.f32 %v13645_v42, %v2185_v62 }
 0x3c2   :  { %v2189_v3 = vpack.c.bf16 %v2187_v20, %v2187_v20 }
 0x3c4   :  { %9358 = vmatmul.msk.bf16.vlgmr.msrb.gmra.mxu1 %vm2139_vm10, %v2189_v3  ;;  %v2854_v7 = vpop.xlane.xlu1 %2853 }
 0x3c5   :  { %v2709_v6 = vpop.xlane.xlu0 %2708  ;;  %v2856_v12 = vsub.f32 %v13657_v55, %v2854_v7  ;;  %v2475_v7 = vrot.slane %v13576_v15, 4 }
 0x3c6   :  { %v2713_v28 = vsub.f32 %v13654_v39, %v2709_v6  ;;  %v13711_v61 = vpop.xlane.xlu2 %2850 }
 0x3c7   :  { %v2859_v14 = vmul.f32 1.442695, %v2856_v12 }
 0x3c8   :  { %v2715_v10 = vmul.f32 1.442695, %v2713_v28 }
 0x3ca   :  { %12885 = vpow2.f32 %v2715_v10 }
 0x3cb   :  { %12887 = vpow2.f32 %v2859_v14 }
 0x3cd   :  { %v2576_v13 = vpop.xlane.xlu0 %2575 }
 0x3ce   :  { %v2578_v11 = vsub.f32 %v13669_v43, %v2576_v13  ;;  %v2712_v31 = vpop.xlane.xlu2 %2711  ;;  %v2061_v43 = vpop.f32.mrf.mxu1  ;;  %v2480_v13 = vsel %vm2193_vm8, %v2475_v7, 0 }
 0x3cf   :  { %v2714_v42 = vsub.f32 %v13672_v51, %v2712_v31  ;;  %v2062_v22 = vadd.f32 %v2061_v43, %v2048_v33 }
 0x3d0   :  { %v13716_v17 = vpop.eup %12885  ;;  %v2581_v16 = vmul.f32 1.442695, %v2578_v11 }
 0x3d1   :  { %v2717_v18 = vmul.f32 1.442695, %v2714_v42  ;;  %v2719_v39 = vsel %vm2139_vm10, %v13716_v17, 0.0  ;;  %v13720_v55 = vpop.eup %12887  ;;  %v2076_v36 = vadd.f32 %v13607_v63, %v2062_v22  ;;  %v2454_v42 = vand.u32 2147483648, %v13706_v58 }
 0x3d2   :  { %12889 = vpow2.f32 %v2581_v16  ;;  %2720 = vadd.xlane.f32.xlu1 %v2719_v39  ;;  %v2864_v2 = vsel %vm2139_vm10, %v13720_v55, 0.0  ;;  %v2855_v39 = vsub.f32 %v13660_v56, %v13711_v61 }
 0x3d3   :  { %12891 = vpow2.f32 %v2717_v18  ;;  %v13736_v46 = vpack.c.bf16 %v2076_v36, %v2076_v36  ;;  %v2455_v16 = vor.u32 1.1754944e-38, %v2454_v42 }
 0x3d4   :  { %v2857_v43 = vmul.f32 1.442695, %v2855_v39 }
 0x3d5   :  { %v2900_v21 = vunpack.c.l.b16 %v13736_v46 }
 0x3d6   :  { %v2063_v38 = vpop.f32.mrf.mxu1 }
 0x3d7   :  { %v2064_v29 = vadd.f32 %v2063_v38, %v2050_v35  ;;  %v2901_v63 = vpack.c.b16 %v2900_v21, %v2900_v21 }
 0x3d8   :  { %v13722_v0 = vpop.eup %12889 }
 0x3d9   :  { %v13724_v1 = vpop.eup %12891  ;;  %v2586_v51 = vsel %vm2139_vm10, %v13722_v0, 0.0  ;;  %v2078_v47 = vadd.f32 %v13615_v9, %v2064_v29 }
 0x3da   :  { %2587 = vadd.xlane.f32.xlu2 %v2586_v51  ;;  %2865 = vadd.xlane.f32.xlu1 %v2864_v2  ;;  %v2722_v27 = vsel %vm2139_vm10, %v13724_v1, 0.0 }
 0x3db   :  { %2723 = vadd.xlane.f32.xlu0 %v2722_v27  ;;  %v13740_v26 = vpack.c.bf16 %v2078_v47, %v2078_v47 }
 0x3dd   :  { %v2924_v48 = vunpack.c.l.b16 %v13740_v26  ;;  %v2780_v7 = vsel %vm2193_vm8, %v13740_v26, 0 }
 0x3df   :  { %v2925_v53 = vpack.c.b16 %v2924_v48, %v2924_v48 }
 0x3e0   :  { %v2363_v4 = vpop.permute.xlu0 %2362 }
 0x3e1   :  { %v2368_v5 = vsel %vm2193_vm8, %v2363_v4, 0 }
 0x3e2   :  { %2377 = vmatpush.bf16.msra.mxu1 %v2368_v5 }
 0x3e3   :  { %v2299_v44 = vpop.xlane.xlu1 %2298 }
 0x3e4   :  { %12893 = vrcp.f32 %v2299_v44  ;;  %v2314_v8 = vand.u32 2147483648, %v2299_v44  ;;  %vm2308_vm4 = vweird.f32 %v2299_v44  ;;  %v2312_v57 = vand.u32 2147483647, %v2299_v44 }
 0x3e5   :  { %12895 = vrcp.f32 %v13706_v58 }
 0x3e6   :  { %2509 = vmatpush.bf16.msrb.mxu1 %v2500_v40  ;;  %v2315_v20 = vor.u32 1.1754944e-38, %v2314_v8  ;;  %vm2313_vm6 = vcmp.eq.f32.partialorder %v2312_v57, 8.507059e+37 }
 0x3ea   :  { %v12894_v45 = vpop.eup %12893 }
 0x3eb   :  { %v2304_v32 = vmul.f32 %v12894_v45, %v2299_v44  ;;  %vm2309_vm3 = vweird.f32 %v12894_v45  ;;  %v12896_v9 = vpop.eup %12895 }
 0x3ec   :  { %vm2310_vm5 = vmor %vm2308_vm4, %vm2309_vm3  ;;  %v2444_v59 = vmul.f32 %v12896_v9, %v13706_v58  ;;  %vm2449_vm9 = vweird.f32 %v12896_v9 }
 0x3ed   :  { %v2305_v49 = vsub.f32 1.0, %v2304_v32  ;;  %vm2450_vm12 = vmor %vm2448_vm11, %vm2449_vm9 }
 0x3ee   :  { %v2445_v6 = vsub.f32 1.0, %v2444_v59 }
 0x3ef   :  { %2902 = vrot.lane.b32.xlu0 %v2901_v63, %s13299_s10  ;;  %v2306_v50 = vmul.f32 %v12894_v45, %v2305_v49 }
 0x3f0   :  { %v2446_v12 = vmul.f32 %v12896_v9, %v2445_v6 }
 0x3f1   :  { %v2307_v54 = vadd.f32 %v12894_v45, %v2306_v50 }
 0x3f2   :  { %2621 = vrot.lane.b32.xlu2 %v13576_v15, %s13299_s10  ;;  %v2447_v31 = vadd.f32 %v12896_v9, %v2446_v12  ;;  %v2452_v15 = vand.u32 2147483647, %v13706_v58 }
 0x3f3   :  { %2926 = vrot.lane.b32.xlu1 %v2925_v53, %s13299_s10  ;;  %v2311_v62 = vsel %vm2310_vm5, %v12894_v45, %v2307_v54 }
 0x3f4   :  { %v2316_v3 = vsel %vm2313_vm6, %v2315_v20, %v2311_v62  ;;  %vm2453_vm13 = vcmp.eq.f32.partialorder %v2452_v15, 8.507059e+37 }
 0x3f5   :  { %v2331_v28 = vmul.f32 %v13681_v41, %v2316_v3  ;;  %v2451_v41 = vsel %vm2450_vm12, %v12896_v9, %v2447_v31 }
 0x3f6   :  { %v2456_v18 = vsel %vm2453_vm13, %v2455_v16, %v2451_v41 }
 0x3f7   :  { %v2333_v11 = vpack.c.bf16 %v2331_v28, %v2331_v28  ;;  %v2471_v23 = vmul.f32 %v13649_v52, %v2456_v18 }
 0x3f9   :  { %v2473_v51 = vpack.c.bf16 %v2471_v23, %v2471_v23 }
 0x3fb   :  { %v2339_v10 = vpop.permute.xlu1 %2338 }
 0x3fc   :  { %v2344_v14 = vsel %vm2193_vm8, %v2339_v10, 0 }
 0x3fd   :  { %2353 = vmatpush.bf16.msra.mxu0 %v2344_v14 }
 0x400   :  { %9361 = vmatmul.msk.bf16.vlgmr.msra.gmra.mxu0 %vm2139_vm10, %v2333_v11 }
 0x401   :  { %2489 = vmatpush.bf16.msrb.mxu0 %v2480_v13 }
 0x40b   :  { %v2302_v19 = vpop.xlane.xlu0 %2301 }
 0x40c   :  { %12897 = vrcp.f32 %v2302_v19  ;;  %v2328_v33 = vand.u32 2147483648, %v2302_v19  ;;  %v2326_v22 = vand.u32 2147483647, %v2302_v19  ;;  %vm2322_vm15 = vweird.f32 %v2302_v19 }
 0x40d   :  { %12899 = vpow2.f32 %v2857_v43 }
 0x40e   :  { %v2329_v56 = vor.u32 1.1754944e-38, %v2328_v33  ;;  %vm2327_vm1 = vcmp.eq.f32.partialorder %v2326_v22, 8.507059e+37 }
 0x410   :  { %9365 = vmatmul.msk.bf16.vlgmr.msrb.gmra.mxu0 %vm2139_vm10, %v2473_v51 }
 0x412   :  { %v12898_v2 = vpop.eup %12897 }
 0x413   :  { %v2318_v27 = vmul.f32 %v12898_v2, %v2302_v19  ;;  %v13761_v25 = vpop.eup %12899  ;;  %vm2323_vm14 = vweird.f32 %v12898_v2 }
 0x414   :  { %vm2324_vm0 = vmor %vm2322_vm15, %vm2323_vm14  ;;  %v2861_v52 = vsel %vm2139_vm10, %v13761_v25, 0.0 }
 0x415   :  { %v2319_v58 = vsub.f32 1.0, %v2318_v27 }
 0x417   :  { %v2320_v34 = vmul.f32 %v12898_v2, %v2319_v58 }
 0x419   :  { %v2321_v35 = vadd.f32 %v12898_v2, %v2320_v34 }
 0x41b   :  { %v2325_v61 = vsel %vm2324_vm0, %v12898_v2, %v2321_v35  ;;  %2862 = vadd.xlane.f32.xlu2 %v2861_v52  ;;  %v13766_v5 = vpop.f32.mrf.mxu0  ;;  %v2761_v35 = vsel %vm2193_vm8, %v13736_v46, 0 }
 0x41c   :  { %v2330_v4 = vsel %vm2327_vm1, %v2329_v56, %v2325_v61 }
 0x41d   :  { %v2332_v36 = vmul.f32 %v13688_v24, %v2330_v4 }
 0x41e   :  { %v2644_v38 = vpop.permute.xlu0 %2643 }
 0x41f   :  { %v2645_v40 = vrot.slane %v2644_v38, 4  ;;  %v2334_v29 = vpack.c.bf16 %v2332_v36, %v2332_v36 }
 0x421   :  { %v2650_v47 = vsel %vm2193_vm8, %v2645_v40, 0  ;;  %9362 = vmatmul.msk.bf16.vlgmr.msra.gmra.mxu1 %vm2139_vm10, %v2334_v29 }
 0x422   :  { %2659 = vmatpush.bf16.msra.mxu1 %v2650_v47 }
 0x423   :  { %v2208_v44 = vpop.f32.mrf.mxu0 }
 0x426   :  { %v2585_v21 = vpop.xlane.xlu2 %2584 }
 0x427   :  { %v2600_v11 = vand.u32 2147483648, %v2585_v21  ;;  %vm2594_vm9 = vweird.f32 %v2585_v21 }
 0x429   :  { %v2601_v26 = vor.u32 1.1754944e-38, %v2600_v11 }
 0x42e   :  { %v2442_v45 = vpop.xlane.xlu2 %2441 }
 0x42f   :  { %12901 = vrcp.f32 %v2442_v45  ;;  %v2468_v49 = vand.u32 2147483648, %v2442_v45  ;;  %v2466_v50 = vand.u32 2147483647, %v2442_v45  ;;  %vm2462_vm3 = vweird.f32 %v2442_v45 }
 0x430   :  { %12903 = vrcp.f32 %v2585_v21 }
 0x431   :  { %v2469_v54 = vor.u32 1.1754944e-38, %v2468_v49  ;;  %vm2467_vm5 = vcmp.eq.f32.partialorder %v2466_v50, 8.507059e+37 }
 0x435   :  { %v12902_v63 = vpop.eup %12901 }
 0x436   :  { %v2458_v48 = vmul.f32 %v12902_v63, %v2442_v45  ;;  %vm2463_vm2 = vweird.f32 %v12902_v63  ;;  %v12904_v9 = vpop.eup %12903 }
 0x437   :  { %vm2464_vm4 = vmor %vm2462_vm3, %vm2463_vm2  ;;  %v2590_v59 = vmul.f32 %v12904_v9, %v2585_v21  ;;  %vm2595_vm6 = vweird.f32 %v12904_v9 }
 0x438   :  { %v2459_v32 = vsub.f32 1.0, %v2458_v48  ;;  %vm2596_vm11 = vmor %vm2594_vm9, %vm2595_vm6 }
 0x439   :  { %v2591_v6 = vsub.f32 1.0, %v2590_v59 }
 0x43a   :  { %v2460_v24 = vmul.f32 %v12902_v63, %v2459_v32 }
 0x43b   :  { %v2592_v10 = vmul.f32 %v12904_v9, %v2591_v6 }
 0x43c   :  { %v2461_v53 = vadd.f32 %v12902_v63, %v2460_v24 }
 0x43d   :  { %v2593_v14 = vadd.f32 %v12904_v9, %v2592_v10 }
 0x43e   :  { %v2465_v8 = vsel %vm2464_vm4, %v12902_v63, %v2461_v53 }
 0x43f   :  { %v2470_v57 = vsel %vm2467_vm5, %v2469_v54, %v2465_v8  ;;  %v2597_v15 = vsel %vm2596_vm11, %v12904_v9, %v2593_v14 }
 0x440   :  { %v2472_v62 = vmul.f32 %v13702_v37, %v2470_v57  ;;  %v2598_v37 = vand.u32 2147483647, %v2585_v21 }
 0x441   :  { %v13771_v20 = vpop.f32.mrf.mxu1 }
 0x442   :  { %v2474_v3 = vpack.c.bf16 %v2472_v62, %v2472_v62  ;;  %vm2599_vm12 = vcmp.eq.f32.partialorder %v2598_v37, 8.507059e+37 }
 0x443   :  { %v2602_v16 = vsel %vm2599_vm12, %v2601_v26, %v2597_v15 }
 0x444   :  { %9366 = vmatmul.msk.bf16.vlgmr.msrb.gmra.mxu1 %vm2139_vm10, %v2474_v3  ;;  %v2617_v51 = vmul.f32 %v13698_v30, %v2602_v16 }
 0x445   :  { %2789 = vmatpush.bf16.msrb.mxu1 %v2780_v7  ;;  %v2721_v28 = vpop.xlane.xlu1 %2720 }
 0x446   :  { %12905 = vrcp.f32 %v2721_v28  ;;  %v2619_v61 = vpack.c.bf16 %v2617_v51, %v2617_v51  ;;  %v2736_v29 = vand.u32 2147483648, %v2721_v28  ;;  %vm2730_vm2 = vweird.f32 %v2721_v28 }
 0x447   :  { %v2734_v46 = vand.u32 2147483647, %v2721_v28 }
 0x448   :  { %v2737_v48 = vor.u32 1.1754944e-38, %v2736_v29 }
 0x449   :  { %v2227_v12 = vpop.f32.mrf.mxu1  ;;  %vm2735_vm4 = vcmp.eq.f32.partialorder %v2734_v46, 8.507059e+37 }
 0x44c   :  { %v12906_v13 = vpop.eup %12905 }
 0x44d   :  { %v2588_v31 = vpop.xlane.xlu2 %2587  ;;  %v2726_v41 = vmul.f32 %v12906_v13, %v2721_v28  ;;  %v2866_v30 = vpop.xlane.xlu1 %2865  ;;  %vm2731_vm15 = vweird.f32 %v12906_v13 }
 0x44e   :  { %12907 = vrcp.f32 %v2588_v31  ;;  %v13776_v42 = vpop.xlane.xlu0 %2723  ;;  %v2614_v34 = vand.u32 2147483648, %v2588_v31  ;;  %v2612_v52 = vand.u32 2147483647, %v2588_v31  ;;  %vm2608_vm14 = vweird.f32 %v2588_v31  ;;  %vm2732_vm3 = vmor %vm2730_vm2, %vm2731_vm15 }
 0x44f   :  { %12909 = vrcp.f32 %v13776_v42  ;;  %v2727_v39 = vsub.f32 1.0, %v2726_v41  ;;  %v2750_v54 = vand.u32 2147483648, %v13776_v42  ;;  %vm2744_vm6 = vweird.f32 %v13776_v42 }
 0x450   :  { %v2615_v40 = vor.u32 1.1754944e-38, %v2614_v34  ;;  %vm2613_vm1 = vcmp.eq.f32.partialorder %v2612_v52, 8.507059e+37  ;;  %12911 = vrcp.f32 %v2866_v30 }
 0x451   :  { %v2728_v33 = vmul.f32 %v12906_v13, %v2727_v39  ;;  %v2751_v6 = vor.u32 1.1754944e-38, %v2750_v54 }
 0x453   :  { %v2729_v38 = vadd.f32 %v12906_v13, %v2728_v33 }
 0x454   :  { %v12908_v18 = vpop.eup %12907 }
 0x455   :  { %v2604_v19 = vmul.f32 %v12908_v18, %v2588_v31  ;;  %v2622_v23 = vpop.permute.xlu2 %2621  ;;  %v12910_v43 = vpop.eup %12909  ;;  %vm2609_vm13 = vweird.f32 %v12908_v18  ;;  %v2733_v63 = vsel %vm2732_vm3, %v12906_v13, %v2729_v38  ;;  %v2890_v31 = vand.u32 2147483647, %v2866_v30 }
 0x456   :  { %v2623_v2 = vrot.slane %v2622_v23, 4  ;;  %v2740_v58 = vmul.f32 %v12910_v43, %v13776_v42  ;;  %vm2610_vm0 = vmor %vm2608_vm14, %vm2609_vm13  ;;  %v2738_v50 = vsel %vm2735_vm4, %v2737_v48, %v2733_v63  ;;  %vm2745_vm5 = vweird.f32 %v12910_v43  ;;  %v12912_v9 = vpop.eup %12911 }
 0x457   :  { %v2605_v27 = vsub.f32 1.0, %v2604_v19  ;;  %v2753_v57 = vmul.f32 %v13716_v17, %v2738_v50  ;;  %vm2746_vm9 = vmor %vm2744_vm6, %vm2745_vm5  ;;  %v2882_v62 = vmul.f32 %v12912_v9, %v2866_v30  ;;  %vm2887_vm12 = vweird.f32 %v12912_v9 }
 0x458   :  { %v2628_v22 = vsel %vm2193_vm8, %v2623_v2, 0  ;;  %v2741_v36 = vsub.f32 1.0, %v2740_v58  ;;  %v2892_v17 = vand.u32 2147483648, %v2866_v30  ;;  %vm2891_vm14 = vcmp.eq.f32.partialorder %v2890_v31, 8.507059e+37  ;;  %v9429_v31 = vld [vmem:[#allocation11 + $0x60] sm:$0xf] }
 0x459   :  { %v2606_v56 = vmul.f32 %v12908_v18, %v2605_v27  ;;  %2637 = vmatpush.bf16.msra.mxu0 %v2628_v22  ;;  %v2755_v28 = vpack.c.bf16 %v2753_v57, %v2753_v57  ;;  %v2883_v10 = vsub.f32 1.0, %v2882_v62  ;;  %v12205_v57 = vld [vmem:[#allocation11 + $0x94] sm:$0xf] }
 0x45a   :  { %v2742_v45 = vmul.f32 %v12910_v43, %v2741_v36 }
 0x45b   :  { %v2607_v4 = vadd.f32 %v12908_v18, %v2606_v56  ;;  %v2884_v14 = vmul.f32 %v12912_v9, %v2883_v10  ;;  %v12203_v10 = vld [vmem:[#allocation11 + $0x80] sm:$0xf0] }
 0x45c   :  { %9369 = vmatmul.msk.bf16.vlgmr.msra.gmra.mxu0 %vm2139_vm10, %v2619_v61  ;;  %v2743_v53 = vadd.f32 %v12910_v43, %v2742_v45  ;;  %v12208_v45 = vld [vmem:[#allocation11 + $0xac] sm:$0xf] }
 0x45d   :  { %2770 = vmatpush.bf16.msrb.mxu0 %v2761_v35  ;;  %v2611_v47 = vsel %vm2610_vm0, %v12908_v18, %v2607_v4  ;;  %v2885_v11 = vadd.f32 %v12912_v9, %v2884_v14 }
 0x45e   :  { %v2616_v44 = vsel %vm2613_vm1, %v2615_v40, %v2611_v47  ;;  %v2747_v3 = vsel %vm2746_vm9, %v12910_v43, %v2743_v53 }
 0x45f   :  { %v2618_v21 = vmul.f32 %v13722_v0, %v2616_v44  ;;  %v2748_v0 = vand.u32 2147483647, %v13776_v42  ;;  %v2893_v42 = vor.u32 1.1754944e-38, %v2892_v17  ;;  %v9465_v44 = vld [vmem:[#allocation11 + $0xa8] sm:$0xf] }
 0x461   :  { %v2903_v32 = vpop.permute.xlu0 %2902  ;;  %v2620_v49 = vpack.c.bf16 %v2618_v21, %v2618_v21  ;;  %vm2749_vm11 = vcmp.eq.f32.partialorder %v2748_v0, 8.507059e+37  ;;  %v12209_v21 = vld [vmem:[#allocation11 + $0xb0] sm:$0xf0]  ;;  %v9453_v0 = vld [vmem:[#allocation11 + $0x90] sm:$0xf] }
 0x462   :  { %v2908_v24 = vsel %vm2193_vm8, %v2903_v32, 0  ;;  %v2752_v7 = vsel %vm2749_vm11, %v2751_v6, %v2747_v3  ;;  %v9466_v48 = vor.u32 %v12209_v21, %v9465_v44  ;;  %v9467_v32 = vld [vmem:[#allocation11 + $0xb4] sm:$0xf0]  ;;  %v9455_v3 = vld [vmem:[#allocation11 + $0x9c] sm:$0xf0] }
 0x463   :  { %9370 = vmatmul.msk.bf16.vlgmr.msra.gmra.mxu1 %vm2139_vm10, %v2620_v49  ;;  %2917 = vmatpush.bf16.msra.mxu0 %v2908_v24  ;;  %v2754_v12 = vmul.f32 %v13724_v1, %v2752_v7  ;;  %v9470_v24 = vor.u32 %v12208_v45, %v9467_v32  ;;  %v9458_v6 = vor.u32 %v12205_v57, %v9455_v3  ;;  %v9383_v21 = vld [vmem:[#allocation11 + $0xc] sm:$0xf0]  ;;  %v12230_v3 = vld [vmem:[#allocation11 + $0x158] sm:$0xf0] }
 0x464   :  { %3503 = vmatpush.bf16.msrb.mxu2 %v9466_v48 }
 0x465   :  { %v2927_v8 = vpop.permute.xlu1 %2926  ;;  %v2756_v13 = vpack.c.bf16 %v2754_v12, %v2754_v12  ;;  %v12202_v12 = vld [vmem:[#allocation11 + $0x7c] sm:$0xf] }
 0x466   :  { %v2932_v59 = vsel %vm2193_vm8, %v2927_v8, 0  ;;  %vm2886_vm8 = vweird.f32 %v2866_v30  ;;  %v12206_v8 = vld [vmem:[#allocation11 + $0x98] sm:$0xf0] }
 0x467   :  { %2941 = vmatpush.bf16.msra.mxu1 %v2932_v59  ;;  %vm2888_vm13 = vmor %vm2886_vm8, %vm2887_vm12  ;;  %v9454_v62 = vor.u32 %v12206_v8, %v9453_v0  ;;  %v9569_v0 = vld [vmem:[#allocation11 + $0x170] sm:$0xf]  ;;  %v12234_v8 = vld [vmem:[#allocation11 + $0x178] sm:$0xf0] }
 0x468   :  { %v2889_v37 = vsel %vm2888_vm13, %v12912_v9, %v2885_v11 }
 0x469   :  { %v2894_v15 = vsel %vm2891_vm14, %v2893_v42, %v2889_v37  ;;  %3504 = vmatpush.bf16.msrb.mxu2 %v9454_v62  ;;  %v12200_v37 = vld [vmem:[#allocation11 + $0x68] sm:$0xf0]  ;;  %v12199_v42 = vld [vmem:[#allocation11 + $0x64] sm:$0xf]  ;;  %v9549_v62 = vld [vmem:[#allocation11 + $0x150] sm:$0xf] }
 0x46a   :  { %v2896_v41 = vmul.f32 %v13720_v55, %v2894_v15 }
 0x46c   :  { %9373 = vmatmul.msk.bf16.vlgmr.msrb.gmra.mxu0 %vm2139_vm10, %v2755_v28  ;;  %v2898_v18 = vpack.c.bf16 %v2896_v41, %v2896_v41  ;;  %v9441_v28 = vld [vmem:[#allocation11 + $0x78] sm:$0xf]  ;;  %v9430_v41 = vor.u32 %v12200_v37, %v9429_v31  ;;  %v12226_v31 = vld [vmem:[#allocation11 + $0x13c] sm:$0xf]  ;;  %v9539_v37 = vld [vmem:[#allocation11 + $0x144] sm:$0xf0] }
 0x46d   :  { %v9442_v14 = vor.u32 %v12203_v10, %v9441_v28  ;;  %v9551_v28 = vld [vmem:[#allocation11 + $0x15c] sm:$0xf0]  ;;  %v9557_v10 = vld [vmem:[#allocation11 + $0x158] sm:$0xf] }
 0x46f   :  { %3505 = vmatpush.bf16.msrb.mxu2 %v9442_v14 }
 0x473   :  { %9374 = vmatmul.msk.bf16.vlgmr.msrb.gmra.mxu1 %vm2139_vm10, %v2756_v13  ;;  %v9443_v13 = vld [vmem:[#allocation11 + $0x84] sm:$0xf0]  ;;  %3506 = vmatpush.bf16.msrb.mxu2 %v9430_v41  ;;  %v12228_v41 = vld [vmem:[#allocation11 + $0x148] sm:$0xf0] }
 0x474   :  { %3545 = vmatpush.bf16.msrb.mxu1 %v9470_v24  ;;  %v9446_v11 = vor.u32 %v12202_v12, %v9443_v13  ;;  %v12231_v12 = vld [vmem:[#allocation11 + $0x160] sm:$0xf0] }
 0x475   :  { %v9558_v13 = vor.u32 %v12231_v12, %v9557_v10  ;;  %v9497_v10 = vld [vmem:[#allocation11 + $0xe0] sm:$0xf]  ;;  %v12216_v12 = vld [vmem:[#allocation11 + $0xe8] sm:$0xf0] }
 0x478   :  { %3546 = vmatpush.bf16.msrb.mxu1 %v9458_v6  ;;  %v12229_v6 = vld [vmem:[#allocation11 + $0x154] sm:$0xf] }
 0x479   :  { %v9554_v14 = vor.u32 %v12229_v6, %v9551_v28  ;;  %v12214_v6 = vld [vmem:[#allocation11 + $0xdc] sm:$0xf]  ;;  %v9491_v28 = vld [vmem:[#allocation11 + $0xe4] sm:$0xf0] }
 0x47c   :  { %3547 = vmatpush.bf16.msrb.mxu1 %v9446_v11  ;;  %v9537_v11 = vld [vmem:[#allocation11 + $0x138] sm:$0xf] }
 0x47d   :  { %v2355_v26 = vpop.f32.mrf.mxu0 }
 0x47e   :  { %v2383_v16 = vpack.c.bf16 %v2355_v26, %v2355_v26  ;;  %v9431_v26 = vld [vmem:[#allocation11 + $0x6c] sm:$0xf0] }
 0x480   :  { %v2951_v1 = vunpack.c.l.b16 %v2383_v16  ;;  %v9434_v16 = vor.u32 %v12199_v42, %v9431_v26  ;;  %v9545_v42 = vld [vmem:[#allocation11 + $0x140] sm:$0xf] }
 0x482   :  { %v2953_v39 = vpack.c.b16 %v2951_v1, %v2951_v1  ;;  %v12197_v1 = vld [vmem:[#allocation11 + $0x50] sm:$0xf0]  ;;  %3548 = vmatpush.bf16.msrb.mxu1 %v9434_v16  ;;  %v9542_v16 = vor.u32 %v12226_v31, %v9539_v37  ;;  %v12211_v31 = vld [vmem:[#allocation11 + $0xc4] sm:$0xf] }
 0x483   :  { %9378 = vmatmul.msk.bf16.vlgmr.msra.gmra.mxu1 %vm2139_vm10, %v2898_v18  ;;  %v9417_v18 = vld [vmem:[#allocation11 + $0x48] sm:$0xf] }
 0x484   :  { %2955 = vrot.lane.b32.xlu2 %v2953_v39, %s13299_s10  ;;  %v12196_v39 = vld [vmem:[#allocation11 + $0x4c] sm:$0xf] }
 0x485   :  { %v2357_v19 = vpop.f32.mrf.mxu0 }
 0x486   :  { %v9419_v19 = vld [vmem:[#allocation11 + $0x54] sm:$0xf0] }
 0x48d   :  { %v13799_v43 = vpop.f32.mrf.mxu0 }
 0x48e   :  { %v2863_v23 = vpop.xlane.xlu2 %2862 }
 0x48f   :  { %12913 = vrcp.f32 %v2863_v23  ;;  %v2878_v33 = vand.u32 2147483648, %v2863_v23  ;;  %v2876_v34 = vand.u32 2147483647, %v2863_v23  ;;  %vm2872_vm0 = vweird.f32 %v2863_v23 }
 0x491   :  { %v2879_v35 = vor.u32 1.1754944e-38, %v2878_v33  ;;  %vm2877_vm2 = vcmp.eq.f32.partialorder %v2876_v34, 8.507059e+37  ;;  %v9407_v33 = vld [vmem:[#allocation11 + $0x3c] sm:$0xf0] }
 0x495   :  { %v12914_v51 = vpop.eup %12913  ;;  %v2493_v27 = vpop.f32.mrf.mxu0 }
 0x496   :  { %v2868_v2 = vmul.f32 %v12914_v51, %v2863_v23  ;;  %vm2873_vm15 = vweird.f32 %v12914_v51  ;;  %v9418_v23 = vor.u32 %v12197_v1, %v9417_v18  ;;  %v12194_v27 = vld [vmem:[#allocation11 + $0x38] sm:$0xf0]  ;;  %v9546_v18 = vor.u32 %v12228_v41, %v9545_v42  ;;  %v9525_v1 = vld [vmem:[#allocation11 + $0x120] sm:$0xf]  ;;  %v9479_v42 = vld [vmem:[#allocation11 + $0xcc] sm:$0xf0] }
 0x497   :  { %vm2874_vm1 = vmor %vm2872_vm0, %vm2873_vm15  ;;  %v9485_v41 = vld [vmem:[#allocation11 + $0xc8] sm:$0xf] }
 0x498   :  { %v2869_v58 = vsub.f32 1.0, %v2868_v2  ;;  %v9405_v2 = vld [vmem:[#allocation11 + $0x30] sm:$0xf]  ;;  %3507 = vmatpush.bf16.msrb.mxu2 %v9418_v23 }
 0x499   :  { %v9527_v23 = vld [vmem:[#allocation11 + $0x12c] sm:$0xf0] }
 0x49a   :  { %v2870_v55 = vmul.f32 %v12914_v51, %v2869_v58  ;;  %v12193_v58 = vld [vmem:[#allocation11 + $0x34] sm:$0xf] }
 0x49c   :  { %v2871_v22 = vadd.f32 %v12914_v51, %v2870_v55 }
 0x49e   :  { %v2875_v56 = vsel %vm2874_vm1, %v12914_v51, %v2871_v22  ;;  %v2379_v52 = vpop.f32.mrf.mxu1  ;;  %v9422_v51 = vor.u32 %v12196_v39, %v9419_v19  ;;  %v9406_v22 = vor.u32 %v12194_v27, %v9405_v2  ;;  %v12224_v39 = vld [vmem:[#allocation11 + $0x128] sm:$0xf0]  ;;  %v12223_v19 = vld [vmem:[#allocation11 + $0x124] sm:$0xf]  ;;  %v12225_v2 = vld [vmem:[#allocation11 + $0x130] sm:$0xf0] }
 0x49f   :  { %v2880_v61 = vsel %vm2877_vm2, %v2879_v35, %v2875_v56  ;;  %v2384_v4 = vpack.c.bf16 %v2379_v52, %v2379_v52  ;;  %v9410_v35 = vor.u32 %v12193_v58, %v9407_v33  ;;  %v9393_v56 = vld [vmem:[#allocation11 + $0x18] sm:$0xf]  ;;  %v12191_v52 = vld [vmem:[#allocation11 + $0x20] sm:$0xf0]  ;;  %v2229_v58 = vpack.c.bf16 %v13766_v5, %v13766_v5 }
 0x4a0   :  { %v2895_v30 = vmul.f32 %v13761_v25, %v2880_v61  ;;  %3549 = vmatpush.bf16.msrb.mxu1 %v9422_v51  ;;  %v12190_v61 = vld [vmem:[#allocation11 + $0x1c] sm:$0xf]  ;;  %3508 = vmatpush.bf16.msrb.mxu2 %v9406_v22  ;;  %v9533_v51 = vld [vmem:[#allocation11 + $0x128] sm:$0xf]  ;;  %v9526_v33 = vor.u32 %v12224_v39, %v9525_v1  ;;  %v12257_v39 = vld [vmem:[#allocation11 + $0x230] sm:$0xf0] }
 0x4a1   :  { %v2952_v36 = vunpack.c.l.b16 %v2384_v4  ;;  %v9395_v4 = vld [vmem:[#allocation11 + $0x24] sm:$0xf0]  ;;  %v9534_v22 = vor.u32 %v12225_v2, %v9533_v51  ;;  %v12254_v51 = vld [vmem:[#allocation11 + $0x218] sm:$0xf0] }
 0x4a2   :  { %v2897_v38 = vpack.c.bf16 %v2895_v30, %v2895_v30  ;;  %v9394_v30 = vor.u32 %v12191_v52, %v9393_v56  ;;  %v12221_v56 = vld [vmem:[#allocation11 + $0x110] sm:$0xf0]  ;;  %v2230_v52 = vpack.c.bf16 %v13771_v20, %v13771_v20  ;;  %v9657_v1 = vld [vmem:[#allocation11 + $0x228] sm:$0xf] }
 0x4a3   :  { %v2954_v40 = vpack.c.b16 %v2952_v36, %v2952_v36  ;;  %v9398_v36 = vor.u32 %v12190_v61, %v9395_v4  ;;  %v12220_v4 = vld [vmem:[#allocation11 + $0x10c] sm:$0xf] }
 0x4a4   :  { %9377 = vmatmul.msk.bf16.vlgmr.msra.gmra.mxu0 %vm2139_vm10, %v2897_v38  ;;  %3550 = vmatpush.bf16.msrb.mxu1 %v9410_v35  ;;  %v9513_v35 = vld [vmem:[#allocation11 + $0x108] sm:$0xf] }
 0x4a5   :  { %2957 = vrot.lane.b32.xlu0 %v2954_v40, %s13299_s10  ;;  %3509 = vmatpush.bf16.msrb.mxu2 %v9394_v30  ;;  %v9381_v40 = vld [vmem:[#allocation11] sm:$0xf] }
 0x4a6   :  { %v2381_v29 = vpop.f32.mrf.mxu1 }
 0x4a7   :  { %v12188_v29 = vld [vmem:[#allocation11 + $0x8] sm:$0xf0] }
 0x4a8   :  { %3551 = vmatpush.bf16.msrb.mxu1 %v9398_v36  ;;  %v9382_v44 = vor.u32 %v12188_v29, %v9381_v40  ;;  %v9515_v36 = vld [vmem:[#allocation11 + $0x114] sm:$0xf0]  ;;  %v12222_v40 = vld [vmem:[#allocation11 + $0x118] sm:$0xf0]  ;;  %v9514_v29 = vor.u32 %v12221_v56, %v9513_v35 }
 0x4aa   :  { %3510 = vmatpush.bf16.msrb.mxu2 %v9382_v44 }
 0x4c1   :  { %v13804_v47 = vpop.f32.mrf.mxu1 }
 0x4c9   :  { %v2513_v46 = vpop.f32.mrf.mxu1 }
 0x4ca   :  { %v12187_v46 = vld [vmem:[#allocation11 + $0x4] sm:$0xf] }
 0x4cb   :  { %v9386_v45 = vor.u32 %v12187_v46, %v9383_v21  ;;  %v9518_v21 = vor.u32 %v12220_v4, %v9515_v36  ;;  %v12251_v4 = vld [vmem:[#allocation11 + $0x200] sm:$0xf0] }
 0x4cd   :  { %3552 = vmatpush.bf16.msrb.mxu1 %v9386_v45 }
 0x4d9   :  { %v2639_v63 = vpop.f32.mrf.mxu0 }
 0x4da   :  { %v2665_v49 = vpack.c.bf16 %v2639_v63, %v2639_v63 }
 0x4dc   :  { %v2961_v25 = vunpack.c.l.b16 %v2665_v49 }
 0x4de   :  { %v2963_v50 = vpack.c.b16 %v2961_v25, %v2961_v25  ;;  %v9561_v25 = vld [vmem:[#allocation11 + $0x168] sm:$0xf]  ;;  %v2956_v27 = vpop.permute.xlu2 %2955 }
 0x4df   :  { %v2981_v61 = vsel %vm2098_vm7, %v2229_v58, %v2956_v27  ;;  %v2515_v58 = vpack.c.bf16 %v13799_v43, %v13799_v43  ;;  %v9665_v43 = vld [vmem:[#allocation11 + $0x230] sm:$0xf] }
 0x4e0   :  { %v2661_v53 = vpop.f32.mrf.mxu1  ;;  %2965 = vrot.lane.b32.xlu1 %v2963_v50, %s13299_s10  ;;  %v12233_v50 = vld [vmem:[#allocation11 + $0x170] sm:$0xf0]  ;;  %v3003_v46 = vunpack.c.l.b16 %v2981_v61  ;;  %v9633_v61 = vld [vmem:[#allocation11 + $0x1f8] sm:$0xf] }
 0x4e1   :  { %v2666_v9 = vpack.c.bf16 %v2661_v53, %v2661_v53  ;;  %v2641_v54 = vpop.f32.mrf.mxu0  ;;  %v12232_v53 = vld [vmem:[#allocation11 + $0x16c] sm:$0xf]  ;;  %v9634_v36 = vor.u32 %v12251_v4, %v9633_v61  ;;  %v12238_v61 = vld [vmem:[#allocation11 + $0x19c] sm:$0xf]  ;;  %v9587_v4 = vld [vmem:[#allocation11 + $0x1a4] sm:$0xf0] }
 0x4e2   :  { %v9563_v54 = vld [vmem:[#allocation11 + $0x174] sm:$0xf0] }
 0x4e3   :  { %v2962_v59 = vunpack.c.l.b16 %v2666_v9  ;;  %v9562_v9 = vor.u32 %v12233_v50, %v9561_v25  ;;  %v9566_v57 = vor.u32 %v12232_v53, %v9563_v54  ;;  %v9501_v25 = vld [vmem:[#allocation11 + $0xf0] sm:$0xf]  ;;  %v12218_v50 = vld [vmem:[#allocation11 + $0xf8] sm:$0xf0]  ;;  %v12217_v53 = vld [vmem:[#allocation11 + $0xf4] sm:$0xf] }
 0x4e4   :  { %v9503_v54 = vld [vmem:[#allocation11 + $0xfc] sm:$0xf0] }
 0x4e5   :  { %v2964_v7 = vpack.c.b16 %v2962_v59, %v2962_v59  ;;  %v9570_v59 = vor.u32 %v12234_v8, %v9569_v0  ;;  %3517 = vmatpush.bf16.msra.mxu3 %v9562_v9  ;;  %3559 = vmatpush.bf16.msra.mxu2 %v9566_v57  ;;  %v9502_v9 = vor.u32 %v12218_v50, %v9501_v25  ;;  %v9509_v0 = vld [vmem:[#allocation11 + $0xf8] sm:$0xf]  ;;  %v12219_v8 = vld [vmem:[#allocation11 + $0x100] sm:$0xf0] }
 0x4e6   :  { %v9506_v57 = vor.u32 %v12217_v53, %v9503_v54  ;;  %v12250_v53 = vld [vmem:[#allocation11 + $0x1fc] sm:$0xf] }
 0x4e7   :  { %2967 = vrot.lane.b32.xlu0 %v2964_v7, %s13299_s10  ;;  %v9550_v7 = vor.u32 %v12230_v3, %v9549_v62  ;;  %3601 = vmatpush.bf16.msra.mxu1 %v9570_v59  ;;  %v9510_v59 = vor.u32 %v12219_v8, %v9509_v0  ;;  %v9489_v62 = vld [vmem:[#allocation11 + $0xd8] sm:$0xf]  ;;  %v12215_v3 = vld [vmem:[#allocation11 + $0xe0] sm:$0xf0]  ;;  %v9641_v0 = vld [vmem:[#allocation11 + $0x200] sm:$0xf] }
 0x4e8   :  { %v2663_v17 = vpop.f32.mrf.mxu1  ;;  %v12252_v8 = vld [vmem:[#allocation11 + $0x208] sm:$0xf0] }
 0x4e9   :  { %v13808_v15 = vpop.f32.mrf.mxu0  ;;  %v12227_v17 = vld [vmem:[#allocation11 + $0x140] sm:$0xf0]  ;;  %3518 = vmatpush.bf16.msra.mxu3 %v9550_v7  ;;  %3560 = vmatpush.bf16.msra.mxu2 %v9554_v14  ;;  %v9490_v7 = vor.u32 %v12215_v3, %v9489_v62  ;;  %v9494_v14 = vor.u32 %v12214_v6, %v9491_v28  ;;  %v9642_v3 = vor.u32 %v12252_v8, %v9641_v0  ;;  %v9401_v8 = vld [vmem:[#allocation11 + $0x20] sm:$0xf] }
 0x4ea   :  { %v9538_v26 = vor.u32 %v12227_v17, %v9537_v11  ;;  %v9477_v11 = vld [vmem:[#allocation11 + $0xc0] sm:$0xf]  ;;  %v12212_v17 = vld [vmem:[#allocation11 + $0xc8] sm:$0xf0]  ;;  %v12247_v6 = vld [vmem:[#allocation11 + $0x1e4] sm:$0xf] }
 0x4eb   :  { %3602 = vmatpush.bf16.msra.mxu1 %v9558_v13  ;;  %v9498_v13 = vor.u32 %v12216_v12, %v9497_v10  ;;  %v9478_v37 = vor.u32 %v12212_v17, %v9477_v11  ;;  %v9629_v10 = vld [vmem:[#allocation11 + $0x1e8] sm:$0xf]  ;;  %v12249_v12 = vld [vmem:[#allocation11 + $0x1f0] sm:$0xf0] }
 0x4ec   :  { %v9630_v17 = vor.u32 %v12249_v12, %v9629_v10  ;;  %v2795_v10 = vpack.c.bf16 %v13808_v15, %v13808_v15 }
 0x4ed   :  { %3519 = vmatpush.bf16.msra.mxu3 %v9538_v26  ;;  %3561 = vmatpush.bf16.msra.mxu2 %v9542_v16  ;;  %v12213_v26 = vld [vmem:[#allocation11 + $0xd0] sm:$0xf0]  ;;  %v9482_v16 = vor.u32 %v12211_v31, %v9479_v42  ;;  %v12244_v31 = vld [vmem:[#allocation11 + $0x1cc] sm:$0xf] }
 0x4ef   :  { %3603 = vmatpush.bf16.msra.mxu1 %v9546_v18  ;;  %v9486_v18 = vor.u32 %v12213_v26, %v9485_v41  ;;  %v9617_v41 = vld [vmem:[#allocation11 + $0x1d0] sm:$0xf]  ;;  %v12246_v26 = vld [vmem:[#allocation11 + $0x1d8] sm:$0xf0] }
 0x4f0   :  { %v13810_v55 = vpop.f32.mrf.mxu1 }
 0x4f1   :  { %v2774_v34 = vpop.f32.mrf.mxu0  ;;  %3520 = vmatpush.bf16.msra.mxu3 %v9526_v33  ;;  %v2516_v33 = vpack.c.bf16 %v13804_v47, %v13804_v47 }
 0x4f2   :  { %v9530_v34 = vor.u32 %v12223_v19, %v9527_v23  ;;  %v9645_v19 = vld [vmem:[#allocation11 + $0x210] sm:$0xf]  ;;  %v9658_v23 = vor.u32 %v12257_v39, %v9657_v1 }
 0x4f3   :  { %3604 = vmatpush.bf16.msra.mxu1 %v9534_v22  ;;  %v9646_v2 = vor.u32 %v12254_v51, %v9645_v19  ;;  %v9473_v39 = vld [vmem:[#allocation11 + $0xb0] sm:$0xf]  ;;  %v12210_v19 = vld [vmem:[#allocation11 + $0xb8] sm:$0xf0]  ;;  %v12241_v51 = vld [vmem:[#allocation11 + $0x1b4] sm:$0xf] }
 0x4f4   :  { %3562 = vmatpush.bf16.msra.mxu2 %v9530_v34  ;;  %3531 = vmatpush.bf16.msrb.mxu0 %v9658_v23  ;;  %v9618_v23 = vor.u32 %v12246_v26, %v9617_v41 }
 0x4f5   :  { %3521 = vmatpush.bf16.msra.mxu3 %v9514_v29 }
 0x4f8   :  { %v2793_v38 = vpop.f32.mrf.mxu1  ;;  %3563 = vmatpush.bf16.msra.mxu2 %v9518_v21  ;;  %3532 = vmatpush.bf16.msrb.mxu0 %v9646_v2  ;;  %v9599_v2 = vld [vmem:[#allocation11 + $0x1bc] sm:$0xf0] }
 0x4f9   :  { %v9521_v38 = vld [vmem:[#allocation11 + $0x110] sm:$0xf]  ;;  %3522 = vmatpush.bf16.msra.mxu3 %v9502_v9  ;;  %v9635_v9 = vld [vmem:[#allocation11 + $0x204] sm:$0xf0] }
 0x4fa   :  { %v9522_v45 = vor.u32 %v12222_v40, %v9521_v38  ;;  %v12248_v38 = vld [vmem:[#allocation11 + $0x1e8] sm:$0xf0]  ;;  %v9638_v62 = vor.u32 %v12250_v53, %v9635_v9  ;;  %v9413_v9 = vld [vmem:[#allocation11 + $0x38] sm:$0xf] }
 0x4fb   :  { %v12256_v40 = vld [vmem:[#allocation11 + $0x22c] sm:$0xf] }
 0x4fc   :  { %3605 = vmatpush.bf16.msra.mxu1 %v9522_v45  ;;  %3564 = vmatpush.bf16.msra.mxu2 %v9506_v57  ;;  %v9609_v45 = vld [vmem:[#allocation11 + $0x1c8] sm:$0xf]  ;;  %v9597_v57 = vld [vmem:[#allocation11 + $0x1b0] sm:$0xf] }
 0x4fd   :  { %3523 = vmatpush.bf16.msra.mxu3 %v9490_v7  ;;  %3533 = vmatpush.bf16.msrb.mxu0 %v9634_v36  ;;  %v9623_v7 = vld [vmem:[#allocation11 + $0x1ec] sm:$0xf0]  ;;  %v12240_v36 = vld [vmem:[#allocation11 + $0x1a8] sm:$0xf0] }
 0x4fe   :  { %v9626_v11 = vor.u32 %v12247_v6, %v9623_v7 }
 0x500   :  { %v2943_v63 = vpop.f32.mrf.mxu1  ;;  %3606 = vmatpush.bf16.msra.mxu1 %v9510_v59  ;;  %3565 = vmatpush.bf16.msra.mxu2 %v9494_v14  ;;  %v12242_v59 = vld [vmem:[#allocation11 + $0x1b8] sm:$0xf0]  ;;  %v9585_v14 = vld [vmem:[#allocation11 + $0x198] sm:$0xf] }
 0x501   :  { %v2948_v48 = vpack.c.bf16 %v2943_v63, %v2943_v63  ;;  %3524 = vmatpush.bf16.msra.mxu3 %v9478_v37  ;;  %v9598_v28 = vor.u32 %v12242_v59, %v9597_v57  ;;  %v9611_v37 = vld [vmem:[#allocation11 + $0x1d4] sm:$0xf0]  ;;  %v12192_v57 = vld [vmem:[#allocation11 + $0x28] sm:$0xf0] }
 0x502   :  { %v9614_v1 = vor.u32 %v12244_v31, %v9611_v37  ;;  %v9402_v59 = vor.u32 %v12192_v57, %v9401_v8  ;;  %v12923_v57 = vld [vmem:[#allocation2 + $0x18] sm:$0xff] }
 0x503   :  { %v2972_v32 = vunpack.c.l.b16 %v2948_v48 }
 0x504   :  { %3607 = vmatpush.bf16.msra.mxu1 %v9498_v13  ;;  %3566 = vmatpush.bf16.msra.mxu2 %v9482_v16  ;;  %v12239_v13 = vld [vmem:[#allocation11 + $0x1a0] sm:$0xf0]  ;;  %v9573_v16 = vld [vmem:[#allocation11 + $0x180] sm:$0xf] }
 0x505   :  { %v2974_v49 = vpack.c.b16 %v2972_v32, %v2972_v32  ;;  %v9586_v42 = vor.u32 %v12239_v13, %v9585_v14 }
 0x507   :  { %2977 = vrot.lane.b32.xlu0 %v2974_v49, %s13299_s10 }
 0x508   :  { %v2945_v24 = vpop.f32.mrf.mxu1  ;;  %3608 = vmatpush.bf16.msra.mxu1 %v9486_v18  ;;  %v12236_v18 = vld [vmem:[#allocation11 + $0x188] sm:$0xf0] }
 0x517   :  { %v2958_v30 = vpop.permute.xlu0 %2957 }
 0x518   :  { %v2984_v5 = vsel %vm2098_vm7, %v2230_v52, %v2958_v30  ;;  %v9621_v30 = vld [vmem:[#allocation11 + $0x1e0] sm:$0xf] }
 0x519   :  { %v3006_v44 = vunpack.c.l.b16 %v2984_v5  ;;  %v9659_v5 = vld [vmem:[#allocation11 + $0x234] sm:$0xf0]  ;;  %v9622_v47 = vor.u32 %v12248_v38, %v9621_v30  ;;  %v9593_v30 = vld [vmem:[#allocation11 + $0x1a0] sm:$0xf] }
 0x51b   :  { %v13819_v63 = vpack.c.b16 %v3006_v44, %v3003_v46  ;;  %v9662_v46 = vor.u32 %v12256_v40, %v9659_v5  ;;  %v12258_v44 = vld [vmem:[#allocation11 + $0x238] sm:$0xf0]  ;;  %3534 = vmatpush.bf16.msrb.mxu0 %v9622_v47  ;;  %v9590_v40 = vor.u32 %v12238_v61, %v9587_v4  ;;  %v9449_v5 = vld [vmem:[#allocation11 + $0x80] sm:$0xf]  ;;  %v9575_v47 = vld [vmem:[#allocation11 + $0x18c] sm:$0xf0] }
 0x51c   :  { %v9666_v21 = vor.u32 %v12258_v44, %v9665_v43  ;;  %v12235_v44 = vld [vmem:[#allocation11 + $0x184] sm:$0xf] }
 0x51d   :  { %3511 = vmatmul.bf16.vlgmr.msrb.gmra.mxu2 %v13819_v63  ;;  %3553 = vmatmul.bf16.vlgmr.msrb.gmra.mxu1 %v13819_v63 }
 0x51e   :  { %3573 = vmatpush.bf16.msrb.mxu3 %v9662_v46  ;;  %3615 = vmatpush.bf16.msrb.mxu2 %v9666_v21  ;;  %v9594_v46 = vor.u32 %v12240_v36, %v9593_v30  ;;  %v9437_v21 = vld [vmem:[#allocation11 + $0x68] sm:$0xf] }
 0x51f   :  { %v12919_v36 = vld [vmem:[#allocation2 + $0x8] sm:$0xff] }
 0x521   :  { %v2919_v20 = vpop.f32.mrf.mxu0 }
 0x522   :  { %v2947_v48 = vpack.c.bf16 %v2919_v20, %v2919_v20  ;;  %v12253_v20 = vld [vmem:[#allocation11 + $0x214] sm:$0xf] }
 0x524   :  { %v2971_v32 = vunpack.c.l.b16 %v2947_v48  ;;  %v9647_v48 = vld [vmem:[#allocation11 + $0x21c] sm:$0xf0] }
 0x525   :  { %v9650_v25 = vor.u32 %v12253_v20, %v9647_v48  ;;  %v12201_v20 = vld [vmem:[#allocation11 + $0x70] sm:$0xf0]  ;;  %v9581_v48 = vld [vmem:[#allocation11 + $0x188] sm:$0xf] }
 0x526   :  { %v2973_v49 = vpack.c.b16 %v2971_v32, %v2971_v32  ;;  %v12245_v32 = vld [vmem:[#allocation11 + $0x1d0] sm:$0xf0] }
 0x527   :  { %v9610_v54 = vor.u32 %v12245_v32, %v9609_v45  ;;  %3574 = vmatpush.bf16.msrb.mxu3 %v9650_v25  ;;  %v9578_v45 = vor.u32 %v12235_v44, %v9575_v47  ;;  %v12237_v32 = vld [vmem:[#allocation11 + $0x190] sm:$0xf0]  ;;  %v9425_v25 = vld [vmem:[#allocation11 + $0x50] sm:$0xf] }
 0x528   :  { %2975 = vrot.lane.b32.xlu1 %v2973_v49, %s13299_s10  ;;  %v9653_v49 = vld [vmem:[#allocation11 + $0x218] sm:$0xf] }
 0x529   :  { %v2921_v24 = vpop.f32.mrf.mxu0  ;;  %3535 = vmatpush.bf16.msrb.mxu0 %v9610_v54  ;;  %v12195_v54 = vld [vmem:[#allocation11 + $0x40] sm:$0xf0] }
 0x52a   :  { %v12255_v24 = vld [vmem:[#allocation11 + $0x220] sm:$0xf0]  ;;  %v9414_v0 = vor.u32 %v12195_v54, %v9413_v9 }
 0x52b   :  { %v9654_v50 = vor.u32 %v12255_v24, %v9653_v49  ;;  %3575 = vmatpush.bf16.msrb.mxu3 %v9638_v62  ;;  %v9438_v49 = vor.u32 %v12201_v20, %v9437_v21  ;;  %v9582_v24 = vor.u32 %v12237_v32, %v9581_v48  ;;  %v9389_v62 = vld [vmem:[#allocation11 + $0x8] sm:$0xf]  ;;  %v12921_v20 = vld [vmem:[#allocation2 + $0x10] sm:$0xff]  ;;  %v12922_v9 = vld [vmem:[#allocation2 + $0x20] sm:$0xff] }
 0x52d   :  { %3616 = vmatpush.bf16.msrb.mxu2 %v9654_v50  ;;  %3536 = vmatpush.bf16.msrb.mxu0 %v9598_v28  ;;  %v12198_v50 = vld [vmem:[#allocation11 + $0x58] sm:$0xf0]  ;;  %v2796_v28 = vpack.c.bf16 %v13810_v55, %v13810_v55 }
 0x52e   :  { %v9426_v53 = vor.u32 %v12198_v50, %v9425_v25 }
 0x52f   :  { %3576 = vmatpush.bf16.msrb.mxu3 %v9626_v11 }
 0x531   :  { %3617 = vmatpush.bf16.msrb.mxu2 %v9642_v3  ;;  %3537 = vmatpush.bf16.msrb.mxu0 %v9586_v42  ;;  %v12189_v3 = vld [vmem:[#allocation11 + $0x10] sm:$0xf0] }
 0x532   :  { %v9390_v6 = vor.u32 %v12189_v3, %v9389_v62  ;;  %v12924_v3 = vld [vmem:[#allocation2 + $0x28] sm:$0xff] }
 0x533   :  { %3577 = vmatpush.bf16.msrb.mxu3 %v9614_v1 }
 0x535   :  { %3618 = vmatpush.bf16.msrb.mxu2 %v9630_v17 }
 0x539   :  { %3619 = vmatpush.bf16.msrb.mxu2 %v9618_v23 }
 0x552   :  { %v2966_v27 = vpop.permute.xlu1 %2965 }
 0x553   :  { %v2987_v34 = vsel %vm2098_vm7, %v2515_v58, %v2966_v27  ;;  %v9574_v27 = vor.u32 %v12236_v18, %v9573_v16  ;;  %v9605_v58 = vld [vmem:[#allocation11 + $0x1b8] sm:$0xf]  ;;  %v3105_v18 = vld [vmem:[#allocation13] sm:$0x7] }
 0x554   :  { %v3004_v56 = vunpack.c.l.b16 %v2987_v34  ;;  %v9474_v34 = vor.u32 %v12210_v19, %v9473_v39  ;;  %v3108_v1 = vperm.slane %v3105_v18, 1  ;;  %v3107_v23 = vperm.slane %v3105_v18, 0 }
 0x555   :  { %3538 = vmatpush.bf16.msrb.mxu0 %v9574_v27 }
 0x559   :  { %v2968_v22 = vpop.permute.xlu0 %2967  ;;  %3587 = vmatpush.bf16.msra.mxu0 %v9474_v34  ;;  %v3109_v34 = vperm.slane %v3105_v18, 2  ;;  %v10341_v18 = vld [vmem:[#allocation17 + $0x540] sm:$0xf] }
 0x55a   :  { %v2990_v35 = vsel %vm2098_vm7, %v2516_v33, %v2968_v22  ;;  %v12243_v33 = vld [vmem:[#allocation11 + $0x1c0] sm:$0xf0]  ;;  %v9602_v22 = vor.u32 %v12241_v51, %v9599_v2 }
 0x55b   :  { %v3007_v52 = vunpack.c.l.b16 %v2990_v35  ;;  %v9461_v35 = vld [vmem:[#allocation11 + $0x98] sm:$0xf] }
 0x55c   :  { %3578 = vmatpush.bf16.msrb.mxu3 %v9602_v22 }
 0x55d   :  { %v3114_v29 = vpack.c.b16 %v3007_v52, %v3004_v56  ;;  %v12207_v56 = vld [vmem:[#allocation11 + $0xa0] sm:$0xf0]  ;;  %v9606_v52 = vor.u32 %v12243_v33, %v9605_v58 }
 0x55e   :  { %v9462_v38 = vor.u32 %v12207_v56, %v9461_v35 }
 0x55f   :  { %3525 = vmatmul.bf16.vlgmr.msra.gmra.mxu3 %v3114_v29  ;;  %3567 = vmatmul.bf16.vlgmr.msra.gmra.mxu2 %v3114_v29 }
 0x560   :  { %3609 = vmatmul.bf16.vlgmr.msra.gmra.mxu1 %v3114_v29  ;;  %v12204_v29 = vld [vmem:[#allocation11 + $0x88] sm:$0xf0]  ;;  %3620 = vmatpush.bf16.msrb.mxu2 %v9606_v52 }
 0x561   :  { %3588 = vmatpush.bf16.msra.mxu0 %v9462_v38  ;;  %v9450_v43 = vor.u32 %v12204_v29, %v9449_v5  ;;  %3579 = vmatpush.bf16.msrb.mxu3 %v9590_v40 }
 0x564   :  { %3621 = vmatpush.bf16.msrb.mxu2 %v9594_v46 }
 0x565   :  { %3589 = vmatpush.bf16.msra.mxu0 %v9450_v43  ;;  %3580 = vmatpush.bf16.msrb.mxu3 %v9578_v45  ;;  %v12920_v43 = vld [vmem:[#allocation2] sm:$0xff] }
 0x568   :  { %3622 = vmatpush.bf16.msrb.mxu2 %v9582_v24 }
 0x569   :  { %3590 = vmatpush.bf16.msra.mxu0 %v9438_v49 }
 0x56d   :  { %3591 = vmatpush.bf16.msra.mxu0 %v9426_v53 }
 0x571   :  { %3592 = vmatpush.bf16.msra.mxu0 %v9414_v0 }
 0x575   :  { %3593 = vmatpush.bf16.msra.mxu0 %v9402_v59 }
 0x579   :  { %3594 = vmatpush.bf16.msra.mxu0 %v9390_v6  ;;  %v2978_v7 = vpop.permute.xlu0 %2977 }
 0x57a   :  { %v2996_v12 = vsel %vm2098_vm7, %v2796_v28, %v2978_v7 }
 0x57b   :  { %v3008_v11 = vunpack.c.l.b16 %v2996_v12  ;;  %v12349_v12 = vld [vmem:[#allocation17 + $0x2cc] sm:$0xf0] }
 0x59a   :  { %v2976_v14 = vpop.permute.xlu1 %2975  ;;  %v3554_v55 = vpop.f32.mrf.mxu1 }
 0x59b   :  { %v2993_v13 = vsel %vm2098_vm7, %v2795_v10, %v2976_v14  ;;  %v3555_v27 = vadd.f32 %v3554_v55, %v3108_v1  ;;  %v10005_v10 = vld [vmem:[#allocation17 + $0x2a0] sm:$0xf]  ;;  %v10007_v55 = vld [vmem:[#allocation17 + $0x2d0] sm:$0xf0] }
 0x59c   :  { %v3005_v17 = vunpack.c.l.b16 %v2993_v13  ;;  %v10389_v14 = vld [vmem:[#allocation17 + $0x5a0] sm:$0xf]  ;;  %v10006_v13 = vor.u32 %v12349_v12, %v10005_v10  ;;  %v9815_v10 = vld [vmem:[#allocation17 + $0x150] sm:$0xf0] }
 0x59e   :  { %v3115_v31 = vpack.c.b16 %v3008_v11, %v3005_v17  ;;  %v12445_v11 = vld [vmem:[#allocation17 + $0x5cc] sm:$0xf0]  ;;  %v10773_v17 = vld [vmem:[#allocation17 + $0x8a0] sm:$0xf]  ;;  %5482 = vmatpush.bf16.msra.mxu3 %v10006_v13 }
 0x5a0   :  { %3539 = vmatmul.bf16.vlgmr.msrb.gmra.mxu0 %v3115_v31  ;;  %3581 = vmatmul.bf16.vlgmr.msrb.gmra.mxu3 %v3115_v31  ;;  %v3512_v37 = vpop.f32.mrf.mxu2 }
 0x5a1   :  { %3623 = vmatmul.bf16.vlgmr.msrb.gmra.mxu2 %v3115_v31  ;;  %v3513_v58 = vadd.f32 %v3512_v37, %v3107_v23  ;;  %v12541_v31 = vld [vmem:[#allocation17 + $0x8cc] sm:$0xf0]  ;;  %v10390_v37 = vor.u32 %v12445_v11, %v10389_v14 }
 0x5a2   :  { %v3556_v39 = vpop.f32.mrf.mxu1 }
 0x5a3   :  { %v3557_v30 = vadd.f32 %v3556_v39, %v3108_v1  ;;  %v12433_v1 = vld [vmem:[#allocation17 + $0x56c] sm:$0xf0]  ;;  %5496 = vmatpush.bf16.msrb.mxu0 %v10390_v37 }
 0x5a8   :  { %v3514_v42 = vpop.f32.mrf.mxu2 }
 0x5a9   :  { %v3515_v29 = vadd.f32 %v3514_v42, %v3107_v23  ;;  %v10774_v42 = vor.u32 %v12541_v31, %v10773_v17  ;;  %v10725_v23 = vld [vmem:[#allocation17 + $0x840] sm:$0xf] }
 0x5ab   :  { %5510 = vmatpush.bf16.msrb.mxu1 %v10774_v42 }
 0x5b0   :  { %3595 = vmatmul.bf16.vlgmr.msra.gmra.mxu0 %v13819_v63 }
 0x5dd   :  { %v3610_v35 = vpop.f32.mrf.mxu1 }
 0x5e2   :  { %v3526_v41 = vpop.f32.mrf.mxu3  ;;  %v3568_v26 = vpop.f32.mrf.mxu2 }
 0x5e3   :  { %v3569_v33 = vadd.f32 %v3568_v26, %v3555_v27  ;;  %v3527_v22 = vadd.f32 %v3526_v41, %v3513_v58  ;;  %v12343_v41 = vld [vmem:[#allocation17 + $0x2a4] sm:$0xf]  ;;  %v9957_v26 = vld [vmem:[#allocation17 + $0x240] sm:$0xf]  ;;  %v9959_v58 = vld [vmem:[#allocation17 + $0x270] sm:$0xf0] }
 0x5e5   :  { %v3612_v53 = vpop.f32.mrf.mxu1 }
 0x5ea   :  { %v3528_v15 = vpop.f32.mrf.mxu3  ;;  %v3570_v51 = vpop.f32.mrf.mxu2 }
 0x5eb   :  { %v3571_v46 = vadd.f32 %v3570_v51, %v3557_v30  ;;  %v3529_v21 = vadd.f32 %v3528_v15, %v3515_v29  ;;  %v12337_v15 = vld [vmem:[#allocation17 + $0x26c] sm:$0xf0]  ;;  %v9911_v30 = vld [vmem:[#allocation17 + $0x210] sm:$0xf0] }
 0x5ec   :  { %v9958_v39 = vor.u32 %v12337_v15, %v9957_v26  ;;  %v12529_v51 = vld [vmem:[#allocation17 + $0x86c] sm:$0xf0] }
 0x5ed   :  { %v10726_v27 = vor.u32 %v12529_v51, %v10725_v23  ;;  %v12313_v29 = vld [vmem:[#allocation17 + $0x1ac] sm:$0xf0] }
 0x5ee   :  { %5483 = vmatpush.bf16.msra.mxu3 %v9958_v39 }
 0x5ef   :  { %5511 = vmatpush.bf16.msrb.mxu1 %v10726_v27 }
 0x61d   :  { %v3540_v16 = vpop.f32.mrf.mxu0 }
 0x61e   :  { %v3541_v52 = vadd.f32 %v3540_v16, %v3527_v22  ;;  %v10010_v16 = vor.u32 %v12343_v41, %v10007_v55 }
 0x620   :  { %v13839_v44 = vadd.f32 %v12920_v43, %v3541_v52  ;;  %5524 = vmatpush.bf16.msra.mxu2 %v10010_v16 }
 0x623   :  { %v3582_v2 = vpop.f32.mrf.mxu3 }
 0x624   :  { %v3583_v63 = vadd.f32 %v3582_v2, %v3569_v33  ;;  %v3624_v4 = vpop.f32.mrf.mxu2  ;;  %v12331_v2 = vld [vmem:[#allocation17 + $0x244] sm:$0xf]  ;;  %v9909_v33 = vld [vmem:[#allocation17 + $0x1e0] sm:$0xf] }
 0x625   :  { %v3542_v19 = vpop.f32.mrf.mxu0  ;;  %v9962_v22 = vor.u32 %v12331_v2, %v9959_v58 }
 0x626   :  { %v13837_v38 = vadd.f32 %v12919_v36, %v3583_v63  ;;  %v3543_v24 = vadd.f32 %v3542_v19, %v3529_v21  ;;  %v10342_v19 = vor.u32 %v12433_v1, %v10341_v18  ;;  %v10293_v63 = vld [vmem:[#allocation17 + $0x4e0] sm:$0xf] }
 0x627   :  { %5525 = vmatpush.bf16.msra.mxu2 %v9962_v22  ;;  %v10629_v21 = vld [vmem:[#allocation17 + $0x780] sm:$0xf] }
 0x628   :  { %v3637_v32 = vadd.f32 %v13837_v38, %v13839_v44  ;;  %v13848_v59 = vadd.f32 %v12923_v57, %v3543_v24  ;;  %5497 = vmatpush.bf16.msrb.mxu0 %v10342_v19  ;;  %v9813_v24 = vld [vmem:[#allocation17 + $0x120] sm:$0xf]  ;;  %v12493_v57 = vld [vmem:[#allocation17 + $0x74c] sm:$0xf0] }
 0x629   :  { %v10149_v22 = vld [vmem:[#allocation17 + $0x3c0] sm:$0xf] }
 0x62b   :  { %v3584_v5 = vpop.f32.mrf.mxu3 }
 0x62c   :  { %v3585_v45 = vadd.f32 %v3584_v5, %v3571_v46  ;;  %v3626_v8 = vpop.f32.mrf.mxu2  ;;  %v9861_v5 = vld [vmem:[#allocation17 + $0x180] sm:$0xf] }
 0x62d   :  { %v3596_v56 = vpop.f32.mrf.mxu0  ;;  %v10245_v46 = vld [vmem:[#allocation17 + $0x480] sm:$0xf] }
 0x62e   :  { %v3597_v61 = vadd.f32 %v3596_v56, %v3109_v34  ;;  %v13846_v54 = vadd.f32 %v12922_v9, %v3585_v45  ;;  %v10677_v56 = vld [vmem:[#allocation17 + $0x7e0] sm:$0xf]  ;;  %v12505_v45 = vld [vmem:[#allocation17 + $0x7ac] sm:$0xf0] }
 0x62f   :  { %v10630_v9 = vor.u32 %v12505_v45, %v10629_v21  ;;  %v10485_v21 = vld [vmem:[#allocation17 + $0x660] sm:$0xf]  ;;  %v12469_v45 = vld [vmem:[#allocation17 + $0x68c] sm:$0xf0] }
 0x630   :  { %v3611_v40 = vadd.f32 %v3610_v35, %v3597_v61  ;;  %v3641_v7 = vadd.f32 %v13846_v54, %v13848_v59  ;;  %v12421_v35 = vld [vmem:[#allocation17 + $0x50c] sm:$0xf0] }
 0x631   :  { %v12517_v61 = vld [vmem:[#allocation17 + $0x80c] sm:$0xf0]  ;;  %v10294_v36 = vor.u32 %v12421_v35, %v10293_v63 }
 0x632   :  { %v3625_v47 = vadd.f32 %v3624_v4, %v3611_v40  ;;  %v12319_v4 = vld [vmem:[#allocation17 + $0x1e4] sm:$0xf]  ;;  %v10678_v40 = vor.u32 %v12517_v61, %v10677_v56  ;;  %v12385_v35 = vld [vmem:[#allocation17 + $0x3ec] sm:$0xf0]  ;;  %v10533_v56 = vld [vmem:[#allocation17 + $0x6c0] sm:$0xf] }
 0x633   :  { %v9914_v43 = vor.u32 %v12319_v4, %v9911_v30  ;;  %5498 = vmatpush.bf16.msrb.mxu0 %v10294_v36  ;;  %v10150_v61 = vor.u32 %v12385_v35, %v10149_v22  ;;  %v12283_v30 = vld [vmem:[#allocation17 + $0xc4] sm:$0xf]  ;;  %v9767_v36 = vld [vmem:[#allocation17 + $0xf0] sm:$0xf0]  ;;  %v9965_v22 = vld [vmem:[#allocation17 + $0x248] sm:$0xf] }
 0x634   :  { %v13841_v48 = vadd.f32 %v12921_v20, %v3625_v47  ;;  %v12409_v47 = vld [vmem:[#allocation17 + $0x4ac] sm:$0xf0]  ;;  %v12307_v20 = vld [vmem:[#allocation17 + $0x184] sm:$0xf]  ;;  %5512 = vmatpush.bf16.msrb.mxu1 %v10678_v40  ;;  %v9770_v40 = vor.u32 %v12283_v30, %v9767_v36  ;;  %v12338_v35 = vld [vmem:[#allocation17 + $0x274] sm:$0xf0] }
 0x635   :  { %v3598_v49 = vpop.f32.mrf.mxu0  ;;  %5526 = vmatpush.bf16.msra.mxu2 %v9914_v43  ;;  %v12415_v30 = vld [vmem:[#allocation17 + $0x4e4] sm:$0xf]  ;;  %v10295_v36 = vld [vmem:[#allocation17 + $0x510] sm:$0xf0] }
 0x636   :  { %v3599_v25 = vadd.f32 %v3598_v49, %v3109_v34  ;;  %v3638_v50 = vadd.f32 %v3637_v32, %v13841_v48  ;;  %v12325_v34 = vld [vmem:[#allocation17 + $0x20c] sm:$0xf0]  ;;  %v9863_v32 = vld [vmem:[#allocation17 + $0x1b0] sm:$0xf0]  ;;  %v9862_v49 = vor.u32 %v12313_v29, %v9861_v5  ;;  %v9717_v5 = vld [vmem:[#allocation17 + $0x60] sm:$0xf] }
 0x637   :  { %v9910_v52 = vor.u32 %v12325_v34, %v9909_v33  ;;  %v9765_v33 = vld [vmem:[#allocation17 + $0xc0] sm:$0xf]  ;;  %v12289_v34 = vld [vmem:[#allocation17 + $0xec] sm:$0xf0] }
 0x638   :  { %v3613_v0 = vadd.f32 %v3612_v53, %v3599_v25  ;;  %3639 = vadd.xlane.f32.xlu2 %v3638_v50  ;;  %v12301_v25 = vld [vmem:[#allocation17 + $0x14c] sm:$0xf0]  ;;  %v10197_v50 = vld [vmem:[#allocation17 + $0x420] sm:$0xf]  ;;  %v10246_v53 = vor.u32 %v12409_v47, %v10245_v46  ;;  %5513 = vmatpush.bf16.msrb.mxu1 %v10630_v9  ;;  %v9766_v63 = vor.u32 %v12289_v34, %v9765_v33  ;;  %v12523_v33 = vld [vmem:[#allocation17 + $0x844] sm:$0xf] }
 0x639   :  { %5484 = vmatpush.bf16.msra.mxu3 %v9910_v52  ;;  %v9814_v12 = vor.u32 %v12301_v25, %v9813_v24  ;;  %v12481_v52 = vld [vmem:[#allocation17 + $0x6ec] sm:$0xf0]  ;;  %v10101_v46 = vld [vmem:[#allocation17 + $0x360] sm:$0xf]  ;;  %v9719_v24 = vld [vmem:[#allocation17 + $0x90] sm:$0xf0] }
 0x63a   :  { %v3627_v62 = vadd.f32 %v3626_v8, %v3613_v0  ;;  %v12397_v0 = vld [vmem:[#allocation17 + $0x44c] sm:$0xf0]  ;;  %v10581_v8 = vld [vmem:[#allocation17 + $0x720] sm:$0xf]  ;;  %5499 = vmatpush.bf16.msrb.mxu0 %v10246_v53  ;;  %v10534_v4 = vor.u32 %v12481_v52, %v10533_v56  ;;  %v10727_v34 = vld [vmem:[#allocation17 + $0x870] sm:$0xf0] }
 0x63b   :  { %v10198_v14 = vor.u32 %v12397_v0, %v10197_v50  ;;  %v10582_v13 = vor.u32 %v12493_v57, %v10581_v8  ;;  %v12277_v29 = vld [vmem:[#allocation17 + $0x8c] sm:$0xf0]  ;;  %v9669_v50 = vld [vmem:[#allocation17] sm:$0xf]  ;;  %v10349_v56 = vld [vmem:[#allocation17 + $0x548] sm:$0xf] }
 0x63c   :  { %v13850_v6 = vadd.f32 %v12924_v3, %v3627_v62  ;;  %v9866_v3 = vor.u32 %v12307_v20, %v9863_v32  ;;  %v9718_v43 = vor.u32 %v12277_v29, %v9717_v5  ;;  %v12373_v47 = vld [vmem:[#allocation17 + $0x38c] sm:$0xf0]  ;;  %v10486_v32 = vor.u32 %v12469_v45, %v10485_v21  ;;  %v10053_v9 = vld [vmem:[#allocation17 + $0x300] sm:$0xf]  ;;  %v12434_v52 = vld [vmem:[#allocation17 + $0x574] sm:$0xf0] }
 0x63d   :  { %5485 = vmatpush.bf16.msra.mxu3 %v9862_v49  ;;  %5514 = vmatpush.bf16.msrb.mxu1 %v10582_v13  ;;  %v10102_v20 = vor.u32 %v12373_v47, %v10101_v46  ;;  %v12271_v49 = vld [vmem:[#allocation17 + $0x64] sm:$0xf]  ;;  %v12265_v53 = vld [vmem:[#allocation17 + $0x2c] sm:$0xf0]  ;;  %v10437_v57 = vld [vmem:[#allocation17 + $0x600] sm:$0xf]  ;;  %v10298_v5 = vor.u32 %v12415_v30, %v10295_v36 }
 0x63e   :  { %v3642_v28 = vadd.f32 %v3641_v7, %v13850_v6  ;;  %5527 = vmatpush.bf16.msra.mxu2 %v9866_v3  ;;  %5500 = vmatpush.bf16.msrb.mxu0 %v10198_v14  ;;  %v9722_v25 = vor.u32 %v12271_v49, %v9719_v24  ;;  %v9670_v0 = vor.u32 %v12265_v53, %v9669_v50  ;;  %v12361_v8 = vld [vmem:[#allocation17 + $0x32c] sm:$0xf0]  ;;  %v10391_v13 = vld [vmem:[#allocation17 + $0x5d0] sm:$0xf0]  ;;  %v9917_v46 = vld [vmem:[#allocation17 + $0x1e8] sm:$0xf] }
 0x63f   :  { %v10054_v3 = vor.u32 %v12361_v8, %v10053_v9  ;;  %v10679_v29 = vld [vmem:[#allocation17 + $0x810] sm:$0xf0]  ;;  %v10301_v45 = vld [vmem:[#allocation17 + $0x4e8] sm:$0xf]  ;;  %v12403_v49 = vld [vmem:[#allocation17 + $0x484] sm:$0xf] }
 0x640   :  { %3643 = vadd.xlane.f32.xlu1 %v3642_v28  ;;  %v12295_v28 = vld [vmem:[#allocation17 + $0x124] sm:$0xf]  ;;  %v10247_v24 = vld [vmem:[#allocation17 + $0x4b0] sm:$0xf0]  ;;  %v9869_v9 = vld [vmem:[#allocation17 + $0x188] sm:$0xf] }
 0x641   :  { %v9818_v37 = vor.u32 %v12295_v28, %v9815_v10  ;;  %5486 = vmatpush.bf16.msra.mxu3 %v9814_v12  ;;  %5515 = vmatpush.bf16.msrb.mxu1 %v10534_v4  ;;  %v12259_v28 = vld [vmem:[#allocation17 + $0x4] sm:$0xf]  ;;  %v9671_v10 = vld [vmem:[#allocation17 + $0x30] sm:$0xf0]  ;;  %v10350_v4 = vor.u32 %v12434_v52, %v10349_v56  ;;  %v10250_v50 = vor.u32 %v12403_v49, %v10247_v24  ;;  %v12386_v56 = vld [vmem:[#allocation17 + $0x3f4] sm:$0xf0] }
 0x642   :  { %5501 = vmatpush.bf16.msrb.mxu0 %v10150_v61  ;;  %v12439_v12 = vld [vmem:[#allocation17 + $0x5a4] sm:$0xf]  ;;  %v9674_v14 = vor.u32 %v12259_v28, %v9671_v10  ;;  %v9966_v61 = vor.u32 %v12338_v35, %v9965_v22  ;;  %v10631_v53 = vld [vmem:[#allocation17 + $0x7b0] sm:$0xf0]  ;;  %v10157_v35 = vld [vmem:[#allocation17 + $0x3c8] sm:$0xf] }
 0x643   :  { %5528 = vmatpush.bf16.msra.mxu2 %v9818_v37  ;;  %v12535_v37 = vld [vmem:[#allocation17 + $0x8a4] sm:$0xf]  ;;  %v10199_v10 = vld [vmem:[#allocation17 + $0x450] sm:$0xf0] }
 0x644   :  { %v12391_v28 = vld [vmem:[#allocation17 + $0x424] sm:$0xf]  ;;  %v10103_v30 = vld [vmem:[#allocation17 + $0x390] sm:$0xf0] }
 0x645   :  { %5487 = vmatpush.bf16.msra.mxu3 %v9766_v63  ;;  %5516 = vmatpush.bf16.msrb.mxu1 %v10486_v32  ;;  %v10730_v63 = vor.u32 %v12523_v33, %v10727_v34  ;;  %v12290_v33 = vld [vmem:[#allocation17 + $0xf4] sm:$0xf0]  ;;  %v12463_v36 = vld [vmem:[#allocation17 + $0x664] sm:$0xf]  ;;  %v10055_v24 = vld [vmem:[#allocation17 + $0x330] sm:$0xf0] }
 0x646   :  { %5502 = vmatpush.bf16.msrb.mxu0 %v10102_v20  ;;  %v12422_v20 = vld [vmem:[#allocation17 + $0x514] sm:$0xf0]  ;;  %v12355_v49 = vld [vmem:[#allocation17 + $0x304] sm:$0xf] }
 0x647   :  { %5529 = vmatpush.bf16.msra.mxu2 %v9770_v40  ;;  %v12511_v40 = vld [vmem:[#allocation17 + $0x7e4] sm:$0xf]  ;;  %v10302_v32 = vor.u32 %v12422_v20, %v10301_v45  ;;  %v12374_v45 = vld [vmem:[#allocation17 + $0x394] sm:$0xf0] }
 0x648   :  { %v10682_v47 = vor.u32 %v12511_v40, %v10679_v29  ;;  %v10487_v29 = vld [vmem:[#allocation17 + $0x690] sm:$0xf0] }
 0x649   :  { %5488 = vmatpush.bf16.msra.mxu3 %v9718_v43  ;;  %v12326_v43 = vld [vmem:[#allocation17 + $0x214] sm:$0xf0] }
 0x64a   :  { %5503 = vmatpush.bf16.msrb.mxu0 %v10054_v3  ;;  %v9918_v21 = vor.u32 %v12326_v43, %v9917_v46  ;;  %v12410_v3 = vld [vmem:[#allocation17 + $0x4b4] sm:$0xf0]  ;;  %v9725_v46 = vld [vmem:[#allocation17 + $0x68] sm:$0xf]  ;;  %v10490_v43 = vor.u32 %v12463_v36, %v10487_v29 }
 0x64b   :  { %5530 = vmatpush.bf16.msra.mxu2 %v9722_v25  ;;  %v12499_v25 = vld [vmem:[#allocation17 + $0x784] sm:$0xf] }
 0x64c   :  { %v10634_v8 = vor.u32 %v12499_v25, %v10631_v53  ;;  %v12451_v25 = vld [vmem:[#allocation17 + $0x604] sm:$0xf]  ;;  %v9677_v53 = vld [vmem:[#allocation17 + $0x8] sm:$0xf] }
 0x64d   :  { %5489 = vmatpush.bf16.msra.mxu3 %v9670_v0  ;;  %v12314_v0 = vld [vmem:[#allocation17 + $0x1b4] sm:$0xf0] }
 0x64f   :  { %5531 = vmatpush.bf16.msra.mxu2 %v9674_v14  ;;  %v10202_v14 = vor.u32 %v12391_v28, %v10199_v10 }
 0x6ab   :  { %v3640_v62 = vpop.xlane.xlu2 %3639 }
 0x6ac   :  { %v3645_v7 = vmul.f32 %v3640_v62, %v13432_v60  ;;  %v12457_v62 = vld [vmem:[#allocation17 + $0x62c] sm:$0xf0] }
 0x6ae   :  { %v13857_v11 = vsub.f32 %v13839_v44, %v3645_v7  ;;  %v13860_v17 = vsub.f32 %v13837_v38, %v3645_v7  ;;  %v13863_v31 = vsub.f32 %v13841_v48, %v3645_v7  ;;  %v10438_v7 = vor.u32 %v12457_v62, %v10437_v57  ;;  %v10253_v62 = vld [vmem:[#allocation17 + $0x488] sm:$0xf] }
 0x6af   :  { %v9870_v57 = vor.u32 %v12314_v0, %v9869_v9  ;;  %v12266_v9 = vld [vmem:[#allocation17 + $0x34] sm:$0xf0]  ;;  %v10058_v0 = vor.u32 %v12355_v49, %v10055_v24  ;;  %v12440_v49 = vld [vmem:[#allocation17 + $0x5ac] sm:$0xf] }
 0x6b0   :  { %v3653_v42 = vmul.f32 %v13857_v11, %v13857_v11  ;;  %v3654_v41 = vmul.f32 %v13860_v17, %v13860_v17  ;;  %v3655_v55 = vmul.f32 %v13863_v31, %v13863_v31  ;;  %5517 = vmatpush.bf16.msrb.mxu1 %v10438_v7  ;;  %v10254_v7 = vor.u32 %v12410_v3, %v10253_v62  ;;  %v12362_v62 = vld [vmem:[#allocation17 + $0x334] sm:$0xf0] }
 0x6b2   :  { %v3659_v26 = vadd.f32 %v3654_v41, %v3653_v42  ;;  %v10775_v42 = vld [vmem:[#allocation17 + $0x8d0] sm:$0xf0]  ;;  %v10394_v41 = vor.u32 %v12439_v12, %v10391_v13  ;;  %v12487_v12 = vld [vmem:[#allocation17 + $0x724] sm:$0xf] }
 0x6b3   :  { %v3644_v16 = vpop.xlane.xlu1 %3643  ;;  %v10583_v13 = vld [vmem:[#allocation17 + $0x750] sm:$0xf0] }
 0x6b4   :  { %v3646_v15 = vmul.f32 %v3644_v16, %v13432_v60  ;;  %v3660_v18 = vadd.f32 %v3659_v26, %v3655_v55  ;;  %v10778_v55 = vor.u32 %v12535_v37, %v10775_v42  ;;  %v10013_v26 = vld [vmem:[#allocation17 + $0x2a8] sm:$0xf]  ;;  %v12350_v16 = vld [vmem:[#allocation17 + $0x2d4] sm:$0xf0]  ;;  %5538 = vmatpush.bf16.msrb.mxu3 %v10394_v41  ;;  %v10586_v41 = vor.u32 %v12487_v12, %v10583_v13 }
 0x6b5   :  { %v9821_v37 = vld [vmem:[#allocation17 + $0x128] sm:$0xf]  ;;  %v12302_v42 = vld [vmem:[#allocation17 + $0x154] sm:$0xf0] }
 0x6b6   :  { %v13873_v1 = vsub.f32 %v13848_v59, %v3646_v15  ;;  %v13876_v39 = vsub.f32 %v13846_v54, %v3646_v15  ;;  %v13879_v19 = vsub.f32 %v13850_v6, %v3646_v15  ;;  %3661 = vadd.xlane.f32.xlu0 %v3660_v18  ;;  %v10397_v15 = vld [vmem:[#allocation17 + $0x5a8] sm:$0xf]  ;;  %v10014_v18 = vor.u32 %v12350_v16, %v10013_v26  ;;  %v12398_v16 = vld [vmem:[#allocation17 + $0x454] sm:$0xf0] }
 0x6b7   :  { %5552 = vmatpush.bf16.msra.mxu0 %v10778_v55  ;;  %v9822_v55 = vor.u32 %v12302_v42, %v9821_v37  ;;  %v10205_v26 = vld [vmem:[#allocation17 + $0x428] sm:$0xf] }
 0x6b8   :  { %v3656_v23 = vmul.f32 %v13873_v1, %v13873_v1  ;;  %v3657_v51 = vmul.f32 %v13876_v39, %v13876_v39  ;;  %v3658_v2 = vmul.f32 %v13879_v19, %v13879_v19  ;;  %5566 = vmatpush.bf16.msra.mxu1 %v10014_v18  ;;  %v12379_v18 = vld [vmem:[#allocation17 + $0x3c4] sm:$0xf] }
 0x6ba   :  { %v3663_v27 = vadd.f32 %v3657_v51, %v3656_v23  ;;  %v12446_v23 = vld [vmem:[#allocation17 + $0x5d4] sm:$0xf0]  ;;  %v12427_v51 = vld [vmem:[#allocation17 + $0x544] sm:$0xf] }
 0x6bb   :  { %5553 = vmatpush.bf16.msra.mxu0 %v10730_v63 }
 0x6bc   :  { %v3664_v58 = vadd.f32 %v3663_v27, %v3658_v2  ;;  %v10343_v2 = vld [vmem:[#allocation17 + $0x570] sm:$0xf0]  ;;  %v10398_v27 = vor.u32 %v12446_v23, %v10397_v15  ;;  %5567 = vmatpush.bf16.msra.mxu1 %v9966_v61  ;;  %v10206_v15 = vor.u32 %v12398_v16, %v10205_v26  ;;  %v10158_v61 = vor.u32 %v12386_v56, %v10157_v35 }
 0x6bd   :  { %v10151_v23 = vld [vmem:[#allocation17 + $0x3f0] sm:$0xf0] }
 0x6be   :  { %3665 = vadd.xlane.f32.xlu2 %v3664_v58  ;;  %v10346_v58 = vor.u32 %v12427_v51, %v10343_v2  ;;  %5580 = vmatpush.bf16.msrb.mxu2 %v10398_v27  ;;  %v12475_v51 = vld [vmem:[#allocation17 + $0x6c4] sm:$0xf]  ;;  %v10154_v2 = vor.u32 %v12379_v18, %v10151_v23  ;;  %v10535_v27 = vld [vmem:[#allocation17 + $0x6f0] sm:$0xf0] }
 0x6bf   :  { %5554 = vmatpush.bf16.msra.mxu0 %v10682_v47  ;;  %v10538_v22 = vor.u32 %v12475_v51, %v10535_v27  ;;  %v12278_v47 = vld [vmem:[#allocation17 + $0x94] sm:$0xf0]  ;;  %v3636_v27 = vld [vmem:[#allocation16] sm:$0x7] }
 0x6c0   :  { %5539 = vmatpush.bf16.msrb.mxu3 %v10346_v58  ;;  %5568 = vmatpush.bf16.msra.mxu1 %v9918_v21  ;;  %v9773_v58 = vld [vmem:[#allocation17 + $0xc8] sm:$0xf]  ;;  %v9726_v20 = vor.u32 %v12278_v47, %v9725_v46  ;;  %v3711_v56 = vperm.slane %v3636_v27, 0  ;;  %v12542_v47 = vld [vmem:[#allocation17 + $0x8d4] sm:$0xf0] }
 0x6c1   :  { %v9774_v63 = vor.u32 %v12290_v33, %v9773_v58  ;;  %v10109_v21 = vld [vmem:[#allocation17 + $0x368] sm:$0xf] }
 0x6c2   :  { %5581 = vmatpush.bf16.msrb.mxu2 %v10350_v4  ;;  %v12367_v4 = vld [vmem:[#allocation17 + $0x364] sm:$0xf] }
 0x6c3   :  { %5555 = vmatpush.bf16.msra.mxu0 %v10634_v8 }
 0x6c4   :  { %5540 = vmatpush.bf16.msrb.mxu3 %v10298_v5  ;;  %5569 = vmatpush.bf16.msra.mxu1 %v9870_v57  ;;  %v10106_v5 = vor.u32 %v12367_v4, %v10103_v30  ;;  %v10061_v57 = vld [vmem:[#allocation17 + $0x308] sm:$0xf] }
 0x6c5   :  { %v10062_v10 = vor.u32 %v12362_v62, %v10061_v57 }
 0x6c6   :  { %5582 = vmatpush.bf16.msrb.mxu2 %v10302_v32  ;;  %v10110_v32 = vor.u32 %v12374_v45, %v10109_v21 }
 0x6c7   :  { %5556 = vmatpush.bf16.msra.mxu0 %v10586_v41 }
 0x6c8   :  { %5541 = vmatpush.bf16.msrb.mxu3 %v10250_v50  ;;  %5570 = vmatpush.bf16.msra.mxu1 %v9822_v55  ;;  %v10439_v50 = vld [vmem:[#allocation17 + $0x630] sm:$0xf0] }
 0x6c9   :  { %v10442_v8 = vor.u32 %v12451_v25, %v10439_v50 }
 0x6ca   :  { %5583 = vmatpush.bf16.msrb.mxu2 %v10254_v7  ;;  %v9678_v7 = vor.u32 %v12266_v9, %v9677_v53  ;;  %v10399_v9 = vld [vmem:[#allocation17 + $0x5d8] sm:$0xf0] }
 0x6cb   :  { %5557 = vmatpush.bf16.msra.mxu0 %v10538_v22 }
 0x6cc   :  { %5542 = vmatpush.bf16.msrb.mxu3 %v10202_v14  ;;  %5571 = vmatpush.bf16.msra.mxu1 %v9774_v63 }
 0x6ce   :  { %5584 = vmatpush.bf16.msrb.mxu2 %v10206_v15  ;;  %v3635_v15 = vld [vmem:[#allocation14] sm:$0x7] }
 0x6cf   :  { %5558 = vmatpush.bf16.msra.mxu0 %v10490_v43  ;;  %v3698_v51 = vperm.slane %v3635_v15, 0  ;;  %v3700_v22 = vperm.slane %v3635_v15, 2 }
 0x6d0   :  { %5543 = vmatpush.bf16.msrb.mxu3 %v10154_v2  ;;  %5572 = vmatpush.bf16.msra.mxu1 %v9726_v20  ;;  %v3699_v2 = vperm.slane %v3635_v15, 1  ;;  %v12344_v20 = vld [vmem:[#allocation17 + $0x2ac] sm:$0xf]  ;;  %v12518_v15 = vld [vmem:[#allocation17 + $0x814] sm:$0xf0] }
 0x6d2   :  { %5585 = vmatpush.bf16.msrb.mxu2 %v10158_v61  ;;  %v3713_v61 = vperm.slane %v3636_v27, 2 }
 0x6d3   :  { %5559 = vmatpush.bf16.msra.mxu0 %v10442_v8 }
 0x6d4   :  { %5544 = vmatpush.bf16.msrb.mxu3 %v10106_v5  ;;  %5573 = vmatpush.bf16.msra.mxu1 %v9678_v7  ;;  %v12530_v7 = vld [vmem:[#allocation17 + $0x874] sm:$0xf0] }
 0x6d6   :  { %5586 = vmatpush.bf16.msrb.mxu2 %v10110_v32  ;;  %v10015_v32 = vld [vmem:[#allocation17 + $0x2d8] sm:$0xf0] }
 0x6d7   :  { %v10018_v62 = vor.u32 %v12344_v20, %v10015_v32  ;;  %v10207_v20 = vld [vmem:[#allocation17 + $0x458] sm:$0xf0]  ;;  %v12488_v32 = vld [vmem:[#allocation17 + $0x72c] sm:$0xf] }
 0x6d8   :  { %5545 = vmatpush.bf16.msrb.mxu3 %v10058_v0  ;;  %v10783_v0 = vld [vmem:[#allocation17 + $0x8d8] sm:$0xf0] }
 0x6da   :  { %5587 = vmatpush.bf16.msrb.mxu2 %v10062_v10 }
 0x729   :  { %v3662_v34 = vpop.xlane.xlu0 %3661 }
 0x72a   :  { %v3667_v52 = vmul.f32 %v3662_v34, %v13432_v60 }
 0x72c   :  { %v3669_v40 = vadd.f32 1e-05, %v3667_v52  ;;  %v3712_v52 = vperm.slane %v3636_v27, 1  ;;  %v10303_v27 = vld [vmem:[#allocation17 + $0x518] sm:$0xf0] }
 0x72e   :  { %12915 = vrsqrt.f32 %v3669_v40  ;;  %vm3677_vm10 = vweird.f32 %v3669_v40 }
 0x731   :  { %v3666_v3 = vpop.xlane.xlu2 %3665 }
 0x732   :  { %v3668_v28 = vmul.f32 %v3666_v3, %v13432_v60  ;;  %v10733_v3 = vld [vmem:[#allocation17 + $0x848] sm:$0xf] }
 0x734   :  { %v12916_v12 = vpop.eup %12915  ;;  %v3670_v14 = vadd.f32 1e-05, %v3668_v28  ;;  %v10402_v28 = vor.u32 %v12440_v49, %v10399_v9  ;;  %v10591_v49 = vld [vmem:[#allocation17 + $0x758] sm:$0xf0] }
 0x735   :  { %v3672_v13 = vmul.f32 %v12916_v12, %v3669_v40  ;;  %vm3678_vm7 = vweird.f32 %v12916_v12 }
 0x736   :  { %12917 = vrsqrt.f32 %v3670_v14  ;;  %vm3679_vm3 = vmor %vm3677_vm10, %vm3678_vm7  ;;  %vm3687_vm5 = vweird.f32 %v3670_v14 }
 0x737   :  { %v3673_v37 = vmul.f32 %v12916_v12, %v3672_v13  ;;  %v12428_v13 = vld [vmem:[#allocation17 + $0x54c] sm:$0xf] }
 0x739   :  { %v3674_v42 = vmul.f32 0.5, %v3673_v37  ;;  %v10351_v37 = vld [vmem:[#allocation17 + $0x578] sm:$0xf0] }
 0x73b   :  { %v3675_v41 = vsub.f32 1.5, %v3674_v42  ;;  %v12524_v42 = vld [vmem:[#allocation17 + $0x84c] sm:$0xf] }
 0x73c   :  { %v12918_v55 = vpop.eup %12917 }
 0x73d   :  { %v3676_v26 = vmul.f32 %v12916_v12, %v3675_v41  ;;  %v3682_v16 = vmul.f32 %v12918_v55, %v3670_v14  ;;  %vm3688_vm4 = vweird.f32 %v12918_v55  ;;  %v9967_v14 = vld [vmem:[#allocation17 + $0x278] sm:$0xf0] }
 0x73e   :  { %vm3689_vm6 = vmor %vm3687_vm5, %vm3688_vm4  ;;  %v10735_v41 = vld [vmem:[#allocation17 + $0x878] sm:$0xf0] }
 0x73f   :  { %v3683_v60 = vmul.f32 %v12918_v55, %v3682_v16  ;;  %v3680_v18 = vsel %vm3679_vm3, %v12916_v12, %v3676_v26  ;;  %v12332_v12 = vld [vmem:[#allocation17 + $0x24c] sm:$0xf]  ;;  %v10685_v16 = vld [vmem:[#allocation17 + $0x7e8] sm:$0xf] }
 0x740   :  { %v3691_v58 = vmul.f32 %v3680_v18, %v13857_v11  ;;  %v3692_v33 = vmul.f32 %v3680_v18, %v13860_v17  ;;  %v3693_v63 = vmul.f32 %v3680_v18, %v13863_v31  ;;  %v10781_v31 = vld [vmem:[#allocation17 + $0x8a8] sm:$0xf]  ;;  %v9970_v26 = vor.u32 %v12332_v12, %v9967_v14 }
 0x741   :  { %v3684_v23 = vmul.f32 0.5, %v3683_v60  ;;  %v10354_v60 = vor.u32 %v12428_v13, %v10351_v37  ;;  %v10738_v18 = vor.u32 %v12524_v42, %v10735_v41  ;;  %v10493_v14 = vld [vmem:[#allocation17 + $0x668] sm:$0xf]  ;;  %v12470_v13 = vld [vmem:[#allocation17 + $0x694] sm:$0xf0] }
 0x742   :  { %v3704_v4 = vmul.f32 %v3698_v51, %v3691_v58  ;;  %v3705_v30 = vmul.f32 %v3699_v2, %v3692_v33  ;;  %v3706_v40 = vmul.f32 %v3700_v22, %v3693_v63  ;;  %v12512_v58 = vld [vmem:[#allocation17 + $0x7ec] sm:$0xf]  ;;  %v10687_v33 = vld [vmem:[#allocation17 + $0x818] sm:$0xf0]  ;;  %v10637_v63 = vld [vmem:[#allocation17 + $0x788] sm:$0xf] }
 0x743   :  { %v3685_v34 = vsub.f32 1.5, %v3684_v23  ;;  %v12320_v23 = vld [vmem:[#allocation17 + $0x1ec] sm:$0xf] }
 0x744   :  { %v3717_v21 = vadd.f32 %v3711_v56, %v3704_v4  ;;  %v3718_v45 = vadd.f32 %v3712_v52, %v3705_v30  ;;  %v3719_v24 = vadd.f32 %v3713_v61, %v3706_v40  ;;  %v9871_v4 = vld [vmem:[#allocation17 + $0x1b8] sm:$0xf0]  ;;  %v12404_v30 = vld [vmem:[#allocation17 + $0x48c] sm:$0xf] }
 0x745   :  { %v3686_v35 = vmul.f32 %v12918_v55, %v3685_v34  ;;  %v10686_v34 = vor.u32 %v12518_v15, %v10685_v16  ;;  %v12500_v40 = vld [vmem:[#allocation17 + $0x78c] sm:$0xf]  ;;  %v10111_v16 = vld [vmem:[#allocation17 + $0x398] sm:$0xf0] }
 0x746   :  { %v12272_v41 = vld [vmem:[#allocation17 + $0x6c] sm:$0xf] }
 0x747   :  { %v3690_v36 = vsel %vm3689_vm6, %v12918_v55, %v3686_v35  ;;  %v10734_v55 = vor.u32 %v12530_v7, %v10733_v3  ;;  %v12506_v35 = vld [vmem:[#allocation17 + $0x7b4] sm:$0xf0]  ;;  %v10159_v3 = vld [vmem:[#allocation17 + $0x3f8] sm:$0xf0]  ;;  %v12476_v7 = vld [vmem:[#allocation17 + $0x6cc] sm:$0xf] }
 0x748   :  { %v3694_v5 = vmul.f32 %v3690_v36, %v13873_v1  ;;  %v3695_v11 = vmul.f32 %v3690_v36, %v13876_v39  ;;  %v3696_v17 = vmul.f32 %v3690_v36, %v13879_v19  ;;  %v12536_v1 = vld [vmem:[#allocation17 + $0x8ac] sm:$0xf]  ;;  %v10782_v39 = vor.u32 %v12542_v47, %v10781_v31  ;;  %v10255_v36 = vld [vmem:[#allocation17 + $0x4b8] sm:$0xf0] }
 0x749   :  { %v10786_v10 = vor.u32 %v12536_v1, %v10783_v0  ;;  %v12296_v47 = vld [vmem:[#allocation17 + $0x12c] sm:$0xf]  ;;  %v10594_v1 = vor.u32 %v12488_v32, %v10591_v49  ;;  %v10357_v49 = vld [vmem:[#allocation17 + $0x550] sm:$0xf] }
 0x74a   :  { %v3707_v29 = vmul.f32 %v3698_v51, %v3694_v5  ;;  %v3708_v46 = vmul.f32 %v3699_v2, %v3695_v11  ;;  %v3709_v43 = vmul.f32 %v3700_v22, %v3696_v17  ;;  %v9919_v51 = vld [vmem:[#allocation17 + $0x218] sm:$0xf0]  ;;  %v12416_v2 = vld [vmem:[#allocation17 + $0x4ec] sm:$0xf]  ;;  %v10638_v11 = vor.u32 %v12506_v35, %v10637_v63 }
 0x74b   :  { %v9922_v22 = vor.u32 %v12320_v23, %v9919_v51  ;;  %v10639_v5 = vld [vmem:[#allocation17 + $0x7b8] sm:$0xf0]  ;;  %v12284_v0 = vld [vmem:[#allocation17 + $0xcc] sm:$0xf]  ;;  %v10494_v23 = vor.u32 %v12470_v13, %v10493_v14  ;;  %v12519_v14 = vld [vmem:[#allocation17 + $0x81c] sm:$0xf0] }
 0x74c   :  { %v3720_v25 = vadd.f32 %v3711_v56, %v3707_v29  ;;  %v3721_v50 = vadd.f32 %v3712_v52, %v3708_v46  ;;  %v3722_v53 = vadd.f32 %v3713_v61, %v3709_v43  ;;  %v10306_v56 = vor.u32 %v12416_v2, %v10303_v27  ;;  %v12308_v61 = vld [vmem:[#allocation17 + $0x18c] sm:$0xf]  ;;  %v10589_v29 = vld [vmem:[#allocation17 + $0x728] sm:$0xf]  ;;  %v12494_v46 = vld [vmem:[#allocation17 + $0x754] sm:$0xf0] }
 0x74d   :  { %v10690_v52 = vor.u32 %v12512_v58, %v10687_v33  ;;  %v9874_v17 = vor.u32 %v12308_v61, %v9871_v4  ;;  %v10258_v43 = vor.u32 %v12404_v30, %v10255_v36  ;;  %v10642_v31 = vor.u32 %v12500_v40, %v10639_v5  ;;  %v12464_v15 = vld [vmem:[#allocation17 + $0x66c] sm:$0xf]  ;;  %v12458_v2 = vld [vmem:[#allocation17 + $0x634] sm:$0xf0]  ;;  %v9679_v58 = vld [vmem:[#allocation17 + $0x38] sm:$0xf0] }
 0x74e   :  { %v13895_v8 = vpack.c.bf16 %v3720_v25, %v3717_v21  ;;  %v13897_v19 = vpack.c.bf16 %v3721_v50, %v3718_v45  ;;  %v13899_v57 = vpack.c.bf16 %v3722_v53, %v3719_v24  ;;  %v9823_v21 = vld [vmem:[#allocation17 + $0x158] sm:$0xf0]  ;;  %v12392_v45 = vld [vmem:[#allocation17 + $0x42c] sm:$0xf]  ;;  %v10590_v24 = vor.u32 %v12494_v46, %v10589_v29  ;;  %v10541_v50 = vld [vmem:[#allocation17 + $0x6c8] sm:$0xf] }
 0x74f   :  { %v9826_v25 = vor.u32 %v12296_v47, %v9823_v21  ;;  %v12482_v53 = vld [vmem:[#allocation17 + $0x6f4] sm:$0xf0]  ;;  %v10210_v9 = vor.u32 %v12392_v45, %v10207_v20  ;;  %v12260_v27 = vld [vmem:[#allocation17 + $0xc] sm:$0xf]  ;;  %v10063_v63 = vld [vmem:[#allocation17 + $0x338] sm:$0xf0] }
 0x750   :  { %5490 = vmatmul.bf16.vlgmr.msra.gmra.mxu3 %v13895_v8  ;;  %5504 = vmatmul.bf16.vlgmr.msrb.gmra.mxu0 %v13897_v19  ;;  %v12452_v35 = vld [vmem:[#allocation17 + $0x60c] sm:$0xf]  ;;  %v12351_v61 = vld [vmem:[#allocation17 + $0x2dc] sm:$0xf0]  ;;  %v10405_v4 = vld [vmem:[#allocation17 + $0x5b0] sm:$0xf]  ;;  %v9682_v5 = vor.u32 %v12260_v27, %v9679_v58 }
 0x751   :  { %5518 = vmatmul.bf16.vlgmr.msrb.gmra.mxu1 %v13899_v57  ;;  %5532 = vmatmul.bf16.vlgmr.msra.gmra.mxu2 %v13895_v8  ;;  %v12447_v30 = vld [vmem:[#allocation17 + $0x5dc] sm:$0xf0]  ;;  %v10789_v36 = vld [vmem:[#allocation17 + $0x8b0] sm:$0xf]  ;;  %v10023_v29 = vld [vmem:[#allocation17 + $0x2e0] sm:$0xf0] }
 0x752   :  { %5594 = vmatpush.bf16.msra.mxu3 %v10782_v39  ;;  %5608 = vmatpush.bf16.msrb.mxu0 %v10018_v62  ;;  %v9775_v39 = vld [vmem:[#allocation17 + $0xf8] sm:$0xf0]  ;;  %v12380_v62 = vld [vmem:[#allocation17 + $0x3cc] sm:$0xf]  ;;  %v10406_v47 = vor.u32 %v12447_v30, %v10405_v4  ;;  %v9973_v21 = vld [vmem:[#allocation17 + $0x250] sm:$0xf] }
 0x753   :  { %5622 = vmatpush.bf16.msrb.mxu1 %v10402_v28  ;;  %5636 = vmatpush.bf16.msra.mxu2 %v10786_v10  ;;  %v10543_v28 = vld [vmem:[#allocation17 + $0x6f8] sm:$0xf0]  ;;  %v10542_v10 = vor.u32 %v12482_v53, %v10541_v50  ;;  %v9778_v12 = vor.u32 %v12284_v0, %v9775_v39  ;;  %v10162_v37 = vor.u32 %v12380_v62, %v10159_v3  ;;  %v12339_v45 = vld [vmem:[#allocation17 + $0x27c] sm:$0xf0]  ;;  %v12333_v53 = vld [vmem:[#allocation17 + $0x254] sm:$0xf] }
 0x754   :  { %v10546_v42 = vor.u32 %v12476_v7, %v10543_v28  ;;  %v12531_v50 = vld [vmem:[#allocation17 + $0x87c] sm:$0xf0]  ;;  %v9925_v39 = vld [vmem:[#allocation17 + $0x1f0] sm:$0xf]  ;;  %v12321_v13 = vld [vmem:[#allocation17 + $0x1f4] sm:$0xf] }
 0x755   :  { %v12327_v62 = vld [vmem:[#allocation17 + $0x21c] sm:$0xf0]  ;;  %v10309_v28 = vld [vmem:[#allocation17 + $0x4f0] sm:$0xf]  ;;  %v9879_v27 = vld [vmem:[#allocation17 + $0x1c0] sm:$0xf0] }
 0x756   :  { %5595 = vmatpush.bf16.msra.mxu3 %v10734_v55  ;;  %5609 = vmatpush.bf16.msrb.mxu0 %v9970_v26  ;;  %v9727_v55 = vld [vmem:[#allocation17 + $0x98] sm:$0xf0]  ;;  %v12368_v26 = vld [vmem:[#allocation17 + $0x36c] sm:$0xf]  ;;  %v12495_v4 = vld [vmem:[#allocation17 + $0x75c] sm:$0xf0] }
 0x757   :  { %5623 = vmatpush.bf16.msrb.mxu1 %v10354_v60  ;;  %5637 = vmatpush.bf16.msra.mxu2 %v10738_v18  ;;  %v10495_v60 = vld [vmem:[#allocation17 + $0x698] sm:$0xf0]  ;;  %v10445_v18 = vld [vmem:[#allocation17 + $0x608] sm:$0xf]  ;;  %v9730_v51 = vor.u32 %v12272_v41, %v9727_v55  ;;  %v10114_v33 = vor.u32 %v12368_v26, %v10111_v16  ;;  %v9877_v55 = vld [vmem:[#allocation17 + $0x190] sm:$0xf] }
 0x758   :  { %v10446_v40 = vor.u32 %v12458_v2, %v10445_v18  ;;  %v12315_v26 = vld [vmem:[#allocation17 + $0x1bc] sm:$0xf0]  ;;  %v12309_v2 = vld [vmem:[#allocation17 + $0x194] sm:$0xf] }
 0x759   :  { %v12411_v18 = vld [vmem:[#allocation17 + $0x4bc] sm:$0xf0]  ;;  %v9878_v58 = vor.u32 %v12315_v26, %v9877_v55  ;;  %v12297_v30 = vld [vmem:[#allocation17 + $0x134] sm:$0xf] }
 0x75a   :  { %5596 = vmatpush.bf16.msra.mxu3 %v10686_v34  ;;  %5610 = vmatpush.bf16.msrb.mxu0 %v9922_v22  ;;  %v10498_v34 = vor.u32 %v12464_v15, %v10495_v60  ;;  %v12356_v22 = vld [vmem:[#allocation17 + $0x30c] sm:$0xf]  ;;  %v10261_v60 = vld [vmem:[#allocation17 + $0x490] sm:$0xf]  ;;  %v12459_v55 = vld [vmem:[#allocation17 + $0x63c] sm:$0xf0] }
 0x75b   :  { %5624 = vmatpush.bf16.msrb.mxu1 %v10306_v56  ;;  %5638 = vmatpush.bf16.msra.mxu2 %v10690_v52  ;;  %v10447_v56 = vld [vmem:[#allocation17 + $0x638] sm:$0xf0]  ;;  %v10021_v52 = vld [vmem:[#allocation17 + $0x2b0] sm:$0xf]  ;;  %v10066_v46 = vor.u32 %v12356_v22, %v10063_v63  ;;  %v12303_v22 = vld [vmem:[#allocation17 + $0x15c] sm:$0xf0] }
 0x75c   :  { %v12261_v26 = vld [vmem:[#allocation17 + $0x14] sm:$0xf] }
 0x75e   :  { %5597 = vmatpush.bf16.msra.mxu3 %v10638_v11  ;;  %5611 = vmatpush.bf16.msrb.mxu0 %v9874_v17  ;;  %v12543_v11 = vld [vmem:[#allocation17 + $0x8dc] sm:$0xf0]  ;;  %v12345_v17 = vld [vmem:[#allocation17 + $0x2b4] sm:$0xf] }
 0x75f   :  { %5625 = vmatpush.bf16.msrb.mxu1 %v10258_v43  ;;  %5639 = vmatpush.bf16.msra.mxu2 %v10642_v31  ;;  %v10450_v43 = vor.u32 %v12452_v35, %v10447_v56  ;;  %v10022_v31 = vor.u32 %v12351_v61, %v10021_v52  ;;  %v10790_v20 = vor.u32 %v12543_v11, %v10789_v36  ;;  %v10213_v56 = vld [vmem:[#allocation17 + $0x430] sm:$0xf]  ;;  %v12399_v52 = vld [vmem:[#allocation17 + $0x45c] sm:$0xf0]  ;;  %v9831_v36 = vld [vmem:[#allocation17 + $0x160] sm:$0xf0] }
 0x760   :  { %5546 = vmatmul.bf16.vlgmr.msrb.gmra.mxu3 %v13897_v19  ;;  %5560 = vmatmul.bf16.vlgmr.msra.gmra.mxu0 %v13899_v57  ;;  %v10026_v32 = vor.u32 %v12345_v17, %v10023_v29  ;;  %v9882_v35 = vor.u32 %v12309_v2, %v9879_v27  ;;  %v10597_v61 = vld [vmem:[#allocation17 + $0x730] sm:$0xf]  ;;  %v12291_v17 = vld [vmem:[#allocation17 + $0xfc] sm:$0xf0] }
 0x761   :  { %5574 = vmatmul.bf16.vlgmr.msra.gmra.mxu1 %v13895_v8  ;;  %5588 = vmatmul.bf16.vlgmr.msrb.gmra.mxu2 %v13897_v19  ;;  %v9781_v11 = vld [vmem:[#allocation17 + $0xd0] sm:$0xf]  ;;  %v10598_v29 = vor.u32 %v12495_v4, %v10597_v61  ;;  %v10359_v61 = vld [vmem:[#allocation17 + $0x580] sm:$0xf0] }
 0x762   :  { %5598 = vmatpush.bf16.msra.mxu3 %v10590_v24  ;;  %5612 = vmatpush.bf16.msrb.mxu0 %v9826_v25  ;;  %v12435_v24 = vld [vmem:[#allocation17 + $0x57c] sm:$0xf0]  ;;  %v10741_v25 = vld [vmem:[#allocation17 + $0x850] sm:$0xf] }
 0x763   :  { %5626 = vmatpush.bf16.msrb.mxu1 %v10210_v9  ;;  %5640 = vmatpush.bf16.msra.mxu2 %v10594_v1  ;;  %v9975_v9 = vld [vmem:[#allocation17 + $0x280] sm:$0xf0]  ;;  %v9974_v1 = vor.u32 %v12339_v45, %v9973_v21  ;;  %v10358_v0 = vor.u32 %v12435_v24, %v10357_v49  ;;  %v10742_v3 = vor.u32 %v12531_v50, %v10741_v25  ;;  %v12483_v21 = vld [vmem:[#allocation17 + $0x6fc] sm:$0xf0]  ;;  %v12285_v45 = vld [vmem:[#allocation17 + $0xd4] sm:$0xf] }
 0x764   :  { %v9978_v7 = vor.u32 %v12333_v53, %v9975_v9  ;;  %v9733_v24 = vld [vmem:[#allocation17 + $0x70] sm:$0xf]  ;;  %v12279_v25 = vld [vmem:[#allocation17 + $0x9c] sm:$0xf0] }
 0x765   :  { %v10117_v9 = vld [vmem:[#allocation17 + $0x370] sm:$0xf] }
 0x766   :  { %5599 = vmatpush.bf16.msra.mxu3 %v10542_v10  ;;  %5613 = vmatpush.bf16.msrb.mxu0 %v9778_v12  ;;  %v12423_v10 = vld [vmem:[#allocation17 + $0x51c] sm:$0xf0]  ;;  %v10693_v12 = vld [vmem:[#allocation17 + $0x7f0] sm:$0xf] }
 0x767   :  { %5627 = vmatpush.bf16.msrb.mxu1 %v10162_v37  ;;  %5641 = vmatpush.bf16.msra.mxu2 %v10546_v42  ;;  %v9927_v37 = vld [vmem:[#allocation17 + $0x220] sm:$0xf0]  ;;  %v9926_v42 = vor.u32 %v12327_v62, %v9925_v39  ;;  %v10310_v41 = vor.u32 %v12423_v10, %v10309_v28  ;;  %v10694_v16 = vor.u32 %v12519_v14, %v10693_v12  ;;  %v12471_v39 = vld [vmem:[#allocation17 + $0x69c] sm:$0xf0]  ;;  %v12273_v62 = vld [vmem:[#allocation17 + $0x74] sm:$0xf] }
 0x768   :  { %v9930_v15 = vor.u32 %v12321_v13, %v9927_v37  ;;  %v9734_v28 = vor.u32 %v12279_v25, %v9733_v24  ;;  %v12267_v12 = vld [vmem:[#allocation17 + $0x3c] sm:$0xf0]  ;;  %v10069_v14 = vld [vmem:[#allocation17 + $0x310] sm:$0xf]  ;;  %v12328_v24 = vld [vmem:[#allocation17 + $0x224] sm:$0xf0] }
 0x769   :  { %v12363_v13 = vld [vmem:[#allocation17 + $0x33c] sm:$0xf0]  ;;  %v10317_v25 = vld [vmem:[#allocation17 + $0x4f8] sm:$0xf] }
 0x76a   :  { %5600 = vmatpush.bf16.msra.mxu3 %v10494_v23  ;;  %5614 = vmatpush.bf16.msrb.mxu0 %v9730_v51  ;;  %v10645_v23 = vld [vmem:[#allocation17 + $0x790] sm:$0xf]  ;;  %v12507_v51 = vld [vmem:[#allocation17 + $0x7bc] sm:$0xf0]  ;;  %v10070_v27 = vor.u32 %v12363_v13, %v10069_v14  ;;  %v12412_v14 = vld [vmem:[#allocation17 + $0x4c4] sm:$0xf0] }
 0x76b   :  { %5628 = vmatpush.bf16.msrb.mxu1 %v10114_v33  ;;  %5642 = vmatpush.bf16.msra.mxu2 %v10498_v34  ;;  %v10262_v33 = vor.u32 %v12411_v18, %v10261_v60  ;;  %v9829_v34 = vld [vmem:[#allocation17 + $0x130] sm:$0xf]  ;;  %v10646_v63 = vor.u32 %v12507_v51, %v10645_v23  ;;  %v10407_v60 = vld [vmem:[#allocation17 + $0x5e0] sm:$0xf0]  ;;  %v12537_v18 = vld [vmem:[#allocation17 + $0x8b4] sm:$0xf] }
 0x76c   :  { %v10791_v23 = vld [vmem:[#allocation17 + $0x8e0] sm:$0xf0]  ;;  %v10029_v51 = vld [vmem:[#allocation17 + $0x2b8] sm:$0xf] }
 0x76e   :  { %5601 = vmatpush.bf16.msra.mxu3 %v10446_v40  ;;  %5615 = vmatpush.bf16.msrb.mxu0 %v9682_v5  ;;  %v9830_v40 = vor.u32 %v12303_v22, %v9829_v34  ;;  %v10214_v5 = vor.u32 %v12399_v52, %v10213_v56  ;;  %v12448_v34 = vld [vmem:[#allocation17 + $0x5e4] sm:$0xf0]  ;;  %v10794_v56 = vor.u32 %v12537_v18, %v10791_v23  ;;  %v12429_v52 = vld [vmem:[#allocation17 + $0x554] sm:$0xf]  ;;  %v10221_v23 = vld [vmem:[#allocation17 + $0x438] sm:$0xf] }
 0x76f   :  { %5629 = vmatpush.bf16.msrb.mxu1 %v10066_v46  ;;  %5643 = vmatpush.bf16.msra.mxu2 %v10450_v43  ;;  %v9834_v46 = vor.u32 %v12297_v30, %v9831_v36  ;;  %v10165_v43 = vld [vmem:[#allocation17 + $0x3d0] sm:$0xf]  ;;  %v12525_v36 = vld [vmem:[#allocation17 + $0x854] sm:$0xf]  ;;  %v12304_v18 = vld [vmem:[#allocation17 + $0x164] sm:$0xf0] }
 0x771   :  { %5602 = vmatmul.bf16.vlgmr.msra.gmra.mxu3 %v13899_v57  ;;  %5616 = vmatmul.bf16.vlgmr.msrb.gmra.mxu0 %v13895_v8 }
 0x772   :  { %5650 = vmatpush.bf16.msrb.mxu3 %v10022_v31  ;;  %5664 = vmatpush.bf16.msra.mxu0 %v10406_v47  ;;  %v12387_v31 = vld [vmem:[#allocation17 + $0x3fc] sm:$0xf0]  ;;  %v10549_v47 = vld [vmem:[#allocation17 + $0x6d0] sm:$0xf] }
 0x773   :  { %5678 = vmatpush.bf16.msra.mxu1 %v10790_v20  ;;  %5692 = vmatpush.bf16.msrb.mxu2 %v10026_v32  ;;  %v9783_v20 = vld [vmem:[#allocation17 + $0x100] sm:$0xf0]  ;;  %v9782_v32 = vor.u32 %v12291_v17, %v9781_v11  ;;  %v10166_v49 = vor.u32 %v12387_v31, %v10165_v43  ;;  %v10550_v50 = vor.u32 %v12483_v21, %v10549_v47  ;;  %v12340_v11 = vld [vmem:[#allocation17 + $0x284] sm:$0xf0]  ;;  %v10365_v17 = vld [vmem:[#allocation17 + $0x558] sm:$0xf] }
 0x774   :  { %5630 = vmatmul.bf16.vlgmr.msrb.gmra.mxu1 %v13897_v19  ;;  %5644 = vmatmul.bf16.vlgmr.msra.gmra.mxu2 %v13899_v57  ;;  %v9786_v53 = vor.u32 %v12285_v45, %v9783_v20  ;;  %v12417_v31 = vld [vmem:[#allocation17 + $0x4f4] sm:$0xf]  ;;  %v10311_v47 = vld [vmem:[#allocation17 + $0x520] sm:$0xf0] }
 0x775   :  { %v12513_v20 = vld [vmem:[#allocation17 + $0x7f4] sm:$0xf] }
 0x776   :  { %5651 = vmatpush.bf16.msrb.mxu3 %v9974_v1  ;;  %5665 = vmatpush.bf16.msra.mxu0 %v10358_v0  ;;  %v12375_v1 = vld [vmem:[#allocation17 + $0x39c] sm:$0xf0]  ;;  %v10501_v0 = vld [vmem:[#allocation17 + $0x670] sm:$0xf] }
 0x777   :  { %5679 = vmatpush.bf16.msra.mxu1 %v10742_v3  ;;  %5693 = vmatpush.bf16.msrb.mxu2 %v9978_v7  ;;  %v9735_v3 = vld [vmem:[#allocation17 + $0xa0] sm:$0xf0]  ;;  %v9685_v7 = vld [vmem:[#allocation17 + $0x10] sm:$0xf]  ;;  %v10118_v10 = vor.u32 %v12375_v1, %v10117_v9  ;;  %v10502_v37 = vor.u32 %v12471_v39, %v10501_v0  ;;  %v12405_v1 = vld [vmem:[#allocation17 + $0x494] sm:$0xf] }
 0x778   :  { %v9686_v2 = vor.u32 %v12267_v12, %v9685_v7  ;;  %v10263_v0 = vld [vmem:[#allocation17 + $0x4c0] sm:$0xf0]  ;;  %v10269_v12 = vld [vmem:[#allocation17 + $0x498] sm:$0xf] }
 0x779   :  { %v10647_v7 = vld [vmem:[#allocation17 + $0x7c0] sm:$0xf0]  ;;  %v10266_v13 = vor.u32 %v12405_v1, %v10263_v0  ;;  %v12268_v1 = vld [vmem:[#allocation17 + $0x44] sm:$0xf0]  ;;  %v10077_v0 = vld [vmem:[#allocation17 + $0x318] sm:$0xf] }
 0x77a   :  { %5652 = vmatpush.bf16.msrb.mxu3 %v9926_v42  ;;  %5666 = vmatpush.bf16.msra.mxu0 %v10310_v41  ;;  %v9738_v42 = vor.u32 %v12273_v62, %v9735_v3  ;;  %v10453_v41 = vld [vmem:[#allocation17 + $0x610] sm:$0xf]  ;;  %v12501_v3 = vld [vmem:[#allocation17 + $0x794] sm:$0xf] }
 0x77b   :  { %5680 = vmatpush.bf16.msra.mxu1 %v10694_v16  ;;  %5694 = vmatpush.bf16.msrb.mxu2 %v9930_v15  ;;  %v9687_v16 = vld [vmem:[#allocation17 + $0x40] sm:$0xf0]  ;;  %v12441_v15 = vld [vmem:[#allocation17 + $0x5b4] sm:$0xf]  ;;  %v10454_v22 = vor.u32 %v12459_v55, %v10453_v41 }
 0x77c   :  { %v10215_v41 = vld [vmem:[#allocation17 + $0x460] sm:$0xf0] }
 0x77e   :  { %5653 = vmatpush.bf16.msrb.mxu3 %v9878_v58  ;;  %5667 = vmatpush.bf16.msra.mxu0 %v10262_v33  ;;  %v12352_v58 = vld [vmem:[#allocation17 + $0x2e4] sm:$0xf0]  ;;  %v10413_v33 = vld [vmem:[#allocation17 + $0x5b8] sm:$0xf] }
 0x77f   :  { %5681 = vmatpush.bf16.msra.mxu1 %v10646_v63  ;;  %5695 = vmatpush.bf16.msrb.mxu2 %v9882_v35  ;;  %v9690_v63 = vor.u32 %v12261_v26, %v9687_v16  ;;  %v10410_v35 = vor.u32 %v12441_v15, %v10407_v60  ;;  %v10030_v4 = vor.u32 %v12352_v58, %v10029_v51  ;;  %v12489_v16 = vld [vmem:[#allocation17 + $0x734] sm:$0xf]  ;;  %v10599_v15 = vld [vmem:[#allocation17 + $0x760] sm:$0xf0]  ;;  %v9837_v60 = vld [vmem:[#allocation17 + $0x138] sm:$0xf] }
 0x780   :  { %v10414_v30 = vor.u32 %v12448_v34, %v10413_v33  ;;  %v10270_v26 = vor.u32 %v12412_v14, %v10269_v12  ;;  %v12400_v51 = vld [vmem:[#allocation17 + $0x464] sm:$0xf0]  ;;  %v12381_v58 = vld [vmem:[#allocation17 + $0x3d4] sm:$0xf]  ;;  %v10167_v33 = vld [vmem:[#allocation17 + $0x400] sm:$0xf0]  ;;  %v9838_v34 = vor.u32 %v12304_v18, %v9837_v60 }
 0x781   :  { %v12532_v60 = vld [vmem:[#allocation17 + $0x884] sm:$0xf0] }
 0x782   :  { %5654 = vmatpush.bf16.msrb.mxu3 %v9830_v40  ;;  %5668 = vmatpush.bf16.msra.mxu0 %v10214_v5  ;;  %v10743_v40 = vld [vmem:[#allocation17 + $0x880] sm:$0xf0]  ;;  %v9981_v5 = vld [vmem:[#allocation17 + $0x258] sm:$0xf] }
 0x783   :  { %5682 = vmatpush.bf16.msra.mxu1 %v10598_v29  ;;  %5696 = vmatpush.bf16.msrb.mxu2 %v9834_v46  ;;  %v12436_v29 = vld [vmem:[#allocation17 + $0x584] sm:$0xf0]  ;;  %v10362_v46 = vor.u32 %v12429_v52, %v10359_v61  ;;  %v10746_v43 = vor.u32 %v12525_v36, %v10743_v40  ;;  %v9982_v21 = vor.u32 %v12340_v11, %v9981_v5  ;;  %v10173_v61 = vld [vmem:[#allocation17 + $0x3d8] sm:$0xf]  ;;  %v12369_v40 = vld [vmem:[#allocation17 + $0x374] sm:$0xf] }
 0x784   :  { %v10366_v45 = vor.u32 %v12436_v29, %v10365_v17  ;;  %v12292_v52 = vld [vmem:[#allocation17 + $0x104] sm:$0xf0]  ;;  %v10119_v5 = vld [vmem:[#allocation17 + $0x3a0] sm:$0xf0]  ;;  %v12465_v29 = vld [vmem:[#allocation17 + $0x674] sm:$0xf] }
 0x786   :  { %5655 = vmatpush.bf16.msrb.mxu3 %v9782_v32  ;;  %5669 = vmatpush.bf16.msra.mxu0 %v10166_v49  ;;  %v10695_v32 = vld [vmem:[#allocation17 + $0x820] sm:$0xf0]  ;;  %v9933_v49 = vld [vmem:[#allocation17 + $0x1f8] sm:$0xf] }
 0x787   :  { %5683 = vmatpush.bf16.msra.mxu1 %v10550_v50  ;;  %5697 = vmatpush.bf16.msrb.mxu2 %v9786_v53  ;;  %v12424_v50 = vld [vmem:[#allocation17 + $0x524] sm:$0xf0]  ;;  %v10314_v53 = vor.u32 %v12417_v31, %v10311_v47  ;;  %v10698_v9 = vor.u32 %v12513_v20, %v10695_v32  ;;  %v9934_v39 = vor.u32 %v12328_v24, %v9933_v49  ;;  %v10125_v47 = vld [vmem:[#allocation17 + $0x378] sm:$0xf]  ;;  %v10071_v49 = vld [vmem:[#allocation17 + $0x340] sm:$0xf0] }
 0x788   :  { %v10318_v62 = vor.u32 %v12424_v50, %v10317_v25  ;;  %v12280_v31 = vld [vmem:[#allocation17 + $0xa4] sm:$0xf0]  ;;  %v10122_v20 = vor.u32 %v12369_v40, %v10119_v5  ;;  %v12453_v24 = vld [vmem:[#allocation17 + $0x614] sm:$0xf]  ;;  %v10455_v25 = vld [vmem:[#allocation17 + $0x640] sm:$0xf0] }
 0x789   :  { %v10458_v14 = vor.u32 %v12453_v24, %v10455_v25  ;;  %v10319_v40 = vld [vmem:[#allocation17 + $0x528] sm:$0xf0]  ;;  %v12514_v5 = vld [vmem:[#allocation17 + $0x7fc] sm:$0xf] }
 0x78a   :  { %5656 = vmatpush.bf16.msrb.mxu3 %v9734_v28  ;;  %5670 = vmatpush.bf16.msra.mxu0 %v10118_v10  ;;  %v9885_v28 = vld [vmem:[#allocation17 + $0x198] sm:$0xf]  ;;  %v12316_v10 = vld [vmem:[#allocation17 + $0x1c4] sm:$0xf0]  ;;  %v10655_v24 = vld [vmem:[#allocation17 + $0x7c8] sm:$0xf0] }
 0x78b   :  { %5684 = vmatpush.bf16.msra.mxu1 %v10502_v37  ;;  %5698 = vmatpush.bf16.msrb.mxu2 %v9738_v42  ;;  %v10650_v37 = vor.u32 %v12501_v3, %v10647_v7  ;;  %v12393_v42 = vld [vmem:[#allocation17 + $0x434] sm:$0xf]  ;;  %v9886_v55 = vor.u32 %v12316_v10, %v9885_v28  ;;  %v12544_v3 = vld [vmem:[#allocation17 + $0x8e4] sm:$0xf0]  ;;  %v12346_v7 = vld [vmem:[#allocation17 + $0x2bc] sm:$0xf] }
 0x78c   :  { %v10031_v28 = vld [vmem:[#allocation17 + $0x2e8] sm:$0xf0]  ;;  %v12442_v10 = vld [vmem:[#allocation17 + $0x5bc] sm:$0xf] }
 0x78e   :  { %5657 = vmatpush.bf16.msrb.mxu3 %v9686_v2  ;;  %5671 = vmatpush.bf16.msra.mxu0 %v10070_v27  ;;  %v10218_v2 = vor.u32 %v12393_v42, %v10215_v41  ;;  %v10602_v27 = vor.u32 %v12489_v16, %v10599_v15  ;;  %v10799_v42 = vld [vmem:[#allocation17 + $0x8e8] sm:$0xf0]  ;;  %v10034_v16 = vor.u32 %v12346_v7, %v10031_v28  ;;  %v10749_v15 = vld [vmem:[#allocation17 + $0x858] sm:$0xf]  ;;  %v12490_v28 = vld [vmem:[#allocation17 + $0x73c] sm:$0xf] }
 0x78f   :  { %5685 = vmatpush.bf16.msra.mxu1 %v10454_v22  ;;  %5699 = vmatpush.bf16.msrb.mxu2 %v9690_v63  ;;  %v10222_v22 = vor.u32 %v12400_v51, %v10221_v23  ;;  %v12477_v63 = vld [vmem:[#allocation17 + $0x6d4] sm:$0xf]  ;;  %v12334_v51 = vld [vmem:[#allocation17 + $0x25c] sm:$0xf]  ;;  %v10223_v7 = vld [vmem:[#allocation17 + $0x468] sm:$0xf0] }
 0x791   :  { %5658 = vmatmul.bf16.vlgmr.msrb.gmra.mxu3 %v13895_v8  ;;  %5672 = vmatmul.bf16.vlgmr.msra.gmra.mxu0 %v13897_v19 }
 0x792   :  { %5706 = vmatpush.bf16.msra.mxu3 %v10410_v35  ;;  %5720 = vmatpush.bf16.msrb.mxu0 %v10794_v56  ;;  %v10551_v35 = vld [vmem:[#allocation17 + $0x700] sm:$0xf0]  ;;  %v9789_v56 = vld [vmem:[#allocation17 + $0xd8] sm:$0xf] }
 0x793   :  { %5734 = vmatpush.bf16.msrb.mxu1 %v10030_v4  ;;  %5748 = vmatpush.bf16.msra.mxu2 %v10414_v30  ;;  %v12388_v4 = vld [vmem:[#allocation17 + $0x404] sm:$0xf0]  ;;  %v10170_v30 = vor.u32 %v12381_v58, %v10167_v33  ;;  %v10554_v36 = vor.u32 %v12477_v63, %v10551_v35  ;;  %v9790_v11 = vor.u32 %v12292_v52, %v9789_v56  ;;  %v10367_v58 = vld [vmem:[#allocation17 + $0x588] sm:$0xf0]  ;;  %v12526_v33 = vld [vmem:[#allocation17 + $0x85c] sm:$0xf] }
 0x794   :  { %5686 = vmatmul.bf16.vlgmr.msra.gmra.mxu1 %v13899_v57  ;;  %5700 = vmatmul.bf16.vlgmr.msrb.gmra.mxu2 %v13895_v8  ;;  %v10174_v17 = vor.u32 %v12388_v4, %v10173_v61  ;;  %v10701_v35 = vld [vmem:[#allocation17 + $0x7f8] sm:$0xf]  ;;  %v12520_v56 = vld [vmem:[#allocation17 + $0x824] sm:$0xf0]  ;;  %v12322_v4 = vld [vmem:[#allocation17 + $0x1fc] sm:$0xf] }
 0x796   :  { %5707 = vmatpush.bf16.msra.mxu3 %v10362_v46  ;;  %5721 = vmatpush.bf16.msrb.mxu0 %v10746_v43  ;;  %v10503_v46 = vld [vmem:[#allocation17 + $0x6a0] sm:$0xf0]  ;;  %v9741_v43 = vld [vmem:[#allocation17 + $0x78] sm:$0xf] }
 0x797   :  { %5735 = vmatpush.bf16.msrb.mxu1 %v9982_v21  ;;  %5749 = vmatpush.bf16.msra.mxu2 %v10366_v45  ;;  %v12376_v21 = vld [vmem:[#allocation17 + $0x3a4] sm:$0xf0]  ;;  %v12357_v45 = vld [vmem:[#allocation17 + $0x314] sm:$0xf]  ;;  %v10506_v32 = vor.u32 %v12465_v29, %v10503_v46  ;;  %v9742_v50 = vor.u32 %v12280_v31, %v9741_v43  ;;  %v10653_v46 = vld [vmem:[#allocation17 + $0x798] sm:$0xf] }
 0x798   :  { %v10074_v12 = vor.u32 %v12357_v45, %v10071_v49  ;;  %v12508_v43 = vld [vmem:[#allocation17 + $0x7c4] sm:$0xf0]  ;;  %v9887_v45 = vld [vmem:[#allocation17 + $0x1c8] sm:$0xf0]  ;;  %v12502_v49 = vld [vmem:[#allocation17 + $0x79c] sm:$0xf] }
 0x799   :  { %v10654_v25 = vor.u32 %v12508_v43, %v10653_v46  ;;  %v10079_v46 = vld [vmem:[#allocation17 + $0x348] sm:$0xf0]  ;;  %v12454_v43 = vld [vmem:[#allocation17 + $0x61c] sm:$0xf] }
 0x79a   :  { %5708 = vmatpush.bf16.msra.mxu3 %v10314_v53  ;;  %5722 = vmatpush.bf16.msrb.mxu0 %v10698_v9  ;;  %v10126_v53 = vor.u32 %v12376_v21, %v10125_v47  ;;  %v9693_v9 = vld [vmem:[#allocation17 + $0x18] sm:$0xf]  ;;  %v12310_v21 = vld [vmem:[#allocation17 + $0x19c] sm:$0xf] }
 0x79b   :  { %5736 = vmatpush.bf16.msrb.mxu1 %v9934_v39  ;;  %5750 = vmatpush.bf16.msra.mxu2 %v10318_v62  ;;  %v12364_v39 = vld [vmem:[#allocation17 + $0x344] sm:$0xf0]  ;;  %v10797_v62 = vld [vmem:[#allocation17 + $0x8b8] sm:$0xf]  ;;  %v9694_v41 = vor.u32 %v12268_v1, %v9693_v9 }
 0x79c   :  { %v12496_v9 = vld [vmem:[#allocation17 + $0x764] sm:$0xf0] }
 0x79e   :  { %5709 = vmatpush.bf16.msra.mxu3 %v10266_v13  ;;  %5723 = vmatpush.bf16.msrb.mxu0 %v10650_v37  ;;  %v10415_v13 = vld [vmem:[#allocation17 + $0x5e8] sm:$0xf0]  ;;  %v12538_v37 = vld [vmem:[#allocation17 + $0x8bc] sm:$0xf] }
 0x79f   :  { %5737 = vmatpush.bf16.msrb.mxu1 %v9886_v55  ;;  %5751 = vmatpush.bf16.msra.mxu2 %v10270_v26  ;;  %v10078_v55 = vor.u32 %v12364_v39, %v10077_v0  ;;  %v10798_v26 = vor.u32 %v12544_v3, %v10797_v62  ;;  %v10418_v18 = vor.u32 %v12442_v10, %v10415_v13  ;;  %v12298_v39 = vld [vmem:[#allocation17 + $0x13c] sm:$0xf]  ;;  %v9839_v62 = vld [vmem:[#allocation17 + $0x168] sm:$0xf0]  ;;  %v10557_v13 = vld [vmem:[#allocation17 + $0x6d8] sm:$0xf] }
 0x7a0   :  { %v10802_v23 = vor.u32 %v12538_v37, %v10799_v42  ;;  %v10658_v0 = vor.u32 %v12502_v49, %v10655_v24  ;;  %v12394_v3 = vld [vmem:[#allocation17 + $0x43c] sm:$0xf]  ;;  %v10607_v10 = vld [vmem:[#allocation17 + $0x768] sm:$0xf0]  ;;  %v12484_v37 = vld [vmem:[#allocation17 + $0x704] sm:$0xf0] }
 0x7a1   :  { %v10226_v42 = vor.u32 %v12394_v3, %v10223_v7  ;;  %v12341_v3 = vld [vmem:[#allocation17 + $0x28c] sm:$0xf0] }
 0x7a2   :  { %5710 = vmatpush.bf16.msra.mxu3 %v10218_v2  ;;  %5724 = vmatpush.bf16.msrb.mxu0 %v10602_v27  ;;  %v9983_v2 = vld [vmem:[#allocation17 + $0x288] sm:$0xf0]  ;;  %v12430_v27 = vld [vmem:[#allocation17 + $0x55c] sm:$0xf] }
 0x7a3   :  { %5738 = vmatpush.bf16.msrb.mxu1 %v9838_v34  ;;  %5752 = vmatpush.bf16.msra.mxu2 %v10222_v22  ;;  %v10751_v34 = vld [vmem:[#allocation17 + $0x888] sm:$0xf0]  ;;  %v10750_v22 = vor.u32 %v12532_v60, %v10749_v15  ;;  %v9986_v63 = vor.u32 %v12334_v51, %v9983_v2  ;;  %v10370_v52 = vor.u32 %v12430_v27, %v10367_v58  ;;  %v12478_v60 = vld [vmem:[#allocation17 + $0x6dc] sm:$0xf]  ;;  %v10509_v2 = vld [vmem:[#allocation17 + $0x678] sm:$0xf] }
 0x7a4   :  { %v10754_v61 = vor.u32 %v12526_v33, %v10751_v34  ;;  %v10175_v15 = vld [vmem:[#allocation17 + $0x408] sm:$0xf0]  ;;  %v12472_v27 = vld [vmem:[#allocation17 + $0x6a4] sm:$0xf0]  ;;  %v12274_v34 = vld [vmem:[#allocation17 + $0x7c] sm:$0xf] }
 0x7a6   :  { %5711 = vmatpush.bf16.msra.mxu3 %v10170_v30  ;;  %5725 = vmatpush.bf16.msrb.mxu0 %v10554_v36  ;;  %v9935_v30 = vld [vmem:[#allocation17 + $0x228] sm:$0xf0]  ;;  %v12418_v36 = vld [vmem:[#allocation17 + $0x4fc] sm:$0xf] }
 0x7a7   :  { %5739 = vmatpush.bf16.msrb.mxu1 %v9790_v11  ;;  %5753 = vmatpush.bf16.msra.mxu2 %v10174_v17  ;;  %v10703_v11 = vld [vmem:[#allocation17 + $0x828] sm:$0xf0]  ;;  %v10702_v17 = vor.u32 %v12520_v56, %v10701_v35  ;;  %v9938_v29 = vor.u32 %v12322_v4, %v9935_v30  ;;  %v10322_v31 = vor.u32 %v12418_v36, %v10319_v40  ;;  %v12466_v56 = vld [vmem:[#allocation17 + $0x67c] sm:$0xf]  ;;  %v12460_v36 = vld [vmem:[#allocation17 + $0x644] sm:$0xf0] }
 0x7a8   :  { %v10706_v47 = vor.u32 %v12514_v5, %v10703_v11  ;;  %v10127_v35 = vld [vmem:[#allocation17 + $0x3a8] sm:$0xf0]  ;;  %v10510_v4 = vor.u32 %v12472_v27, %v10509_v2  ;;  %v12262_v40 = vld [vmem:[#allocation17 + $0x1c] sm:$0xf]  ;;  %v12521_v2 = vld [vmem:[#allocation17 + $0x82c] sm:$0xf0] }
 0x7a9   :  { %v9695_v5 = vld [vmem:[#allocation17 + $0x48] sm:$0xf0]  ;;  %v12323_v27 = vld [vmem:[#allocation17 + $0x204] sm:$0xf] }
 0x7aa   :  { %5712 = vmatpush.bf16.msra.mxu3 %v10122_v20  ;;  %5726 = vmatpush.bf16.msrb.mxu0 %v10506_v32  ;;  %v12406_v20 = vld [vmem:[#allocation17 + $0x49c] sm:$0xf]  ;;  %v10271_v32 = vld [vmem:[#allocation17 + $0x4c8] sm:$0xf0]  ;;  %v9698_v24 = vor.u32 %v12262_v40, %v9695_v5  ;;  %v9895_v40 = vld [vmem:[#allocation17 + $0x1d0] sm:$0xf0] }
 0x7ab   :  { %5740 = vmatpush.bf16.msrb.mxu1 %v9742_v50  ;;  %5754 = vmatpush.bf16.msra.mxu2 %v10126_v53  ;;  %v9890_v50 = vor.u32 %v12310_v21, %v9887_v45  ;;  %v10605_v53 = vld [vmem:[#allocation17 + $0x738] sm:$0xf]  ;;  %v10274_v1 = vor.u32 %v12406_v20, %v10271_v32  ;;  %v12353_v21 = vld [vmem:[#allocation17 + $0x2ec] sm:$0xf0]  ;;  %v10421_v45 = vld [vmem:[#allocation17 + $0x5c0] sm:$0xf] }
 0x7ac   :  { %v12449_v20 = vld [vmem:[#allocation17 + $0x5ec] sm:$0xf0]  ;;  %v10805_v32 = vld [vmem:[#allocation17 + $0x8c0] sm:$0xf] }
 0x7ae   :  { %5713 = vmatpush.bf16.msra.mxu3 %v10074_v12  ;;  %5727 = vmatpush.bf16.msrb.mxu0 %v10458_v14  ;;  %v10606_v12 = vor.u32 %v12496_v9, %v10605_v53  ;;  %v9842_v14 = vor.u32 %v12298_v39, %v9839_v62  ;;  %v10039_v53 = vld [vmem:[#allocation17 + $0x2f0] sm:$0xf0]  ;;  %v10422_v39 = vor.u32 %v12449_v20, %v10421_v45  ;;  %v9989_v62 = vld [vmem:[#allocation17 + $0x260] sm:$0xf]  ;;  %v12497_v45 = vld [vmem:[#allocation17 + $0x76c] sm:$0xf0] }
 0x7af   :  { %5741 = vmatpush.bf16.msrb.mxu1 %v9694_v41  ;;  %5755 = vmatpush.bf16.msra.mxu2 %v10078_v55  ;;  %v10610_v41 = vor.u32 %v12490_v28, %v10607_v10  ;;  %v12286_v55 = vld [vmem:[#allocation17 + $0xdc] sm:$0xf]  ;;  %v10373_v10 = vld [vmem:[#allocation17 + $0x560] sm:$0xf]  ;;  %v12299_v20 = vld [vmem:[#allocation17 + $0x144] sm:$0xf] }
 0x7b1   :  { %5714 = vmatmul.bf16.vlgmr.msra.gmra.mxu3 %v13897_v19  ;;  %5728 = vmatmul.bf16.vlgmr.msrb.gmra.mxu0 %v13899_v57 }
 0x7b2   :  { %5762 = vmatpush.bf16.msrb.mxu3 %v10798_v26  ;;  %5776 = vmatpush.bf16.msra.mxu0 %v10034_v16  ;;  %v9791_v26 = vld [vmem:[#allocation17 + $0x108] sm:$0xf0]  ;;  %v12382_v16 = vld [vmem:[#allocation17 + $0x3dc] sm:$0xf] }
 0x7b3   :  { %5790 = vmatpush.bf16.msra.mxu1 %v10418_v18  ;;  %5804 = vmatpush.bf16.msrb.mxu2 %v10802_v23  ;;  %v10559_v18 = vld [vmem:[#allocation17 + $0x708] sm:$0xf0]  ;;  %v10558_v23 = vor.u32 %v12484_v37, %v10557_v13  ;;  %v9794_v51 = vor.u32 %v12286_v55, %v9791_v26  ;;  %v10178_v58 = vor.u32 %v12382_v16, %v10175_v15  ;;  %v12533_v13 = vld [vmem:[#allocation17 + $0x88c] sm:$0xf0]  ;;  %v12335_v37 = vld [vmem:[#allocation17 + $0x264] sm:$0xf] }
 0x7b4   :  { %5742 = vmatmul.bf16.vlgmr.msrb.gmra.mxu1 %v13895_v8  ;;  %5756 = vmatmul.bf16.vlgmr.msra.gmra.mxu2 %v13897_v19  ;;  %v10562_v33 = vor.u32 %v12478_v60, %v10559_v18  ;;  %v9941_v26 = vld [vmem:[#allocation17 + $0x200] sm:$0xf]  ;;  %v12329_v16 = vld [vmem:[#allocation17 + $0x22c] sm:$0xf0] }
 0x7b5   :  { %v10325_v18 = vld [vmem:[#allocation17 + $0x500] sm:$0xf] }
 0x7b6   :  { %5763 = vmatpush.bf16.msrb.mxu3 %v10750_v22  ;;  %5777 = vmatpush.bf16.msra.mxu0 %v9986_v63  ;;  %v9743_v22 = vld [vmem:[#allocation17 + $0xa8] sm:$0xf0]  ;;  %v12370_v63 = vld [vmem:[#allocation17 + $0x37c] sm:$0xf] }
 0x7b7   :  { %5791 = vmatpush.bf16.msra.mxu1 %v10370_v52  ;;  %5805 = vmatpush.bf16.msrb.mxu2 %v10754_v61  ;;  %v10511_v52 = vld [vmem:[#allocation17 + $0x6a8] sm:$0xf0]  ;;  %v10461_v61 = vld [vmem:[#allocation17 + $0x618] sm:$0xf]  ;;  %v9746_v30 = vor.u32 %v12274_v34, %v9743_v22  ;;  %v10130_v11 = vor.u32 %v12370_v63, %v10127_v35  ;;  %v9893_v22 = vld [vmem:[#allocation17 + $0x1a0] sm:$0xf] }
 0x7b8   :  { %v10462_v49 = vor.u32 %v12460_v36, %v10461_v61  ;;  %v12317_v63 = vld [vmem:[#allocation17 + $0x1cc] sm:$0xf0]  ;;  %v12311_v36 = vld [vmem:[#allocation17 + $0x1a4] sm:$0xf] }
 0x7b9   :  { %v12413_v61 = vld [vmem:[#allocation17 + $0x4cc] sm:$0xf0]  ;;  %v9894_v5 = vor.u32 %v12317_v63, %v9893_v22  ;;  %v12263_v63 = vld [vmem:[#allocation17 + $0x24] sm:$0xf] }
 0x7ba   :  { %5764 = vmatpush.bf16.msrb.mxu3 %v10702_v17  ;;  %5778 = vmatpush.bf16.msra.mxu0 %v9938_v29  ;;  %v10514_v17 = vor.u32 %v12466_v56, %v10511_v52  ;;  %v12358_v29 = vld [vmem:[#allocation17 + $0x31c] sm:$0xf]  ;;  %v10277_v52 = vld [vmem:[#allocation17 + $0x4a0] sm:$0xf]  ;;  %v12461_v22 = vld [vmem:[#allocation17 + $0x64c] sm:$0xf0] }
 0x7bb   :  { %5792 = vmatpush.bf16.msra.mxu1 %v10322_v31  ;;  %5806 = vmatpush.bf16.msrb.mxu2 %v10706_v47  ;;  %v10463_v31 = vld [vmem:[#allocation17 + $0x648] sm:$0xf0]  ;;  %v10037_v47 = vld [vmem:[#allocation17 + $0x2c0] sm:$0xf]  ;;  %v10082_v9 = vor.u32 %v12358_v29, %v10079_v46  ;;  %v12305_v29 = vld [vmem:[#allocation17 + $0x16c] sm:$0xf0] }
 0x7be   :  { %5765 = vmatpush.bf16.msrb.mxu3 %v10654_v25  ;;  %5779 = vmatpush.bf16.msra.mxu0 %v9890_v50  ;;  %v12545_v25 = vld [vmem:[#allocation17 + $0x8ec] sm:$0xf0]  ;;  %v12347_v50 = vld [vmem:[#allocation17 + $0x2c4] sm:$0xf] }
 0x7bf   :  { %5793 = vmatpush.bf16.msra.mxu1 %v10274_v1  ;;  %5807 = vmatpush.bf16.msrb.mxu2 %v10658_v0  ;;  %v10466_v1 = vor.u32 %v12454_v43, %v10463_v31  ;;  %v10038_v0 = vor.u32 %v12353_v21, %v10037_v47  ;;  %v10806_v7 = vor.u32 %v12545_v25, %v10805_v32  ;;  %v10229_v31 = vld [vmem:[#allocation17 + $0x440] sm:$0xf]  ;;  %v12401_v47 = vld [vmem:[#allocation17 + $0x46c] sm:$0xf0]  ;;  %v9847_v32 = vld [vmem:[#allocation17 + $0x170] sm:$0xf0] }
 0x7c0   :  { %v10042_v28 = vor.u32 %v12347_v50, %v10039_v53  ;;  %v9898_v43 = vor.u32 %v12311_v36, %v9895_v40  ;;  %v10613_v21 = vld [vmem:[#allocation17 + $0x740] sm:$0xf]  ;;  %v12293_v50 = vld [vmem:[#allocation17 + $0x10c] sm:$0xf0] }
 0x7c1   :  { %v9797_v25 = vld [vmem:[#allocation17 + $0xe0] sm:$0xf]  ;;  %v10614_v53 = vor.u32 %v12497_v45, %v10613_v21  ;;  %v10375_v21 = vld [vmem:[#allocation17 + $0x590] sm:$0xf0] }
 0x7c2   :  { %5766 = vmatpush.bf16.msrb.mxu3 %v10606_v12  ;;  %5780 = vmatpush.bf16.msra.mxu0 %v9842_v14  ;;  %v12437_v12 = vld [vmem:[#allocation17 + $0x58c] sm:$0xf0]  ;;  %v10757_v14 = vld [vmem:[#allocation17 + $0x860] sm:$0xf] }
 0x7c3   :  { %5794 = vmatpush.bf16.msra.mxu1 %v10226_v42  ;;  %5808 = vmatpush.bf16.msrb.mxu2 %v10610_v41  ;;  %v9991_v42 = vld [vmem:[#allocation17 + $0x290] sm:$0xf0]  ;;  %v9990_v41 = vor.u32 %v12341_v3, %v9989_v62  ;;  %v10374_v55 = vor.u32 %v12437_v12, %v10373_v10  ;;  %v10758_v15 = vor.u32 %v12533_v13, %v10757_v14  ;;  %v12485_v62 = vld [vmem:[#allocation17 + $0x70c] sm:$0xf0]  ;;  %v12287_v3 = vld [vmem:[#allocation17 + $0xe4] sm:$0xf] }
 0x7c4   :  { %v9994_v60 = vor.u32 %v12335_v37, %v9991_v42  ;;  %v9749_v12 = vld [vmem:[#allocation17 + $0x80] sm:$0xf]  ;;  %v12281_v14 = vld [vmem:[#allocation17 + $0xac] sm:$0xf0] }
 0x7c5   :  { %v10133_v42 = vld [vmem:[#allocation17 + $0x380] sm:$0xf] }
 0x7c6   :  { %5767 = vmatpush.bf16.msrb.mxu3 %v10558_v23  ;;  %5781 = vmatpush.bf16.msra.mxu0 %v9794_v51  ;;  %v12425_v23 = vld [vmem:[#allocation17 + $0x52c] sm:$0xf0]  ;;  %v10709_v51 = vld [vmem:[#allocation17 + $0x800] sm:$0xf] }
 0x7c7   :  { %5795 = vmatpush.bf16.msra.mxu1 %v10178_v58  ;;  %5809 = vmatpush.bf16.msrb.mxu2 %v10562_v33  ;;  %v9943_v58 = vld [vmem:[#allocation17 + $0x230] sm:$0xf0]  ;;  %v9942_v33 = vor.u32 %v12329_v16, %v9941_v26  ;;  %v10326_v34 = vor.u32 %v12425_v23, %v10325_v18  ;;  %v10710_v35 = vor.u32 %v12521_v2, %v10709_v51  ;;  %v12473_v26 = vld [vmem:[#allocation17 + $0x6ac] sm:$0xf0]  ;;  %v12275_v16 = vld [vmem:[#allocation17 + $0x84] sm:$0xf] }
 0x7c8   :  { %v9946_v56 = vor.u32 %v12323_v27, %v9943_v58  ;;  %v9750_v18 = vor.u32 %v12281_v14, %v9749_v12  ;;  %v12269_v51 = vld [vmem:[#allocation17 + $0x4c] sm:$0xf0]  ;;  %v10085_v2 = vld [vmem:[#allocation17 + $0x320] sm:$0xf]  ;;  %v12330_v12 = vld [vmem:[#allocation17 + $0x234] sm:$0xf0] }
 0x7c9   :  { %v12365_v27 = vld [vmem:[#allocation17 + $0x34c] sm:$0xf0]  ;;  %v10333_v14 = vld [vmem:[#allocation17 + $0x508] sm:$0xf] }
 0x7ca   :  { %5768 = vmatpush.bf16.msrb.mxu3 %v10510_v4  ;;  %5782 = vmatpush.bf16.msra.mxu0 %v9746_v30  ;;  %v10661_v4 = vld [vmem:[#allocation17 + $0x7a0] sm:$0xf]  ;;  %v12509_v30 = vld [vmem:[#allocation17 + $0x7cc] sm:$0xf0]  ;;  %v10086_v40 = vor.u32 %v12365_v27, %v10085_v2  ;;  %v12318_v2 = vld [vmem:[#allocation17 + $0x1d4] sm:$0xf0] }
 0x7cb   :  { %5796 = vmatpush.bf16.msra.mxu1 %v10130_v11  ;;  %5810 = vmatpush.bf16.msrb.mxu2 %v10514_v17  ;;  %v10278_v11 = vor.u32 %v12413_v61, %v10277_v52  ;;  %v9845_v17 = vld [vmem:[#allocation17 + $0x140] sm:$0xf]  ;;  %v10662_v46 = vor.u32 %v12509_v30, %v10661_v4  ;;  %v10423_v52 = vld [vmem:[#allocation17 + $0x5f0] sm:$0xf0]  ;;  %v12539_v61 = vld [vmem:[#allocation17 + $0x8c4] sm:$0xf] }
 0x7cc   :  { %v10807_v4 = vld [vmem:[#allocation17 + $0x8f0] sm:$0xf0]  ;;  %v10045_v30 = vld [vmem:[#allocation17 + $0x2c8] sm:$0xf] }
 0x7cd   :  { %v10285_v27 = vld [vmem:[#allocation17 + $0x4a8] sm:$0xf] }
 0x7ce   :  { %5769 = vmatpush.bf16.msrb.mxu3 %v10462_v49  ;;  %5783 = vmatpush.bf16.msra.mxu0 %v9698_v24  ;;  %v9846_v49 = vor.u32 %v12305_v29, %v9845_v17  ;;  %v10230_v24 = vor.u32 %v12401_v47, %v10229_v31  ;;  %v12450_v17 = vld [vmem:[#allocation17 + $0x5f4] sm:$0xf0]  ;;  %v10810_v31 = vor.u32 %v12539_v61, %v10807_v4  ;;  %v12431_v47 = vld [vmem:[#allocation17 + $0x564] sm:$0xf]  ;;  %v10615_v4 = vld [vmem:[#allocation17 + $0x770] sm:$0xf0] }
 0x7cf   :  { %5797 = vmatpush.bf16.msra.mxu1 %v10082_v9  ;;  %5811 = vmatpush.bf16.msrb.mxu2 %v10466_v1  ;;  %v9850_v9 = vor.u32 %v12299_v20, %v9847_v32  ;;  %v10181_v1 = vld [vmem:[#allocation17 + $0x3e0] sm:$0xf]  ;;  %v12527_v32 = vld [vmem:[#allocation17 + $0x864] sm:$0xf] }
 0x7d0   :  { %v12491_v61 = vld [vmem:[#allocation17 + $0x744] sm:$0xf] }
 0x7d1   :  { %5770 = vmatmul.bf16.vlgmr.msrb.gmra.mxu3 %v13899_v57  ;;  %5784 = vmatmul.bf16.vlgmr.msra.gmra.mxu0 %v13895_v8 }
 0x7d2   :  { %5818 = vmatpush.bf16.msra.mxu3 %v10038_v0  ;;  %5832 = vmatpush.bf16.msrb.mxu0 %v10422_v39  ;;  %v12389_v0 = vld [vmem:[#allocation17 + $0x40c] sm:$0xf0]  ;;  %v10565_v39 = vld [vmem:[#allocation17 + $0x6e0] sm:$0xf] }
 0x7d3   :  { %5846 = vmatpush.bf16.msrb.mxu1 %v10806_v7  ;;  %5860 = vmatpush.bf16.msra.mxu2 %v10042_v28  ;;  %v9799_v7 = vld [vmem:[#allocation17 + $0x110] sm:$0xf0]  ;;  %v9798_v28 = vor.u32 %v12293_v50, %v9797_v25  ;;  %v10182_v10 = vor.u32 %v12389_v0, %v10181_v1  ;;  %v10566_v13 = vor.u32 %v12485_v62, %v10565_v39  ;;  %v12342_v25 = vld [vmem:[#allocation17 + $0x294] sm:$0xf0]  ;;  %v10381_v50 = vld [vmem:[#allocation17 + $0x568] sm:$0xf] }
 0x7d4   :  { %5798 = vmatmul.bf16.vlgmr.msra.gmra.mxu1 %v13897_v19  ;;  %5812 = vmatmul.bf16.vlgmr.msrb.gmra.mxu2 %v13899_v57  ;;  %v9802_v37 = vor.u32 %v12287_v3, %v9799_v7  ;;  %v12419_v0 = vld [vmem:[#allocation17 + $0x504] sm:$0xf]  ;;  %v10327_v39 = vld [vmem:[#allocation17 + $0x530] sm:$0xf0] }
 0x7d5   :  { %v12515_v7 = vld [vmem:[#allocation17 + $0x804] sm:$0xf] }
 0x7d6   :  { %5819 = vmatpush.bf16.msra.mxu3 %v9990_v41  ;;  %5833 = vmatpush.bf16.msrb.mxu0 %v10374_v55  ;;  %v12377_v41 = vld [vmem:[#allocation17 + $0x3ac] sm:$0xf0]  ;;  %v10517_v55 = vld [vmem:[#allocation17 + $0x680] sm:$0xf] }
 0x7d7   :  { %5847 = vmatpush.bf16.msrb.mxu1 %v10758_v15  ;;  %5861 = vmatpush.bf16.msra.mxu2 %v9994_v60  ;;  %v9751_v15 = vld [vmem:[#allocation17 + $0xb0] sm:$0xf0]  ;;  %v9701_v60 = vld [vmem:[#allocation17 + $0x20] sm:$0xf]  ;;  %v10134_v23 = vor.u32 %v12377_v41, %v10133_v42  ;;  %v10518_v58 = vor.u32 %v12473_v26, %v10517_v55  ;;  %v10330_v42 = vor.u32 %v12419_v0, %v10327_v39  ;;  %v12407_v55 = vld [vmem:[#allocation17 + $0x4a4] sm:$0xf] }
 0x7d8   :  { %v9702_v36 = vor.u32 %v12269_v51, %v9701_v60  ;;  %v10279_v26 = vld [vmem:[#allocation17 + $0x4d0] sm:$0xf0]  ;;  %v12503_v60 = vld [vmem:[#allocation17 + $0x7a4] sm:$0xf]  ;;  %v13931_v51 = vpop.f32.mrf.mxu1 }
 0x7d9   :  { %v10135_v0 = vld [vmem:[#allocation17 + $0x3b0] sm:$0xf0] }
 0x7da   :  { %5820 = vmatpush.bf16.msra.mxu3 %v9942_v33  ;;  %5834 = vmatpush.bf16.msrb.mxu0 %v10326_v34  ;;  %v9754_v33 = vor.u32 %v12275_v16, %v9751_v15  ;;  %v10469_v34 = vld [vmem:[#allocation17 + $0x620] sm:$0xf] }
 0x7db   :  { %5848 = vmatpush.bf16.msrb.mxu1 %v10710_v35  ;;  %5862 = vmatpush.bf16.msra.mxu2 %v9946_v56  ;;  %v9703_v35 = vld [vmem:[#allocation17 + $0x50] sm:$0xf0]  ;;  %v12443_v56 = vld [vmem:[#allocation17 + $0x5c4] sm:$0xf]  ;;  %v10470_v29 = vor.u32 %v12461_v22, %v10469_v34 }
 0x7dc   :  { %v12395_v22 = vld [vmem:[#allocation17 + $0x444] sm:$0xf] }
 0x7de   :  { %5821 = vmatpush.bf16.msra.mxu3 %v9894_v5  ;;  %5835 = vmatpush.bf16.msrb.mxu0 %v10278_v11  ;;  %v12354_v5 = vld [vmem:[#allocation17 + $0x2f4] sm:$0xf0]  ;;  %v10429_v11 = vld [vmem:[#allocation17 + $0x5c8] sm:$0xf] }
 0x7df   :  { %5849 = vmatpush.bf16.msrb.mxu1 %v10662_v46  ;;  %5863 = vmatpush.bf16.msra.mxu2 %v9898_v43  ;;  %v9706_v46 = vor.u32 %v12263_v63, %v9703_v35  ;;  %v10426_v43 = vor.u32 %v12443_v56, %v10423_v52  ;;  %v10046_v45 = vor.u32 %v12354_v5, %v10045_v30  ;;  %v10231_v63 = vld [vmem:[#allocation17 + $0x470] sm:$0xf0]  ;;  %v13933_v35 = vpop.f32.mrf.mxu3  ;;  %v9853_v30 = vld [vmem:[#allocation17 + $0x148] sm:$0xf] }
 0x7e0   :  { %v10430_v20 = vor.u32 %v12450_v17, %v10429_v11  ;;  %v10237_v5 = vld [vmem:[#allocation17 + $0x448] sm:$0xf]  ;;  %v12402_v11 = vld [vmem:[#allocation17 + $0x474] sm:$0xf0]  ;;  %v10234_v17 = vor.u32 %v12395_v22, %v10231_v63 }
 0x7e1   :  { %v12546_v22 = vld [vmem:[#allocation17 + $0x8f4] sm:$0xf0] }
 0x7e2   :  { %5822 = vmatpush.bf16.msra.mxu3 %v9846_v49  ;;  %5836 = vmatpush.bf16.msrb.mxu0 %v10230_v24  ;;  %v10759_v49 = vld [vmem:[#allocation17 + $0x890] sm:$0xf0]  ;;  %v9997_v24 = vld [vmem:[#allocation17 + $0x268] sm:$0xf] }
 0x7e3   :  { %5850 = vmatpush.bf16.msrb.mxu1 %v10614_v53  ;;  %5864 = vmatpush.bf16.msra.mxu2 %v9850_v9  ;;  %v12438_v53 = vld [vmem:[#allocation17 + $0x594] sm:$0xf0]  ;;  %v10378_v9 = vor.u32 %v12431_v47, %v10375_v21  ;;  %v10762_v1 = vor.u32 %v12527_v32, %v10759_v49  ;;  %v9998_v62 = vor.u32 %v12342_v25, %v9997_v24  ;;  %v9805_v32 = vld [vmem:[#allocation17 + $0xe8] sm:$0xf] }
 0x7e4   :  { %v10382_v3 = vor.u32 %v12438_v53, %v10381_v50  ;;  %v10238_v21 = vor.u32 %v12402_v11, %v10237_v5  ;;  %v12294_v49 = vld [vmem:[#allocation17 + $0x114] sm:$0xf0]  ;;  %v10189_v24 = vld [vmem:[#allocation17 + $0x3e8] sm:$0xf]  ;;  %v13939_v50 = vpop.f32.mrf.mxu1  ;;  %v12540_v5 = vld [vmem:[#allocation17 + $0x8cc] sm:$0xf] }
 0x7e5   :  { %v12390_v25 = vld [vmem:[#allocation17 + $0x414] sm:$0xf0]  ;;  %v9806_v39 = vor.u32 %v12294_v49, %v9805_v32  ;;  %v10815_v11 = vld [vmem:[#allocation17 + $0x8f8] sm:$0xf0]  ;;  %v12336_v49 = vld [vmem:[#allocation17 + $0x26c] sm:$0xf] }
 0x7e6   :  { %5823 = vmatpush.bf16.msra.mxu3 %v9798_v28  ;;  %5837 = vmatpush.bf16.msrb.mxu0 %v10182_v10  ;;  %v10711_v28 = vld [vmem:[#allocation17 + $0x830] sm:$0xf0]  ;;  %v9949_v10 = vld [vmem:[#allocation17 + $0x208] sm:$0xf]  ;;  %v10818_v32 = vor.u32 %v12540_v5, %v10815_v11 }
 0x7e7   :  { %5851 = vmatpush.bf16.msrb.mxu1 %v10566_v13  ;;  %5865 = vmatpush.bf16.msra.mxu2 %v9802_v37  ;;  %v12426_v13 = vld [vmem:[#allocation17 + $0x534] sm:$0xf0]  ;;  %v13927_v37 = vpop.f32.mrf.mxu0  ;;  %v10714_v41 = vor.u32 %v12515_v7, %v10711_v28  ;;  %v9950_v16 = vor.u32 %v12330_v12, %v9949_v10  ;;  %v10519_v7 = vld [vmem:[#allocation17 + $0x6b0] sm:$0xf0]  ;;  %v9757_v28 = vld [vmem:[#allocation17 + $0x88] sm:$0xf] }
 0x7e8   :  { %v10334_v15 = vor.u32 %v12426_v13, %v10333_v14  ;;  %v12282_v10 = vld [vmem:[#allocation17 + $0xb4] sm:$0xf0]  ;;  %v10141_v12 = vld [vmem:[#allocation17 + $0x388] sm:$0xf]  ;;  %v13941_v13 = vpop.f32.mrf.mxu3 }
 0x7e9   :  { %v12378_v14 = vld [vmem:[#allocation17 + $0x3b4] sm:$0xf0]  ;;  %v10621_v11 = vld [vmem:[#allocation17 + $0x748] sm:$0xf] }
 0x7ea   :  { %5824 = vmatpush.bf16.msra.mxu3 %v9750_v18  ;;  %5838 = vmatpush.bf16.msrb.mxu0 %v10134_v23  ;;  %v10663_v18 = vld [vmem:[#allocation17 + $0x7d0] sm:$0xf0]  ;;  %v9901_v23 = vld [vmem:[#allocation17 + $0x1a8] sm:$0xf] }
 0x7eb   :  { %5852 = vmatpush.bf16.msrb.mxu1 %v10518_v58  ;;  %5866 = vmatpush.bf16.msra.mxu2 %v9754_v33  ;;  %v12414_v58 = vld [vmem:[#allocation17 + $0x4d4] sm:$0xf0]  ;;  %v10282_v33 = vor.u32 %v12407_v55, %v10279_v26  ;;  %v10666_v34 = vor.u32 %v12503_v60, %v10663_v18  ;;  %v9902_v56 = vor.u32 %v12318_v2, %v9901_v23  ;;  %v10471_v60 = vld [vmem:[#allocation17 + $0x650] sm:$0xf0]  ;;  %v9709_v2 = vld [vmem:[#allocation17 + $0x28] sm:$0xf] }
 0x7ec   :  { %v10286_v52 = vor.u32 %v12414_v58, %v10285_v27  ;;  %v9758_v18 = vor.u32 %v12282_v10, %v9757_v28  ;;  %v10142_v23 = vor.u32 %v12378_v14, %v10141_v12  ;;  %v12270_v27 = vld [vmem:[#allocation17 + $0x54] sm:$0xf0]  ;;  %v10093_v58 = vld [vmem:[#allocation17 + $0x328] sm:$0xf]  ;;  %v12324_v14 = vld [vmem:[#allocation17 + $0x20c] sm:$0xf] }
 0x7ed   :  { %v12522_v28 = vld [vmem:[#allocation17 + $0x834] sm:$0xf0] }
 0x7ee   :  { %5825 = vmatpush.bf16.msra.mxu3 %v9702_v36  ;;  %5839 = vmatpush.bf16.msrb.mxu0 %v10086_v40  ;;  %v13935_v36 = vpop.f32.mrf.mxu2  ;;  %v12306_v40 = vld [vmem:[#allocation17 + $0x174] sm:$0xf0] }
 0x7ef   :  { %5853 = vmatpush.bf16.msrb.mxu1 %v10470_v29  ;;  %5867 = vmatpush.bf16.msra.mxu2 %v9706_v46  ;;  %v10618_v29 = vor.u32 %v12491_v61, %v10615_v4  ;;  %v12383_v46 = vld [vmem:[#allocation17 + $0x3e4] sm:$0xf]  ;;  %v9854_v47 = vor.u32 %v12306_v40, %v9853_v30  ;;  %v12444_v61 = vld [vmem:[#allocation17 + $0x5cc] sm:$0xf]  ;;  %v10431_v40 = vld [vmem:[#allocation17 + $0x5f8] sm:$0xf0] }
 0x7f1   :  { %5826 = vmatmul.bf16.vlgmr.msra.gmra.mxu3 %v13895_v8  ;;  %5840 = vmatmul.bf16.vlgmr.msrb.gmra.mxu0 %v13897_v19 }
 0x7f2   :  { %5874 = vmatpush.bf16.msrb.mxu3 %v10426_v43  ;;  %5888 = vmatpush.bf16.msra.mxu0 %v10810_v31  ;;  %v10183_v43 = vld [vmem:[#allocation17 + $0x410] sm:$0xf0]  ;;  %v13937_v31 = vpop.f32.mrf.mxu0 }
 0x7f3   :  { %5902 = vmatpush.bf16.msra.mxu1 %v10046_v45  ;;  %5916 = vmatpush.bf16.msrb.mxu2 %v10430_v20  ;;  %v12479_v45 = vld [vmem:[#allocation17 + $0x6e4] sm:$0xf]  ;;  %v10567_v20 = vld [vmem:[#allocation17 + $0x710] sm:$0xf0]  ;;  %v10186_v53 = vor.u32 %v12383_v46, %v10183_v43  ;;  %v13947_v46 = vpop.f32.mrf.mxu1 }
 0x7f4   :  { %5854 = vmatmul.bf16.vlgmr.msrb.gmra.mxu1 %v13899_v57  ;;  %5868 = vmatmul.bf16.vlgmr.msra.gmra.mxu2 %v13895_v8 }
 0x7f6   :  { %5875 = vmatpush.bf16.msrb.mxu3 %v10378_v9  ;;  %5889 = vmatpush.bf16.msra.mxu0 %v10762_v1  ;;  %v10570_v9 = vor.u32 %v12479_v45, %v10567_v20  ;;  %v12371_v1 = vld [vmem:[#allocation17 + $0x384] sm:$0xf]  ;;  %v12534_v45 = vld [vmem:[#allocation17 + $0x894] sm:$0xf0]  ;;  %v10434_v20 = vor.u32 %v12444_v61, %v10431_v40  ;;  %v10287_v61 = vld [vmem:[#allocation17 + $0x4d8] sm:$0xf0] }
 0x7f7   :  { %5903 = vmatpush.bf16.msra.mxu1 %v9998_v62  ;;  %5917 = vmatpush.bf16.msrb.mxu2 %v10382_v3  ;;  %v10190_v62 = vor.u32 %v12390_v25, %v10189_v24  ;;  %v12467_v3 = vld [vmem:[#allocation17 + $0x684] sm:$0xf]  ;;  %v10138_v55 = vor.u32 %v12371_v1, %v10135_v0  ;;  %v9999_v24 = vld [vmem:[#allocation17 + $0x298] sm:$0xf0]  ;;  %v12432_v25 = vld [vmem:[#allocation17 + $0x56c] sm:$0xf]  ;;  %v13949_v0 = vpop.f32.mrf.mxu3 }
 0x7f8   :  { %v10522_v26 = vor.u32 %v12467_v3, %v10519_v7  ;;  %v10767_v1 = vld [vmem:[#allocation17 + $0x898] sm:$0xf0]  ;;  %v10002_v3 = vor.u32 %v12336_v49, %v9999_v24  ;;  %v10717_v7 = vld [vmem:[#allocation17 + $0x808] sm:$0xf]  ;;  %v12492_v24 = vld [vmem:[#allocation17 + $0x74c] sm:$0xf] }
 0x7f9   :  { %v10239_v49 = vld [vmem:[#allocation17 + $0x478] sm:$0xf0] }
 0x7fa   :  { %5876 = vmatpush.bf16.msrb.mxu3 %v10330_v42  ;;  %5890 = vmatpush.bf16.msra.mxu0 %v10714_v41  ;;  %v12359_v42 = vld [vmem:[#allocation17 + $0x324] sm:$0xf]  ;;  %v13943_v41 = vpop.f32.mrf.mxu2  ;;  %v13945_v63 = vpop.f32.mrf.mxu0 }
 0x7fb   :  { %5904 = vmatpush.bf16.msra.mxu1 %v9950_v16  ;;  %5918 = vmatpush.bf16.msrb.mxu2 %v10334_v15  ;;  %v10087_v16 = vld [vmem:[#allocation17 + $0x350] sm:$0xf0]  ;;  %v12455_v15 = vld [vmem:[#allocation17 + $0x624] sm:$0xf] }
 0x7fc   :  { %v10090_v4 = vor.u32 %v12359_v42, %v10087_v16  ;;  %v10474_v30 = vor.u32 %v12455_v15, %v10471_v60  ;;  %v9951_v42 = vld [vmem:[#allocation17 + $0x238] sm:$0xf0]  ;;  %v12516_v16 = vld [vmem:[#allocation17 + $0x80c] sm:$0xf] }
 0x7fd   :  { %v10719_v15 = vld [vmem:[#allocation17 + $0x838] sm:$0xf0] }
 0x7fe   :  { %5877 = vmatpush.bf16.msrb.mxu3 %v10282_v33  ;;  %5891 = vmatpush.bf16.msra.mxu0 %v10666_v34  ;;  %v12366_v33 = vld [vmem:[#allocation17 + $0x354] sm:$0xf0]  ;;  %v10813_v34 = vld [vmem:[#allocation17 + $0x8c8] sm:$0xf] }
 0x7ff   :  { %5905 = vmatpush.bf16.msra.mxu1 %v9902_v56  ;;  %5919 = vmatpush.bf16.msrb.mxu2 %v10286_v52  ;;  %v12348_v56 = vld [vmem:[#allocation17 + $0x2cc] sm:$0xf]  ;;  %v10047_v52 = vld [vmem:[#allocation17 + $0x2f8] sm:$0xf0]  ;;  %v10814_v43 = vor.u32 %v12546_v22, %v10813_v34 }
 0x800   :  { %v12312_v34 = vld [vmem:[#allocation17 + $0x1ac] sm:$0xf]  ;;  %v9903_v22 = vld [vmem:[#allocation17 + $0x1d8] sm:$0xf0] }
 0x801   :  { %v9906_v5 = vor.u32 %v12312_v34, %v9903_v22  ;;  %v9759_v34 = vld [vmem:[#allocation17 + $0xb8] sm:$0xf0]  ;;  %v12372_v22 = vld [vmem:[#allocation17 + $0x38c] sm:$0xf] }
 0x802   :  { %5878 = vmatpush.bf16.msrb.mxu3 %v10234_v17  ;;  %5892 = vmatpush.bf16.msra.mxu0 %v10618_v29  ;;  %v9710_v17 = vor.u32 %v12270_v27, %v9709_v2  ;;  %v10094_v29 = vor.u32 %v12366_v33, %v10093_v58  ;;  %v13955_v60 = vpop.f32.mrf.mxu0  ;;  %v10669_v2 = vld [vmem:[#allocation17 + $0x7a8] sm:$0xf]  ;;  %v12510_v27 = vld [vmem:[#allocation17 + $0x7d4] sm:$0xf0]  ;;  %v10722_v33 = vor.u32 %v12516_v16, %v10719_v15 }
 0x803   :  { %5906 = vmatpush.bf16.msra.mxu1 %v9854_v47  ;;  %5920 = vmatpush.bf16.msrb.mxu2 %v10238_v21  ;;  %v10050_v47 = vor.u32 %v12348_v56, %v10047_v52  ;;  %v10765_v21 = vld [vmem:[#allocation17 + $0x868] sm:$0xf]  ;;  %v12408_v56 = vld [vmem:[#allocation17 + $0x4ac] sm:$0xf]  ;;  %v13959_v52 = vpop.f32.mrf.mxu1  ;;  %v10670_v40 = vor.u32 %v12510_v27, %v10669_v2  ;;  %v12474_v2 = vld [vmem:[#allocation17 + $0x6b4] sm:$0xf0] }
 0x806   :  { %5879 = vmatpush.bf16.msrb.mxu3 %v10186_v53  ;;  %5893 = vmatpush.bf16.msra.mxu0 %v10570_v9  ;;  %v10383_v53 = vld [vmem:[#allocation17 + $0x598] sm:$0xf0]  ;;  %v12528_v9 = vld [vmem:[#allocation17 + $0x86c] sm:$0xf] }
 0x807   :  { %5907 = vmatpush.bf16.msra.mxu1 %v9806_v39  ;;  %5921 = vmatpush.bf16.msrb.mxu2 %v10190_v62  ;;  %v13951_v39 = vpop.f32.mrf.mxu2  ;;  %v10766_v62 = vor.u32 %v12534_v45, %v10765_v21  ;;  %v10386_v10 = vor.u32 %v12432_v25, %v10383_v53  ;;  %v10770_v12 = vor.u32 %v12528_v9, %v10767_v1  ;;  %v12300_v21 = vld [vmem:[#allocation17 + $0x14c] sm:$0xf]  ;;  %v9855_v45 = vld [vmem:[#allocation17 + $0x178] sm:$0xf0]  ;;  %v10573_v1 = vld [vmem:[#allocation17 + $0x6e8] sm:$0xf] }
 0x808   :  { %v10623_v25 = vld [vmem:[#allocation17 + $0x778] sm:$0xf0]  ;;  %v9858_v9 = vor.u32 %v12300_v21, %v9855_v45 }
 0x809   :  { %v9711_v21 = vld [vmem:[#allocation17 + $0x58] sm:$0xf0] }
 0x80a   :  { %5880 = vmatpush.bf16.msrb.mxu3 %v10138_v55  ;;  %5894 = vmatpush.bf16.msra.mxu0 %v10522_v26  ;;  %v12420_v55 = vld [vmem:[#allocation17 + $0x50c] sm:$0xf]  ;;  %v10335_v26 = vld [vmem:[#allocation17 + $0x538] sm:$0xf0] }
 0x80b   :  { %5908 = vmatpush.bf16.msra.mxu1 %v9758_v18  ;;  %5922 = vmatpush.bf16.msrb.mxu2 %v10142_v23  ;;  %v10718_v18 = vor.u32 %v12522_v28, %v10717_v7  ;;  %v9954_v23 = vor.u32 %v12324_v14, %v9951_v42  ;;  %v10338_v58 = vor.u32 %v12420_v55, %v10335_v26  ;;  %v12384_v14 = vld [vmem:[#allocation17 + $0x3ec] sm:$0xf]  ;;  %v10191_v42 = vld [vmem:[#allocation17 + $0x418] sm:$0xf0]  ;;  %v13967_v16 = vpop.f32.mrf.mxu1 }
 0x80c   :  { %v10626_v28 = vor.u32 %v12492_v24, %v10623_v25  ;;  %v12480_v55 = vld [vmem:[#allocation17 + $0x6ec] sm:$0xf]  ;;  %v10575_v26 = vld [vmem:[#allocation17 + $0x718] sm:$0xf0]  ;;  %v10194_v27 = vor.u32 %v12384_v14, %v10191_v42  ;;  %v12617_v42 = vld [vmem:[#allocation20 + $0x230] sm:$0xf0] }
 0x80d   :  { %v10095_v24 = vld [vmem:[#allocation17 + $0x358] sm:$0xf0]  ;;  %v12456_v25 = vld [vmem:[#allocation17 + $0x62c] sm:$0xf] }
 0x80e   :  { %5881 = vmatpush.bf16.msrb.mxu3 %v10090_v4  ;;  %5895 = vmatpush.bf16.msra.mxu0 %v10474_v30  ;;  %v12504_v4 = vld [vmem:[#allocation17 + $0x7ac] sm:$0xf]  ;;  %v10671_v30 = vld [vmem:[#allocation17 + $0x7d8] sm:$0xf0] }
 0x80f   :  { %5909 = vmatpush.bf16.msra.mxu1 %v9710_v17  ;;  %5923 = vmatpush.bf16.msrb.mxu2 %v10094_v29  ;;  %v12498_v17 = vld [vmem:[#allocation17 + $0x774] sm:$0xf0]  ;;  %v13961_v29 = vpop.f32.mrf.mxu3 }
 0x810   :  { %v10622_v53 = vor.u32 %v12498_v17, %v10621_v11 }
 0x811   :  { %5882 = vmatmul.bf16.vlgmr.msrb.gmra.mxu3 %v13897_v19  ;;  %5896 = vmatmul.bf16.vlgmr.msra.gmra.mxu0 %v13899_v57 }
 0x812   :  { %5930 = vmatpush.bf16.msra.mxu3 %v10814_v43  ;;  %5944 = vmatpush.bf16.msrb.mxu0 %v10050_v47  ;;  %v10290_v43 = vor.u32 %v12408_v56, %v10287_v61  ;;  %v10674_v47 = vor.u32 %v12504_v4, %v10671_v30  ;;  %v10143_v56 = vld [vmem:[#allocation17 + $0x3b8] sm:$0xf0]  ;;  %v12468_v61 = vld [vmem:[#allocation17 + $0x68c] sm:$0xf] }
 0x813   :  { %5958 = vmatpush.bf16.msrb.mxu1 %v10434_v20  ;;  %5972 = vmatpush.bf16.msra.mxu2 %v10818_v32  ;;  %v12396_v20 = vld [vmem:[#allocation17 + $0x44c] sm:$0xf]  ;;  %v13963_v32 = vpop.f32.mrf.mxu2  ;;  %v10527_v4 = vld [vmem:[#allocation17 + $0x6b8] sm:$0xf0]  ;;  %v10146_v45 = vor.u32 %v12372_v22, %v10143_v56 }
 0x814   :  { %5910 = vmatmul.bf16.vlgmr.msra.gmra.mxu1 %v13895_v8  ;;  %5924 = vmatmul.bf16.vlgmr.msrb.gmra.mxu2 %v13897_v19  ;;  %v10242_v7 = vor.u32 %v12396_v20, %v10239_v49  ;;  %v10530_v20 = vor.u32 %v12468_v61, %v10527_v4  ;;  %v12360_v49 = vld [vmem:[#allocation17 + $0x32c] sm:$0xf]  ;;  %v10989_v61 = vld [vmem:[#allocation20 + $0x150] sm:$0xf]  ;;  %v12590_v4 = vld [vmem:[#allocation20 + $0x158] sm:$0xf0] }
 0x816   :  { %5931 = vmatpush.bf16.msra.mxu3 %v10766_v62  ;;  %5945 = vmatpush.bf16.msrb.mxu0 %v10002_v3  ;;  %v12486_v62 = vld [vmem:[#allocation17 + $0x714] sm:$0xf0]  ;;  %v13965_v3 = vpop.f32.mrf.mxu0 }
 0x817   :  { %5959 = vmatpush.bf16.msrb.mxu1 %v10386_v10  ;;  %5973 = vmatpush.bf16.msra.mxu2 %v10770_v12  ;;  %v12288_v10 = vld [vmem:[#allocation17 + $0xec] sm:$0xf]  ;;  %v9807_v12 = vld [vmem:[#allocation17 + $0x118] sm:$0xf0]  ;;  %v10574_v15 = vor.u32 %v12486_v62, %v10573_v1  ;;  %v13969_v30 = vpop.f32.mrf.mxu3  ;;  %v12569_v1 = vld [vmem:[#allocation20 + $0xb0] sm:$0xf0] }
 0x81a   :  { %5932 = vmatpush.bf16.msra.mxu3 %v10718_v18  ;;  %5946 = vmatpush.bf16.msrb.mxu0 %v9954_v23  ;;  %v9810_v18 = vor.u32 %v12288_v10, %v9807_v12  ;;  %v10525_v23 = vld [vmem:[#allocation17 + $0x688] sm:$0xf]  ;;  %v11097_v10 = vld [vmem:[#allocation20 + $0x228] sm:$0xf] }
 0x81b   :  { %5960 = vmatpush.bf16.msrb.mxu1 %v10338_v58  ;;  %5974 = vmatpush.bf16.msra.mxu2 %v10722_v33  ;;  %v10578_v58 = vor.u32 %v12480_v55, %v10575_v26  ;;  %v12276_v33 = vld [vmem:[#allocation17 + $0x8c] sm:$0xf]  ;;  %v10526_v11 = vor.u32 %v12474_v2, %v10525_v23  ;;  %v11193_v55 = vld [vmem:[#allocation20 + $0x2e8] sm:$0xf]  ;;  %v12641_v26 = vld [vmem:[#allocation20 + $0x2f0] sm:$0xf0]  ;;  %v13977_v2 = vpop.f32.mrf.mxu1  ;;  %v11098_v22 = vor.u32 %v12617_v42, %v11097_v10 }
 0x81c   :  { %v9762_v17 = vor.u32 %v12276_v33, %v9759_v34  ;;  %v13975_v23 = vld [vmem:[#allocation19] sm:$0xff]  ;;  %v10893_v33 = vld [vmem:[#allocation20 + $0x90] sm:$0xf]  ;;  %v12566_v34 = vld [vmem:[#allocation20 + $0x98] sm:$0xf0]  ;;  %v11194_v56 = vor.u32 %v12641_v26, %v11193_v55 }
 0x81d   :  { %v11073_v10 = vld [vmem:[#allocation20 + $0x1f8] sm:$0xf]  ;;  %v12635_v42 = vld [vmem:[#allocation20 + $0x2c0] sm:$0xf0]  ;;  %v4019_v26 = vperm.slane %v13975_v23, 1 }
 0x81e   :  { %5933 = vmatpush.bf16.msra.mxu3 %v10670_v40  ;;  %5947 = vmatpush.bf16.msrb.mxu0 %v9906_v5  ;;  %v10477_v40 = vld [vmem:[#allocation17 + $0x628] sm:$0xf]  ;;  %v13971_v5 = vpop.f32.mrf.mxu2  ;;  %v13973_v62 = vpop.f32.mrf.mxu0 }
 0x81f   :  { %5961 = vmatpush.bf16.msrb.mxu1 %v10290_v43  ;;  %5975 = vmatpush.bf16.msra.mxu2 %v10674_v47  ;;  %v12462_v43 = vld [vmem:[#allocation17 + $0x654] sm:$0xf0]  ;;  %v12264_v47 = vld [vmem:[#allocation17 + $0x2c] sm:$0xf] }
 0x820   :  { %v10478_v12 = vor.u32 %v12462_v43, %v10477_v40  ;;  %v9714_v14 = vor.u32 %v12264_v47, %v9711_v21  ;;  %v11085_v40 = vld [vmem:[#allocation20 + $0x210] sm:$0xf]  ;;  %v12638_v43 = vld [vmem:[#allocation20 + $0x2d8] sm:$0xf0]  ;;  %v4018_v47 = vperm.slane %v13975_v23, 0  ;;  %v13980_v21 = vpop.f32.mrf.mxu3 }
 0x822   :  { %5934 = vmatpush.bf16.msra.mxu3 %v10622_v53  ;;  %5948 = vmatpush.bf16.msrb.mxu0 %v9858_v9  ;;  %v10479_v53 = vld [vmem:[#allocation17 + $0x658] sm:$0xf0]  ;;  %v10905_v9 = vld [vmem:[#allocation20 + $0xa8] sm:$0xf]  ;;  %v5492_v55 = vadd.f32 %v13933_v35, %v4018_v47 }
 0x823   :  { %5962 = vmatpush.bf16.msrb.mxu1 %v10242_v7  ;;  %5976 = vmatpush.bf16.msra.mxu2 %v10626_v28  ;;  %v11001_v7 = vld [vmem:[#allocation20 + $0x168] sm:$0xf]  ;;  %v12593_v28 = vld [vmem:[#allocation20 + $0x170] sm:$0xf0] }
 0x826   :  { %5935 = vmatpush.bf16.msra.mxu3 %v10574_v15  ;;  %5949 = vmatpush.bf16.msrb.mxu0 %v9810_v18  ;;  %v10098_v15 = vor.u32 %v12360_v49, %v10095_v24  ;;  %v10482_v18 = vor.u32 %v12456_v25, %v10479_v53  ;;  %v10990_v49 = vor.u32 %v12590_v4, %v10989_v61  ;;  %v10881_v24 = vld [vmem:[#allocation20 + $0x78] sm:$0xf]  ;;  %v12563_v25 = vld [vmem:[#allocation20 + $0x80] sm:$0xf0]  ;;  %v13984_v53 = vpop.f32.mrf.mxu0  ;;  %v11061_v61 = vld [vmem:[#allocation20 + $0x1e0] sm:$0xf] }
 0x827   :  { %5963 = vmatpush.bf16.msrb.mxu1 %v10194_v27  ;;  %5977 = vmatpush.bf16.msra.mxu2 %v10578_v58  ;;  %v10906_v27 = vor.u32 %v12569_v1, %v10905_v9  ;;  %v11002_v58 = vor.u32 %v12593_v28, %v11001_v7  ;;  %v10977_v7 = vld [vmem:[#allocation20 + $0x138] sm:$0xf]  ;;  %v12587_v28 = vld [vmem:[#allocation20 + $0x140] sm:$0xf0]  ;;  %v11157_v4 = vld [vmem:[#allocation20 + $0x2a0] sm:$0xf] }
 0x82a   :  { %5936 = vmatpush.bf16.msra.mxu3 %v10526_v11  ;;  %5950 = vmatpush.bf16.msrb.mxu0 %v9762_v17  ;;  %v12614_v11 = vld [vmem:[#allocation20 + $0x218] sm:$0xf0]  ;;  %v11181_v17 = vld [vmem:[#allocation20 + $0x2d0] sm:$0xf] }
 0x82b   :  { %5964 = vmatpush.bf16.msrb.mxu1 %v10146_v45  ;;  %5978 = vmatpush.bf16.msra.mxu2 %v10530_v20  ;;  %v13982_v45 = vpop.f32.mrf.mxu2  ;;  %v10894_v20 = vor.u32 %v12566_v34, %v10893_v33  ;;  %v11086_v9 = vor.u32 %v12614_v11, %v11085_v40  ;;  %v11182_v1 = vor.u32 %v12638_v43, %v11181_v17  ;;  %v12560_v33 = vld [vmem:[#allocation20 + $0x68] sm:$0xf0]  ;;  %v13997_v11 = vpop.f32.mrf.mxu3 }
 0x82c   :  { %v5534_v40 = vadd.f32 %v13935_v36, %v4019_v26  ;;  %v12581_v36 = vld [vmem:[#allocation20 + $0x110] sm:$0xf0] }
 0x82e   :  { %5937 = vmatpush.bf16.msra.mxu3 %v10478_v12  ;;  %5951 = vmatpush.bf16.msrb.mxu0 %v9714_v14  ;;  %v12611_v12 = vld [vmem:[#allocation20 + $0x200] sm:$0xf0]  ;;  %v11169_v14 = vld [vmem:[#allocation20 + $0x2b8] sm:$0xf] }
 0x82f   :  { %5965 = vmatpush.bf16.msrb.mxu1 %v10098_v15  ;;  %5979 = vmatpush.bf16.msra.mxu2 %v10482_v18  ;;  %v5494_v15 = vadd.f32 %v13941_v13, %v4018_v47  ;;  %v13993_v18 = vpop.f32.mrf.mxu1  ;;  %v11074_v34 = vor.u32 %v12611_v12, %v11073_v10  ;;  %v11170_v35 = vor.u32 %v12635_v42, %v11169_v14  ;;  %v11145_v10 = vld [vmem:[#allocation20 + $0x288] sm:$0xf]  ;;  %v4020_v14 = vperm.slane %v13975_v23, 2 }
 0x830   :  { %v5506_v13 = vadd.f32 %v13927_v37, %v5492_v55  ;;  %v5548_v42 = vadd.f32 %v13949_v0, %v5534_v40  ;;  %v10941_v0 = vld [vmem:[#allocation20 + $0xf0] sm:$0xf] }
 0x831   :  { %5938 = vmatmul.bf16.vlgmr.msra.gmra.mxu3 %v13899_v57  ;;  %5952 = vmatmul.bf16.vlgmr.msrb.gmra.mxu0 %v13895_v8  ;;  %v10869_v8 = vld [vmem:[#allocation20 + $0x60] sm:$0xf]  ;;  %v5508_v17 = vadd.f32 %v13937_v31, %v5494_v15  ;;  %v12629_v31 = vld [vmem:[#allocation20 + $0x290] sm:$0xf0]  ;;  %v4021_v15 = vperm.slane %v13975_v23, 3 }
 0x832   :  { %7950 = vmatpush.bf16.msrb.mxu3 %v10906_v27  ;;  %7964 = vmatpush.bf16.msra.mxu0 %v11002_v58  ;;  %v10882_v27 = vor.u32 %v12563_v25, %v10881_v24  ;;  %v10978_v58 = vor.u32 %v12587_v28, %v10977_v7  ;;  %v10870_v47 = vor.u32 %v12560_v33, %v10869_v8  ;;  %v12557_v24 = vld [vmem:[#allocation20 + $0x50] sm:$0xf0]  ;;  %v11049_v7 = vld [vmem:[#allocation20 + $0x1c8] sm:$0xf]  ;;  %v10845_v8 = vld [vmem:[#allocation20 + $0x30] sm:$0xf] }
 0x833   :  { %7978 = vmatpush.bf16.msra.mxu1 %v11098_v22  ;;  %7992 = vmatpush.bf16.msrb.mxu2 %v11194_v56  ;;  %v10965_v22 = vld [vmem:[#allocation20 + $0x120] sm:$0xf]  ;;  %v12584_v56 = vld [vmem:[#allocation20 + $0x128] sm:$0xf0]  ;;  %v14000_v43 = vpop.f32.mrf.mxu2  ;;  %v5536_v25 = vadd.f32 %v13943_v41, %v4019_v26  ;;  %v12605_v28 = vld [vmem:[#allocation20 + $0x1d0] sm:$0xf0]  ;;  %v14004_v12 = vadd.f32 %v13931_v51, %v5506_v13  ;;  %v14009_v41 = vpop.f32.mrf.mxu0  ;;  %v14012_v26 = vadd.f32 %v13939_v50, %v5508_v17 }
 0x834   :  { %5966 = vmatmul.bf16.vlgmr.msrb.gmra.mxu1 %v13897_v19  ;;  %5980 = vmatmul.bf16.vlgmr.msra.gmra.mxu2 %v13899_v57  ;;  %v12608_v19 = vld [vmem:[#allocation20 + $0x1e8] sm:$0xf0]  ;;  %v12554_v51 = vld [vmem:[#allocation20 + $0x38] sm:$0xf0]  ;;  %v11050_v33 = vor.u32 %v12605_v28, %v11049_v7  ;;  %v11133_v50 = vld [vmem:[#allocation20 + $0x270] sm:$0xf]  ;;  %v5620_v17 = vadd.f32 %v13973_v62, %v4021_v15 }
 0x835   :  { %v12632_v57 = vld [vmem:[#allocation20 + $0x2a8] sm:$0xf0]  ;;  %v5550_v55 = vadd.f32 %v13961_v29, %v5536_v25  ;;  %v11037_v29 = vld [vmem:[#allocation20 + $0x1b0] sm:$0xf]  ;;  %v5998_v40 = vmax.f32 %v14012_v26, 0.0  ;;  %v5578_v25 = vadd.f32 %v13959_v52, %v4020_v14 }
 0x836   :  { %7951 = vmatpush.bf16.msrb.mxu3 %v10894_v20  ;;  %7965 = vmatpush.bf16.msra.mxu0 %v10990_v49  ;;  %v10966_v20 = vor.u32 %v12584_v56, %v10965_v22  ;;  %v10857_v49 = vld [vmem:[#allocation20 + $0x48] sm:$0xf]  ;;  %v11158_v37 = vor.u32 %v12632_v57, %v11157_v4  ;;  %v12602_v56 = vld [vmem:[#allocation20 + $0x1b8] sm:$0xf0]  ;;  %v5576_v4 = vadd.f32 %v13947_v46, %v4020_v14  ;;  %v12599_v7 = vld [vmem:[#allocation20 + $0x1a0] sm:$0xf0] }
 0x837   :  { %7979 = vmatpush.bf16.msra.mxu1 %v11086_v9  ;;  %7993 = vmatpush.bf16.msrb.mxu2 %v11182_v1  ;;  %v11062_v9 = vor.u32 %v12608_v19, %v11061_v61  ;;  %v10953_v1 = vld [vmem:[#allocation20 + $0x108] sm:$0xf]  ;;  %v14015_v22 = vpop.f32.mrf.mxu1  ;;  %v12626_v61 = vld [vmem:[#allocation20 + $0x278] sm:$0xf0]  ;;  %v5986_v19 = vmax.f32 %v14004_v12, 0.0  ;;  %v14020_v57 = vadd.f32 %v13945_v63, %v5548_v42  ;;  %v14023_v13 = vadd.f32 %v13955_v60, %v5550_v55 }
 0x838   :  { %v11038_v63 = vor.u32 %v12602_v56, %v11037_v29  ;;  %v11134_v46 = vor.u32 %v12626_v61, %v11133_v50  ;;  %v10929_v60 = vld [vmem:[#allocation20 + $0xd8] sm:$0xf]  ;;  %v5592_v14 = vadd.f32 %v13963_v32, %v5578_v25  ;;  %v5618_v42 = vadd.f32 %v13965_v3, %v4021_v15  ;;  %v11013_v29 = vld [vmem:[#allocation20 + $0x180] sm:$0xf]  ;;  %v12596_v3 = vld [vmem:[#allocation20 + $0x188] sm:$0xf0] }
 0x839   :  { %v11121_v28 = vld [vmem:[#allocation20 + $0x258] sm:$0xf]  ;;  %v5999_v52 = vmax.f32 %v14023_v13, 0.0  ;;  %v11109_v15 = vld [vmem:[#allocation20 + $0x240] sm:$0xf] }
 0x83a   :  { %7952 = vmatpush.bf16.msrb.mxu3 %v10882_v27  ;;  %7966 = vmatpush.bf16.msra.mxu0 %v10978_v58  ;;  %v10858_v27 = vor.u32 %v12557_v24, %v10857_v49  ;;  %v10954_v58 = vor.u32 %v12581_v36, %v10953_v1  ;;  %v10833_v49 = vld [vmem:[#allocation20 + $0x18] sm:$0xf]  ;;  %v12551_v24 = vld [vmem:[#allocation20 + $0x20] sm:$0xf0]  ;;  %v5590_v36 = vadd.f32 %v13951_v39, %v5576_v4  ;;  %v12620_v61 = vld [vmem:[#allocation20 + $0x248] sm:$0xf0] }
 0x83b   :  { %7980 = vmatpush.bf16.msra.mxu1 %v11074_v34  ;;  %7994 = vmatpush.bf16.msrb.mxu2 %v11170_v35  ;;  %v11146_v34 = vor.u32 %v12629_v31, %v11145_v10  ;;  %v12578_v35 = vld [vmem:[#allocation20 + $0xf8] sm:$0xf0]  ;;  %v11025_v1 = vld [vmem:[#allocation20 + $0x198] sm:$0xf]  ;;  %v14031_v62 = vpop.f32.mrf.mxu2  ;;  %v12623_v10 = vld [vmem:[#allocation20 + $0x260] sm:$0xf0]  ;;  %v14037_v55 = vpop.f32.mrf.mxu0  ;;  %v10834_v39 = vor.u32 %v12551_v24, %v10833_v49  ;;  %v5606_v56 = vadd.f32 %v13980_v21, %v5592_v14 }
 0x83c   :  { %v5987_v31 = vmax.f32 %v14020_v57, 0.0  ;;  %v11122_v32 = vor.u32 %v12623_v10, %v11121_v28  ;;  %v11289_v4 = vld [vmem:[#allocation20 + $0x3a8] sm:$0xf] }
 0x83d   :  { %v11481_v49 = vld [vmem:[#allocation20 + $0x528] sm:$0xf] }
 0x83e   :  { %7953 = vmatpush.bf16.msrb.mxu3 %v10870_v47  ;;  %7967 = vmatpush.bf16.msra.mxu0 %v10966_v20  ;;  %v10846_v47 = vor.u32 %v12554_v51, %v10845_v8  ;;  %v10942_v20 = vor.u32 %v12578_v35, %v10941_v0  ;;  %v12548_v51 = vld [vmem:[#allocation20 + $0x8] sm:$0xf0]  ;;  %v5604_v0 = vadd.f32 %v13969_v30, %v5590_v36  ;;  %v12689_v30 = vld [vmem:[#allocation20 + $0x470] sm:$0xf0] }
 0x83f   :  { %7981 = vmatpush.bf16.msra.mxu1 %v11062_v9  ;;  %7995 = vmatpush.bf16.msrb.mxu2 %v11158_v37  ;;  %v14028_v9 = vpop.f32.mrf.mxu3  ;;  %v12575_v37 = vld [vmem:[#allocation20 + $0xe0] sm:$0xf0]  ;;  %v11026_v35 = vor.u32 %v12599_v7, %v11025_v1  ;;  %v14043_v50 = vpop.f32.mrf.mxu1  ;;  %v11014_v1 = vor.u32 %v12596_v3, %v11013_v29  ;;  %v11110_v36 = vor.u32 %v12620_v61, %v11109_v15  ;;  %v11457_v61 = vld [vmem:[#allocation20 + $0x4f8] sm:$0xf] }
 0x840   :  { %v10930_v8 = vor.u32 %v12575_v37, %v10929_v60  ;;  %v12737_v60 = vld [vmem:[#allocation20 + $0x5f0] sm:$0xf0]  ;;  %v5988_v21 = vmax.f32 %v5604_v0, 0.0  ;;  %v12734_v0 = vld [vmem:[#allocation20 + $0x5d8] sm:$0xf0] }
 0x842   :  { %7954 = vmatpush.bf16.msrb.mxu3 %v10858_v27  ;;  %7968 = vmatpush.bf16.msra.mxu0 %v10954_v58  ;;  %v10821_v27 = vld [vmem:[#allocation20] sm:$0xf]  ;;  %v5634_v58 = vadd.f32 %v13977_v2, %v5620_v17  ;;  %v12665_v17 = vld [vmem:[#allocation20 + $0x3b0] sm:$0xf0] }
 0x843   :  { %7982 = vmatpush.bf16.msra.mxu1 %v11050_v33  ;;  %7996 = vmatpush.bf16.msrb.mxu2 %v11146_v34  ;;  %v10917_v33 = vld [vmem:[#allocation20 + $0xc0] sm:$0xf]  ;;  %v12572_v34 = vld [vmem:[#allocation20 + $0xc8] sm:$0xf0]  ;;  %v10822_v24 = vor.u32 %v12548_v51, %v10821_v27  ;;  %v14049_v28 = vpop.f32.mrf.mxu2  ;;  %v11290_v10 = vor.u32 %v12665_v17, %v11289_v4  ;;  %v12662_v27 = vld [vmem:[#allocation20 + $0x398] sm:$0xf0]  ;;  %v14063_v3 = vpop.f32.mrf.mxu0 }
 0x844   :  { %v5648_v2 = vadd.f32 %v13982_v45, %v5634_v58  ;;  %v10918_v25 = vor.u32 %v12572_v34, %v10917_v33  ;;  %v12686_v51 = vld [vmem:[#allocation20 + $0x458] sm:$0xf0]  ;;  %v11469_v33 = vld [vmem:[#allocation20 + $0x510] sm:$0xf]  ;;  %v12707_v17 = vld [vmem:[#allocation20 + $0x500] sm:$0xf0] }
 0x845   :  { %v11565_v34 = vld [vmem:[#allocation20 + $0x5d0] sm:$0xf] }
 0x846   :  { %7955 = vmatpush.bf16.msrb.mxu3 %v10846_v47  ;;  %7969 = vmatpush.bf16.msra.mxu0 %v10942_v20  ;;  %v5632_v47 = vadd.f32 %v13967_v16, %v5618_v42  ;;  %v11385_v20 = vld [vmem:[#allocation20 + $0x468] sm:$0xf]  ;;  %v6000_v16 = vmax.f32 %v5606_v56, 0.0  ;;  %v6001_v7 = vmax.f32 %v5648_v2, 0.0  ;;  %v11277_v42 = vld [vmem:[#allocation20 + $0x390] sm:$0xf] }
 0x847   :  { %7983 = vmatpush.bf16.msra.mxu1 %v11038_v63  ;;  %7997 = vmatpush.bf16.msrb.mxu2 %v11134_v46  ;;  %v12713_v63 = vld [vmem:[#allocation20 + $0x530] sm:$0xf0]  ;;  %v11577_v46 = vld [vmem:[#allocation20 + $0x5e8] sm:$0xf]  ;;  %v14047_v37 = vpop.f32.mrf.mxu3  ;;  %v11386_v14 = vor.u32 %v12689_v30, %v11385_v20  ;;  %v4022_v56 = vperm.slane %v13975_v23, 4  ;;  %v11278_v12 = vor.u32 %v12662_v27, %v11277_v42  ;;  %v14070_v4 = vpop.f32.mrf.mxu1 }
 0x848   :  { %v5646_v45 = vadd.f32 %v13971_v5, %v5632_v47  ;;  %v11482_v58 = vor.u32 %v12713_v63, %v11481_v49  ;;  %v12710_v5 = vld [vmem:[#allocation20 + $0x518] sm:$0xf0]  ;;  %v14065_v15 = vpack.c.bf16 %v6000_v16, %v5988_v21  ;;  %v12683_v2 = vld [vmem:[#allocation20 + $0x440] sm:$0xf0]  ;;  %v11553_v47 = vld [vmem:[#allocation20 + $0x5b8] sm:$0xf] }
 0x849   :  { %v11470_v13 = vor.u32 %v12710_v5, %v11469_v33  ;;  %v12731_v20 = vld [vmem:[#allocation20 + $0x5c0] sm:$0xf0]  ;;  %v11349_v21 = vld [vmem:[#allocation20 + $0x420] sm:$0xf]  ;;  %v5662_v16 = vadd.f32 %v14028_v9, %v4022_v56  ;;  %v12728_v42 = vld [vmem:[#allocation20 + $0x5a8] sm:$0xf0] }
 0x84a   :  { %7956 = vmatpush.bf16.msrb.mxu3 %v10834_v39  ;;  %7970 = vmatpush.bf16.msra.mxu0 %v10930_v8  ;;  %v11578_v39 = vor.u32 %v12737_v60, %v11577_v46  ;;  %v11373_v8 = vld [vmem:[#allocation20 + $0x450] sm:$0xf]  ;;  %v5989_v29 = vmax.f32 %v5646_v45, 0.0  ;;  %v11458_v46 = vor.u32 %v12707_v17, %v11457_v61  ;;  %v11554_v60 = vor.u32 %v12731_v20, %v11553_v47  ;;  %v12680_v45 = vld [vmem:[#allocation20 + $0x428] sm:$0xf0] }
 0x84b   :  { %7984 = vmatpush.bf16.msra.mxu1 %v11026_v35  ;;  %7998 = vmatpush.bf16.msrb.mxu2 %v11122_v32  ;;  %v14055_v35 = vpack.c.bf16 %v5998_v40, %v5986_v19  ;;  %v14061_v32 = vpack.c.bf16 %v5999_v52, %v5987_v31  ;;  %v11374_v26 = vor.u32 %v12686_v51, %v11373_v8  ;;  %v11265_v19 = vld [vmem:[#allocation20 + $0x378] sm:$0xf]  ;;  %v12659_v40 = vld [vmem:[#allocation20 + $0x380] sm:$0xf0]  ;;  %v11241_v51 = vld [vmem:[#allocation20 + $0x348] sm:$0xf] }
 0x84c   :  { %v14068_v57 = vpack.c.bf16 %v6001_v7, %v5989_v29  ;;  %v11566_v31 = vor.u32 %v12734_v0, %v11565_v34  ;;  %v11361_v52 = vld [vmem:[#allocation20 + $0x438] sm:$0xf]  ;;  %v11266_v30 = vor.u32 %v12659_v40, %v11265_v19  ;;  %v14080_v7 = vpop.f32.mrf.mxu2  ;;  %v11350_v8 = vor.u32 %v12680_v45, %v11349_v21  ;;  %v12653_v33 = vld [vmem:[#allocation20 + $0x350] sm:$0xf0]  ;;  %v11337_v34 = vld [vmem:[#allocation20 + $0x408] sm:$0xf] }
 0x84d   :  { %v11362_v49 = vor.u32 %v12683_v2, %v11361_v52  ;;  %v12677_v9 = vld [vmem:[#allocation20 + $0x410] sm:$0xf0]  ;;  %v11433_v0 = vld [vmem:[#allocation20 + $0x4c8] sm:$0xf]  ;;  %v11242_v52 = vor.u32 %v12653_v33, %v11241_v51  ;;  %v11229_v61 = vld [vmem:[#allocation20 + $0x330] sm:$0xf] }
 0x84e   :  { %7957 = vmatpush.bf16.msrb.mxu3 %v10822_v24  ;;  %7971 = vmatpush.bf16.msra.mxu0 %v10918_v25  ;;  %v11253_v24 = vld [vmem:[#allocation20 + $0x360] sm:$0xf]  ;;  %v12656_v25 = vld [vmem:[#allocation20 + $0x368] sm:$0xf0]  ;;  %v5785_v27 = vpop.f32.mrf.mxu0  ;;  %v11529_v19 = vld [vmem:[#allocation20 + $0x588] sm:$0xf]  ;;  %v11338_v2 = vor.u32 %v12677_v9, %v11337_v34 }
 0x84f   :  { %7985 = vmatpush.bf16.msra.mxu1 %v11014_v1  ;;  %7999 = vmatpush.bf16.msrb.mxu2 %v11110_v36  ;;  %v14076_v63 = vpop.f32.mrf.mxu3  ;;  %v11445_v1 = vld [vmem:[#allocation20 + $0x4e0] sm:$0xf]  ;;  %v5660_v36 = vadd.f32 %v13997_v11, %v4022_v56  ;;  %v5676_v56 = vadd.f32 %v14009_v41, %v5662_v16  ;;  %v12725_v40 = vld [vmem:[#allocation20 + $0x590] sm:$0xf0]  ;;  %v12650_v17 = vld [vmem:[#allocation20 + $0x338] sm:$0xf0] }
 0x850   :  { %v11325_v47 = vld [vmem:[#allocation20 + $0x3f0] sm:$0xf]  ;;  %v12722_v45 = vld [vmem:[#allocation20 + $0x578] sm:$0xf0]  ;;  %v12671_v51 = vld [vmem:[#allocation20 + $0x3e0] sm:$0xf0] }
 0x851   :  { %7958 = vmatmul.bf16.vlgmr.msrb.gmra.mxu3 %v14055_v35  ;;  %7972 = vmatmul.bf16.vlgmr.msra.gmra.mxu0 %v14061_v32  ;;  %v5674_v29 = vadd.f32 %v13984_v53, %v5660_v36  ;;  %v11517_v21 = vld [vmem:[#allocation20 + $0x570] sm:$0xf]  ;;  %v11505_v34 = vld [vmem:[#allocation20 + $0x558] sm:$0xf]  ;;  %v12719_v9 = vld [vmem:[#allocation20 + $0x560] sm:$0xf0] }
 0x852   :  { %8006 = vmatpush.bf16.msra.mxu3 %v11290_v10  ;;  %8020 = vmatpush.bf16.msrb.mxu0 %v11386_v14  ;;  %v12704_v10 = vld [vmem:[#allocation20 + $0x4e8] sm:$0xf0]  ;;  %v11541_v14 = vld [vmem:[#allocation20 + $0x5a0] sm:$0xf] }
 0x853   :  { %8034 = vmatpush.bf16.msrb.mxu1 %v11482_v58  ;;  %8048 = vmatpush.bf16.msra.mxu2 %v11578_v39  ;;  %v4023_v58 = vperm.slane %v13975_v23, 5  ;;  %v11254_v39 = vor.u32 %v12656_v25, %v11253_v24  ;;  %v11446_v5 = vor.u32 %v12704_v10, %v11445_v1  ;;  %v11542_v11 = vor.u32 %v12728_v42, %v11541_v14  ;;  %v11421_v24 = vld [vmem:[#allocation20 + $0x4b0] sm:$0xf]  ;;  %v12698_v25 = vld [vmem:[#allocation20 + $0x4b8] sm:$0xf0] }
 0x854   :  { %7986 = vmatmul.bf16.vlgmr.msra.gmra.mxu1 %v14065_v15  ;;  %8000 = vmatmul.bf16.vlgmr.msrb.gmra.mxu2 %v14068_v57  ;;  %v11230_v10 = vor.u32 %v12650_v17, %v11229_v61  ;;  %v11217_v14 = vld [vmem:[#allocation20 + $0x318] sm:$0xf]  ;;  %v11301_v61 = vld [vmem:[#allocation20 + $0x3c0] sm:$0xf]  ;;  %v11506_v17 = vor.u32 %v12719_v9, %v11505_v34  ;;  %v12833_v9 = vld [vmem:[#allocation20 + $0x8f0] sm:$0xf0] }
 0x855   :  { %v5702_v20 = vadd.f32 %v14000_v43, %v4023_v58  ;;  %v5704_v1 = vadd.f32 %v14031_v62, %v4023_v58  ;;  %v11518_v58 = vor.u32 %v12722_v45, %v11517_v21  ;;  %v11769_v21 = vld [vmem:[#allocation20 + $0x768] sm:$0xf]  ;;  %v12785_v45 = vld [vmem:[#allocation20 + $0x770] sm:$0xf0] }
 0x856   :  { %8007 = vmatpush.bf16.msra.mxu3 %v11278_v12  ;;  %8021 = vmatpush.bf16.msrb.mxu0 %v11374_v26  ;;  %v5799_v12 = vpop.f32.mrf.mxu1  ;;  %v12701_v26 = vld [vmem:[#allocation20 + $0x4d0] sm:$0xf0]  ;;  %v5787_v16 = vpop.f32.mrf.mxu0 }
 0x857   :  { %8035 = vmatpush.bf16.msrb.mxu1 %v11470_v13  ;;  %8049 = vmatpush.bf16.msra.mxu2 %v11566_v31  ;;  %v4024_v13 = vperm.slane %v13975_v23, 6  ;;  %v4025_v31 = vperm.slane %v13975_v23, 7  ;;  %v5771_v53 = vpop.f32.mrf.mxu3  ;;  %v11434_v41 = vor.u32 %v12701_v26, %v11433_v0  ;;  %v14092_v23 = vadd.f32 %v14015_v22, %v5676_v56  ;;  %v11313_v22 = vld [vmem:[#allocation20 + $0x3d8] sm:$0xf] }
 0x858   :  { %v5716_v36 = vadd.f32 %v14047_v37, %v5702_v20  ;;  %v5718_v33 = vadd.f32 %v14076_v63, %v5704_v1  ;;  %v11314_v56 = vor.u32 %v12671_v51, %v11313_v22  ;;  %v12692_v20 = vld [vmem:[#allocation20 + $0x488] sm:$0xf0]  ;;  %v11770_v22 = vor.u32 %v12785_v45, %v11769_v21  ;;  %v11757_v51 = vld [vmem:[#allocation20 + $0x750] sm:$0xf]  ;;  %v14120_v45 = vld [vmem:[#allocation19 + $0x8] sm:$0xf] }
 0x859   :  { %v5744_v43 = vadd.f32 %v14043_v50, %v4024_v13  ;;  %v5786_v42 = vadd.f32 %v5785_v27, %v4025_v31  ;;  %v5788_v62 = vadd.f32 %v5787_v16, %v4025_v31  ;;  %v11409_v50 = vld [vmem:[#allocation20 + $0x498] sm:$0xf]  ;;  %v5746_v27 = vadd.f32 %v14070_v4, %v4024_v13 }
 0x85a   :  { %8008 = vmatpush.bf16.msra.mxu3 %v11266_v30  ;;  %8022 = vmatpush.bf16.msrb.mxu0 %v11362_v49  ;;  %v11530_v30 = vor.u32 %v12725_v40, %v11529_v19  ;;  %v12674_v49 = vld [vmem:[#allocation20 + $0x3f8] sm:$0xf0]  ;;  %v14102_v0 = vadd.f32 %v14037_v55, %v5716_v36  ;;  %v5732_v4 = vadd.f32 %v14063_v3, %v5718_v33 }
 0x85b   :  { %8036 = vmatpush.bf16.msrb.mxu1 %v11458_v46  ;;  %8050 = vmatpush.bf16.msra.mxu2 %v11554_v60  ;;  %v14089_v46 = vadd.f32 %v13993_v18, %v5674_v29  ;;  %v5813_v60 = vpop.f32.mrf.mxu2  ;;  %v11326_v18 = vor.u32 %v12674_v49, %v11325_v47  ;;  %v5758_v29 = vadd.f32 %v14049_v28, %v5744_v43  ;;  %v12668_v28 = vld [vmem:[#allocation20 + $0x3c8] sm:$0xf0]  ;;  %v11397_v47 = vld [vmem:[#allocation20 + $0x480] sm:$0xf]  ;;  %v12782_v33 = vld [vmem:[#allocation20 + $0x758] sm:$0xf0] }
 0x85c   :  { %v5760_v26 = vadd.f32 %v14080_v7, %v5746_v27  ;;  %v5800_v19 = vadd.f32 %v5799_v12, %v5786_v42  ;;  %v11493_v49 = vld [vmem:[#allocation20 + $0x540] sm:$0xf]  ;;  %v5991_v3 = vmax.f32 %v14102_v0, 0.0  ;;  %v11302_v36 = vor.u32 %v12668_v28, %v11301_v61  ;;  %v12758_v42 = vld [vmem:[#allocation20 + $0x698] sm:$0xf0] }
 0x85d   :  { %v5990_v37 = vmax.f32 %v14089_v46, 0.0  ;;  %v6003_v16 = vmax.f32 %v5732_v4, 0.0  ;;  %v12830_v61 = vld [vmem:[#allocation20 + $0x8d8] sm:$0xf0]  ;;  %v12752_v28 = vld [vmem:[#allocation20 + $0x668] sm:$0xf0] }
 0x85e   :  { %8009 = vmatpush.bf16.msra.mxu3 %v11254_v39  ;;  %8023 = vmatpush.bf16.msrb.mxu0 %v11350_v8  ;;  %v11422_v39 = vor.u32 %v12698_v25, %v11421_v24  ;;  %v12647_v8 = vld [vmem:[#allocation20 + $0x320] sm:$0xf0]  ;;  %v5801_v40 = vpop.f32.mrf.mxu1  ;;  %v5814_v7 = vadd.f32 %v5813_v60, %v5800_v19  ;;  %v12716_v24 = vld [vmem:[#allocation20 + $0x548] sm:$0xf0]  ;;  %v11673_v25 = vld [vmem:[#allocation20 + $0x6a8] sm:$0xf] }
 0x85f   :  { %8037 = vmatpush.bf16.msrb.mxu1 %v11446_v5  ;;  %8051 = vmatpush.bf16.msra.mxu2 %v11542_v11  ;;  %v12695_v5 = vld [vmem:[#allocation20 + $0x4a0] sm:$0xf0]  ;;  %v6002_v11 = vmax.f32 %v14092_v23, 0.0  ;;  %v11218_v63 = vor.u32 %v12647_v8, %v11217_v14  ;;  %v5802_v13 = vadd.f32 %v5801_v40, %v5788_v62  ;;  %v5773_v55 = vpop.f32.mrf.mxu3  ;;  %v12761_v23 = vld [vmem:[#allocation20 + $0x6b0] sm:$0xf0]  ;;  %v11494_v60 = vor.u32 %v12716_v24, %v11493_v49 }
 0x860   :  { %v11410_v31 = vor.u32 %v12695_v5, %v11409_v50  ;;  %v5774_v12 = vadd.f32 %v5773_v55, %v5760_v26  ;;  %v11661_v14 = vld [vmem:[#allocation20 + $0x690] sm:$0xf]  ;;  %v11674_v8 = vor.u32 %v12761_v23, %v11673_v25  ;;  %v11865_v62 = vld [vmem:[#allocation20 + $0x828] sm:$0xf]  ;;  %v14114_v0 = vpack.c.bf16 %v6003_v16, %v5991_v3  ;;  %v12755_v19 = vld [vmem:[#allocation20 + $0x680] sm:$0xf0] }
 0x861   :  { %v11961_v50 = vld [vmem:[#allocation20 + $0x8e8] sm:$0xf]  ;;  %v14108_v5 = vpack.c.bf16 %v6002_v11, %v5990_v37  ;;  %v11662_v26 = vor.u32 %v12758_v42, %v11661_v14  ;;  %v11758_v37 = vor.u32 %v12782_v33, %v11757_v51  ;;  %v11745_v11 = vld [vmem:[#allocation20 + $0x738] sm:$0xf]  ;;  %v12779_v40 = vld [vmem:[#allocation20 + $0x740] sm:$0xf0] }
 0x862   :  { %8010 = vmatpush.bf16.msra.mxu3 %v11242_v52  ;;  %8024 = vmatpush.bf16.msrb.mxu0 %v11338_v2  ;;  %v11205_v52 = vld [vmem:[#allocation20 + $0x300] sm:$0xf]  ;;  %v12644_v2 = vld [vmem:[#allocation20 + $0x308] sm:$0xf0]  ;;  %v6004_v1 = vmax.f32 %v5774_v12, 0.0 }
 0x863   :  { %8038 = vmatpush.bf16.msrb.mxu1 %v11434_v41  ;;  %8052 = vmatpush.bf16.msra.mxu2 %v11530_v30  ;;  %v5772_v41 = vadd.f32 %v5771_v53, %v5758_v29  ;;  %v5815_v30 = vpop.f32.mrf.mxu2  ;;  %v11206_v43 = vor.u32 %v12644_v2, %v11205_v52  ;;  %v11398_v53 = vor.u32 %v12692_v20, %v11397_v47  ;;  %v11649_v29 = vld [vmem:[#allocation20 + $0x678] sm:$0xf]  ;;  %v12806_v52 = vld [vmem:[#allocation20 + $0x818] sm:$0xf0]  ;;  %v11949_v2 = vld [vmem:[#allocation20 + $0x8d0] sm:$0xf] }
 0x864   :  { %v5816_v46 = vadd.f32 %v5815_v30, %v5802_v13  ;;  %v11950_v13 = vor.u32 %v12830_v61, %v11949_v2  ;;  %v11650_v55 = vor.u32 %v12755_v19, %v11649_v29  ;;  %v11746_v47 = vor.u32 %v12779_v40, %v11745_v11  ;;  %v11733_v20 = vld [vmem:[#allocation20 + $0x720] sm:$0xf]  ;;  %v12803_v12 = vld [vmem:[#allocation20 + $0x800] sm:$0xf0]  ;;  %v11937_v30 = vld [vmem:[#allocation20 + $0x8b8] sm:$0xf] }
 0x865   :  { %v12827_v49 = vld [vmem:[#allocation20 + $0x8c0] sm:$0xf0]  ;;  %v11625_v24 = vld [vmem:[#allocation20 + $0x648] sm:$0xf]  ;;  %v12749_v25 = vld [vmem:[#allocation20 + $0x650] sm:$0xf0] }
 0x866   :  { %8011 = vmatpush.bf16.msra.mxu3 %v11230_v10  ;;  %8025 = vmatpush.bf16.msrb.mxu0 %v11326_v18  ;;  %v6005_v10 = vmax.f32 %v5816_v46, 0.0  ;;  %v5992_v18 = vmax.f32 %v5772_v41, 0.0  ;;  %v12776_v41 = vld [vmem:[#allocation20 + $0x728] sm:$0xf0]  ;;  %v11938_v23 = vor.u32 %v12827_v49, %v11937_v30  ;;  %v11613_v14 = vld [vmem:[#allocation20 + $0x630] sm:$0xf] }
 0x867   :  { %8039 = vmatpush.bf16.msrb.mxu1 %v11422_v39  ;;  %8053 = vmatpush.bf16.msra.mxu2 %v11518_v58  ;;  %v5993_v39 = vmax.f32 %v5814_v7, 0.0  ;;  %v12809_v58 = vld [vmem:[#allocation20 + $0x830] sm:$0xf0]  ;;  %v11841_v7 = vld [vmem:[#allocation20 + $0x7f8] sm:$0xf]  ;;  %v11734_v3 = vor.u32 %v12776_v41, %v11733_v20 }
 0x868   :  { %v14110_v27 = vpack.c.bf16 %v6004_v1, %v5992_v18  ;;  %v11842_v46 = vor.u32 %v12803_v12, %v11841_v7  ;;  %v11721_v1 = vld [vmem:[#allocation20 + $0x708] sm:$0xf]  ;;  %v12800_v16 = vld [vmem:[#allocation20 + $0x7e8] sm:$0xf0]  ;;  %v11709_v51 = vld [vmem:[#allocation20 + $0x6f0] sm:$0xf] }
 0x869   :  { %v14112_v34 = vpack.c.bf16 %v6005_v10, %v5993_v39  ;;  %v11925_v10 = vld [vmem:[#allocation20 + $0x8a0] sm:$0xf]  ;;  %v11626_v39 = vor.u32 %v12749_v25, %v11625_v24  ;;  %v12770_v33 = vld [vmem:[#allocation20 + $0x6f8] sm:$0xf0]  ;;  %v11913_v29 = vld [vmem:[#allocation20 + $0x888] sm:$0xf] }
 0x86a   :  { %8012 = vmatpush.bf16.msra.mxu3 %v11218_v63  ;;  %8026 = vmatpush.bf16.msrb.mxu0 %v11314_v56  ;;  %v11866_v63 = vor.u32 %v12809_v58, %v11865_v62  ;;  %v11962_v56 = vor.u32 %v12833_v9, %v11961_v50  ;;  %v11817_v50 = vld [vmem:[#allocation20 + $0x7c8] sm:$0xf]  ;;  %v12797_v9 = vld [vmem:[#allocation20 + $0x7d0] sm:$0xf0]  ;;  %v11697_v2 = vld [vmem:[#allocation20 + $0x6d8] sm:$0xf] }
 0x86b   :  { %8040 = vmatpush.bf16.msrb.mxu1 %v11410_v31  ;;  %8054 = vmatpush.bf16.msra.mxu2 %v11506_v17  ;;  %v11853_v31 = vld [vmem:[#allocation20 + $0x810] sm:$0xf]  ;;  %v11637_v17 = vld [vmem:[#allocation20 + $0x660] sm:$0xf]  ;;  %v11818_v19 = vor.u32 %v12797_v9, %v11817_v50  ;;  %v12767_v61 = vld [vmem:[#allocation20 + $0x6e0] sm:$0xf0] }
 0x86c   :  { %v11854_v4 = vor.u32 %v12806_v52, %v11853_v31  ;;  %v11638_v21 = vor.u32 %v12752_v28, %v11637_v17  ;;  %v12743_v31 = vld [vmem:[#allocation20 + $0x620] sm:$0xf0]  ;;  %v11710_v52 = vor.u32 %v12770_v33, %v11709_v51  ;;  %v12818_v17 = vld [vmem:[#allocation20 + $0x878] sm:$0xf0]  ;;  %v11589_v28 = vld [vmem:[#allocation20 + $0x600] sm:$0xf]  ;;  %v11698_v30 = vor.u32 %v12767_v61, %v11697_v2 }
 0x86d   :  { %v12568_v49 = vld [vmem:[#allocation20 + $0xac] sm:$0xf]  ;;  %v10907_v24 = vld [vmem:[#allocation20 + $0xb4] sm:$0xf0]  ;;  %v11685_v25 = vld [vmem:[#allocation20 + $0x6c0] sm:$0xf] }
 0x86e   :  { %8013 = vmatpush.bf16.msra.mxu3 %v11206_v43  ;;  %8027 = vmatpush.bf16.msrb.mxu0 %v11302_v36  ;;  %v12773_v43 = vld [vmem:[#allocation20 + $0x710] sm:$0xf0]  ;;  %v11829_v36 = vld [vmem:[#allocation20 + $0x7e0] sm:$0xf]  ;;  %v5841_v62 = vpop.f32.mrf.mxu0  ;;  %v11195_v2 = vld [vmem:[#allocation20 + $0x2f4] sm:$0xf0] }
 0x86f   :  { %8041 = vmatpush.bf16.msrb.mxu1 %v11398_v53  ;;  %8055 = vmatpush.bf16.msra.mxu2 %v11494_v60  ;;  %v12824_v53 = vld [vmem:[#allocation20 + $0x8a8] sm:$0xf0]  ;;  %v4026_v60 = vperm.slane %v14120_v45, 0  ;;  %v11830_v42 = vor.u32 %v12800_v16, %v11829_v36  ;;  %v11003_v16 = vld [vmem:[#allocation20 + $0x174] sm:$0xf0] }
 0x870   :  { %v11926_v18 = vor.u32 %v12824_v53, %v11925_v10  ;;  %v12592_v36 = vld [vmem:[#allocation20 + $0x16c] sm:$0xf]  ;;  %v12815_v10 = vld [vmem:[#allocation20 + $0x860] sm:$0xf0]  ;;  %v12565_v51 = vld [vmem:[#allocation20 + $0x94] sm:$0xf] }
 0x871   :  { %8014 = vmatmul.bf16.vlgmr.msra.gmra.mxu3 %v14108_v5  ;;  %8028 = vmatmul.bf16.vlgmr.msrb.gmra.mxu0 %v14114_v0  ;;  %v10895_v33 = vld [vmem:[#allocation20 + $0x9c] sm:$0xf0]  ;;  %v11006_v9 = vor.u32 %v12592_v36, %v11003_v16  ;;  %v10967_v36 = vld [vmem:[#allocation20 + $0x12c] sm:$0xf0] }
 0x872   :  { %8062 = vmatpush.bf16.msrb.mxu3 %v11674_v8  ;;  %8076 = vmatpush.bf16.msra.mxu0 %v11770_v22  ;;  %v12746_v8 = vld [vmem:[#allocation20 + $0x638] sm:$0xf0]  ;;  %v11722_v22 = vor.u32 %v12773_v43, %v11721_v1  ;;  %v11889_v1 = vld [vmem:[#allocation20 + $0x858] sm:$0xf] }
 0x873   :  { %8042 = vmatmul.bf16.vlgmr.msrb.gmra.mxu1 %v14110_v27  ;;  %8056 = vmatmul.bf16.vlgmr.msra.gmra.mxu2 %v14112_v34  ;;  %v11614_v40 = vor.u32 %v12746_v8, %v11613_v14 }
 0x874   :  { %8090 = vmatpush.bf16.msra.mxu1 %v11866_v63  ;;  %8104 = vmatpush.bf16.msrb.mxu2 %v11962_v56  ;;  %v5827_v58 = vpop.f32.mrf.mxu3  ;;  %v12821_v63 = vld [vmem:[#allocation20 + $0x890] sm:$0xf0]  ;;  %v5855_v56 = vpop.f32.mrf.mxu1 }
 0x875   :  { %v5828_v11 = vadd.f32 %v5827_v58, %v4026_v60  ;;  %v10991_v58 = vld [vmem:[#allocation20 + $0x15c] sm:$0xf0] }
 0x876   :  { %8063 = vmatpush.bf16.msrb.mxu3 %v11662_v26  ;;  %8077 = vmatpush.bf16.msra.mxu0 %v11758_v37  ;;  %v11601_v26 = vld [vmem:[#allocation20 + $0x618] sm:$0xf]  ;;  %v11914_v37 = vor.u32 %v12821_v63, %v11913_v29  ;;  %v5843_v53 = vpop.f32.mrf.mxu0  ;;  %v11781_v29 = vld [vmem:[#allocation20 + $0x780] sm:$0xf]  ;;  %v12788_v63 = vld [vmem:[#allocation20 + $0x788] sm:$0xf0] }
 0x877   :  { %v5842_v7 = vadd.f32 %v5841_v62, %v5828_v11  ;;  %v11602_v12 = vor.u32 %v12743_v31, %v11601_v26  ;;  %v12589_v62 = vld [vmem:[#allocation20 + $0x154] sm:$0xf]  ;;  %v11877_v26 = vld [vmem:[#allocation20 + $0x840] sm:$0xf]  ;;  %v12616_v11 = vld [vmem:[#allocation20 + $0x22c] sm:$0xf] }
 0x878   :  { %8091 = vmatpush.bf16.msra.mxu1 %v11854_v4  ;;  %8105 = vmatpush.bf16.msrb.mxu2 %v11950_v13  ;;  %v11805_v4 = vld [vmem:[#allocation20 + $0x7b0] sm:$0xf]  ;;  %v12794_v13 = vld [vmem:[#allocation20 + $0x7b8] sm:$0xf0] }
 0x879   :  { %v11806_v20 = vor.u32 %v12794_v13, %v11805_v4 }
 0x87a   :  { %8064 = vmatpush.bf16.msrb.mxu3 %v11650_v55  ;;  %8078 = vmatpush.bf16.msra.mxu0 %v11746_v47  ;;  %v11901_v55 = vld [vmem:[#allocation20 + $0x870] sm:$0xf]  ;;  %v12740_v47 = vld [vmem:[#allocation20 + $0x608] sm:$0xf0] }
 0x87b   :  { %v11902_v41 = vor.u32 %v12818_v17, %v11901_v55  ;;  %v11590_v14 = vor.u32 %v12740_v47, %v11589_v28  ;;  %v10898_v55 = vor.u32 %v12565_v51, %v10895_v33  ;;  %v12562_v17 = vld [vmem:[#allocation20 + $0x7c] sm:$0xf]  ;;  %v10883_v28 = vld [vmem:[#allocation20 + $0x84] sm:$0xf0]  ;;  %v10994_v47 = vor.u32 %v12589_v62, %v10991_v58  ;;  %v10859_v51 = vld [vmem:[#allocation20 + $0x54] sm:$0xf0] }
 0x87c   :  { %8092 = vmatpush.bf16.msra.mxu1 %v11842_v46  ;;  %8106 = vmatpush.bf16.msrb.mxu2 %v11938_v23  ;;  %v12764_v46 = vld [vmem:[#allocation20 + $0x6c8] sm:$0xf0]  ;;  %v5829_v23 = vpop.f32.mrf.mxu3  ;;  %v5857_v50 = vpop.f32.mrf.mxu1  ;;  %v10955_v58 = vld [vmem:[#allocation20 + $0x114] sm:$0xf0] }
 0x87d   :  { %v5830_v43 = vadd.f32 %v5829_v23, %v4026_v60  ;;  %v10910_v60 = vor.u32 %v12568_v49, %v10907_v24  ;;  %v11087_v49 = vld [vmem:[#allocation20 + $0x21c] sm:$0xf0]  ;;  %v12637_v24 = vld [vmem:[#allocation20 + $0x2d4] sm:$0xf]  ;;  %v10886_v23 = vor.u32 %v12562_v17, %v10883_v28  ;;  %v12580_v62 = vld [vmem:[#allocation20 + $0x10c] sm:$0xf] }
 0x87e   :  { %8065 = vmatpush.bf16.msrb.mxu3 %v11638_v21  ;;  %8079 = vmatpush.bf16.msra.mxu0 %v11734_v3  ;;  %v11793_v21 = vld [vmem:[#allocation20 + $0x798] sm:$0xf]  ;;  %v12791_v3 = vld [vmem:[#allocation20 + $0x7a0] sm:$0xf0]  ;;  %v12628_v17 = vld [vmem:[#allocation20 + $0x28c] sm:$0xf] }
 0x87f   :  { %v5844_v8 = vadd.f32 %v5843_v53, %v5830_v43  ;;  %v12583_v43 = vld [vmem:[#allocation20 + $0x124] sm:$0xf]  ;;  %v11075_v53 = vld [vmem:[#allocation20 + $0x204] sm:$0xf0]  ;;  %v11147_v28 = vld [vmem:[#allocation20 + $0x294] sm:$0xf0] }
 0x880   :  { %8093 = vmatpush.bf16.msra.mxu1 %v11830_v42  ;;  %8107 = vmatpush.bf16.msrb.mxu2 %v11926_v18  ;;  %v11794_v42 = vor.u32 %v12791_v3, %v11793_v21  ;;  %v11890_v18 = vor.u32 %v12815_v10, %v11889_v1  ;;  %v12559_v21 = vld [vmem:[#allocation20 + $0x64] sm:$0xf]  ;;  %v10871_v3 = vld [vmem:[#allocation20 + $0x6c] sm:$0xf0]  ;;  %v12610_v10 = vld [vmem:[#allocation20 + $0x1fc] sm:$0xf]  ;;  %v10970_v33 = vor.u32 %v12583_v43, %v10967_v36 }
 0x881   :  { %v11135_v43 = vld [vmem:[#allocation20 + $0x27c] sm:$0xf0] }
 0x882   :  { %8066 = vmatpush.bf16.msrb.mxu3 %v11626_v39  ;;  %8080 = vmatpush.bf16.msra.mxu0 %v11722_v22  ;;  %v5856_v39 = vadd.f32 %v5855_v56, %v5842_v7  ;;  %v11686_v22 = vor.u32 %v12764_v46, %v11685_v25  ;;  %v11782_v56 = vor.u32 %v12788_v63, %v11781_v29  ;;  %v10979_v7 = vld [vmem:[#allocation20 + $0x144] sm:$0xf0]  ;;  %v11183_v25 = vld [vmem:[#allocation20 + $0x2dc] sm:$0xf0]  ;;  %v12631_v29 = vld [vmem:[#allocation20 + $0x2a4] sm:$0xf] }
 0x883   :  { %v11186_v16 = vor.u32 %v12637_v24, %v11183_v25  ;;  %v11159_v63 = vld [vmem:[#allocation20 + $0x2ac] sm:$0xf0]  ;;  %v10931_v25 = vld [vmem:[#allocation20 + $0xe4] sm:$0xf0] }
 0x884   :  { %8094 = vmatpush.bf16.msra.mxu1 %v11818_v19  ;;  %8108 = vmatpush.bf16.msrb.mxu2 %v11914_v37  ;;  %v5858_v19 = vadd.f32 %v5857_v50, %v5844_v8  ;;  %v12812_v37 = vld [vmem:[#allocation20 + $0x848] sm:$0xf0]  ;;  %v5994_v61 = vmax.f32 %v5856_v39, 0.0  ;;  %v5869_v39 = vpop.f32.mrf.mxu2  ;;  %v10874_v8 = vor.u32 %v12559_v21, %v10871_v3  ;;  %v11039_v21 = vld [vmem:[#allocation20 + $0x1bc] sm:$0xf0] }
 0x885   :  { %v11878_v31 = vor.u32 %v12812_v37, %v11877_v26  ;;  %v4027_v26 = vperm.slane %v14120_v45, 1 }
 0x886   :  { %8067 = vmatpush.bf16.msrb.mxu3 %v11614_v40  ;;  %8081 = vmatpush.bf16.msra.mxu0 %v11710_v52  ;;  %v11099_v40 = vld [vmem:[#allocation20 + $0x234] sm:$0xf0]  ;;  %v12640_v52 = vld [vmem:[#allocation20 + $0x2ec] sm:$0xf]  ;;  %v6006_v4 = vmax.f32 %v5858_v19, 0.0 }
 0x887   :  { %v11102_v13 = vor.u32 %v12616_v11, %v11099_v40  ;;  %v12553_v11 = vld [vmem:[#allocation20 + $0x34] sm:$0xf]  ;;  %v10847_v40 = vld [vmem:[#allocation20 + $0x3c] sm:$0xf0]  ;;  %v5870_v24 = vadd.f32 %v5869_v39, %v4027_v26 }
 0x888   :  { %8095 = vmatpush.bf16.msra.mxu1 %v11806_v20  ;;  %8109 = vmatpush.bf16.msrb.mxu2 %v11902_v41  ;;  %v12586_v20 = vld [vmem:[#allocation20 + $0x13c] sm:$0xf]  ;;  %v14123_v41 = vpack.c.bf16 %v6006_v4, %v5994_v61  ;;  %v12604_v61 = vld [vmem:[#allocation20 + $0x1cc] sm:$0xf]  ;;  %v11051_v4 = vld [vmem:[#allocation20 + $0x1d4] sm:$0xf0] }
 0x889   :  { %v10982_v1 = vor.u32 %v12586_v20, %v10979_v7  ;;  %v10850_v20 = vor.u32 %v12553_v11, %v10847_v40  ;;  %v12550_v7 = vld [vmem:[#allocation20 + $0x1c] sm:$0xf] }
 0x88a   :  { %8068 = vmatpush.bf16.msrb.mxu3 %v11602_v12  ;;  %8082 = vmatpush.bf16.msra.mxu0 %v11698_v30  ;;  %v11198_v12 = vor.u32 %v12640_v52, %v11195_v2  ;;  %v12613_v30 = vld [vmem:[#allocation20 + $0x214] sm:$0xf]  ;;  %v10943_v52 = vld [vmem:[#allocation20 + $0xfc] sm:$0xf0]  ;;  %v11162_v2 = vor.u32 %v12631_v29, %v11159_v63 }
 0x88b   :  { %v11090_v46 = vor.u32 %v12613_v30, %v11087_v49  ;;  %v12574_v49 = vld [vmem:[#allocation20 + $0xdc] sm:$0xf] }
 0x88c   :  { %8096 = vmatpush.bf16.msra.mxu1 %v11794_v42  ;;  %8110 = vmatpush.bf16.msrb.mxu2 %v11890_v18  ;;  %v11171_v42 = vld [vmem:[#allocation20 + $0x2c4] sm:$0xf0]  ;;  %v11078_v18 = vor.u32 %v12610_v10, %v11075_v53  ;;  %v5871_v3 = vpop.f32.mrf.mxu2 }
 0x88d   :  { %v5872_v39 = vadd.f32 %v5871_v3, %v4027_v26  ;;  %v12658_v3 = vld [vmem:[#allocation20 + $0x37c] sm:$0xf] }
 0x88e   :  { %8069 = vmatpush.bf16.msrb.mxu3 %v11590_v14  ;;  %8083 = vmatpush.bf16.msra.mxu0 %v11686_v22  ;;  %v12634_v14 = vld [vmem:[#allocation20 + $0x2bc] sm:$0xf]  ;;  %v12556_v22 = vld [vmem:[#allocation20 + $0x4c] sm:$0xf] }
 0x88f   :  { %v11174_v50 = vor.u32 %v12634_v14, %v11171_v42  ;;  %v10862_v37 = vor.u32 %v12556_v22, %v10859_v51  ;;  %v10823_v14 = vld [vmem:[#allocation20 + $0xc] sm:$0xf0]  ;;  %v10934_v42 = vor.u32 %v12574_v49, %v10931_v25 }
 0x890   :  { %8097 = vmatpush.bf16.msra.mxu1 %v11782_v56  ;;  %8111 = vmatpush.bf16.msrb.mxu2 %v11878_v31  ;;  %v10958_v56 = vor.u32 %v12580_v62, %v10955_v58  ;;  %v12577_v31 = vld [vmem:[#allocation20 + $0xf4] sm:$0xf]  ;;  %v10919_v22 = vld [vmem:[#allocation20 + $0xcc] sm:$0xf0]  ;;  %v11027_v62 = vld [vmem:[#allocation20 + $0x1a4] sm:$0xf0] }
 0x891   :  { %8070 = vmatmul.bf16.vlgmr.msrb.gmra.mxu3 %v14123_v41  ;;  %v10946_v30 = vor.u32 %v12577_v31, %v10943_v52  ;;  %v14127_v29 = vpop.f32.mrf.mxu1  ;;  %v12688_v31 = vld [vmem:[#allocation20 + $0x46c] sm:$0xf] }
 0x892   :  { %8118 = vmatpush.bf16.msra.mxu3 %v10910_v60  ;;  %8132 = vmatpush.bf16.msrb.mxu0 %v11006_v9  ;;  %v12607_v60 = vld [vmem:[#allocation20 + $0x1e4] sm:$0xf]  ;;  %v11063_v9 = vld [vmem:[#allocation20 + $0x1ec] sm:$0xf0] }
 0x893   :  { %v11066_v19 = vor.u32 %v12607_v60, %v11063_v9  ;;  %v12622_v60 = vld [vmem:[#allocation20 + $0x25c] sm:$0xf]  ;;  %v11123_v9 = vld [vmem:[#allocation20 + $0x264] sm:$0xf0] }
 0x894   :  { %8146 = vmatpush.bf16.msrb.mxu1 %v11102_v13  ;;  %8160 = vmatpush.bf16.msra.mxu2 %v11198_v12  ;;  %v5897_v13 = vpop.f32.mrf.mxu0  ;;  %v10835_v12 = vld [vmem:[#allocation20 + $0x24] sm:$0xf0] }
 0x895   :  { %v10838_v53 = vor.u32 %v12550_v7, %v10835_v12 }
 0x896   :  { %8119 = vmatpush.bf16.msra.mxu3 %v10898_v55  ;;  %8133 = vmatpush.bf16.msrb.mxu0 %v10994_v47  ;;  %v5883_v55 = vpop.f32.mrf.mxu3  ;;  %v11054_v47 = vor.u32 %v12604_v61, %v11051_v4  ;;  %v11387_v61 = vld [vmem:[#allocation20 + $0x474] sm:$0xf0]  ;;  %v11126_v4 = vor.u32 %v12622_v60, %v11123_v9 }
 0x897   :  { %v5884_v36 = vadd.f32 %v5883_v55, %v5870_v24  ;;  %v12595_v55 = vld [vmem:[#allocation20 + $0x184] sm:$0xf]  ;;  %v14129_v7 = vpop.f32.mrf.mxu2 }
 0x898   :  { %8147 = vmatpush.bf16.msrb.mxu1 %v11090_v46  ;;  %8161 = vmatpush.bf16.msra.mxu2 %v11186_v16  ;;  %v11150_v46 = vor.u32 %v12628_v17, %v11147_v28  ;;  %v12547_v16 = vld [vmem:[#allocation20 + $0x4] sm:$0xf]  ;;  %v11015_v17 = vld [vmem:[#allocation20 + $0x18c] sm:$0xf0]  ;;  %v11279_v28 = vld [vmem:[#allocation20 + $0x39c] sm:$0xf0] }
 0x899   :  { %v5898_v63 = vadd.f32 %v5897_v13, %v5884_v36  ;;  %v10826_v40 = vor.u32 %v12547_v16, %v10823_v14  ;;  %v11111_v13 = vld [vmem:[#allocation20 + $0x24c] sm:$0xf0]  ;;  %v11018_v49 = vor.u32 %v12595_v55, %v11015_v17  ;;  %v5913_v36 = vpop.f32.mrf.mxu1  ;;  %v12655_v14 = vld [vmem:[#allocation20 + $0x364] sm:$0xf] }
 0x89a   :  { %8120 = vmatpush.bf16.msra.mxu3 %v10886_v23  ;;  %8134 = vmatpush.bf16.msrb.mxu0 %v10982_v1  ;;  %v12601_v23 = vld [vmem:[#allocation20 + $0x1b4] sm:$0xf] }
 0x89b   :  { %v12625_v1 = vld [vmem:[#allocation20 + $0x274] sm:$0xf]  ;;  %v11042_v10 = vor.u32 %v12601_v23, %v11039_v21  ;;  %v11375_v23 = vld [vmem:[#allocation20 + $0x45c] sm:$0xf0] }
 0x89c   :  { %8148 = vmatpush.bf16.msrb.mxu1 %v11078_v18  ;;  %8162 = vmatpush.bf16.msra.mxu2 %v11174_v50  ;;  %v12664_v18 = vld [vmem:[#allocation20 + $0x3ac] sm:$0xf]  ;;  %v11138_v51 = vor.u32 %v12625_v1, %v11135_v43  ;;  %v11291_v50 = vld [vmem:[#allocation20 + $0x3b4] sm:$0xf0]  ;;  %v5899_v11 = vpop.f32.mrf.mxu0  ;;  %v11267_v1 = vld [vmem:[#allocation20 + $0x384] sm:$0xf0] }
 0x89d   :  { %v11270_v16 = vor.u32 %v12658_v3, %v11267_v1  ;;  %v11207_v3 = vld [vmem:[#allocation20 + $0x30c] sm:$0xf0] }
 0x89e   :  { %8121 = vmatpush.bf16.msra.mxu3 %v10874_v8  ;;  %8135 = vmatpush.bf16.msrb.mxu0 %v10970_v33  ;;  %v12571_v8 = vld [vmem:[#allocation20 + $0xc4] sm:$0xf]  ;;  %v12598_v33 = vld [vmem:[#allocation20 + $0x19c] sm:$0xf]  ;;  %v5885_v58 = vpop.f32.mrf.mxu3 }
 0x89f   :  { %v10922_v26 = vor.u32 %v12571_v8, %v10919_v22  ;;  %v5927_v8 = vpop.f32.mrf.mxu2  ;;  %v12679_v22 = vld [vmem:[#allocation20 + $0x424] sm:$0xf] }
 0x8a0   :  { %8149 = vmatpush.bf16.msrb.mxu1 %v11066_v19  ;;  %8163 = vmatpush.bf16.msra.mxu2 %v11162_v2  ;;  %v5886_v19 = vadd.f32 %v5885_v58, %v5872_v39  ;;  %v11294_v2 = vor.u32 %v12664_v18, %v11291_v50  ;;  %v11243_v58 = vld [vmem:[#allocation20 + $0x354] sm:$0xf0] }
 0x8a2   :  { %8122 = vmatpush.bf16.msra.mxu3 %v10862_v37  ;;  %8136 = vmatpush.bf16.msrb.mxu0 %v10958_v56  ;;  %v11030_v37 = vor.u32 %v12598_v33, %v11027_v62  ;;  %v12661_v56 = vld [vmem:[#allocation20 + $0x394] sm:$0xf]  ;;  %v5900_v52 = vadd.f32 %v5899_v11, %v5886_v19  ;;  %v12652_v62 = vld [vmem:[#allocation20 + $0x34c] sm:$0xf]  ;;  %v11339_v19 = vld [vmem:[#allocation20 + $0x414] sm:$0xf0] }
 0x8a3   :  { %v11282_v25 = vor.u32 %v12661_v56, %v11279_v28  ;;  %v11246_v9 = vor.u32 %v12652_v62, %v11243_v58  ;;  %v12649_v11 = vld [vmem:[#allocation20 + $0x334] sm:$0xf]  ;;  %v12646_v28 = vld [vmem:[#allocation20 + $0x31c] sm:$0xf] }
 0x8a4   :  { %8150 = vmatpush.bf16.msrb.mxu1 %v11054_v47  ;;  %8164 = vmatpush.bf16.msra.mxu2 %v11150_v46  ;;  %v12619_v47 = vld [vmem:[#allocation20 + $0x244] sm:$0xf]  ;;  %v6007_v12 = vmax.f32 %v5900_v52, 0.0  ;;  %v12685_v46 = vld [vmem:[#allocation20 + $0x454] sm:$0xf] }
 0x8a5   :  { %v11114_v21 = vor.u32 %v12619_v47, %v11111_v13  ;;  %v11378_v43 = vor.u32 %v12685_v46, %v11375_v23  ;;  %v11219_v47 = vld [vmem:[#allocation20 + $0x324] sm:$0xf0] }
 0x8a6   :  { %8123 = vmatpush.bf16.msra.mxu3 %v10850_v20  ;;  %8137 = vmatpush.bf16.msrb.mxu0 %v10946_v30  ;;  %v5995_v20 = vmax.f32 %v5898_v63, 0.0  ;;  %v11390_v30 = vor.u32 %v12688_v31, %v11387_v61  ;;  %v12676_v63 = vld [vmem:[#allocation20 + $0x40c] sm:$0xf]  ;;  %v12673_v61 = vld [vmem:[#allocation20 + $0x3f4] sm:$0xf] }
 0x8a7   :  { %v11342_v31 = vor.u32 %v12676_v63, %v11339_v19  ;;  %v11315_v46 = vld [vmem:[#allocation20 + $0x3e4] sm:$0xf0]  ;;  %v12757_v19 = vld [vmem:[#allocation20 + $0x694] sm:$0xf] }
 0x8a8   :  { %8151 = vmatpush.bf16.msrb.mxu1 %v11042_v10  ;;  %8165 = vmatpush.bf16.msra.mxu2 %v11138_v51  ;;  %v14131_v24 = vpack.c.bf16 %v6007_v12, %v5995_v20  ;;  %v12682_v10 = vld [vmem:[#allocation20 + $0x43c] sm:$0xf]  ;;  %v11351_v51 = vld [vmem:[#allocation20 + $0x42c] sm:$0xf0] }
 0x8a9   :  { %v11354_v50 = vor.u32 %v12679_v22, %v11351_v51  ;;  %v12712_v22 = vld [vmem:[#allocation20 + $0x52c] sm:$0xf]  ;;  %v11483_v51 = vld [vmem:[#allocation20 + $0x534] sm:$0xf0] }
 0x8aa   :  { %8124 = vmatpush.bf16.msra.mxu3 %v10838_v53  ;;  %8138 = vmatpush.bf16.msrb.mxu0 %v10934_v42  ;;  %v11363_v53 = vld [vmem:[#allocation20 + $0x444] sm:$0xf0]  ;;  %v11255_v42 = vld [vmem:[#allocation20 + $0x36c] sm:$0xf0] }
 0x8ab   :  { %8084 = vmatmul.bf16.vlgmr.msra.gmra.mxu0 %v14131_v24  ;;  %v11366_v18 = vor.u32 %v12682_v10, %v11363_v53  ;;  %v11258_v39 = vor.u32 %v12655_v14, %v11255_v42  ;;  %v12760_v10 = vld [vmem:[#allocation20 + $0x6ac] sm:$0xf] }
 0x8ac   :  { %8152 = vmatpush.bf16.msrb.mxu1 %v11030_v37  ;;  %8166 = vmatpush.bf16.msra.mxu2 %v11126_v4  ;;  %v4029_v37 = vperm.slane %v14120_v45, 3  ;;  %v11327_v4 = vld [vmem:[#allocation20 + $0x3fc] sm:$0xf0] }
 0x8ad   :  { %v11330_v12 = vor.u32 %v12673_v61, %v11327_v4  ;;  %v12709_v61 = vld [vmem:[#allocation20 + $0x514] sm:$0xf] }
 0x8ae   :  { %8125 = vmatpush.bf16.msra.mxu3 %v10826_v40  ;;  %8139 = vmatpush.bf16.msrb.mxu0 %v10922_v26  ;;  %v5953_v33 = vpop.f32.mrf.mxu0  ;;  %v11231_v40 = vld [vmem:[#allocation20 + $0x33c] sm:$0xf0]  ;;  %v4028_v26 = vperm.slane %v14120_v45, 2 }
 0x8af   :  { %v5954_v55 = vadd.f32 %v5953_v33, %v4029_v37  ;;  %v12736_v33 = vld [vmem:[#allocation20 + $0x5ec] sm:$0xf] }
 0x8b0   :  { %8153 = vmatpush.bf16.msrb.mxu1 %v11018_v49  ;;  %8167 = vmatpush.bf16.msra.mxu2 %v11114_v21  ;;  %v5912_v13 = vadd.f32 %v14127_v29, %v4028_v26  ;;  %v11222_v49 = vor.u32 %v12646_v28, %v11219_v47  ;;  %v12643_v21 = vld [vmem:[#allocation20 + $0x304] sm:$0xf]  ;;  %v11675_v29 = vld [vmem:[#allocation20 + $0x6b4] sm:$0xf0]  ;;  %v11471_v28 = vld [vmem:[#allocation20 + $0x51c] sm:$0xf0] }
 0x8b1   :  { %8126 = vmatmul.bf16.vlgmr.msra.gmra.mxu3 %v14055_v35  ;;  %v5967_v60 = vpop.f32.mrf.mxu1  ;;  %v11678_v58 = vor.u32 %v12760_v10, %v11675_v29  ;;  %v12733_v47 = vld [vmem:[#allocation20 + $0x5d4] sm:$0xf]  ;;  %v12751_v10 = vld [vmem:[#allocation20 + $0x664] sm:$0xf]  ;;  %v11639_v29 = vld [vmem:[#allocation20 + $0x66c] sm:$0xf0] }
 0x8b2   :  { %8174 = vmatpush.bf16.msrb.mxu3 %v11294_v2  ;;  %8188 = vmatpush.bf16.msra.mxu0 %v11390_v30  ;;  %v11234_v2 = vor.u32 %v12649_v11, %v11231_v40  ;;  %v5926_v45 = vadd.f32 %v14129_v7, %v5912_v13  ;;  %v5914_v30 = vadd.f32 %v5913_v36, %v4028_v26  ;;  %v12784_v26 = vld [vmem:[#allocation20 + $0x76c] sm:$0xf]  ;;  %v11567_v13 = vld [vmem:[#allocation20 + $0x5dc] sm:$0xf0] }
 0x8b3   :  { %v5968_v23 = vadd.f32 %v5967_v60, %v5954_v55  ;;  %v11303_v60 = vld [vmem:[#allocation20 + $0x3cc] sm:$0xf0] }
 0x8b4   :  { %v5939_v56 = vpop.f32.mrf.mxu3  ;;  %v5928_v1 = vadd.f32 %v5927_v8, %v5914_v30  ;;  %v12667_v8 = vld [vmem:[#allocation20 + $0x3c4] sm:$0xf]  ;;  %v12781_v30 = vld [vmem:[#allocation20 + $0x754] sm:$0xf] }
 0x8b5   :  { %v11306_v55 = vor.u32 %v12667_v8, %v11303_v60  ;;  %v11735_v8 = vld [vmem:[#allocation20 + $0x72c] sm:$0xf0] }
 0x8b6   :  { %8175 = vmatpush.bf16.msrb.mxu3 %v11282_v25  ;;  %8189 = vmatpush.bf16.msra.mxu0 %v11378_v43  ;;  %v5955_v17 = vpop.f32.mrf.mxu0  ;;  %v12670_v25 = vld [vmem:[#allocation20 + $0x3dc] sm:$0xf]  ;;  %v5940_v43 = vadd.f32 %v5939_v56, %v5926_v45  ;;  %v11771_v56 = vld [vmem:[#allocation20 + $0x774] sm:$0xf0]  ;;  %v11651_v45 = vld [vmem:[#allocation20 + $0x684] sm:$0xf0] }
 0x8b7   :  { %v5981_v52 = vpop.f32.mrf.mxu2  ;;  %v5956_v20 = vadd.f32 %v5955_v17, %v4029_v37  ;;  %v11663_v37 = vld [vmem:[#allocation20 + $0x69c] sm:$0xf0] }
 0x8b8   :  { %v5982_v53 = vadd.f32 %v5981_v52, %v5968_v23  ;;  %v11486_v52 = vor.u32 %v12712_v22, %v11483_v51  ;;  %v11666_v17 = vor.u32 %v12757_v19, %v11663_v37  ;;  %v12706_v23 = vld [vmem:[#allocation20 + $0x4fc] sm:$0xf]  ;;  %v12727_v22 = vld [vmem:[#allocation20 + $0x5a4] sm:$0xf]  ;;  %v11543_v51 = vld [vmem:[#allocation20 + $0x5ac] sm:$0xf0] }
 0x8b9   :  { %v11435_v37 = vld [vmem:[#allocation20 + $0x4d4] sm:$0xf0] }
 0x8ba   :  { %8176 = vmatpush.bf16.msrb.mxu3 %v11270_v16  ;;  %8190 = vmatpush.bf16.msra.mxu0 %v11366_v18  ;;  %v5969_v16 = vpop.f32.mrf.mxu1  ;;  %v11318_v18 = vor.u32 %v12670_v25, %v11315_v46  ;;  %v5997_v11 = vmax.f32 %v5982_v53, 0.0  ;;  %v11474_v25 = vor.u32 %v12709_v61, %v11471_v28  ;;  %v11570_v46 = vor.u32 %v12733_v47, %v11567_v13  ;;  %v12778_v53 = vld [vmem:[#allocation20 + $0x73c] sm:$0xf]  ;;  %v11723_v61 = vld [vmem:[#allocation20 + $0x714] sm:$0xf0] }
 0x8bb   :  { %8140 = vmatmul.bf16.vlgmr.msrb.gmra.mxu0 %v14061_v32  ;;  %v5970_v14 = vadd.f32 %v5969_v16, %v5956_v20  ;;  %v11774_v20 = vor.u32 %v12784_v26, %v11771_v56  ;;  %v12745_v56 = vld [vmem:[#allocation20 + $0x634] sm:$0xf]  ;;  %v11423_v13 = vld [vmem:[#allocation20 + $0x4bc] sm:$0xf0] }
 0x8bc   :  { %v5941_v42 = vpop.f32.mrf.mxu3  ;;  %v12697_v28 = vld [vmem:[#allocation20 + $0x4b4] sm:$0xf] }
 0x8bd   :  { %v5942_v7 = vadd.f32 %v5941_v42, %v5928_v1  ;;  %v12730_v1 = vld [vmem:[#allocation20 + $0x5bc] sm:$0xf] }
 0x8be   :  { %8177 = vmatpush.bf16.msrb.mxu3 %v11258_v39  ;;  %8191 = vmatpush.bf16.msra.mxu0 %v11354_v50  ;;  %v11210_v39 = vor.u32 %v12643_v21, %v11207_v3  ;;  %v11579_v50 = vld [vmem:[#allocation20 + $0x5f4] sm:$0xf0]  ;;  %v11459_v3 = vld [vmem:[#allocation20 + $0x504] sm:$0xf0] }
 0x8bf   :  { %v5983_v36 = vpop.f32.mrf.mxu2  ;;  %v6008_v63 = vmax.f32 %v5942_v7, 0.0  ;;  %v11462_v42 = vor.u32 %v12706_v23, %v11459_v3  ;;  %v12703_v7 = vld [vmem:[#allocation20 + $0x4e4] sm:$0xf]  ;;  %v11426_v23 = vor.u32 %v12697_v28, %v11423_v13  ;;  %v12694_v3 = vld [vmem:[#allocation20 + $0x49c] sm:$0xf] }
 0x8c0   :  { %v5984_v62 = vadd.f32 %v5983_v36, %v5970_v14  ;;  %v11747_v14 = vld [vmem:[#allocation20 + $0x744] sm:$0xf0]  ;;  %v11642_v36 = vor.u32 %v12751_v10, %v11639_v29  ;;  %v12805_v13 = vld [vmem:[#allocation20 + $0x814] sm:$0xf] }
 0x8c1   :  { %v11507_v10 = vld [vmem:[#allocation20 + $0x564] sm:$0xf0] }
 0x8c2   :  { %8178 = vmatpush.bf16.msrb.mxu3 %v11246_v9  ;;  %8192 = vmatpush.bf16.msra.mxu0 %v11342_v31  ;;  %v5996_v9 = vmax.f32 %v5940_v43, 0.0  ;;  %v6009_v40 = vmax.f32 %v5984_v62, 0.0  ;;  %v11555_v43 = vld [vmem:[#allocation20 + $0x5c4] sm:$0xf0]  ;;  %v12748_v62 = vld [vmem:[#allocation20 + $0x64c] sm:$0xf] }
 0x8c4   :  { %v14140_v31 = vpack.c.bf16 %v6008_v63, %v5996_v9  ;;  %v14142_v4 = vpack.c.bf16 %v6009_v40, %v5997_v11  ;;  %v11546_v9 = vor.u32 %v12727_v22, %v11543_v51  ;;  %v12700_v63 = vld [vmem:[#allocation20 + $0x4cc] sm:$0xf]  ;;  %v11531_v40 = vld [vmem:[#allocation20 + $0x594] sm:$0xf0]  ;;  %v12691_v51 = vld [vmem:[#allocation20 + $0x484] sm:$0xf] }
 0x8c5   :  { %v12724_v11 = vld [vmem:[#allocation20 + $0x58c] sm:$0xf] }
 0x8c6   :  { %8179 = vmatpush.bf16.msrb.mxu3 %v11234_v2  ;;  %8193 = vmatpush.bf16.msra.mxu0 %v11330_v12  ;;  %v11582_v2 = vor.u32 %v12736_v33, %v11579_v50  ;;  %v12754_v12 = vld [vmem:[#allocation20 + $0x67c] sm:$0xf]  ;;  %v11750_v33 = vor.u32 %v12778_v53, %v11747_v14  ;;  %v12775_v50 = vld [vmem:[#allocation20 + $0x724] sm:$0xf]  ;;  %v11591_v14 = vld [vmem:[#allocation20 + $0x60c] sm:$0xf0] }
 0x8c7   :  { %8098 = vmatmul.bf16.vlgmr.msra.gmra.mxu1 %v14140_v31  ;;  %8112 = vmatmul.bf16.vlgmr.msrb.gmra.mxu2 %v14142_v4  ;;  %v11654_v21 = vor.u32 %v12754_v12, %v11651_v45  ;;  %v11738_v26 = vor.u32 %v12775_v50, %v11735_v8  ;;  %v11519_v12 = vld [vmem:[#allocation20 + $0x57c] sm:$0xf0]  ;;  %v12739_v53 = vld [vmem:[#allocation20 + $0x604] sm:$0xf]  ;;  %v11495_v50 = vld [vmem:[#allocation20 + $0x54c] sm:$0xf0] }
 0x8c8   :  { %8202 = vmatpush.bf16.msra.mxu1 %v11486_v52  ;;  %8216 = vmatpush.bf16.msrb.mxu2 %v11582_v2  ;;  %v11615_v52 = vld [vmem:[#allocation20 + $0x63c] sm:$0xf0]  ;;  %v12772_v2 = vld [vmem:[#allocation20 + $0x70c] sm:$0xf] }
 0x8c9   :  { %v11618_v47 = vor.u32 %v12745_v56, %v11615_v52  ;;  %v11726_v45 = vor.u32 %v12772_v2, %v11723_v61  ;;  %v12808_v8 = vld [vmem:[#allocation20 + $0x82c] sm:$0xf]  ;;  %v12567_v2 = vld [vmem:[#allocation20 + $0xa0] sm:$0xf0]  ;;  %v11009_v61 = vld [vmem:[#allocation20 + $0x170] sm:$0xf] }
 0x8ca   :  { %8180 = vmatpush.bf16.msrb.mxu3 %v11222_v49  ;;  %8194 = vmatpush.bf16.msra.mxu0 %v11318_v18  ;;  %v11759_v49 = vld [vmem:[#allocation20 + $0x75c] sm:$0xf0]  ;;  %v11558_v18 = vor.u32 %v12730_v1, %v11555_v43  ;;  %v11411_v43 = vld [vmem:[#allocation20 + $0x4a4] sm:$0xf0] }
 0x8cb   :  { %v11762_v16 = vor.u32 %v12781_v30, %v11759_v49  ;;  %v12742_v30 = vld [vmem:[#allocation20 + $0x61c] sm:$0xf]  ;;  %v11603_v49 = vld [vmem:[#allocation20 + $0x624] sm:$0xf0] }
 0x8cc   :  { %8203 = vmatpush.bf16.msra.mxu1 %v11474_v25  ;;  %8217 = vmatpush.bf16.msrb.mxu2 %v11570_v46  ;;  %v12769_v25 = vld [vmem:[#allocation20 + $0x6f4] sm:$0xf]  ;;  %v11711_v46 = vld [vmem:[#allocation20 + $0x6fc] sm:$0xf0]  ;;  %v11606_v1 = vor.u32 %v12742_v30, %v11603_v49 }
 0x8cd   :  { %v11714_v29 = vor.u32 %v12769_v25, %v11711_v46  ;;  %v12829_v30 = vld [vmem:[#allocation20 + $0x8d4] sm:$0xf]  ;;  %v11951_v49 = vld [vmem:[#allocation20 + $0x8dc] sm:$0xf0]  ;;  %v12564_v46 = vld [vmem:[#allocation20 + $0x88] sm:$0xf0] }
 0x8ce   :  { %8181 = vmatpush.bf16.msrb.mxu3 %v11210_v39  ;;  %8195 = vmatpush.bf16.msra.mxu0 %v11306_v55  ;;  %v11447_v39 = vld [vmem:[#allocation20 + $0x4ec] sm:$0xf0]  ;;  %v11438_v55 = vor.u32 %v12700_v63, %v11435_v37  ;;  %v11867_v63 = vld [vmem:[#allocation20 + $0x834] sm:$0xf0]  ;;  %v10889_v25 = vld [vmem:[#allocation20 + $0x80] sm:$0xf] }
 0x8cf   :  { %v11450_v60 = vor.u32 %v12703_v7, %v11447_v39  ;;  %v10913_v7 = vld [vmem:[#allocation20 + $0xb0] sm:$0xf]  ;;  %v11414_v39 = vor.u32 %v12694_v3, %v11411_v43  ;;  %v11963_v37 = vld [vmem:[#allocation20 + $0x8f4] sm:$0xf0]  ;;  %v12802_v43 = vld [vmem:[#allocation20 + $0x7fc] sm:$0xf] }
 0x8d0   :  { %8204 = vmatpush.bf16.msra.mxu1 %v11462_v42  ;;  %8218 = vmatpush.bf16.msrb.mxu2 %v11558_v18  ;;  %v12766_v42 = vld [vmem:[#allocation20 + $0x6dc] sm:$0xf]  ;;  %v11699_v18 = vld [vmem:[#allocation20 + $0x6e4] sm:$0xf0] }
 0x8d1   :  { %8182 = vmatmul.bf16.vlgmr.msrb.gmra.mxu3 %v14108_v5  ;;  %8196 = vmatmul.bf16.vlgmr.msra.gmra.mxu0 %v14114_v0 }
 0x8d2   :  { %8230 = vmatpush.bf16.msra.mxu3 %v11678_v58  ;;  %8244 = vmatpush.bf16.msrb.mxu0 %v11774_v20  ;;  %v11627_v58 = vld [vmem:[#allocation20 + $0x654] sm:$0xf0]  ;;  %v12721_v20 = vld [vmem:[#allocation20 + $0x574] sm:$0xf] }
 0x8d3   :  { %v11630_v19 = vor.u32 %v12748_v62, %v11627_v58  ;;  %v11594_v62 = vor.u32 %v12739_v53, %v11591_v14  ;;  %v12715_v58 = vld [vmem:[#allocation20 + $0x544] sm:$0xf]  ;;  %v12826_v53 = vld [vmem:[#allocation20 + $0x8bc] sm:$0xf]  ;;  %v11939_v14 = vld [vmem:[#allocation20 + $0x8c4] sm:$0xf0] }
 0x8d4   :  { %8205 = vmatpush.bf16.msra.mxu1 %v11450_v60  ;;  %8219 = vmatpush.bf16.msrb.mxu2 %v11546_v9  ;;  %v11702_v60 = vor.u32 %v12766_v42, %v11699_v18  ;;  %v11498_v52 = vor.u32 %v12715_v58, %v11495_v50  ;;  %v10877_v42 = vld [vmem:[#allocation20 + $0x68] sm:$0xf]  ;;  %v12561_v18 = vld [vmem:[#allocation20 + $0x70] sm:$0xf0]  ;;  %v12823_v50 = vld [vmem:[#allocation20 + $0x8a4] sm:$0xf] }
 0x8d6   :  { %8231 = vmatpush.bf16.msra.mxu3 %v11666_v17  ;;  %8245 = vmatpush.bf16.msrb.mxu0 %v11762_v16  ;;  %v11534_v17 = vor.u32 %v12724_v11, %v11531_v40  ;;  %v12718_v16 = vld [vmem:[#allocation20 + $0x55c] sm:$0xf]  ;;  %v12763_v11 = vld [vmem:[#allocation20 + $0x6c4] sm:$0xf]  ;;  %v11687_v40 = vld [vmem:[#allocation20 + $0x6cc] sm:$0xf0] }
 0x8d7   :  { %8154 = vmatmul.bf16.vlgmr.msrb.gmra.mxu1 %v14065_v15  ;;  %8168 = vmatmul.bf16.vlgmr.msra.gmra.mxu2 %v14068_v57  ;;  %v11510_v22 = vor.u32 %v12718_v16, %v11507_v10  ;;  %v11843_v16 = vld [vmem:[#allocation20 + $0x804] sm:$0xf0]  ;;  %v10890_v10 = vor.u32 %v12564_v46, %v10889_v25  ;;  %v12817_v25 = vld [vmem:[#allocation20 + $0x874] sm:$0xf]  ;;  %v11903_v46 = vld [vmem:[#allocation20 + $0x87c] sm:$0xf0] }
 0x8d8   :  { %8206 = vmatpush.bf16.msra.mxu1 %v11438_v55  ;;  %8220 = vmatpush.bf16.msrb.mxu2 %v11534_v17  ;;  %v12594_v55 = vld [vmem:[#allocation20 + $0x178] sm:$0xf0]  ;;  %v11870_v17 = vor.u32 %v12808_v8, %v11867_v63  ;;  %v11927_v8 = vld [vmem:[#allocation20 + $0x8ac] sm:$0xf0]  ;;  %v10973_v63 = vld [vmem:[#allocation20 + $0x128] sm:$0xf] }
 0x8da   :  { %8232 = vmatpush.bf16.msra.mxu3 %v11654_v21  ;;  %8246 = vmatpush.bf16.msrb.mxu0 %v11750_v33  ;;  %v11522_v21 = vor.u32 %v12721_v20, %v11519_v12  ;;  %v11399_v33 = vld [vmem:[#allocation20 + $0x48c] sm:$0xf0]  ;;  %v11855_v20 = vld [vmem:[#allocation20 + $0x81c] sm:$0xf0] }
 0x8db   :  { %v11402_v56 = vor.u32 %v12691_v51, %v11399_v33  ;;  %v11858_v3 = vor.u32 %v12805_v13, %v11855_v20  ;;  %v12799_v51 = vld [vmem:[#allocation20 + $0x7e4] sm:$0xf]  ;;  %v11831_v33 = vld [vmem:[#allocation20 + $0x7ec] sm:$0xf0] }
 0x8dc   :  { %8207 = vmatpush.bf16.msra.mxu1 %v11426_v23  ;;  %8221 = vmatpush.bf16.msrb.mxu2 %v11522_v21  ;;  %v10997_v23 = vld [vmem:[#allocation20 + $0x158] sm:$0xf]  ;;  %v12591_v21 = vld [vmem:[#allocation20 + $0x160] sm:$0xf0] }
 0x8de   :  { %8233 = vmatpush.bf16.msra.mxu3 %v11642_v36  ;;  %8247 = vmatpush.bf16.msrb.mxu0 %v11738_v26  ;;  %v12570_v36 = vld [vmem:[#allocation20 + $0xb8] sm:$0xf0]  ;;  %v10901_v26 = vld [vmem:[#allocation20 + $0x98] sm:$0xf] }
 0x8df   :  { %v10914_v9 = vor.u32 %v12570_v36, %v10913_v7  ;;  %v10902_v12 = vor.u32 %v12567_v2, %v10901_v26  ;;  %v10985_v7 = vld [vmem:[#allocation20 + $0x140] sm:$0xf]  ;;  %v12588_v36 = vld [vmem:[#allocation20 + $0x148] sm:$0xf0]  ;;  %v11819_v26 = vld [vmem:[#allocation20 + $0x7d4] sm:$0xf0] }
 0x8e0   :  { %8208 = vmatpush.bf16.msra.mxu1 %v11414_v39  ;;  %8222 = vmatpush.bf16.msrb.mxu2 %v11510_v22  ;;  %v11846_v39 = vor.u32 %v12802_v43, %v11843_v16  ;;  %v11942_v22 = vor.u32 %v12826_v53, %v11939_v14  ;;  %v10986_v58 = vor.u32 %v12588_v36, %v10985_v7  ;;  %v12820_v2 = vld [vmem:[#allocation20 + $0x88c] sm:$0xf]  ;;  %v10829_v7 = vld [vmem:[#allocation20 + $0x8] sm:$0xf]  ;;  %v12549_v36 = vld [vmem:[#allocation20 + $0x10] sm:$0xf0] }
 0x8e1   :  { %v11906_v16 = vor.u32 %v12817_v25, %v11903_v46  ;;  %v12615_v25 = vld [vmem:[#allocation20 + $0x220] sm:$0xf0]  ;;  %v11189_v46 = vld [vmem:[#allocation20 + $0x2d8] sm:$0xf] }
 0x8e2   :  { %8234 = vmatpush.bf16.msra.mxu3 %v11630_v19  ;;  %8248 = vmatpush.bf16.msrb.mxu0 %v11726_v45  ;;  %v12832_v19 = vld [vmem:[#allocation20 + $0x8ec] sm:$0xf]  ;;  %v11010_v45 = vor.u32 %v12594_v55, %v11009_v61  ;;  %v11915_v61 = vld [vmem:[#allocation20 + $0x894] sm:$0xf0] }
 0x8e3   :  { %v11966_v28 = vor.u32 %v12832_v19, %v11963_v37  ;;  %v12585_v19 = vld [vmem:[#allocation20 + $0x130] sm:$0xf0]  ;;  %v11834_v37 = vor.u32 %v12799_v51, %v11831_v33  ;;  %v10853_v55 = vld [vmem:[#allocation20 + $0x38] sm:$0xf]  ;;  %v11918_v20 = vor.u32 %v12820_v2, %v11915_v61  ;;  %v11297_v33 = vld [vmem:[#allocation20 + $0x3b0] sm:$0xf] }
 0x8e4   :  { %8209 = vmatpush.bf16.msra.mxu1 %v11402_v56  ;;  %8223 = vmatpush.bf16.msrb.mxu2 %v11498_v52  ;;  %v10974_v52 = vor.u32 %v12585_v19, %v10973_v63  ;;  %v11879_v19 = vld [vmem:[#allocation20 + $0x84c] sm:$0xf0]  ;;  %v12573_v61 = vld [vmem:[#allocation20 + $0xd0] sm:$0xf0] }
 0x8e6   :  { %8235 = vmatpush.bf16.msra.mxu3 %v11618_v47  ;;  %8249 = vmatpush.bf16.msrb.mxu0 %v11714_v29  ;;  %v11690_v47 = vor.u32 %v12763_v11, %v11687_v40  ;;  %v10998_v29 = vor.u32 %v12591_v21, %v10997_v23  ;;  %v11930_v11 = vor.u32 %v12823_v50, %v11927_v8  ;;  %v12796_v40 = vld [vmem:[#allocation20 + $0x7cc] sm:$0xf]  ;;  %v10841_v23 = vld [vmem:[#allocation20 + $0x20] sm:$0xf]  ;;  %v12787_v50 = vld [vmem:[#allocation20 + $0x784] sm:$0xf] }
 0x8e7   :  { %8210 = vmatmul.bf16.vlgmr.msra.gmra.mxu1 %v14110_v27  ;;  %8224 = vmatmul.bf16.vlgmr.msrb.gmra.mxu2 %v14112_v34  ;;  %v11822_v13 = vor.u32 %v12796_v40, %v11819_v26  ;;  %v12552_v21 = vld [vmem:[#allocation20 + $0x28] sm:$0xf0]  ;;  %v11783_v8 = vld [vmem:[#allocation20 + $0x78c] sm:$0xf0] }
 0x8e8   :  { %8258 = vmatpush.bf16.msrb.mxu1 %v11870_v17  ;;  %8272 = vmatpush.bf16.msra.mxu2 %v11966_v28  ;;  %v12555_v17 = vld [vmem:[#allocation20 + $0x40] sm:$0xf0]  ;;  %v10961_v28 = vld [vmem:[#allocation20 + $0x110] sm:$0xf]  ;;  %v10842_v53 = vor.u32 %v12552_v21, %v10841_v23  ;;  %v11786_v2 = vor.u32 %v12787_v50, %v11783_v8  ;;  %v11273_v21 = vld [vmem:[#allocation20 + $0x380] sm:$0xf] }
 0x8e9   :  { %v11201_v26 = vld [vmem:[#allocation20 + $0x2f0] sm:$0xf]  ;;  %v12639_v23 = vld [vmem:[#allocation20 + $0x2e0] sm:$0xf0]  ;;  %v11069_v50 = vld [vmem:[#allocation20 + $0x1e8] sm:$0xf] }
 0x8ea   :  { %8236 = vmatpush.bf16.msra.mxu3 %v11606_v1  ;;  %8250 = vmatpush.bf16.msrb.mxu0 %v11702_v60  ;;  %v11954_v1 = vor.u32 %v12829_v30, %v11951_v49  ;;  %v10865_v60 = vld [vmem:[#allocation20 + $0x50] sm:$0xf]  ;;  %v10854_v30 = vor.u32 %v12555_v17, %v10853_v55  ;;  %v11285_v55 = vld [vmem:[#allocation20 + $0x398] sm:$0xf]  ;;  %v12663_v17 = vld [vmem:[#allocation20 + $0x3a0] sm:$0xf0] }
 0x8eb   :  { %v12609_v8 = vld [vmem:[#allocation20 + $0x1f0] sm:$0xf0] }
 0x8ec   :  { %8259 = vmatpush.bf16.msrb.mxu1 %v11858_v3  ;;  %8273 = vmatpush.bf16.msra.mxu2 %v11954_v1  ;;  %v10949_v3 = vld [vmem:[#allocation20 + $0xf8] sm:$0xf]  ;;  %v12579_v1 = vld [vmem:[#allocation20 + $0x100] sm:$0xf0] }
 0x8ed   :  { %v10950_v14 = vor.u32 %v12579_v1, %v10949_v3  ;;  %v12660_v3 = vld [vmem:[#allocation20 + $0x388] sm:$0xf0] }
 0x8ee   :  { %8237 = vmatpush.bf16.msra.mxu3 %v11594_v62  ;;  %8251 = vmatpush.bf16.msrb.mxu0 %v11690_v47  ;;  %v10878_v62 = vor.u32 %v12561_v18, %v10877_v42  ;;  %v12582_v47 = vld [vmem:[#allocation20 + $0x118] sm:$0xf0]  ;;  %v11891_v18 = vld [vmem:[#allocation20 + $0x864] sm:$0xf0] }
 0x8ef   :  { %v10962_v49 = vor.u32 %v12582_v47, %v10961_v28  ;;  %v12814_v42 = vld [vmem:[#allocation20 + $0x85c] sm:$0xf] }
 0x8f0   :  { %8260 = vmatpush.bf16.msrb.mxu1 %v11846_v39  ;;  %8274 = vmatpush.bf16.msra.mxu2 %v11942_v22  ;;  %v10937_v39 = vld [vmem:[#allocation20 + $0xe0] sm:$0xf]  ;;  %v12576_v22 = vld [vmem:[#allocation20 + $0xe8] sm:$0xf0] }
 0x8f1   :  { %8238 = vmatmul.bf16.vlgmr.msra.gmra.mxu3 %v14123_v41  ;;  %8252 = vmatmul.bf16.vlgmr.msrb.gmra.mxu0 %v14131_v24  ;;  %v10938_v63 = vor.u32 %v12576_v22, %v10937_v39 }
 0x8f2   :  { %8286 = vmatpush.bf16.msrb.mxu3 %v10914_v9  ;;  %8300 = vmatpush.bf16.msra.mxu0 %v11010_v45  ;;  %v12558_v9 = vld [vmem:[#allocation20 + $0x58] sm:$0xf0]  ;;  %v11807_v45 = vld [vmem:[#allocation20 + $0x7bc] sm:$0xf0] }
 0x8f3   :  { %v10866_v56 = vor.u32 %v12558_v9, %v10865_v60  ;;  %v12811_v60 = vld [vmem:[#allocation20 + $0x844] sm:$0xf]  ;;  %v10830_v9 = vor.u32 %v12549_v36, %v10829_v7  ;;  %v12636_v7 = vld [vmem:[#allocation20 + $0x2c8] sm:$0xf0]  ;;  %v11261_v36 = vld [vmem:[#allocation20 + $0x368] sm:$0xf] }
 0x8f4   :  { %8261 = vmatpush.bf16.msrb.mxu1 %v11834_v37  ;;  %8275 = vmatpush.bf16.msra.mxu2 %v11930_v11  ;;  %v11105_v37 = vld [vmem:[#allocation20 + $0x230] sm:$0xf]  ;;  %v12618_v11 = vld [vmem:[#allocation20 + $0x238] sm:$0xf0]  ;;  %v11882_v28 = vor.u32 %v12811_v60, %v11879_v19  ;;  %v11165_v60 = vld [vmem:[#allocation20 + $0x2a8] sm:$0xf] }
 0x8f5   :  { %v11106_v47 = vor.u32 %v12618_v11, %v11105_v37  ;;  %v12654_v19 = vld [vmem:[#allocation20 + $0x358] sm:$0xf0]  ;;  %v11070_v11 = vor.u32 %v12609_v8, %v11069_v50  ;;  %v11021_v50 = vld [vmem:[#allocation20 + $0x188] sm:$0xf] }
 0x8f6   :  { %8287 = vmatpush.bf16.msrb.mxu3 %v10902_v12  ;;  %8301 = vmatpush.bf16.msra.mxu0 %v10998_v29  ;;  %v12793_v12 = vld [vmem:[#allocation20 + $0x7b4] sm:$0xf]  ;;  %v11795_v29 = vld [vmem:[#allocation20 + $0x7a4] sm:$0xf0] }
 0x8f7   :  { %v11810_v43 = vor.u32 %v12793_v12, %v11807_v45  ;;  %v12690_v12 = vld [vmem:[#allocation20 + $0x478] sm:$0xf0] }
 0x8f8   :  { %8262 = vmatpush.bf16.msrb.mxu1 %v11822_v13  ;;  %8276 = vmatpush.bf16.msra.mxu2 %v11918_v20  ;;  %v11393_v20 = vld [vmem:[#allocation20 + $0x470] sm:$0xf] }
 0x8f9   :  { %v11394_v1 = vor.u32 %v12690_v12, %v11393_v20  ;;  %v11345_v20 = vld [vmem:[#allocation20 + $0x410] sm:$0xf]  ;;  %v12678_v12 = vld [vmem:[#allocation20 + $0x418] sm:$0xf0] }
 0x8fa   :  { %8288 = vmatpush.bf16.msrb.mxu3 %v10890_v10  ;;  %8302 = vmatpush.bf16.msra.mxu0 %v10986_v58  ;;  %v12790_v10 = vld [vmem:[#allocation20 + $0x79c] sm:$0xf]  ;;  %v11894_v58 = vor.u32 %v12814_v42, %v11891_v18  ;;  %v12612_v42 = vld [vmem:[#allocation20 + $0x208] sm:$0xf0]  ;;  %v11177_v18 = vld [vmem:[#allocation20 + $0x2c0] sm:$0xf] }
 0x8fb   :  { %v11798_v51 = vor.u32 %v12790_v10, %v11795_v29  ;;  %v12687_v10 = vld [vmem:[#allocation20 + $0x460] sm:$0xf0]  ;;  %v11190_v29 = vor.u32 %v12639_v23, %v11189_v46  ;;  %v11141_v46 = vld [vmem:[#allocation20 + $0x278] sm:$0xf] }
 0x8fc   :  { %8263 = vmatpush.bf16.msrb.mxu1 %v11810_v43  ;;  %8277 = vmatpush.bf16.msra.mxu2 %v11906_v16  ;;  %v11381_v16 = vld [vmem:[#allocation20 + $0x458] sm:$0xf]  ;;  %v12627_v23 = vld [vmem:[#allocation20 + $0x280] sm:$0xf0] }
 0x8fd   :  { %v11382_v39 = vor.u32 %v12687_v10, %v11381_v16  ;;  %v11333_v16 = vld [vmem:[#allocation20 + $0x3f8] sm:$0xf]  ;;  %v12675_v10 = vld [vmem:[#allocation20 + $0x400] sm:$0xf0] }
 0x8fe   :  { %8289 = vmatpush.bf16.msrb.mxu3 %v10878_v62  ;;  %8303 = vmatpush.bf16.msra.mxu0 %v10974_v52  ;;  %v12666_v62 = vld [vmem:[#allocation20 + $0x3b8] sm:$0xf0]  ;;  %v10925_v52 = vld [vmem:[#allocation20 + $0xc8] sm:$0xf] }
 0x8ff   :  { %v11298_v40 = vor.u32 %v12666_v62, %v11297_v33  ;;  %v10926_v45 = vor.u32 %v12573_v61, %v10925_v52  ;;  %v12684_v33 = vld [vmem:[#allocation20 + $0x448] sm:$0xf0]  ;;  %v11178_v62 = vor.u32 %v12636_v7, %v11177_v18  ;;  %v11057_v52 = vld [vmem:[#allocation20 + $0x1d0] sm:$0xf]  ;;  %v11129_v18 = vld [vmem:[#allocation20 + $0x260] sm:$0xf] }
 0x900   :  { %8264 = vmatpush.bf16.msrb.mxu1 %v11798_v51  ;;  %8278 = vmatpush.bf16.msra.mxu2 %v11894_v58  ;;  %v11369_v51 = vld [vmem:[#allocation20 + $0x440] sm:$0xf]  ;;  %v11153_v61 = vld [vmem:[#allocation20 + $0x290] sm:$0xf]  ;;  %v12624_v7 = vld [vmem:[#allocation20 + $0x268] sm:$0xf0] }
 0x901   :  { %v11370_v37 = vor.u32 %v12684_v33, %v11369_v51  ;;  %v12762_v51 = vld [vmem:[#allocation20 + $0x6b8] sm:$0xf0]  ;;  %v11130_v8 = vor.u32 %v12624_v7, %v11129_v18  ;;  %v11465_v18 = vld [vmem:[#allocation20 + $0x500] sm:$0xf]  ;;  %v12708_v7 = vld [vmem:[#allocation20 + $0x508] sm:$0xf0] }
 0x902   :  { %8290 = vmatpush.bf16.msrb.mxu3 %v10866_v56  ;;  %8304 = vmatpush.bf16.msra.mxu0 %v10962_v49  ;;  %v12642_v56 = vld [vmem:[#allocation20 + $0x2f8] sm:$0xf0]  ;;  %v11093_v49 = vld [vmem:[#allocation20 + $0x218] sm:$0xf] }
 0x903   :  { %v11202_v13 = vor.u32 %v12642_v56, %v11201_v26  ;;  %v11094_v43 = vor.u32 %v12615_v25, %v11093_v49  ;;  %v11045_v49 = vld [vmem:[#allocation20 + $0x1b8] sm:$0xf]  ;;  %v12603_v25 = vld [vmem:[#allocation20 + $0x1c0] sm:$0xf0] }
 0x904   :  { %8265 = vmatpush.bf16.msrb.mxu1 %v11786_v2  ;;  %8279 = vmatpush.bf16.msra.mxu2 %v11882_v28  ;;  %v12606_v2 = vld [vmem:[#allocation20 + $0x1d8] sm:$0xf0]  ;;  %v12651_v28 = vld [vmem:[#allocation20 + $0x340] sm:$0xf0] }
 0x906   :  { %8291 = vmatpush.bf16.msrb.mxu3 %v10854_v30  ;;  %8305 = vmatpush.bf16.msra.mxu0 %v10950_v14  ;;  %v11286_v30 = vor.u32 %v12663_v17, %v11285_v55  ;;  %v11081_v14 = vld [vmem:[#allocation20 + $0x200] sm:$0xf]  ;;  %v12630_v55 = vld [vmem:[#allocation20 + $0x298] sm:$0xf0]  ;;  %v11237_v17 = vld [vmem:[#allocation20 + $0x338] sm:$0xf] }
 0x907   :  { %8266 = vmatmul.bf16.vlgmr.msrb.gmra.mxu1 %v14140_v31  ;;  %8280 = vmatmul.bf16.vlgmr.msra.gmra.mxu2 %v14142_v4  ;;  %v11082_v22 = vor.u32 %v12612_v42, %v11081_v14  ;;  %v11033_v14 = vld [vmem:[#allocation20 + $0x1a0] sm:$0xf]  ;;  %v12600_v42 = vld [vmem:[#allocation20 + $0x1a8] sm:$0xf0] }
 0x908   :  { %8314 = vmatpush.bf16.msra.mxu1 %v11106_v47  ;;  %8328 = vmatpush.bf16.msrb.mxu2 %v11202_v13  ;;  %v11058_v13 = vor.u32 %v12606_v2, %v11057_v52  ;;  %v11034_v33 = vor.u32 %v12600_v42, %v11033_v14  ;;  %v11669_v52 = vld [vmem:[#allocation20 + $0x698] sm:$0xf]  ;;  %v12759_v2 = vld [vmem:[#allocation20 + $0x6a0] sm:$0xf0]  ;;  %v14163_v14 = vpop.f32.mrf.mxu1 }
 0x90a   :  { %8292 = vmatpush.bf16.msrb.mxu3 %v10842_v53  ;;  %8306 = vmatpush.bf16.msra.mxu0 %v10938_v63  ;;  %v11274_v53 = vor.u32 %v12660_v3, %v11273_v21  ;;  %v11249_v63 = vld [vmem:[#allocation20 + $0x350] sm:$0xf]  ;;  %v11225_v21 = vld [vmem:[#allocation20 + $0x320] sm:$0xf]  ;;  %v12648_v3 = vld [vmem:[#allocation20 + $0x328] sm:$0xf0] }
 0x90b   :  { %v11250_v56 = vor.u32 %v12654_v19, %v11249_v63  ;;  %v11117_v63 = vld [vmem:[#allocation20 + $0x248] sm:$0xf]  ;;  %v12621_v19 = vld [vmem:[#allocation20 + $0x250] sm:$0xf0] }
 0x90c   :  { %8315 = vmatpush.bf16.msra.mxu1 %v11094_v43  ;;  %8329 = vmatpush.bf16.msrb.mxu2 %v11190_v29  ;;  %v11046_v43 = vor.u32 %v12603_v25, %v11045_v49  ;;  %v11142_v29 = vor.u32 %v12627_v23, %v11141_v46  ;;  %v11477_v49 = vld [vmem:[#allocation20 + $0x518] sm:$0xf]  ;;  %v12711_v25 = vld [vmem:[#allocation20 + $0x520] sm:$0xf0] }
 0x90d   :  { %v11573_v23 = vld [vmem:[#allocation20 + $0x5d8] sm:$0xf] }
 0x90e   :  { %8293 = vmatpush.bf16.msrb.mxu3 %v10830_v9  ;;  %8307 = vmatpush.bf16.msra.mxu0 %v10926_v45  ;;  %v12633_v9 = vld [vmem:[#allocation20 + $0x2b0] sm:$0xf0]  ;;  %v11154_v45 = vor.u32 %v12630_v55, %v11153_v61  ;;  %v11309_v55 = vld [vmem:[#allocation20 + $0x3c8] sm:$0xf] }
 0x90f   :  { %v11166_v26 = vor.u32 %v12633_v9, %v11165_v60  ;;  %v12597_v9 = vld [vmem:[#allocation20 + $0x190] sm:$0xf0] }
 0x910   :  { %8316 = vmatpush.bf16.msra.mxu1 %v11082_v22  ;;  %8330 = vmatpush.bf16.msrb.mxu2 %v11178_v62  ;;  %v11681_v22 = vld [vmem:[#allocation20 + $0x6b0] sm:$0xf]  ;;  %v11321_v62 = vld [vmem:[#allocation20 + $0x3e0] sm:$0xf]  ;;  %v11022_v61 = vor.u32 %v12597_v9, %v11021_v50  ;;  %v12780_v50 = vld [vmem:[#allocation20 + $0x748] sm:$0xf0] }
 0x911   :  { %8294 = vmatmul.bf16.vlgmr.msrb.gmra.mxu3 %v14055_v35  ;;  %v12657_v35 = vld [vmem:[#allocation20 + $0x370] sm:$0xf0]  ;;  %8308 = vmatmul.bf16.vlgmr.msra.gmra.mxu0 %v14061_v32 }
 0x912   :  { %8342 = vmatpush.bf16.msra.mxu3 %v11298_v40  ;;  %8356 = vmatpush.bf16.msrb.mxu0 %v11394_v1  ;;  %v11262_v58 = vor.u32 %v12657_v35, %v11261_v36  ;;  %v11357_v40 = vld [vmem:[#allocation20 + $0x428] sm:$0xf]  ;;  %v12681_v32 = vld [vmem:[#allocation20 + $0x430] sm:$0xf0]  ;;  %v11346_v1 = vor.u32 %v12678_v12, %v11345_v20  ;;  %v12786_v20 = vld [vmem:[#allocation20 + $0x778] sm:$0xf0]  ;;  %v14158_v12 = vpop.f32.mrf.mxu3 }
 0x913   :  { %v11358_v47 = vor.u32 %v12681_v32, %v11357_v40  ;;  %v11213_v36 = vld [vmem:[#allocation20 + $0x308] sm:$0xf]  ;;  %v12645_v35 = vld [vmem:[#allocation20 + $0x310] sm:$0xf0]  ;;  %v12714_v40 = vld [vmem:[#allocation20 + $0x538] sm:$0xf0] }
 0x914   :  { %8317 = vmatpush.bf16.msra.mxu1 %v11070_v11  ;;  %8331 = vmatpush.bf16.msrb.mxu2 %v11166_v26  ;;  %v11214_v60 = vor.u32 %v12645_v35, %v11213_v36  ;;  %v11489_v11 = vld [vmem:[#allocation20 + $0x530] sm:$0xf]  ;;  %v12732_v35 = vld [vmem:[#allocation20 + $0x5c8] sm:$0xf0] }
 0x915   :  { %v11585_v32 = vld [vmem:[#allocation20 + $0x5f0] sm:$0xf] }
 0x916   :  { %8343 = vmatpush.bf16.msra.mxu3 %v11286_v30  ;;  %8357 = vmatpush.bf16.msrb.mxu0 %v11382_v39  ;;  %v11238_v30 = vor.u32 %v12651_v28, %v11237_v17  ;;  %v11334_v39 = vor.u32 %v12675_v10, %v11333_v16  ;;  %v12669_v17 = vld [vmem:[#allocation20 + $0x3d0] sm:$0xf0]  ;;  %v11118_v28 = vor.u32 %v12621_v19, %v11117_v63  ;;  %v12756_v16 = vld [vmem:[#allocation20 + $0x688] sm:$0xf0]  ;;  %v11549_v19 = vld [vmem:[#allocation20 + $0x5a8] sm:$0xf] }
 0x917   :  { %v11310_v46 = vor.u32 %v12669_v17, %v11309_v55  ;;  %v11478_v10 = vor.u32 %v12711_v25, %v11477_v49  ;;  %v11441_v55 = vld [vmem:[#allocation20 + $0x4d0] sm:$0xf]  ;;  %v12702_v17 = vld [vmem:[#allocation20 + $0x4d8] sm:$0xf0]  ;;  %v11621_v49 = vld [vmem:[#allocation20 + $0x638] sm:$0xf] }
 0x918   :  { %8318 = vmatpush.bf16.msra.mxu1 %v11058_v13  ;;  %8332 = vmatpush.bf16.msrb.mxu2 %v11154_v45  ;;  %v11777_v13 = vld [vmem:[#allocation20 + $0x770] sm:$0xf]  ;;  %v12747_v25 = vld [vmem:[#allocation20 + $0x640] sm:$0xf0] }
 0x91a   :  { %8344 = vmatpush.bf16.msra.mxu3 %v11274_v53  ;;  %8358 = vmatpush.bf16.msrb.mxu0 %v11370_v37  ;;  %v11226_v53 = vor.u32 %v12648_v3, %v11225_v21  ;;  %v11682_v37 = vor.u32 %v12762_v51, %v11681_v22  ;;  %v12735_v21 = vld [vmem:[#allocation20 + $0x5e0] sm:$0xf0]  ;;  %v14160_v3 = vpop.f32.mrf.mxu0  ;;  %v11645_v51 = vld [vmem:[#allocation20 + $0x668] sm:$0xf] }
 0x91b   :  { %v11574_v42 = vor.u32 %v12735_v21, %v11573_v23  ;;  %v11729_v23 = vld [vmem:[#allocation20 + $0x710] sm:$0xf]  ;;  %v12774_v21 = vld [vmem:[#allocation20 + $0x718] sm:$0xf0] }
 0x91c   :  { %8319 = vmatpush.bf16.msra.mxu1 %v11046_v43  ;;  %8333 = vmatpush.bf16.msrb.mxu2 %v11142_v29  ;;  %v11657_v43 = vld [vmem:[#allocation20 + $0x680] sm:$0xf]  ;;  %v11765_v29 = vld [vmem:[#allocation20 + $0x758] sm:$0xf] }
 0x91d   :  { %v11658_v36 = vor.u32 %v12756_v16, %v11657_v43  ;;  %v11429_v43 = vld [vmem:[#allocation20 + $0x4b8] sm:$0xf]  ;;  %v12699_v16 = vld [vmem:[#allocation20 + $0x4c0] sm:$0xf0] }
 0x91e   :  { %8345 = vmatpush.bf16.msra.mxu3 %v11262_v58  ;;  %8359 = vmatpush.bf16.msrb.mxu0 %v11358_v47  ;;  %v12672_v58 = vld [vmem:[#allocation20 + $0x3e8] sm:$0xf0]  ;;  %v11490_v47 = vor.u32 %v12714_v40, %v11489_v11  ;;  %v7961_v11 = vpop.f32.mrf.mxu3 }
 0x91f   :  { %v11322_v26 = vor.u32 %v12672_v58, %v11321_v62  ;;  %v11466_v62 = vor.u32 %v12708_v7, %v11465_v18  ;;  %v11753_v58 = vld [vmem:[#allocation20 + $0x740] sm:$0xf]  ;;  %v11730_v18 = vor.u32 %v12774_v21, %v11729_v23  ;;  %v11693_v23 = vld [vmem:[#allocation20 + $0x6c8] sm:$0xf]  ;;  %v12765_v21 = vld [vmem:[#allocation20 + $0x6d0] sm:$0xf0] }
 0x920   :  { %8320 = vmatpush.bf16.msra.mxu1 %v11034_v33  ;;  %8334 = vmatpush.bf16.msrb.mxu2 %v11130_v8  ;;  %v12753_v33 = vld [vmem:[#allocation20 + $0x670] sm:$0xf0]  ;;  %v11754_v40 = vor.u32 %v12780_v50, %v11753_v58  ;;  %v11609_v7 = vld [vmem:[#allocation20 + $0x620] sm:$0xf]  ;;  %v12696_v50 = vld [vmem:[#allocation20 + $0x4a8] sm:$0xf0] }
 0x921   :  { %v11646_v63 = vor.u32 %v12753_v33, %v11645_v51  ;;  %v11417_v58 = vld [vmem:[#allocation20 + $0x4a0] sm:$0xf] }
 0x922   :  { %8346 = vmatpush.bf16.msra.mxu3 %v11250_v56  ;;  %8360 = vmatpush.bf16.msrb.mxu0 %v11346_v1  ;;  %v12738_v56 = vld [vmem:[#allocation20 + $0x5f8] sm:$0xf0]  ;;  %v11778_v1 = vor.u32 %v12786_v20, %v11777_v13  ;;  %v11537_v13 = vld [vmem:[#allocation20 + $0x590] sm:$0xf] }
 0x923   :  { %v11586_v45 = vor.u32 %v12738_v56, %v11585_v32  ;;  %v11633_v32 = vld [vmem:[#allocation20 + $0x650] sm:$0xf]  ;;  %v12726_v20 = vld [vmem:[#allocation20 + $0x598] sm:$0xf0] }
 0x924   :  { %8321 = vmatpush.bf16.msra.mxu1 %v11022_v61  ;;  %8335 = vmatpush.bf16.msrb.mxu2 %v11118_v28 }
 0x926   :  { %8347 = vmatpush.bf16.msra.mxu3 %v11238_v30  ;;  %8361 = vmatpush.bf16.msrb.mxu0 %v11334_v39  ;;  %v11670_v30 = vor.u32 %v12759_v2, %v11669_v52  ;;  %v14166_v39 = vld [vmem:[#allocation22] sm:$0x7]  ;;  %v12777_v52 = vld [vmem:[#allocation20 + $0x730] sm:$0xf0]  ;;  %v14173_v2 = vpop.f32.mrf.mxu0 }
 0x927   :  { %8322 = vmatmul.bf16.vlgmr.msra.gmra.mxu1 %v14065_v15  ;;  %8336 = vmatmul.bf16.vlgmr.msrb.gmra.mxu2 %v14068_v57  ;;  %v11453_v15 = vld [vmem:[#allocation20 + $0x4e8] sm:$0xf]  ;;  %v6408_v9 = vperm.slane %v14166_v39, 0  ;;  %v12729_v57 = vld [vmem:[#allocation20 + $0x5b0] sm:$0xf0] }
 0x928   :  { %8370 = vmatpush.bf16.msrb.mxu1 %v11490_v47  ;;  %8384 = vmatpush.bf16.msra.mxu2 %v11586_v45  ;;  %v11550_v61 = vor.u32 %v12729_v57, %v11549_v19  ;;  %v14176_v45 = vpop.f32.mrf.mxu1 }
 0x929   :  { %v7960_v28 = vadd.f32 %v14158_v12, %v6408_v9 }
 0x92a   :  { %8348 = vmatpush.bf16.msra.mxu3 %v11226_v53  ;;  %8362 = vmatpush.bf16.msrb.mxu0 %v11322_v26  ;;  %v12783_v53 = vld [vmem:[#allocation20 + $0x760] sm:$0xf0]  ;;  %v12750_v26 = vld [vmem:[#allocation20 + $0x658] sm:$0xf0] }
 0x92b   :  { %v11766_v22 = vor.u32 %v12783_v53, %v11765_v29  ;;  %v11634_v47 = vor.u32 %v12750_v26, %v11633_v32  ;;  %v7974_v12 = vadd.f32 %v14160_v3, %v7960_v28  ;;  %v11525_v29 = vld [vmem:[#allocation20 + $0x578] sm:$0xf]  ;;  %v12723_v53 = vld [vmem:[#allocation20 + $0x580] sm:$0xf0]  ;;  %v12741_v32 = vld [vmem:[#allocation20 + $0x610] sm:$0xf0]  ;;  %v11418_v26 = vor.u32 %v12696_v50, %v11417_v58 }
 0x92c   :  { %8371 = vmatpush.bf16.msrb.mxu1 %v11478_v10  ;;  %8385 = vmatpush.bf16.msra.mxu2 %v11574_v42  ;;  %v11622_v10 = vor.u32 %v12747_v25, %v11621_v49  ;;  %v8015_v42 = vpop.f32.mrf.mxu3  ;;  %v12717_v28 = vld [vmem:[#allocation20 + $0x550] sm:$0xf0]  ;;  %v12834_v49 = vld [vmem:[#allocation20 + $0x8f8] sm:$0xf0]  ;;  %v12804_v58 = vld [vmem:[#allocation20 + $0x808] sm:$0xf0] }
 0x92d   :  { %v7988_v3 = vadd.f32 %v14163_v14, %v7974_v12 }
 0x92e   :  { %8349 = vmatpush.bf16.msra.mxu3 %v11214_v60  ;;  %8363 = vmatpush.bf16.msrb.mxu0 %v11310_v46  ;;  %v12705_v60 = vld [vmem:[#allocation20 + $0x4f0] sm:$0xf0]  ;;  %v11442_v46 = vor.u32 %v12702_v17, %v11441_v55  ;;  %v8029_v33 = vpop.f32.mrf.mxu0  ;;  %v11501_v17 = vld [vmem:[#allocation20 + $0x548] sm:$0xf] }
 0x92f   :  { %v11454_v56 = vor.u32 %v12705_v60, %v11453_v15  ;;  %v11513_v60 = vld [vmem:[#allocation20 + $0x560] sm:$0xf]  ;;  %v12693_v55 = vld [vmem:[#allocation20 + $0x490] sm:$0xf0] }
 0x930   :  { %8372 = vmatpush.bf16.msrb.mxu1 %v11466_v62  ;;  %v11526_v62 = vor.u32 %v12723_v53, %v11525_v29  ;;  %v8043_v19 = vpop.f32.mrf.mxu1  ;;  %v11694_v29 = vor.u32 %v12765_v21, %v11693_v23  ;;  %v11861_v53 = vld [vmem:[#allocation20 + $0x818] sm:$0xf]  ;;  %v12819_v21 = vld [vmem:[#allocation20 + $0x880] sm:$0xf0] }
 0x931   :  { %8350 = vmatmul.bf16.vlgmr.msra.gmra.mxu3 %v14108_v5  ;;  %v11561_v5 = vld [vmem:[#allocation20 + $0x5c0] sm:$0xf]  ;;  %8364 = vmatmul.bf16.vlgmr.msrb.gmra.mxu0 %v14114_v0  ;;  %v11741_v0 = vld [vmem:[#allocation20 + $0x728] sm:$0xf]  ;;  %v11909_v23 = vld [vmem:[#allocation20 + $0x878] sm:$0xf] }
 0x932   :  { %8398 = vmatpush.bf16.msrb.mxu3 %v11682_v37  ;;  %8412 = vmatpush.bf16.msra.mxu0 %v11778_v1  ;;  %v11562_v8 = vor.u32 %v12732_v35, %v11561_v5  ;;  %v14171_v37 = vpop.f32.mrf.mxu2  ;;  %v11538_v1 = vor.u32 %v12726_v20, %v11537_v13  ;;  %v11430_v5 = vor.u32 %v12699_v16, %v11429_v43  ;;  %v11717_v35 = vld [vmem:[#allocation20 + $0x6f8] sm:$0xf]  ;;  %v12810_v20 = vld [vmem:[#allocation20 + $0x838] sm:$0xf0] }
 0x933   :  { %v8002_v14 = vadd.f32 %v14171_v37, %v7988_v3  ;;  %v11502_v37 = vor.u32 %v12717_v28, %v11501_v17 }
 0x934   :  { %8386 = vmatpush.bf16.msra.mxu2 %v11562_v8  ;;  %8373 = vmatpush.bf16.msrb.mxu1 %v11454_v56  ;;  %v7962_v8 = vadd.f32 %v7961_v11, %v6408_v9  ;;  %v11705_v56 = vld [vmem:[#allocation20 + $0x6e0] sm:$0xf]  ;;  %v8017_v43 = vpop.f32.mrf.mxu3 }
 0x935   :  { %v8016_v25 = vadd.f32 %v8015_v42, %v8002_v14  ;;  %v11957_v42 = vld [vmem:[#allocation20 + $0x8d8] sm:$0xf] }
 0x936   :  { %8399 = vmatpush.bf16.msrb.mxu3 %v11670_v30  ;;  %8413 = vmatpush.bf16.msra.mxu0 %v11766_v22  ;;  %v11742_v30 = vor.u32 %v12777_v52, %v11741_v0  ;;  %v12771_v22 = vld [vmem:[#allocation20 + $0x700] sm:$0xf0]  ;;  %v12768_v0 = vld [vmem:[#allocation20 + $0x6e8] sm:$0xf0]  ;;  %v7976_v9 = vadd.f32 %v14173_v2, %v7962_v8 }
 0x937   :  { %v11718_v57 = vor.u32 %v12771_v22, %v11717_v35  ;;  %v11706_v13 = vor.u32 %v12768_v0, %v11705_v56  ;;  %v12828_v8 = vld [vmem:[#allocation20 + $0x8c8] sm:$0xf0] }
 0x938   :  { %8387 = vmatpush.bf16.msra.mxu2 %v11550_v61  ;;  %8374 = vmatpush.bf16.msrb.mxu1 %v11442_v46  ;;  %v11405_v61 = vld [vmem:[#allocation20 + $0x488] sm:$0xf]  ;;  %v7990_v2 = vadd.f32 %v14176_v45, %v7976_v9  ;;  %v11921_v9 = vld [vmem:[#allocation20 + $0x890] sm:$0xf] }
 0x939   :  { %v11406_v46 = vor.u32 %v12693_v55, %v11405_v61  ;;  %v11825_v61 = vld [vmem:[#allocation20 + $0x7d0] sm:$0xf] }
 0x93a   :  { %8400 = vmatpush.bf16.msrb.mxu3 %v11658_v36  ;;  %8414 = vmatpush.bf16.msra.mxu0 %v11754_v40  ;;  %v12744_v36 = vld [vmem:[#allocation20 + $0x628] sm:$0xf0]  ;;  %v8003_v51 = vpop.f32.mrf.mxu2  ;;  %v11597_v40 = vld [vmem:[#allocation20 + $0x608] sm:$0xf] }
 0x93b   :  { %v11610_v15 = vor.u32 %v12744_v36, %v11609_v7  ;;  %v11598_v11 = vor.u32 %v12741_v32, %v11597_v40  ;;  %v8030_v7 = vadd.f32 %v8029_v33, %v8016_v25  ;;  %v12831_v36 = vld [vmem:[#allocation20 + $0x8e0] sm:$0xf0]  ;;  %v8004_v35 = vadd.f32 %v8003_v51, %v7990_v2  ;;  %v11945_v33 = vld [vmem:[#allocation20 + $0x8c0] sm:$0xf] }
 0x93c   :  { %8388 = vmatpush.bf16.msra.mxu2 %v11538_v1  ;;  %8375 = vmatpush.bf16.msrb.mxu1 %v11430_v5  ;;  %v8045_v5 = vpop.f32.mrf.mxu1  ;;  %v11958_v22 = vor.u32 %v12831_v36, %v11957_v42 }
 0x93d   :  { %v8044_v50 = vadd.f32 %v8043_v19, %v8030_v7  ;;  %v8018_v3 = vadd.f32 %v8017_v43, %v8004_v35  ;;  %v12825_v19 = vld [vmem:[#allocation20 + $0x8b0] sm:$0xf0]  ;;  %v12816_v7 = vld [vmem:[#allocation20 + $0x868] sm:$0xf0] }
 0x93e   :  { %8401 = vmatpush.bf16.msrb.mxu3 %v11646_v63  ;;  %8415 = vmatpush.bf16.msra.mxu0 %v11742_v30  ;;  %v12720_v63 = vld [vmem:[#allocation20 + $0x568] sm:$0xf0]  ;;  %v11969_v30 = vld [vmem:[#allocation20 + $0x8f0] sm:$0xf] }
 0x93f   :  { %v11514_v52 = vor.u32 %v12720_v63, %v11513_v60  ;;  %v11970_v12 = vor.u32 %v12834_v49, %v11969_v30  ;;  %v11946_v63 = vor.u32 %v12828_v8, %v11945_v33  ;;  %v11813_v30 = vld [vmem:[#allocation20 + $0x7b8] sm:$0xf]  ;;  %v12795_v49 = vld [vmem:[#allocation20 + $0x7c0] sm:$0xf0] }
 0x940   :  { %8389 = vmatpush.bf16.msra.mxu2 %v11526_v62  ;;  %8376 = vmatpush.bf16.msrb.mxu1 %v11418_v26  ;;  %v11849_v62 = vld [vmem:[#allocation20 + $0x800] sm:$0xf]  ;;  %v11933_v26 = vld [vmem:[#allocation20 + $0x8a8] sm:$0xf]  ;;  %v11814_v2 = vor.u32 %v12795_v49, %v11813_v30 }
 0x942   :  { %8402 = vmatpush.bf16.msrb.mxu3 %v11634_v47  ;;  %8416 = vmatpush.bf16.msra.mxu0 %v11730_v18  ;;  %v11873_v47 = vld [vmem:[#allocation20 + $0x830] sm:$0xf]  ;;  %v8057_v1 = vpop.f32.mrf.mxu2  ;;  %v12807_v18 = vld [vmem:[#allocation20 + $0x820] sm:$0xf0] }
 0x943   :  { %v11874_v16 = vor.u32 %v12810_v20, %v11873_v47  ;;  %v11862_v45 = vor.u32 %v12807_v18, %v11861_v53  ;;  %v8058_v40 = vadd.f32 %v8057_v1, %v8044_v50  ;;  %v11897_v18 = vld [vmem:[#allocation20 + $0x860] sm:$0xf] }
 0x944   :  { %8390 = vmatpush.bf16.msra.mxu2 %v11514_v52  ;;  %8377 = vmatpush.bf16.msrb.mxu1 %v11406_v46  ;;  %v8099_v56 = vpop.f32.mrf.mxu1  ;;  %v11934_v52 = vor.u32 %v12825_v19, %v11933_v26  ;;  %v11898_v35 = vor.u32 %v12816_v7, %v11897_v18 }
 0x946   :  { %8403 = vmatpush.bf16.msrb.mxu3 %v11622_v10  ;;  %8417 = vmatpush.bf16.msra.mxu0 %v11718_v57  ;;  %v8031_v10 = vpop.f32.mrf.mxu0  ;;  %v11837_v57 = vld [vmem:[#allocation20 + $0x7e8] sm:$0xf] }
 0x947   :  { %8378 = vmatmul.bf16.vlgmr.msrb.gmra.mxu1 %v14110_v27  ;;  %v12801_v27 = vld [vmem:[#allocation20 + $0x7f0] sm:$0xf0]  ;;  %v8032_v32 = vadd.f32 %v8031_v10, %v8018_v3  ;;  %v11801_v10 = vld [vmem:[#allocation20 + $0x7a0] sm:$0xf] }
 0x948   :  { %8391 = vmatpush.bf16.msra.mxu2 %v11502_v37  ;;  %8426 = vmatpush.bf16.msra.mxu1 %v11874_v16 }
 0x949   :  { %v8046_v55 = vadd.f32 %v8045_v5, %v8032_v32 }
 0x94a   :  { %8404 = vmatpush.bf16.msrb.mxu3 %v11610_v15  ;;  %8418 = vmatpush.bf16.msra.mxu0 %v11706_v13  ;;  %v8071_v15 = vpop.f32.mrf.mxu3  ;;  %v8059_v51 = vpop.f32.mrf.mxu2 }
 0x94b   :  { %8392 = vmatmul.bf16.vlgmr.msra.gmra.mxu2 %v14112_v34  ;;  %v8072_v0 = vadd.f32 %v8071_v15, %v8058_v40  ;;  %v11838_v34 = vor.u32 %v12801_v27, %v11837_v57  ;;  %v8060_v25 = vadd.f32 %v8059_v51, %v8046_v55 }
 0x94c   :  { %8440 = vmatpush.bf16.msrb.mxu2 %v11970_v12  ;;  %8427 = vmatpush.bf16.msra.mxu1 %v11862_v45  ;;  %v8101_v16 = vpop.f32.mrf.mxu1  ;;  %v11910_v12 = vor.u32 %v12819_v21, %v11909_v23  ;;  %v11789_v45 = vld [vmem:[#allocation20 + $0x788] sm:$0xf] }
 0x94e   :  { %8405 = vmatpush.bf16.msrb.mxu3 %v11598_v11  ;;  %8419 = vmatpush.bf16.msra.mxu0 %v11694_v29  ;;  %v8085_v60 = vpop.f32.mrf.mxu0  ;;  %v12822_v11 = vld [vmem:[#allocation20 + $0x898] sm:$0xf0]  ;;  %v12792_v29 = vld [vmem:[#allocation20 + $0x7a8] sm:$0xf0] }
 0x94f   :  { %v8086_v14 = vadd.f32 %v8085_v60, %v8072_v0  ;;  %v11922_v20 = vor.u32 %v12822_v11, %v11921_v9  ;;  %v11802_v36 = vor.u32 %v12792_v29, %v11801_v10 }
 0x950   :  { %8441 = vmatpush.bf16.msrb.mxu2 %v11958_v22  ;;  %v12789_v22 = vld [vmem:[#allocation20 + $0x790] sm:$0xf0] }
 0x951   :  { %8406 = vmatmul.bf16.vlgmr.msrb.gmra.mxu3 %v14123_v41  ;;  %8420 = vmatmul.bf16.vlgmr.msra.gmra.mxu0 %v14131_v24  ;;  %v11850_v41 = vor.u32 %v12804_v58, %v11849_v62  ;;  %v12798_v24 = vld [vmem:[#allocation20 + $0x7d8] sm:$0xf0]  ;;  %v8100_v17 = vadd.f32 %v8099_v56, %v8086_v14  ;;  %v11885_v62 = vld [vmem:[#allocation20 + $0x848] sm:$0xf]  ;;  %v12813_v58 = vld [vmem:[#allocation20 + $0x850] sm:$0xf0]  ;;  %v11790_v3 = vor.u32 %v12789_v22, %v11789_v45 }
 0x952   :  { %v11826_v28 = vor.u32 %v12798_v24, %v11825_v61  ;;  %v8073_v47 = vpop.f32.mrf.mxu3  ;;  %v8113_v13 = vpop.f32.mrf.mxu2  ;;  %v11886_v33 = vor.u32 %v12813_v58, %v11885_v62 }
 0x953   :  { %8428 = vmatpush.bf16.msra.mxu1 %v11850_v41  ;;  %v8114_v46 = vadd.f32 %v8113_v13, %v8100_v17  ;;  %v8074_v43 = vadd.f32 %v8073_v47, %v8060_v25 }
 0x954   :  { %8442 = vmatpush.bf16.msrb.mxu2 %v11946_v63  ;;  %v8155_v41 = vpop.f32.mrf.mxu1 }
 0x955   :  { %v8454_v37 = vadd.f32 %v8114_v46, %v13839_v44 }
 0x956   :  { %v8087_v1 = vpop.f32.mrf.mxu0 }
 0x957   :  { %8429 = vmatpush.bf16.msra.mxu1 %v11838_v34  ;;  %v8088_v53 = vadd.f32 %v8087_v1, %v8074_v43  ;;  %8460 = vst [vmem:[#allocation23] sm:$0xff] %v8454_v37 }
 0x958   :  { %8443 = vmatpush.bf16.msrb.mxu2 %v11934_v52 }
 0x959   :  { %v8102_v42 = vadd.f32 %v8101_v16, %v8088_v53 }
 0x95a   :  { %v8115_v5 = vpop.f32.mrf.mxu2  ;;  %v8127_v8 = vpop.f32.mrf.mxu3 }
 0x95b   :  { %8430 = vmatpush.bf16.msra.mxu1 %v11826_v28  ;;  %v8116_v44 = vadd.f32 %v8115_v5, %v8102_v42 }
 0x95c   :  { %8444 = vmatpush.bf16.msrb.mxu2 %v11922_v20  ;;  %v8157_v57 = vpop.f32.mrf.mxu1 }
 0x95d   :  { %v8457_v50 = vadd.f32 %v8116_v44, %v13848_v59  ;;  %v6409_v59 = vperm.slane %v14166_v39, 1 }
 0x95e   :  { %v8141_v15 = vpop.f32.mrf.mxu0 }
 0x95f   :  { %8431 = vmatpush.bf16.msra.mxu1 %v11814_v2  ;;  %8463 = vst [vmem:[#allocation23 + $0x18] sm:$0xff] %v8457_v50  ;;  %v8128_v27 = vadd.f32 %v8127_v8, %v6409_v59  ;;  %v6410_v50 = vperm.slane %v14166_v39, 2 }
 0x960   :  { %8445 = vmatpush.bf16.msrb.mxu2 %v11910_v12 }
 0x961   :  { %v8142_v26 = vadd.f32 %v8141_v15, %v8128_v27 }
 0x962   :  { %v8169_v51 = vpop.f32.mrf.mxu2  ;;  %v8129_v60 = vpop.f32.mrf.mxu3 }
 0x963   :  { %8432 = vmatpush.bf16.msra.mxu1 %v11802_v36  ;;  %v8156_v19 = vadd.f32 %v8155_v41, %v8142_v26  ;;  %v8130_v52 = vadd.f32 %v8129_v60, %v6409_v59 }
 0x964   :  { %8446 = vmatpush.bf16.msrb.mxu2 %v11898_v35  ;;  %v8211_v0 = vpop.f32.mrf.mxu1 }
 0x965   :  { %v8170_v34 = vadd.f32 %v8169_v51, %v8156_v19 }
 0x966   :  { %v8143_v63 = vpop.f32.mrf.mxu0 }
 0x967   :  { %8433 = vmatpush.bf16.msra.mxu1 %v11790_v3  ;;  %v8144_v61 = vadd.f32 %v8143_v63, %v8130_v52 }
 0x968   :  { %8447 = vmatpush.bf16.msrb.mxu2 %v11886_v33 }
 0x96a   :  { %8434 = vmatmul.bf16.vlgmr.msra.gmra.mxu1 %v14140_v31  ;;  %v8183_v40 = vpop.f32.mrf.mxu3  ;;  %v8171_v32 = vpop.f32.mrf.mxu2 }
 0x96b   :  { %8448 = vmatmul.bf16.vlgmr.msrb.gmra.mxu2 %v14142_v4  ;;  %v8184_v24 = vadd.f32 %v8183_v40, %v8170_v34  ;;  %v8158_v4 = vadd.f32 %v8157_v57, %v8144_v61 }
 0x96c   :  { %v8213_v17 = vpop.f32.mrf.mxu1 }
 0x96d   :  { %v8172_v14 = vadd.f32 %v8171_v32, %v8158_v4 }
 0x96e   :  { %v8197_v56 = vpop.f32.mrf.mxu0 }
 0x96f   :  { %v8198_v9 = vadd.f32 %v8197_v56, %v8184_v24 }
 0x971   :  { %v8212_v28 = vadd.f32 %v8211_v0, %v8198_v9 }
 0x972   :  { %v8185_v31 = vpop.f32.mrf.mxu3  ;;  %v8225_v55 = vpop.f32.mrf.mxu2 }
 0x973   :  { %v8186_v47 = vadd.f32 %v8185_v31, %v8172_v14  ;;  %v8226_v13 = vadd.f32 %v8225_v55, %v8212_v28 }
 0x976   :  { %v8199_v11 = vpop.f32.mrf.mxu0 }
 0x977   :  { %v8200_v25 = vadd.f32 %v8199_v11, %v8186_v47 }
 0x979   :  { %v8214_v21 = vadd.f32 %v8213_v17, %v8200_v25 }
 0x97a   :  { %v8239_v20 = vpop.f32.mrf.mxu3  ;;  %v8227_v30 = vpop.f32.mrf.mxu2 }
 0x97b   :  { %v8240_v49 = vadd.f32 %v8239_v20, %v8226_v13  ;;  %v8228_v1 = vadd.f32 %v8227_v30, %v8214_v21 }
 0x97e   :  { %v8253_v46 = vpop.f32.mrf.mxu0 }
 0x97f   :  { %v8254_v43 = vadd.f32 %v8253_v46, %v8240_v49 }
 0x982   :  { %v8241_v2 = vpop.f32.mrf.mxu3 }
 0x983   :  { %v8242_v12 = vadd.f32 %v8241_v2, %v8228_v1 }
 0x984   :  { %v8267_v23 = vpop.f32.mrf.mxu1 }
 0x985   :  { %v8268_v37 = vadd.f32 %v8267_v23, %v8254_v43 }
 0x986   :  { %v8255_v53 = vpop.f32.mrf.mxu0 }
 0x987   :  { %v8256_v7 = vadd.f32 %v8255_v53, %v8242_v12 }
 0x98a   :  { %v8281_v16 = vpop.f32.mrf.mxu2 }
 0x98b   :  { %v8282_v10 = vadd.f32 %v8281_v16, %v8268_v37 }
 0x98c   :  { %v8269_v18 = vpop.f32.mrf.mxu1 }
 0x98d   :  { %v8455_v29 = vadd.f32 %v8282_v10, %v13837_v38  ;;  %v8270_v42 = vadd.f32 %v8269_v18, %v8256_v7 }
 0x98e   :  { %v8309_v22 = vpop.f32.mrf.mxu0 }
 0x98f   :  { %8461 = vst [vmem:[#allocation23 + $0x8] sm:$0xff] %v8455_v29 }
 0x992   :  { %v8283_v36 = vpop.f32.mrf.mxu2 }
 0x993   :  { %v8284_v5 = vadd.f32 %v8283_v36, %v8270_v42 }
 0x994   :  { %v8295_v45 = vpop.f32.mrf.mxu3 }
 0x995   :  { %v8458_v35 = vadd.f32 %v8284_v5, %v13846_v54  ;;  %v8296_v38 = vadd.f32 %v8295_v45, %v6410_v50 }
 0x996   :  { %v8311_v3 = vpop.f32.mrf.mxu0 }
 0x997   :  { %8464 = vst [vmem:[#allocation23 + $0x20] sm:$0xff] %v8458_v35  ;;  %v8310_v15 = vadd.f32 %v8309_v22, %v8296_v38 }
 0x99c   :  { %v8297_v62 = vpop.f32.mrf.mxu3 }
 0x99d   :  { %v8298_v57 = vadd.f32 %v8297_v62, %v6410_v50 }
 0x99f   :  { %v8312_v27 = vadd.f32 %v8311_v3, %v8298_v57 }
 0x9a4   :  { %v8323_v44 = vpop.f32.mrf.mxu1 }
 0x9a5   :  { %v8324_v51 = vadd.f32 %v8323_v44, %v8310_v15 }
 0x9aa   :  { %v8337_v58 = vpop.f32.mrf.mxu2 }
 0x9ab   :  { %v8338_v59 = vadd.f32 %v8337_v58, %v8324_v51 }
 0x9ac   :  { %v8325_v33 = vpop.f32.mrf.mxu1 }
 0x9ad   :  { %v8326_v26 = vadd.f32 %v8325_v33, %v8312_v27 }
 0x9ae   :  { %v8365_v60 = vpop.f32.mrf.mxu0 }
 0x9b2   :  { %v8339_v41 = vpop.f32.mrf.mxu2 }
 0x9b3   :  { %v8340_v19 = vadd.f32 %v8339_v41, %v8326_v26 }
 0x9b4   :  { %v8351_v8 = vpop.f32.mrf.mxu3 }
 0x9b5   :  { %v8352_v54 = vadd.f32 %v8351_v8, %v8338_v59 }
 0x9b6   :  { %v8367_v0 = vpop.f32.mrf.mxu0 }
 0x9b7   :  { %v8366_v56 = vadd.f32 %v8365_v60, %v8352_v54 }
 0x9bc   :  { %v8353_v40 = vpop.f32.mrf.mxu3 }
 0x9bd   :  { %v8354_v52 = vadd.f32 %v8353_v40, %v8340_v19 }
 0x9bf   :  { %v8368_v4 = vadd.f32 %v8367_v0, %v8354_v52 }
 0x9c4   :  { %v8379_v63 = vpop.f32.mrf.mxu1 }
 0x9c5   :  { %v8380_v34 = vadd.f32 %v8379_v63, %v8366_v56 }
 0x9cc   :  { %v8381_v39 = vpop.f32.mrf.mxu1 }
 0x9cd   :  { %v8382_v11 = vadd.f32 %v8381_v39, %v8368_v4 }
 0x9ce   :  { %v8393_v32 = vpop.f32.mrf.mxu2  ;;  %v8421_v14 = vpop.f32.mrf.mxu0 }
 0x9cf   :  { %v8394_v61 = vadd.f32 %v8393_v32, %v8380_v34 }
 0x9d4   :  { %v8407_v24 = vpop.f32.mrf.mxu3 }
 0x9d5   :  { %v8408_v55 = vadd.f32 %v8407_v24, %v8394_v61 }
 0x9d6   :  { %v8395_v31 = vpop.f32.mrf.mxu2  ;;  %v8423_v46 = vpop.f32.mrf.mxu0 }
 0x9d7   :  { %v8396_v17 = vadd.f32 %v8395_v31, %v8382_v11  ;;  %v8422_v28 = vadd.f32 %v8421_v14, %v8408_v55 }
 0x9dc   :  { %v8409_v13 = vpop.f32.mrf.mxu3 }
 0x9dd   :  { %v8410_v30 = vadd.f32 %v8409_v13, %v8396_v17 }
 0x9df   :  { %v8424_v21 = vadd.f32 %v8423_v46, %v8410_v30 }
 0x9e7   :  { %v8435_v9 = vpop.f32.mrf.mxu1 }
 0x9e8   :  { %v8436_v47 = vadd.f32 %v8435_v9, %v8422_v28 }
 0x9ee   :  { %v8449_v20 = vpop.f32.mrf.mxu2 }
 0x9ef   :  { %v8450_v49 = vadd.f32 %v8449_v20, %v8436_v47  ;;  %v8437_v23 = vpop.f32.mrf.mxu1 }
 0x9f0   :  { %v8438_v1 = vadd.f32 %v8437_v23, %v8424_v21 }
 0x9f1   :  { %v8456_v25 = vadd.f32 %v8450_v49, %v13841_v48 }
 0x9f3   :  { %8462 = vst [vmem:[#allocation23 + $0x10] sm:$0xff] %v8456_v25 }
 0x9f6   :  { %v8451_v43 = vpop.f32.mrf.mxu2 }
 0x9f7   :  { %v8452_v37 = vadd.f32 %v8451_v43, %v8438_v1 }
 0x9f9   :  { %v8459_v2 = vadd.f32 %v8452_v37, %v13850_v6 }
 0x9fb   :  { %8465 = vst [vmem:[#allocation23 + $0x28] sm:$0xff] %v8459_v2 }
 0x9fc   :  { %8478 = dma.vmem_to_hbm [thread:$0]  %s8471_s15, 768, %s8473_s26, [#allocation4], %s13290_s29, %s13290_s29, %s13291_s30  }
 0x9fd   :  { %13275 = dma.done.wait [#allocation4], 768  }
 0x9fe   :  { %13276 = vsyncadd [#allocation4], 4294966528 }
 0x9ff   :  { %8483 = vsyncpa [#allocation3], 1 }
 0xa00   :  { %8484 = vsyncpa [#allocation6], 1 }
 0xa01   :  { %8485 = vsyncpa [#allocation9], 1 }
 0xa02   :  { %8486 = vsyncpa [#allocation12], 1 }
 0xa03   :  { %8487 = vsyncpa [#allocation15], 1 }
 0xa04   :  { %8488 = vsyncpa [#allocation18], 1 }
 0xa05   :  { %8489 = vsyncpa [#allocation21], 1 }
 0xa06   :  { %8490 = vsyncpa [#allocation4], 1 }

</bundles_post_ra>
